<compile_context>
chip_gen: v7x
topology: tpu7x:2x2x1
jax: 0.10.0
libtpu: 0.0.40
codegen_flags: <defaults>
</compile_context>

<pallas_src>
import numpy as np
import jax
import jax.numpy as jnp
from jax.experimental import pallas as pl
from jax.experimental.pallas import tpu as pltpu


def make_aspp_kernel(rates, H, W, P, Cin, Cout):
    nr = len(rates)
    nb = nr + 2            # 1x1 branch + dilated branches + pooling branch
    HW = H * W
    inv_hw = 1.0 / float(HW)

    def kernel(*refs):
        xpad_ref  = refs[0]                      # (1, Hp, Wp, Cin)       bf16
        w0_ref    = refs[1]                      # (Cin, Cout)            bf16 (scale folded)
        wr_refs   = refs[2:2 + nr]               # each (9, Cin, Cout)    bf16 (scale folded)
        wpool_ref = refs[2 + nr]                 # (Cin, Cout)            bf16 (scale folded)
        wproj_ref = refs[3 + nr]                 # (nb, Cout, Cout)       bf16 (scale folded)
        bias_ref  = refs[4 + nr]                 # (nb+1, Cout)           f32 folded BN bias
        fused_ref = refs[5 + nr]                 # (1, HW, (nr+2)*Cout)   bf16 lane-dense out
        pool_ref  = refs[6 + nr]                 # (1, 1, Cout)           f32 pooled vector

        cdt = w0_ref.dtype                       # MXU input dtype (bfloat16)
        out_dt = fused_ref.dtype                 # bf16 output dtype [R5]

        def bias_relu(y, j):                     # BN scale already folded into weights
            return jnp.maximum(y + bias_ref[j:j + 1, :], 0.0)

        # Center view of the padded tile, kept in bf16 [R1]; reused by branch 0,
        # the pooling mean and the (ky,kx)=(1,1) tap of every dilated rate.
        xc = xpad_ref[0, P:P + H, P:P + W, :].reshape(HW, Cin)          # (HW, Cin) bf16

        parts = []                               # bf16 branch activations (proj LHS) [R4]

        # ---- branch 0: 1x1 conv + (folded BN) + ReLU ------------------------
        y0 = jnp.dot(xc, w0_ref[...], preferred_element_type=jnp.float32)
        p0 = bias_relu(y0, 0).astype(out_dt)
        fused_ref[0, :, 0:Cout] = p0             # written exactly once [R4]
        parts.append(p0)

        # ---- dilated 3x3 branches: 9 accumulating K=Cin matmuls per rate -----
        # [R9/R11]: no im2col buffer, no lane-narrow concatenates; taps sliced
        # straight off the bf16 padded ref [R1], f32 accumulation on the MXU.
        for bi, r in enumerate(rates):
            wr_ref = wr_refs[bi]
            acc = None
            for ky in range(3):
                for kx in range(3):
                    t = ky * 3 + kx
                    if ky == 1 and kx == 1:
                        tap = xc                                  # reuse center view
                    else:
                        ys = P + (ky - 1) * r
                        xs = P + (kx - 1) * r
                        tap = xpad_ref[0, ys:ys + H, xs:xs + W, :].reshape(HW, Cin)
                    d = jnp.dot(tap, wr_ref[t], preferred_element_type=jnp.float32)
                    acc = d if acc is None else acc + d
            pb = bias_relu(acc, 1 + bi).astype(out_dt)
            fused_ref[0, :, (1 + bi) * Cout:(2 + bi) * Cout] = pb
            parts.append(pb)

        # ---- global-average-pooling branch -----------------------------------
        # Mean as an MXU matmul (f32 accumulation) instead of a VPU/XLU axis-0
        # reduction [R2].  Only the (1, Cout) pooled vector is written; the
        # constant spatial broadcast is reconstructed in the wrapper.
        ones_row = jnp.ones((1, HW), dtype=cdt)
        xsum = jnp.dot(ones_row, xc, preferred_element_type=jnp.float32)   # (1, Cin)
        xmean = (xsum * inv_hw).astype(cdt)
        yp = jnp.dot(xmean, wpool_ref[...], preferred_element_type=jnp.float32)
        yp = bias_relu(yp, 1 + nr)                                         # (1, Cout) f32
        pool_ref[...] = yp.reshape(1, 1, Cout)

        # ---- projection: per-branch accumulating matmuls ----------------------
        # Pooled column handled as a (1,Cout) contribution (never spatially
        # broadcast) [R3]; spatial branches consumed directly (no concat) [R4].
        proj = jnp.dot(yp.astype(cdt), wproj_ref[nb - 1],
                       preferred_element_type=jnp.float32)                 # (1, Cout)
        for i, part in enumerate(parts):
            proj = proj + jnp.dot(part, wproj_ref[i],
                                  preferred_element_type=jnp.float32)
        proj = bias_relu(proj, nb)
        # TODO(synk): nn.Dropout(0.5) is identity in eval mode; training-mode
        # stochastic dropout is not implemented here.
        fused_ref[0, :, (nr + 1) * Cout:] = proj.astype(out_dt)

    return kernel


def prepare_params(params, rates, compute_dtype=jnp.bfloat16):
    """Fold BN scale into the conv weights (wrapper-side), convert to kernel
    layouts and the MXU compute dtype.  Biases stay f32 (applied in-kernel)."""
    nr = len(rates)
    nb = nr + 2
    s = params['bn_scale'].astype(jnp.float32)                    # (nb+1, Cout)
    Cout, Cin = params['w0'].shape[0], params['w0'].shape[1]

    def fold_1x1(w_oi11, j):
        w = w_oi11[:, :, 0, 0] * s[j][:, None]                    # (Cout, Cin_like)
        return jnp.transpose(w, (1, 0)).astype(compute_dtype)     # (Cin_like, Cout)

    wr = []
    for i, _ in enumerate(rates):
        w = params[f'w_rate{i}'] * s[1 + i][:, None, None, None]  # (Cout, Cin, 3, 3)
        w = jnp.transpose(w, (2, 3, 1, 0))                        # (kh, kw, Cin, Cout)
        wr.append(w.reshape(9, Cin, Cout).astype(compute_dtype))  # per-tap blocks

    return {
        'w0': fold_1x1(params['w0'], 0),                          # (Cin, Cout)
        'wr': wr,                                                 # nr x (9, Cin, Cout)
        'w_pool': fold_1x1(params['w_pool'], 1 + nr),             # (Cin, Cout)
        'w_proj': fold_1x1(params['w_proj'], nb).reshape(nb, Cout, Cout),
        'bias': params['bn_bias'].astype(jnp.float32),            # (nb+1, Cout)
    }


def _vmem_limit_bytes(default=64 * 1024 * 1024):
    """Generation-aware VMEM request (~75% of capacity) with a safe fallback [R7]."""
    try:
        cap = int(pltpu.get_tpu_info().vmem_capacity_bytes)
        return max(32 * 1024 * 1024, int(0.75 * cap))
    except Exception:
        return default


def multi_output_aspp_forward(x_nchw, params, rates, compute_dtype=jnp.bfloat16):
    """Mirrors MultiOutputASPP.forward: returns (aspp_features, aspp_pooling, project)."""
    N, Cin, H, W = x_nchw.shape
    Cout = params['w0'].shape[0]
    nr = len(rates)
    nb = nr + 2
    P = max(rates)
    Hp, Wp = H + 2 * P, W + 2 * P
    HW = H * W
    Cf = (nr + 2) * Cout            # fused lane width: (nr+1) branches + projection

    prep = prepare_params(params, rates, compute_dtype)

    x_nhwc = jnp.transpose(x_nchw, (0, 2, 3, 1)).astype(compute_dtype)
    x_pad = jnp.pad(x_nhwc, ((0, 0), (P, P), (P, P), (0, 0)))      # stays bf16 [R1]

    kernel = make_aspp_kernel(rates, H, W, P, Cin, Cout)

    in_specs = [pl.BlockSpec((1, Hp, Wp, Cin), lambda n: (n, 0, 0, 0)),
                pl.BlockSpec((Cin, Cout), lambda n: (0, 0))]
    in_specs += [pl.BlockSpec((9, Cin, Cout), lambda n: (0, 0, 0)) for _ in rates]
    in_specs += [pl.BlockSpec((Cin, Cout), lambda n: (0, 0)),
                 pl.BlockSpec((nb, Cout, Cout), lambda n: (0, 0, 0)),
                 pl.BlockSpec((nb + 1, Cout), lambda n: (0, 0))]
    out_specs = [pl.BlockSpec((1, HW, Cf), lambda n: (n, 0, 0)),
                 pl.BlockSpec((1, 1, Cout), lambda n: (n, 0, 0))]
    out_shape = [jax.ShapeDtypeStruct((N, HW, Cf), compute_dtype),   # bf16 fused out [R5]
                 jax.ShapeDtypeStruct((N, 1, Cout), jnp.float32)]

    in_arrays = [x_pad, prep['w0'], *prep['wr'], prep['w_pool'],
                 prep['w_proj'], prep['bias']]
    flops = 2 * N * HW * (Cin * Cout + nr * 9 * Cin * Cout + (nr + 1) * Cout * Cout) \
        + 2 * N * HW * Cin + 2 * N * Cin * Cout + 2 * N * Cout * Cout
    bytes_accessed = sum(int(a.size) * a.dtype.itemsize for a in in_arrays) \
        + N * HW * Cf * 2 + N * Cout * 4

    fused, pooled = pl.pallas_call(
        kernel,
        out_shape=out_shape,
        grid_spec=pltpu.PrefetchScalarGridSpec(
            num_scalar_prefetch=0,
            grid=(N,),
            in_specs=in_specs,
            out_specs=out_specs),
        compiler_params=pltpu.CompilerParams(
            dimension_semantics=("parallel",),
            vmem_limit_bytes=_vmem_limit_bytes()),
        cost_estimate=pl.CostEstimate(flops=int(flops), transcendentals=0,
                                      bytes_accessed=int(bytes_accessed)),
    )(*in_arrays)

    fused = fused.astype(jnp.float32).reshape(N, H, W, Cf)
    to_nchw = lambda a: jnp.transpose(a, (0, 3, 1, 2))
    aspp_features = [to_nchw(fused[..., i * Cout:(i + 1) * Cout]) for i in range(nr + 1)]
    projected = to_nchw(fused[..., (nr + 1) * Cout:])
    # pooling map is constant over (H, W): broadcast in XLA instead of in-kernel writeback
    pool_nchw = jnp.broadcast_to(
        jnp.transpose(pooled.reshape(N, 1, 1, Cout), (0, 3, 1, 2)), (N, Cout, H, W))
    return aspp_features, pool_nchw, projected


def init_params(key, Cin, rates, Cout):
    """Deterministic synthetic parameters in PyTorch conventions; BN stats folded."""
    nr = len(rates)
    nb = nr + 2
    keys = iter(jax.random.split(key, 64))

    def nrm(shape, scale=0.1):
        return (scale * jax.random.normal(next(keys), shape)).astype(jnp.float32)

    params = {
        'w0': nrm((Cout, Cin, 1, 1)),
        'w_pool': nrm((Cout, Cin, 1, 1)),
        'w_proj': nrm((Cout, nb * Cout, 1, 1)),
    }
    for i in range(nr):
        params[f'w_rate{i}'] = nrm((Cout, Cin, 3, 3))

    eps = 1e-5
    scales, biases = [], []
    for _ in range(nb + 1):          # one BN per branch + one for project
        gamma = 1.0 + nrm((Cout,))
        beta = nrm((Cout,))
        mean = nrm((Cout,))
        var = 1.0 + jnp.abs(nrm((Cout,)))
        s = gamma / jnp.sqrt(var + eps)
        b = beta - mean * s
        scales.append(s)
        biases.append(b)
    params['bn_scale'] = jnp.stack(scales)   # (nb+1, Cout)
    params['bn_bias'] = jnp.stack(biases)
    return params


def reference_forward(x_nchw, prep, rates):
    """Pure-JAX reference (lax.conv_general_dilated) with the same BN folding and
    the same bf16-MXU-input / f32-accumulate mixed precision as the kernel."""
    nr = len(rates)
    nb = nr + 2
    cdt = prep['w0'].dtype
    Cin, Cout = prep['w0'].shape
    bias = prep['bias']

    x = jnp.transpose(x_nchw, (0, 2, 3, 1)).astype(cdt)           # NHWC, compute dtype

    def conv(inp, w_hwio, dilation=1, padding=0):
        return jax.lax.conv_general_dilated(
            inp, w_hwio, window_strides=(1, 1),
            padding=((padding, padding), (padding, padding)),
            rhs_dilation=(dilation, dilation),
            dimension_numbers=('NHWC', 'HWIO', 'NHWC'),
            preferred_element_type=jnp.float32)

    def br(y, j):
        return jnp.maximum(y + bias[j], 0.0)

    feats = [br(conv(x, prep['w0'].reshape(1, 1, Cin, Cout)), 0)]
    for i, r in enumerate(rates):
        w = prep['wr'][i].reshape(3, 3, Cin, Cout)
        feats.append(br(conv(x, w, dilation=r, padding=r), 1 + i))
    xm = jnp.mean(x.astype(jnp.float32), axis=(1, 2), keepdims=True)
    pool = br(conv(xm.astype(cdt), prep['w_pool'].reshape(1, 1, Cin, Cout)), 1 + nr)
    pool = jnp.broadcast_to(pool, x.shape[:3] + (Cout,))
    cat = jnp.concatenate(feats + [pool], axis=-1).astype(cdt)
    proj = br(conv(cat, prep['w_proj'].reshape(1, 1, nb * Cout, Cout)), nb)

    to_nchw = lambda a: jnp.transpose(a, (0, 3, 1, 2))
    return [to_nchw(f) for f in feats], to_nchw(pool), to_nchw(proj)


if __name__ == "__main__":
    key = jax.random.PRNGKey(0)
    kx, kp = jax.random.split(key)

    N, Cin, H, W = 2, 4, 16, 16
    Cout = 32
    rates = (2, 4)

    x = jax.random.normal(kx, (N, Cin, H, W), dtype=jnp.float32)
    params = init_params(kp, Cin, rates, Cout)

    feats, pool, proj = multi_output_aspp_forward(x, params, rates)
    jax.block_until_ready(proj)

    prep = prepare_params(params, rates, jnp.bfloat16)
    rfeats, rpool, rproj = reference_forward(x, prep, rates)
    # Tolerance covers bf16 rounding of the fused kernel output (accumulation is
    # f32; only the stored activations are bf16) on top of bf16 MXU inputs.
    for got, want in zip(list(feats) + [pool, proj], list(rfeats) + [rpool, rproj]):
        np.testing.assert_allclose(np.asarray(got), np.asarray(want),
                                   atol=4e-3, rtol=8e-3)

    print("KERNEL_OK")
</pallas_src>

<mosaic_0001>
module attributes {stable_mosaic.version = 11 : i64} {
  func.func @kernel(%arg0: i32, %arg1: memref<1x24x24x4xbf16, #tpu.memory_space<vmem>>, %arg2: memref<4x32xbf16, #tpu.memory_space<vmem>>, %arg3: memref<9x4x32xbf16, #tpu.memory_space<vmem>>, %arg4: memref<9x4x32xbf16, #tpu.memory_space<vmem>>, %arg5: memref<4x32xbf16, #tpu.memory_space<vmem>>, %arg6: memref<4x32x32xbf16, #tpu.memory_space<vmem>>, %arg7: memref<5x32xf32, #tpu.memory_space<vmem>>, %arg8: memref<1x256x128xbf16, #tpu.memory_space<vmem>>, %arg9: memref<1x1x32xf32, #tpu.memory_space<vmem>>) attributes {dimension_semantics = [#tpu.dimension_semantics<parallel>], iteration_bounds = array<i64: 2>, scalar_prefetch = 0 : i64, scratch_operands = 0 : i64, tpu.core_type = #tpu.core_type<tc>, window_params = [{transform_indices = @transform_0, window_bounds = array<i64: 1, 24, 24, 4>}, {pipeline_mode = #tpu.pipeline_mode<synchronous>, transform_indices = @transform_1, window_bounds = array<i64: 4, 32>}, {pipeline_mode = #tpu.pipeline_mode<synchronous>, transform_indices = @transform_2, window_bounds = array<i64: 9, 4, 32>}, {pipeline_mode = #tpu.pipeline_mode<synchronous>, transform_indices = @transform_3, window_bounds = array<i64: 9, 4, 32>}, {pipeline_mode = #tpu.pipeline_mode<synchronous>, transform_indices = @transform_4, window_bounds = array<i64: 4, 32>}, {pipeline_mode = #tpu.pipeline_mode<synchronous>, transform_indices = @transform_5, window_bounds = array<i64: 4, 32, 32>}, {pipeline_mode = #tpu.pipeline_mode<synchronous>, transform_indices = @transform_6, window_bounds = array<i64: 5, 32>}, {transform_indices = @transform_7, window_bounds = array<i64: 1, 256, 128>}, {transform_indices = @transform_8, window_bounds = array<i64: 1, 1, 32>}]} {
    %c0 = arith.constant 0 : index
    %c4 = arith.constant 4 : index
    %c4_0 = arith.constant 4 : index
    %c0_1 = arith.constant 0 : index
    %0 = vector.load %arg1[%c0, %c4, %c4_0, %c0_1] : memref<1x24x24x4xbf16, #tpu.memory_space<vmem>>, vector<1x16x16x4xbf16>
    %1 = vector.shape_cast %0 : vector<1x16x16x4xbf16> to vector<16x16x4xbf16>
    %2 = vector.shape_cast %1 : vector<16x16x4xbf16> to vector<256x4xbf16>
    %c0_2 = arith.constant 0 : index
    %c0_3 = arith.constant 0 : index
    %3 = vector.load %arg2[%c0_2, %c0_3] : memref<4x32xbf16, #tpu.memory_space<vmem>>, vector<4x32xbf16>
    %cst = arith.constant dense<0.000000e+00> : vector<256x32xf32>
    %4 = tpu.matmul %2, %3, %cst {dimension_numbers = #tpu.dot_dimension_numbers<[1], [0], [0], [1], [0, 0, 1, 1], [], []>} : vector<256x4xbf16>, vector<4x32xbf16>, vector<256x32xf32> -> vector<256x32xf32>
    %c0_4 = arith.constant 0 : index
    %c0_5 = arith.constant 0 : index
    %5 = vector.load %arg7[%c0_4, %c0_5] : memref<5x32xf32, #tpu.memory_space<vmem>>, vector<1x32xf32>
    %6 = vector.broadcast %5 : vector<1x32xf32> to vector<256x32xf32>
    %7 = arith.addf %4, %6 : vector<256x32xf32>
    %cst_6 = arith.constant 0.000000e+00 : f32
    %8 = vector.broadcast %cst_6 : f32 to vector<256x32xf32>
    %9 = arith.maximumf %7, %8 : vector<256x32xf32>
    %10 = arith.truncf %9 : vector<256x32xf32> to vector<256x32xbf16>
    %c0_7 = arith.constant 0 : index
    %c0_8 = arith.constant 0 : index
    %c0_9 = arith.constant 0 : index
    %11 = vector.load %arg8[%c0_7, %c0_8, %c0_9] : memref<1x256x128xbf16, #tpu.memory_space<vmem>>, vector<1x256x32xbf16>
    %12 = vector.shape_cast %11 : vector<1x256x32xbf16> to vector<256x32xbf16>
    %13 = vector.shape_cast %10 : vector<256x32xbf16> to vector<1x256x32xbf16>
    tpu.vector_store %arg8[%c0_7, %c0_8, %c0_9], %13 {strides = array<i32>} : memref<1x256x128xbf16, #tpu.memory_space<vmem>>, vector<1x256x32xbf16>,
    %c0_10 = arith.constant 0 : index
    %c2 = arith.constant 2 : index
    %c2_11 = arith.constant 2 : index
    %c0_12 = arith.constant 0 : index
    %14 = vector.load %arg1[%c0_10, %c2, %c2_11, %c0_12] : memref<1x24x24x4xbf16, #tpu.memory_space<vmem>>, vector<1x16x16x4xbf16>
    %15 = vector.shape_cast %14 : vector<1x16x16x4xbf16> to vector<16x16x4xbf16>
    %16 = vector.shape_cast %15 : vector<16x16x4xbf16> to vector<256x4xbf16>
    %c0_13 = arith.constant 0 : index
    %c0_14 = arith.constant 0 : index
    %c0_15 = arith.constant 0 : index
    %17 = vector.load %arg3[%c0_13, %c0_14, %c0_15] : memref<9x4x32xbf16, #tpu.memory_space<vmem>>, vector<1x4x32xbf16>
    %18 = vector.shape_cast %17 : vector<1x4x32xbf16> to vector<4x32xbf16>
    %cst_16 = arith.constant dense<0.000000e+00> : vector<256x32xf32>
    %19 = tpu.matmul %16, %18, %cst_16 {dimension_numbers = #tpu.dot_dimension_numbers<[1], [0], [0], [1], [0, 0, 1, 1], [], []>} : vector<256x4xbf16>, vector<4x32xbf16>, vector<256x32xf32> -> vector<256x32xf32>
    %c0_17 = arith.constant 0 : index
    %c2_18 = arith.constant 2 : index
    %c4_19 = arith.constant 4 : index
    %c0_20 = arith.constant 0 : index
    %20 = vector.load %arg1[%c0_17, %c2_18, %c4_19, %c0_20] : memref<1x24x24x4xbf16, #tpu.memory_space<vmem>>, vector<1x16x16x4xbf16>
    %21 = vector.shape_cast %20 : vector<1x16x16x4xbf16> to vector<16x16x4xbf16>
    %22 = vector.shape_cast %21 : vector<16x16x4xbf16> to vector<256x4xbf16>
    %c1 = arith.constant 1 : index
    %c0_21 = arith.constant 0 : index
    %c0_22 = arith.constant 0 : index
    %23 = vector.load %arg3[%c1, %c0_21, %c0_22] : memref<9x4x32xbf16, #tpu.memory_space<vmem>>, vector<1x4x32xbf16>
    %24 = vector.shape_cast %23 : vector<1x4x32xbf16> to vector<4x32xbf16>
    %cst_23 = arith.constant dense<0.000000e+00> : vector<256x32xf32>
    %25 = tpu.matmul %22, %24, %cst_23 {dimension_numbers = #tpu.dot_dimension_numbers<[1], [0], [0], [1], [0, 0, 1, 1], [], []>} : vector<256x4xbf16>, vector<4x32xbf16>, vector<256x32xf32> -> vector<256x32xf32>
    %26 = arith.addf %19, %25 : vector<256x32xf32>
    %c0_24 = arith.constant 0 : index
    %c2_25 = arith.constant 2 : index
    %c6 = arith.constant 6 : index
    %c0_26 = arith.constant 0 : index
    %27 = vector.load %arg1[%c0_24, %c2_25, %c6, %c0_26] : memref<1x24x24x4xbf16, #tpu.memory_space<vmem>>, vector<1x16x16x4xbf16>
    %28 = vector.shape_cast %27 : vector<1x16x16x4xbf16> to vector<16x16x4xbf16>
    %29 = vector.shape_cast %28 : vector<16x16x4xbf16> to vector<256x4xbf16>
    %c2_27 = arith.constant 2 : index
    %c0_28 = arith.constant 0 : index
    %c0_29 = arith.constant 0 : index
    %30 = vector.load %arg3[%c2_27, %c0_28, %c0_29] : memref<9x4x32xbf16, #tpu.memory_space<vmem>>, vector<1x4x32xbf16>
    %31 = vector.shape_cast %30 : vector<1x4x32xbf16> to vector<4x32xbf16>
    %cst_30 = arith.constant dense<0.000000e+00> : vector<256x32xf32>
    %32 = tpu.matmul %29, %31, %cst_30 {dimension_numbers = #tpu.dot_dimension_numbers<[1], [0], [0], [1], [0, 0, 1, 1], [], []>} : vector<256x4xbf16>, vector<4x32xbf16>, vector<256x32xf32> -> vector<256x32xf32>
    %33 = arith.addf %26, %32 : vector<256x32xf32>
    %c0_31 = arith.constant 0 : index
    %c4_32 = arith.constant 4 : index
    %c2_33 = arith.constant 2 : index
    %c0_34 = arith.constant 0 : index
    %34 = vector.load %arg1[%c0_31, %c4_32, %c2_33, %c0_34] : memref<1x24x24x4xbf16, #tpu.memory_space<vmem>>, vector<1x16x16x4xbf16>
    %35 = vector.shape_cast %34 : vector<1x16x16x4xbf16> to vector<16x16x4xbf16>
    %36 = vector.shape_cast %35 : vector<16x16x4xbf16> to vector<256x4xbf16>
    %c3 = arith.constant 3 : index
    %c0_35 = arith.constant 0 : index
    %c0_36 = arith.constant 0 : index
    %37 = vector.load %arg3[%c3, %c0_35, %c0_36] : memref<9x4x32xbf16, #tpu.memory_space<vmem>>, vector<1x4x32xbf16>
    %38 = vector.shape_cast %37 : vector<1x4x32xbf16> to vector<4x32xbf16>
    %cst_37 = arith.constant dense<0.000000e+00> : vector<256x32xf32>
    %39 = tpu.matmul %36, %38, %cst_37 {dimension_numbers = #tpu.dot_dimension_numbers<[1], [0], [0], [1], [0, 0, 1, 1], [], []>} : vector<256x4xbf16>, vector<4x32xbf16>, vector<256x32xf32> -> vector<256x32xf32>
    %40 = arith.addf %33, %39 : vector<256x32xf32>
    %c4_38 = arith.constant 4 : index
    %c0_39 = arith.constant 0 : index
    %c0_40 = arith.constant 0 : index
    %41 = vector.load %arg3[%c4_38, %c0_39, %c0_40] : memref<9x4x32xbf16, #tpu.memory_space<vmem>>, vector<1x4x32xbf16>
    %42 = vector.shape_cast %41 : vector<1x4x32xbf16> to vector<4x32xbf16>
    %cst_41 = arith.constant dense<0.000000e+00> : vector<256x32xf32>
    %43 = tpu.matmul %2, %42, %cst_41 {dimension_numbers = #tpu.dot_dimension_numbers<[1], [0], [0], [1], [0, 0, 1, 1], [], []>} : vector<256x4xbf16>, vector<4x32xbf16>, vector<256x32xf32> -> vector<256x32xf32>
    %44 = arith.addf %40, %43 : vector<256x32xf32>
    %c0_42 = arith.constant 0 : index
    %c4_43 = arith.constant 4 : index
    %c6_44 = arith.constant 6 : index
    %c0_45 = arith.constant 0 : index
    %45 = vector.load %arg1[%c0_42, %c4_43, %c6_44, %c0_45] : memref<1x24x24x4xbf16, #tpu.memory_space<vmem>>, vector<1x16x16x4xbf16>
    %46 = vector.shape_cast %45 : vector<1x16x16x4xbf16> to vector<16x16x4xbf16>
    %47 = vector.shape_cast %46 : vector<16x16x4xbf16> to vector<256x4xbf16>
    %c5 = arith.constant 5 : index
    %c0_46 = arith.constant 0 : index
    %c0_47 = arith.constant 0 : index
    %48 = vector.load %arg3[%c5, %c0_46, %c0_47] : memref<9x4x32xbf16, #tpu.memory_space<vmem>>, vector<1x4x32xbf16>
    %49 = vector.shape_cast %48 : vector<1x4x32xbf16> to vector<4x32xbf16>
    %cst_48 = arith.constant dense<0.000000e+00> : vector<256x32xf32>
    %50 = tpu.matmul %47, %49, %cst_48 {dimension_numbers = #tpu.dot_dimension_numbers<[1], [0], [0], [1], [0, 0, 1, 1], [], []>} : vector<256x4xbf16>, vector<4x32xbf16>, vector<256x32xf32> -> vector<256x32xf32>
    %51 = arith.addf %44, %50 : vector<256x32xf32>
    %c0_49 = arith.constant 0 : index
    %c6_50 = arith.constant 6 : index
    %c2_51 = arith.constant 2 : index
    %c0_52 = arith.constant 0 : index
    %52 = vector.load %arg1[%c0_49, %c6_50, %c2_51, %c0_52] : memref<1x24x24x4xbf16, #tpu.memory_space<vmem>>, vector<1x16x16x4xbf16>
    %53 = vector.shape_cast %52 : vector<1x16x16x4xbf16> to vector<16x16x4xbf16>
    %54 = vector.shape_cast %53 : vector<16x16x4xbf16> to vector<256x4xbf16>
    %c6_53 = arith.constant 6 : index
    %c0_54 = arith.constant 0 : index
    %c0_55 = arith.constant 0 : index
    %55 = vector.load %arg3[%c6_53, %c0_54, %c0_55] : memref<9x4x32xbf16, #tpu.memory_space<vmem>>, vector<1x4x32xbf16>
    %56 = vector.shape_cast %55 : vector<1x4x32xbf16> to vector<4x32xbf16>
    %cst_56 = arith.constant dense<0.000000e+00> : vector<256x32xf32>
    %57 = tpu.matmul %54, %56, %cst_56 {dimension_numbers = #tpu.dot_dimension_numbers<[1], [0], [0], [1], [0, 0, 1, 1], [], []>} : vector<256x4xbf16>, vector<4x32xbf16>, vector<256x32xf32> -> vector<256x32xf32>
    %58 = arith.addf %51, %57 : vector<256x32xf32>
    %c0_57 = arith.constant 0 : index
    %c6_58 = arith.constant 6 : index
    %c4_59 = arith.constant 4 : index
    %c0_60 = arith.constant 0 : index
    %59 = vector.load %arg1[%c0_57, %c6_58, %c4_59, %c0_60] : memref<1x24x24x4xbf16, #tpu.memory_space<vmem>>, vector<1x16x16x4xbf16>
    %60 = vector.shape_cast %59 : vector<1x16x16x4xbf16> to vector<16x16x4xbf16>
    %61 = vector.shape_cast %60 : vector<16x16x4xbf16> to vector<256x4xbf16>
    %c7 = arith.constant 7 : index
    %c0_61 = arith.constant 0 : index
    %c0_62 = arith.constant 0 : index
    %62 = vector.load %arg3[%c7, %c0_61, %c0_62] : memref<9x4x32xbf16, #tpu.memory_space<vmem>>, vector<1x4x32xbf16>
    %63 = vector.shape_cast %62 : vector<1x4x32xbf16> to vector<4x32xbf16>
    %cst_63 = arith.constant dense<0.000000e+00> : vector<256x32xf32>
    %64 = tpu.matmul %61, %63, %cst_63 {dimension_numbers = #tpu.dot_dimension_numbers<[1], [0], [0], [1], [0, 0, 1, 1], [], []>} : vector<256x4xbf16>, vector<4x32xbf16>, vector<256x32xf32> -> vector<256x32xf32>
    %65 = arith.addf %58, %64 : vector<256x32xf32>
    %c0_64 = arith.constant 0 : index
    %c6_65 = arith.constant 6 : index
    %c6_66 = arith.constant 6 : index
    %c0_67 = arith.constant 0 : index
    %66 = vector.load %arg1[%c0_64, %c6_65, %c6_66, %c0_67] : memref<1x24x24x4xbf16, #tpu.memory_space<vmem>>, vector<1x16x16x4xbf16>
    %67 = vector.shape_cast %66 : vector<1x16x16x4xbf16> to vector<16x16x4xbf16>
    %68 = vector.shape_cast %67 : vector<16x16x4xbf16> to vector<256x4xbf16>
    %c8 = arith.constant 8 : index
    %c0_68 = arith.constant 0 : index
    %c0_69 = arith.constant 0 : index
    %69 = vector.load %arg3[%c8, %c0_68, %c0_69] : memref<9x4x32xbf16, #tpu.memory_space<vmem>>, vector<1x4x32xbf16>
    %70 = vector.shape_cast %69 : vector<1x4x32xbf16> to vector<4x32xbf16>
    %cst_70 = arith.constant dense<0.000000e+00> : vector<256x32xf32>
    %71 = tpu.matmul %68, %70, %cst_70 {dimension_numbers = #tpu.dot_dimension_numbers<[1], [0], [0], [1], [0, 0, 1, 1], [], []>} : vector<256x4xbf16>, vector<4x32xbf16>, vector<256x32xf32> -> vector<256x32xf32>
    %72 = arith.addf %65, %71 : vector<256x32xf32>
    %c1_71 = arith.constant 1 : index
    %c0_72 = arith.constant 0 : index
    %73 = vector.load %arg7[%c1_71, %c0_72] : memref<5x32xf32, #tpu.memory_space<vmem>>, vector<1x32xf32>
    %74 = vector.broadcast %73 : vector<1x32xf32> to vector<256x32xf32>
    %75 = arith.addf %72, %74 : vector<256x32xf32>
    %cst_73 = arith.constant 0.000000e+00 : f32
    %76 = vector.broadcast %cst_73 : f32 to vector<256x32xf32>
    %77 = arith.maximumf %75, %76 : vector<256x32xf32>
    %78 = arith.truncf %77 : vector<256x32xf32> to vector<256x32xbf16>
    %c0_74 = arith.constant 0 : index
    %c0_75 = arith.constant 0 : index
    %c32 = arith.constant 32 : index
    %79 = vector.load %arg8[%c0_74, %c0_75, %c32] : memref<1x256x128xbf16, #tpu.memory_space<vmem>>, vector<1x256x32xbf16>
    %80 = vector.shape_cast %79 : vector<1x256x32xbf16> to vector<256x32xbf16>
    %81 = vector.shape_cast %78 : vector<256x32xbf16> to vector<1x256x32xbf16>
    tpu.vector_store %arg8[%c0_74, %c0_75, %c32], %81 {strides = array<i32>} : memref<1x256x128xbf16, #tpu.memory_space<vmem>>, vector<1x256x32xbf16>,
    %c0_76 = arith.constant 0 : index
    %c0_77 = arith.constant 0 : index
    %c0_78 = arith.constant 0 : index
    %c0_79 = arith.constant 0 : index
    %82 = vector.load %arg1[%c0_76, %c0_77, %c0_78, %c0_79] : memref<1x24x24x4xbf16, #tpu.memory_space<vmem>>, vector<1x16x16x4xbf16>
    %83 = vector.shape_cast %82 : vector<1x16x16x4xbf16> to vector<16x16x4xbf16>
    %84 = vector.shape_cast %83 : vector<16x16x4xbf16> to vector<256x4xbf16>
    %c0_80 = arith.constant 0 : index
    %c0_81 = arith.constant 0 : index
    %c0_82 = arith.constant 0 : index
    %85 = vector.load %arg4[%c0_80, %c0_81, %c0_82] : memref<9x4x32xbf16, #tpu.memory_space<vmem>>, vector<1x4x32xbf16>
    %86 = vector.shape_cast %85 : vector<1x4x32xbf16> to vector<4x32xbf16>
    %cst_83 = arith.constant dense<0.000000e+00> : vector<256x32xf32>
    %87 = tpu.matmul %84, %86, %cst_83 {dimension_numbers = #tpu.dot_dimension_numbers<[1], [0], [0], [1], [0, 0, 1, 1], [], []>} : vector<256x4xbf16>, vector<4x32xbf16>, vector<256x32xf32> -> vector<256x32xf32>
    %c0_84 = arith.constant 0 : index
    %c0_85 = arith.constant 0 : index
    %c4_86 = arith.constant 4 : index
    %c0_87 = arith.constant 0 : index
    %88 = vector.load %arg1[%c0_84, %c0_85, %c4_86, %c0_87] : memref<1x24x24x4xbf16, #tpu.memory_space<vmem>>, vector<1x16x16x4xbf16>
    %89 = vector.shape_cast %88 : vector<1x16x16x4xbf16> to vector<16x16x4xbf16>
    %90 = vector.shape_cast %89 : vector<16x16x4xbf16> to vector<256x4xbf16>
    %c1_88 = arith.constant 1 : index
    %c0_89 = arith.constant 0 : index
    %c0_90 = arith.constant 0 : index
    %91 = vector.load %arg4[%c1_88, %c0_89, %c0_90] : memref<9x4x32xbf16, #tpu.memory_space<vmem>>, vector<1x4x32xbf16>
    %92 = vector.shape_cast %91 : vector<1x4x32xbf16> to vector<4x32xbf16>
    %cst_91 = arith.constant dense<0.000000e+00> : vector<256x32xf32>
    %93 = tpu.matmul %90, %92, %cst_91 {dimension_numbers = #tpu.dot_dimension_numbers<[1], [0], [0], [1], [0, 0, 1, 1], [], []>} : vector<256x4xbf16>, vector<4x32xbf16>, vector<256x32xf32> -> vector<256x32xf32>
    %94 = arith.addf %87, %93 : vector<256x32xf32>
    %c0_92 = arith.constant 0 : index
    %c0_93 = arith.constant 0 : index
    %c8_94 = arith.constant 8 : index
    %c0_95 = arith.constant 0 : index
    %95 = vector.load %arg1[%c0_92, %c0_93, %c8_94, %c0_95] : memref<1x24x24x4xbf16, #tpu.memory_space<vmem>>, vector<1x16x16x4xbf16>
    %96 = vector.shape_cast %95 : vector<1x16x16x4xbf16> to vector<16x16x4xbf16>
    %97 = vector.shape_cast %96 : vector<16x16x4xbf16> to vector<256x4xbf16>
    %c2_96 = arith.constant 2 : index
    %c0_97 = arith.constant 0 : index
    %c0_98 = arith.constant 0 : index
    %98 = vector.load %arg4[%c2_96, %c0_97, %c0_98] : memref<9x4x32xbf16, #tpu.memory_space<vmem>>, vector<1x4x32xbf16>
    %99 = vector.shape_cast %98 : vector<1x4x32xbf16> to vector<4x32xbf16>
    %cst_99 = arith.constant dense<0.000000e+00> : vector<256x32xf32>
    %100 = tpu.matmul %97, %99, %cst_99 {dimension_numbers = #tpu.dot_dimension_numbers<[1], [0], [0], [1], [0, 0, 1, 1], [], []>} : vector<256x4xbf16>, vector<4x32xbf16>, vector<256x32xf32> -> vector<256x32xf32>
    %101 = arith.addf %94, %100 : vector<256x32xf32>
    %c0_100 = arith.constant 0 : index
    %c4_101 = arith.constant 4 : index
    %c0_102 = arith.constant 0 : index
    %c0_103 = arith.constant 0 : index
    %102 = vector.load %arg1[%c0_100, %c4_101, %c0_102, %c0_103] : memref<1x24x24x4xbf16, #tpu.memory_space<vmem>>, vector<1x16x16x4xbf16>
    %103 = vector.shape_cast %102 : vector<1x16x16x4xbf16> to vector<16x16x4xbf16>
    %104 = vector.shape_cast %103 : vector<16x16x4xbf16> to vector<256x4xbf16>
    %c3_104 = arith.constant 3 : index
    %c0_105 = arith.constant 0 : index
    %c0_106 = arith.constant 0 : index
    %105 = vector.load %arg4[%c3_104, %c0_105, %c0_106] : memref<9x4x32xbf16, #tpu.memory_space<vmem>>, vector<1x4x32xbf16>
    %106 = vector.shape_cast %105 : vector<1x4x32xbf16> to vector<4x32xbf16>
    %cst_107 = arith.constant dense<0.000000e+00> : vector<256x32xf32>
    %107 = tpu.matmul %104, %106, %cst_107 {dimension_numbers = #tpu.dot_dimension_numbers<[1], [0], [0], [1], [0, 0, 1, 1], [], []>} : vector<256x4xbf16>, vector<4x32xbf16>, vector<256x32xf32> -> vector<256x32xf32>
    %108 = arith.addf %101, %107 : vector<256x32xf32>
    %c4_108 = arith.constant 4 : index
    %c0_109 = arith.constant 0 : index
    %c0_110 = arith.constant 0 : index
    %109 = vector.load %arg4[%c4_108, %c0_109, %c0_110] : memref<9x4x32xbf16, #tpu.memory_space<vmem>>, vector<1x4x32xbf16>
    %110 = vector.shape_cast %109 : vector<1x4x32xbf16> to vector<4x32xbf16>
    %cst_111 = arith.constant dense<0.000000e+00> : vector<256x32xf32>
    %111 = tpu.matmul %2, %110, %cst_111 {dimension_numbers = #tpu.dot_dimension_numbers<[1], [0], [0], [1], [0, 0, 1, 1], [], []>} : vector<256x4xbf16>, vector<4x32xbf16>, vector<256x32xf32> -> vector<256x32xf32>
    %112 = arith.addf %108, %111 : vector<256x32xf32>
    %c0_112 = arith.constant 0 : index
    %c4_113 = arith.constant 4 : index
    %c8_114 = arith.constant 8 : index
    %c0_115 = arith.constant 0 : index
    %113 = vector.load %arg1[%c0_112, %c4_113, %c8_114, %c0_115] : memref<1x24x24x4xbf16, #tpu.memory_space<vmem>>, vector<1x16x16x4xbf16>
    %114 = vector.shape_cast %113 : vector<1x16x16x4xbf16> to vector<16x16x4xbf16>
    %115 = vector.shape_cast %114 : vector<16x16x4xbf16> to vector<256x4xbf16>
    %c5_116 = arith.constant 5 : index
    %c0_117 = arith.constant 0 : index
    %c0_118 = arith.constant 0 : index
    %116 = vector.load %arg4[%c5_116, %c0_117, %c0_118] : memref<9x4x32xbf16, #tpu.memory_space<vmem>>, vector<1x4x32xbf16>
    %117 = vector.shape_cast %116 : vector<1x4x32xbf16> to vector<4x32xbf16>
    %cst_119 = arith.constant dense<0.000000e+00> : vector<256x32xf32>
    %118 = tpu.matmul %115, %117, %cst_119 {dimension_numbers = #tpu.dot_dimension_numbers<[1], [0], [0], [1], [0, 0, 1, 1], [], []>} : vector<256x4xbf16>, vector<4x32xbf16>, vector<256x32xf32> -> vector<256x32xf32>
    %119 = arith.addf %112, %118 : vector<256x32xf32>
    %c0_120 = arith.constant 0 : index
    %c8_121 = arith.constant 8 : index
    %c0_122 = arith.constant 0 : index
    %c0_123 = arith.constant 0 : index
    %120 = vector.load %arg1[%c0_120, %c8_121, %c0_122, %c0_123] : memref<1x24x24x4xbf16, #tpu.memory_space<vmem>>, vector<1x16x16x4xbf16>
    %121 = vector.shape_cast %120 : vector<1x16x16x4xbf16> to vector<16x16x4xbf16>
    %122 = vector.shape_cast %121 : vector<16x16x4xbf16> to vector<256x4xbf16>
    %c6_124 = arith.constant 6 : index
    %c0_125 = arith.constant 0 : index
    %c0_126 = arith.constant 0 : index
    %123 = vector.load %arg4[%c6_124, %c0_125, %c0_126] : memref<9x4x32xbf16, #tpu.memory_space<vmem>>, vector<1x4x32xbf16>
    %124 = vector.shape_cast %123 : vector<1x4x32xbf16> to vector<4x32xbf16>
    %cst_127 = arith.constant dense<0.000000e+00> : vector<256x32xf32>
    %125 = tpu.matmul %122, %124, %cst_127 {dimension_numbers = #tpu.dot_dimension_numbers<[1], [0], [0], [1], [0, 0, 1, 1], [], []>} : vector<256x4xbf16>, vector<4x32xbf16>, vector<256x32xf32> -> vector<256x32xf32>
    %126 = arith.addf %119, %125 : vector<256x32xf32>
    %c0_128 = arith.constant 0 : index
    %c8_129 = arith.constant 8 : index
    %c4_130 = arith.constant 4 : index
    %c0_131 = arith.constant 0 : index
    %127 = vector.load %arg1[%c0_128, %c8_129, %c4_130, %c0_131] : memref<1x24x24x4xbf16, #tpu.memory_space<vmem>>, vector<1x16x16x4xbf16>
    %128 = vector.shape_cast %127 : vector<1x16x16x4xbf16> to vector<16x16x4xbf16>
    %129 = vector.shape_cast %128 : vector<16x16x4xbf16> to vector<256x4xbf16>
    %c7_132 = arith.constant 7 : index
    %c0_133 = arith.constant 0 : index
    %c0_134 = arith.constant 0 : index
    %130 = vector.load %arg4[%c7_132, %c0_133, %c0_134] : memref<9x4x32xbf16, #tpu.memory_space<vmem>>, vector<1x4x32xbf16>
    %131 = vector.shape_cast %130 : vector<1x4x32xbf16> to vector<4x32xbf16>
    %cst_135 = arith.constant dense<0.000000e+00> : vector<256x32xf32>
    %132 = tpu.matmul %129, %131, %cst_135 {dimension_numbers = #tpu.dot_dimension_numbers<[1], [0], [0], [1], [0, 0, 1, 1], [], []>} : vector<256x4xbf16>, vector<4x32xbf16>, vector<256x32xf32> -> vector<256x32xf32>
    %133 = arith.addf %126, %132 : vector<256x32xf32>
    %c0_136 = arith.constant 0 : index
    %c8_137 = arith.constant 8 : index
    %c8_138 = arith.constant 8 : index
    %c0_139 = arith.constant 0 : index
    %134 = vector.load %arg1[%c0_136, %c8_137, %c8_138, %c0_139] : memref<1x24x24x4xbf16, #tpu.memory_space<vmem>>, vector<1x16x16x4xbf16>
    %135 = vector.shape_cast %134 : vector<1x16x16x4xbf16> to vector<16x16x4xbf16>
    %136 = vector.shape_cast %135 : vector<16x16x4xbf16> to vector<256x4xbf16>
    %c8_140 = arith.constant 8 : index
    %c0_141 = arith.constant 0 : index
    %c0_142 = arith.constant 0 : index
    %137 = vector.load %arg4[%c8_140, %c0_141, %c0_142] : memref<9x4x32xbf16, #tpu.memory_space<vmem>>, vector<1x4x32xbf16>
    %138 = vector.shape_cast %137 : vector<1x4x32xbf16> to vector<4x32xbf16>
    %cst_143 = arith.constant dense<0.000000e+00> : vector<256x32xf32>
    %139 = tpu.matmul %136, %138, %cst_143 {dimension_numbers = #tpu.dot_dimension_numbers<[1], [0], [0], [1], [0, 0, 1, 1], [], []>} : vector<256x4xbf16>, vector<4x32xbf16>, vector<256x32xf32> -> vector<256x32xf32>
    %140 = arith.addf %133, %139 : vector<256x32xf32>
    %c2_144 = arith.constant 2 : index
    %c0_145 = arith.constant 0 : index
    %141 = vector.load %arg7[%c2_144, %c0_145] : memref<5x32xf32, #tpu.memory_space<vmem>>, vector<1x32xf32>
    %142 = vector.broadcast %141 : vector<1x32xf32> to vector<256x32xf32>
    %143 = arith.addf %140, %142 : vector<256x32xf32>
    %cst_146 = arith.constant 0.000000e+00 : f32
    %144 = vector.broadcast %cst_146 : f32 to vector<256x32xf32>
    %145 = arith.maximumf %143, %144 : vector<256x32xf32>
    %146 = arith.truncf %145 : vector<256x32xf32> to vector<256x32xbf16>
    %c0_147 = arith.constant 0 : index
    %c0_148 = arith.constant 0 : index
    %c64 = arith.constant 64 : index
    %147 = vector.load %arg8[%c0_147, %c0_148, %c64] : memref<1x256x128xbf16, #tpu.memory_space<vmem>>, vector<1x256x32xbf16>
    %148 = vector.shape_cast %147 : vector<1x256x32xbf16> to vector<256x32xbf16>
    %149 = vector.shape_cast %146 : vector<256x32xbf16> to vector<1x256x32xbf16>
    tpu.vector_store %arg8[%c0_147, %c0_148, %c64], %149 {strides = array<i32>} : memref<1x256x128xbf16, #tpu.memory_space<vmem>>, vector<1x256x32xbf16>,
    %cst_149 = arith.constant 1.000000e+00 : bf16
    %150 = vector.broadcast %cst_149 : bf16 to vector<1x256xbf16>
    %cst_150 = arith.constant dense<0.000000e+00> : vector<1x4xf32>
    %151 = tpu.matmul %150, %2, %cst_150 {dimension_numbers = #tpu.dot_dimension_numbers<[1], [0], [0], [1], [0, 0, 1, 1], [], []>} : vector<1x256xbf16>, vector<256x4xbf16>, vector<1x4xf32> -> vector<1x4xf32>
    %cst_151 = arith.constant 3.906250e-03 : f32
    %152 = vector.broadcast %cst_151 : f32 to vector<1x4xf32>
    %153 = arith.mulf %151, %152 : vector<1x4xf32>
    %154 = arith.truncf %153 : vector<1x4xf32> to vector<1x4xbf16>
    %c0_152 = arith.constant 0 : index
    %c0_153 = arith.constant 0 : index
    %155 = vector.load %arg5[%c0_152, %c0_153] : memref<4x32xbf16, #tpu.memory_space<vmem>>, vector<4x32xbf16>
    %cst_154 = arith.constant dense<0.000000e+00> : vector<1x32xf32>
    %156 = tpu.matmul %154, %155, %cst_154 {dimension_numbers = #tpu.dot_dimension_numbers<[1], [0], [0], [1], [0, 0, 1, 1], [], []>} : vector<1x4xbf16>, vector<4x32xbf16>, vector<1x32xf32> -> vector<1x32xf32>
    %c3_155 = arith.constant 3 : index
    %c0_156 = arith.constant 0 : index
    %157 = vector.load %arg7[%c3_155, %c0_156] : memref<5x32xf32, #tpu.memory_space<vmem>>, vector<1x32xf32>
    %158 = arith.addf %156, %157 : vector<1x32xf32>
    %cst_157 = arith.constant 0.000000e+00 : f32
    %159 = vector.broadcast %cst_157 : f32 to vector<1x32xf32>
    %160 = arith.maximumf %158, %159 : vector<1x32xf32>
    %161 = vector.shape_cast %160 : vector<1x32xf32> to vector<1x1x32xf32>
    %c0_158 = arith.constant 0 : index
    %c0_159 = arith.constant 0 : index
    %c0_160 = arith.constant 0 : index
    %162 = vector.load %arg9[%c0_158, %c0_159, %c0_160] : memref<1x1x32xf32, #tpu.memory_space<vmem>>, vector<1x1x32xf32>
    tpu.vector_store %arg9[%c0_158, %c0_159, %c0_160], %161 {strides = array<i32>} : memref<1x1x32xf32, #tpu.memory_space<vmem>>, vector<1x1x32xf32>,
    %163 = arith.truncf %160 : vector<1x32xf32> to vector<1x32xbf16>
    %c3_161 = arith.constant 3 : index
    %c0_162 = arith.constant 0 : index
    %c0_163 = arith.constant 0 : index
    %164 = vector.load %arg6[%c3_161, %c0_162, %c0_163] : memref<4x32x32xbf16, #tpu.memory_space<vmem>>, vector<1x32x32xbf16>
    %165 = vector.shape_cast %164 : vector<1x32x32xbf16> to vector<32x32xbf16>
    %cst_164 = arith.constant dense<0.000000e+00> : vector<1x32xf32>
    %166 = tpu.matmul %163, %165, %cst_164 {dimension_numbers = #tpu.dot_dimension_numbers<[1], [0], [0], [1], [0, 0, 1, 1], [], []>} : vector<1x32xbf16>, vector<32x32xbf16>, vector<1x32xf32> -> vector<1x32xf32>
    %c0_165 = arith.constant 0 : index
    %c0_166 = arith.constant 0 : index
    %c0_167 = arith.constant 0 : index
    %167 = vector.load %arg6[%c0_165, %c0_166, %c0_167] : memref<4x32x32xbf16, #tpu.memory_space<vmem>>, vector<1x32x32xbf16>
    %168 = vector.shape_cast %167 : vector<1x32x32xbf16> to vector<32x32xbf16>
    %cst_168 = arith.constant dense<0.000000e+00> : vector<256x32xf32>
    %169 = tpu.matmul %10, %168, %cst_168 {dimension_numbers = #tpu.dot_dimension_numbers<[1], [0], [0], [1], [0, 0, 1, 1], [], []>} : vector<256x32xbf16>, vector<32x32xbf16>, vector<256x32xf32> -> vector<256x32xf32>
    %170 = vector.broadcast %166 : vector<1x32xf32> to vector<256x32xf32>
    %171 = arith.addf %170, %169 : vector<256x32xf32>
    %c1_169 = arith.constant 1 : index
    %c0_170 = arith.constant 0 : index
    %c0_171 = arith.constant 0 : index
    %172 = vector.load %arg6[%c1_169, %c0_170, %c0_171] : memref<4x32x32xbf16, #tpu.memory_space<vmem>>, vector<1x32x32xbf16>
    %173 = vector.shape_cast %172 : vector<1x32x32xbf16> to vector<32x32xbf16>
    %cst_172 = arith.constant dense<0.000000e+00> : vector<256x32xf32>
    %174 = tpu.matmul %78, %173, %cst_172 {dimension_numbers = #tpu.dot_dimension_numbers<[1], [0], [0], [1], [0, 0, 1, 1], [], []>} : vector<256x32xbf16>, vector<32x32xbf16>, vector<256x32xf32> -> vector<256x32xf32>
    %175 = arith.addf %171, %174 : vector<256x32xf32>
    %c2_173 = arith.constant 2 : index
    %c0_174 = arith.constant 0 : index
    %c0_175 = arith.constant 0 : index
    %176 = vector.load %arg6[%c2_173, %c0_174, %c0_175] : memref<4x32x32xbf16, #tpu.memory_space<vmem>>, vector<1x32x32xbf16>
    %177 = vector.shape_cast %176 : vector<1x32x32xbf16> to vector<32x32xbf16>
    %cst_176 = arith.constant dense<0.000000e+00> : vector<256x32xf32>
    %178 = tpu.matmul %146, %177, %cst_176 {dimension_numbers = #tpu.dot_dimension_numbers<[1], [0], [0], [1], [0, 0, 1, 1], [], []>} : vector<256x32xbf16>, vector<32x32xbf16>, vector<256x32xf32> -> vector<256x32xf32>
    %179 = arith.addf %175, %178 : vector<256x32xf32>
    %c4_177 = arith.constant 4 : index
    %c0_178 = arith.constant 0 : index
    %180 = vector.load %arg7[%c4_177, %c0_178] : memref<5x32xf32, #tpu.memory_space<vmem>>, vector<1x32xf32>
    %181 = vector.broadcast %180 : vector<1x32xf32> to vector<256x32xf32>
    %182 = arith.addf %179, %181 : vector<256x32xf32>
    %cst_179 = arith.constant 0.000000e+00 : f32
    %183 = vector.broadcast %cst_179 : f32 to vector<256x32xf32>
    %184 = arith.maximumf %182, %183 : vector<256x32xf32>
    %185 = arith.truncf %184 : vector<256x32xf32> to vector<256x32xbf16>
    %c0_180 = arith.constant 0 : index
    %c0_181 = arith.constant 0 : index
    %c96 = arith.constant 96 : index
    %186 = vector.load %arg8[%c0_180, %c0_181, %c96] : memref<1x256x128xbf16, #tpu.memory_space<vmem>>, vector<1x256x32xbf16>
    %187 = vector.shape_cast %186 : vector<1x256x32xbf16> to vector<256x32xbf16>
    %188 = vector.shape_cast %185 : vector<256x32xbf16> to vector<1x256x32xbf16>
    tpu.vector_store %arg8[%c0_180, %c0_181, %c96], %188 {strides = array<i32>} : memref<1x256x128xbf16, #tpu.memory_space<vmem>>, vector<1x256x32xbf16>,
    return
  }
  func.func @transform_0(%arg0: i32) -> (i32, i32, i32, i32) {
    %c0_i32 = arith.constant 0 : i32
    %c0_i32_0 = arith.constant 0 : i32
    %c0_i32_1 = arith.constant 0 : i32
    %c0_i32_2 = arith.constant 0 : i32
    return %arg0, %c0_i32, %c0_i32_0, %c0_i32_1 : i32, i32, i32, i32
  }
  func.func @transform_1(%arg0: i32) -> (i32, i32) {
    %c0_i32 = arith.constant 0 : i32
    %c0_i32_0 = arith.constant 0 : i32
    %c0_i32_1 = arith.constant 0 : i32
    return %c0_i32, %c0_i32_0 : i32, i32
  }
  func.func @transform_2(%arg0: i32) -> (i32, i32, i32) {
    %c0_i32 = arith.constant 0 : i32
    %c0_i32_0 = arith.constant 0 : i32
    %c0_i32_1 = arith.constant 0 : i32
    %c0_i32_2 = arith.constant 0 : i32
    return %c0_i32, %c0_i32_0, %c0_i32_1 : i32, i32, i32
  }
  func.func @transform_3(%arg0: i32) -> (i32, i32, i32) {
    %c0_i32 = arith.constant 0 : i32
    %c0_i32_0 = arith.constant 0 : i32
    %c0_i32_1 = arith.constant 0 : i32
    %c0_i32_2 = arith.constant 0 : i32
    return %c0_i32, %c0_i32_0, %c0_i32_1 : i32, i32, i32
  }
  func.func @transform_4(%arg0: i32) -> (i32, i32) {
    %c0_i32 = arith.constant 0 : i32
    %c0_i32_0 = arith.constant 0 : i32
    %c0_i32_1 = arith.constant 0 : i32
    return %c0_i32, %c0_i32_0 : i32, i32
  }
  func.func @transform_5(%arg0: i32) -> (i32, i32, i32) {
    %c0_i32 = arith.constant 0 : i32
    %c0_i32_0 = arith.constant 0 : i32
    %c0_i32_1 = arith.constant 0 : i32
    %c0_i32_2 = arith.constant 0 : i32
    return %c0_i32, %c0_i32_0, %c0_i32_1 : i32, i32, i32
  }
  func.func @transform_6(%arg0: i32) -> (i32, i32) {
    %c0_i32 = arith.constant 0 : i32
    %c0_i32_0 = arith.constant 0 : i32
    %c0_i32_1 = arith.constant 0 : i32
    return %c0_i32, %c0_i32_0 : i32, i32
  }
  func.func @transform_7(%arg0: i32) -> (i32, i32, i32) {
    %c0_i32 = arith.constant 0 : i32
    %c0_i32_0 = arith.constant 0 : i32
    %c0_i32_1 = arith.constant 0 : i32
    return %arg0, %c0_i32, %c0_i32_0 : i32, i32, i32
  }
  func.func @transform_8(%arg0: i32) -> (i32, i32, i32) {
    %c0_i32 = arith.constant 0 : i32
    %c0_i32_0 = arith.constant 0 : i32
    %c0_i32_1 = arith.constant 0 : i32
    return %arg0, %c0_i32, %c0_i32_0 : i32, i32, i32
  }
}

</mosaic_0001>

<bundles_post_ra>
// kernel: tpu_custom_call.1
= control target key start
LH: loop header
LB: loop body
LE: loop exit
PB: predicated region body
PF: predicated region fallthrough
CT: control target
= control target key end

     0   :  { %s18315_s0 = inlined_call_operand.hbm [shape: bf16[2,24,24,4], index: 0, kind: input, shape index: {}]   ;;  %s18316_s1 = inlined_call_operand.hbm [shape: bf16[4,32], index: 1, kind: input, shape index: {}]   ;;  %s18317_s2 = inlined_call_operand.hbm [shape: bf16[9,4,32], index: 2, kind: input, shape index: {}]   ;;  %s18318_s3 = inlined_call_operand.hbm [shape: bf16[9,4,32], index: 3, kind: input, shape index: {}]   ;;  %s18319_s4 = inlined_call_operand.hbm [shape: bf16[4,32], index: 4, kind: input, shape index: {}]   ;;  %s18320_s5 = inlined_call_operand.hbm [shape: bf16[4,32,32], index: 5, kind: input, shape index: {}]   ;;  %s18321_s6 = inlined_call_operand.hbm [shape: f32[5,32], index: 6, kind: input, shape index: {}]   ;;  %s18322_s7 = inlined_call_operand.hbm [shape: bf16[2,256,128], index: 7, kind: output, shape index: {0}]   ;;  %s18323_s8 = inlined_call_operand.hbm [shape: f32[2,1,32], index: 8, kind: output, shape index: {1}]  }
   0x1   :  { %18400 = sst [smem:[#allocation80_spill]] %s18316_s1 }
   0x2   :  { %18401 = sst [smem:[#allocation81_spill]] %s18318_s3 }
   0x3   :  { %14 = vsyncpa [#allocation3], 0 }
   0x4   :  { %16 = vsyncpa [#allocation3 + $0x1], 0 }
   0x5   :  { %17 = vsyncpa [#allocation6], 0 }
   0x6   :  { %18 = vsyncpa [#allocation9], 0 }
   0x7   :  { %19 = vsyncpa [#allocation12], 0 }
   0x8   :  { %20 = vsyncpa [#allocation4], 0 }
   0x9   :  { %22 = vsyncpa [#allocation4 + $0x1], 0 }
   0xa   :  { %23 = vsyncpa [#allocation16], 0 }
   0xb   :  { %25 = vsyncpa [#allocation16 + $0x1], 0  ;;  %s14313_s27 = smov 0   ;;  %s14315_s28 = smov 0  }
   0xc   :  { %s14317_s29 = smov 0   ;;  %s14319_s30 = smov 0  }
   0xd LB: > { %s14248_s9 = smov [#allocation5]   ;;  %s14334_s11 = sadd.s32 4294967295, %s14246_s30   ;;  %s14246_s30 = sphi %s14319_s30, %s18672_s30   ;;  %s14242_s29 = sphi %s14317_s29, %s18671_s29   ;;  %s14238_s28 = sphi %s14315_s28, %s18670_s28   ;;  %s14234_s27 = sphi %s14313_s27, %s18669_s27  }
   0xe   : > { %s253_s10 = sshll.u32 %s14248_s9, 4  ;;  %p10281_p0 = scmp.ge.s32.totalorder %s14246_s30, 1  ;;  %s254_s10 = int_to_ptr.vmem [resolvable:$true] %s253_s10 }
   0xf   : > { %p18324_p1 = scmp.eq.s32.totalorder %s14334_s11, 0  ;;  %p240_p2 = scmp.lt.s32.totalorder %s14246_s30, 3 }
  0x10   : > { %s14249_s13 = smov [#allocation8]   ;;  %s14250_s16 = smov [#allocation11]  }
  0x11   : > { %p14339_p3 = pnand %p10281_p0, %p240_p2  ;;  %s276_s14 = sshll.u32 %s14249_s13, 4  ;;  %s14352_s14 = int_to_ptr.vmem [resolvable:$true] %s276_s14 }
  0x12   : > { %s300_s17 = sshll.u32 %s14250_s16, 4  ;;  %s18404_s1 = sld [smem:[#allocation80_spill]]  ;;  %s14354_s17 = int_to_ptr.vmem [resolvable:$true] %s300_s17 }
  0x13   : > { %s18402_s12 = scalar_select %p14339_p3, 1, 0 }
  0x14   : > { %p13722_p5 = pneg %p14339_p3 }
  0x16   : > { %p14348_p6 = pnand %p13722_p5, %p18324_p1 }
  0x18   : > { %s13938_s20 = scalar_lea.hbm %s18404_s1, 32  ;;  %p14364_p8 = pneg %p14348_p6 }
  0x19   : > { %p13939_p7 = scmp.ne.s32.totalorder %s18404_s1, %s13938_s20  ;;  %p13945_p11 = scmp.lt.u32.totalorder %s13938_s20, %s18404_s1 }
  0x1b   : > { %p13941_p9 = pnand %p14364_p8, %p13939_p7 }
  0x1d   : > { %p13942_p10 = pneg %p13941_p9 }
  0x1f   : > { %p13947_p12 = pnand %p13945_p11, %p13942_p10 }
  0x21   : > { %13950 = shalt.err (!%p13947_p12)
}
  0x22   : > { %s13951_s26 = scalar_lea.vmem %s254_s10, 32  ;;  %p13959_p5 = scmp.lt.s32.totalorder %s254_s10, %s254_s10 }
  0x23   : > { %p13952_p13 = scmp.ne.s32.totalorder %s254_s10, %s13951_s26  ;;  %p13960_p4 = scmp.lt.s32.totalorder %s13951_s26, %s13951_s26 }
  0x25   : > { %p13954_p0 = pnand %p13952_p13, %p14364_p8  ;;  %p13961_p1 = por %p13960_p4, %p13959_p5 }
  0x27   : > { %p13955_p2 = pneg %p13954_p0 }
  0x29   : > { %p13962_p3 = pnand %p13961_p1, %p13955_p2 }
  0x2b   : > { %13965 = shalt.err (!%p13962_p3)
}
  0x2c   : > { %13725 = dma.hbm_to_vmem [thread:$0]  (!%p14348_p6), %s18404_s1, 32, %s254_s10, [#allocation6]  }
  0x2d   : > { %s18406_s3 = sld [smem:[#allocation81_spill]] }
  0x33   : > { %s13966_s19 = scalar_lea.hbm %s18406_s3, 288 }
  0x34   : > { %p13967_p7 = scmp.ne.s32.totalorder %s18406_s3, %s13966_s19  ;;  %p13973_p1 = scmp.lt.u32.totalorder %s13966_s19, %s18406_s3 }
  0x36   : > { %p13969_p9 = pnand %p13967_p7, %p14364_p8 }
  0x38   : > { %p13970_p4 = pneg %p13969_p9 }
  0x3a   : > { %p13975_p3 = pnand %p13973_p1, %p13970_p4 }
  0x3c   : > { %13978 = shalt.err (!%p13975_p3)
}
  0x3d   : > { %s13979_s10 = scalar_lea.vmem %s14352_s14, 288  ;;  %p13987_p13 = scmp.lt.s32.totalorder %s14352_s14, %s14352_s14 }
  0x3e   : > { %p13980_p10 = scmp.ne.s32.totalorder %s14352_s14, %s13979_s10  ;;  %p13988_p0 = scmp.lt.s32.totalorder %s13979_s10, %s13979_s10 }
  0x40   : > { %p13982_p11 = pnand %p13980_p10, %p14364_p8  ;;  %p13989_p2 = por %p13988_p0, %p13987_p13 }
  0x42   : > { %p13983_p12 = pneg %p13982_p11 }
  0x44   : > { %p13990_p5 = pnand %p13989_p2, %p13983_p12 }
  0x46   : > { %13993 = shalt.err (!%p13990_p5)
}
  0x47   : > { %s18326_s25 = smov 32   ;;  %s18327_s26 = smov 2  }
  0x48   : > { %13731 = dma.hbm_to_vmem [thread:$0]  (!%p14348_p6), %s18406_s3, 288, %s14352_s14, [#allocation9], %s18326_s25, %s18326_s25, %s18327_s26  }
  0x49   : > { %s13994_s19 = scalar_lea.hbm %s18320_s5, 1024 }
  0x4a   : > { %p13995_p7 = scmp.ne.s32.totalorder %s18320_s5, %s13994_s19  ;;  %p14001_p1 = scmp.lt.u32.totalorder %s13994_s19, %s18320_s5 }
  0x4c   : > { %p13997_p9 = pnand %p13995_p7, %p14364_p8 }
  0x4e   : > { %p13998_p4 = pneg %p13997_p9 }
  0x50   : > { %p14003_p3 = pnand %p14001_p1, %p13998_p4 }
  0x52   : > { %14006 = shalt.err (!%p14003_p3)
}
  0x53   : > { %s14007_s14 = scalar_lea.vmem %s14354_s17, 1024  ;;  %p14015_p13 = scmp.lt.s32.totalorder %s14354_s17, %s14354_s17 }
  0x54   : > { %p14008_p10 = scmp.ne.s32.totalorder %s14354_s17, %s14007_s14  ;;  %p14016_p0 = scmp.lt.s32.totalorder %s14007_s14, %s14007_s14 }
  0x56   : > { %p14010_p11 = pnand %p14008_p10, %p14364_p8  ;;  %p14017_p2 = por %p14016_p0, %p14015_p13 }
  0x58   : > { %p14011_p12 = pneg %p14010_p11 }
  0x5a   : > { %p14018_p5 = pnand %p14017_p2, %p14011_p12 }
  0x5c   : > { %14021 = shalt.err (!%p14018_p5)
}
  0x5d   : > { %s18328_s10 = smov 64   ;;  %s18329_s9 = smov 4  }
  0x5e   : > { %13737 = dma.hbm_to_vmem [thread:$0]  (!%p14348_p6), %s18320_s5, 1024, %s14354_s17, [#allocation12], %s18328_s10, %s18328_s10, %s18329_s9  }
  0x5f   : > { %s14255_s18 = smov [#allocation7]   ;;  %s14256_s20 = smov [#allocation10]  }
  0x60   : > { %s263_s19 = sshll.u32 %s14255_s18, 4  ;;  %s290_s21 = sshll.u32 %s14256_s20, 4  ;;  %s264_s19 = int_to_ptr.vmem [resolvable:$true] %s263_s19  ;;  %s291_s21 = int_to_ptr.vmem [resolvable:$true] %s290_s21 }
  0x61   : > { %s14022_s14 = scalar_lea.hbm %s18317_s2, 288 }
  0x62   : > { %p14023_p7 = scmp.ne.s32.totalorder %s18317_s2, %s14022_s14  ;;  %p14029_p1 = scmp.lt.u32.totalorder %s14022_s14, %s18317_s2 }
  0x64   : > { %p14025_p9 = pnand %p14023_p7, %p14364_p8 }
  0x66   : > { %p14026_p4 = pneg %p14025_p9 }
  0x68   : > { %p14031_p3 = pnand %p14029_p1, %p14026_p4 }
  0x6a   : > { %14034 = shalt.err (!%p14031_p3)
}
  0x6b   : > { %s14035_s17 = scalar_lea.vmem %s264_s19, 288  ;;  %p14043_p13 = scmp.lt.s32.totalorder %s264_s19, %s264_s19 }
  0x6c   : > { %p14036_p10 = scmp.ne.s32.totalorder %s264_s19, %s14035_s17  ;;  %p14044_p0 = scmp.lt.s32.totalorder %s14035_s17, %s14035_s17 }
  0x6e   : > { %p14038_p11 = pnand %p14036_p10, %p14364_p8  ;;  %p14045_p2 = por %p14044_p0, %p14043_p13 }
  0x70   : > { %p14039_p12 = pneg %p14038_p11 }
  0x72   : > { %p14046_p5 = pnand %p14045_p2, %p14039_p12 }
  0x74   : > { %14049 = shalt.err (!%p14046_p5)
}
  0x75   : > { %s18407_s25 = smov 2   ;;  %s18408_s26 = smov 32  }
  0x76   : > { %13728 = dma.hbm_to_vmem [thread:$0]  (!%p14348_p6), %s18317_s2, 288, %s264_s19, [#allocation6], %s18408_s26, %s18408_s26, %s18407_s25  }
  0x77   : > { %s14050_s18 = scalar_lea.hbm %s18319_s4, 32 }
  0x78   : > { %p14051_p7 = scmp.ne.s32.totalorder %s18319_s4, %s14050_s18  ;;  %p14057_p1 = scmp.lt.u32.totalorder %s14050_s18, %s18319_s4 }
  0x7a   : > { %p14053_p9 = pnand %p14051_p7, %p14364_p8 }
  0x7c   : > { %p14054_p4 = pneg %p14053_p9 }
  0x7e   : > { %p14059_p3 = pnand %p14057_p1, %p14054_p4 }
  0x80   : > { %14062 = shalt.err (!%p14059_p3)
}
  0x81   : > { %s14063_s17 = scalar_lea.vmem %s291_s21, 32  ;;  %p14071_p13 = scmp.lt.s32.totalorder %s291_s21, %s291_s21 }
  0x82   : > { %p14064_p10 = scmp.ne.s32.totalorder %s291_s21, %s14063_s17  ;;  %p14072_p0 = scmp.lt.s32.totalorder %s14063_s17, %s14063_s17 }
  0x84   : > { %p14066_p11 = pnand %p14064_p10, %p14364_p8  ;;  %p14073_p2 = por %p14072_p0, %p14071_p13 }
  0x86   : > { %p14067_p12 = pneg %p14066_p11 }
  0x88   : > { %p14074_p5 = pnand %p14073_p2, %p14067_p12 }
  0x8a   : > { %14077 = shalt.err (!%p14074_p5)
}
  0x8b   : > { %13734 = dma.hbm_to_vmem [thread:$0]  (!%p14348_p6), %s18319_s4, 32, %s291_s21, [#allocation9]  }
  0x8c   : > { %s14257_s26 = smov [#allocation13]   ;;  %s14078_s16 = scalar_lea.hbm %s18321_s6, 128 }
  0x8d   : > { %s314_s1 = sshll.u32 %s14257_s26, 4  ;;  %p14079_p7 = scmp.ne.s32.totalorder %s18321_s6, %s14078_s16  ;;  %s315_s1 = int_to_ptr.vmem [resolvable:$true] %s314_s1 }
  0x8e   : > { %p14085_p1 = scmp.lt.u32.totalorder %s14078_s16, %s18321_s6 }
  0x8f   : > { %p14081_p9 = pnand %p14079_p7, %p14364_p8 }
  0x91   : > { %p14082_p4 = pneg %p14081_p9 }
  0x93   : > { %p14087_p3 = pnand %p14085_p1, %p14082_p4 }
  0x95   : > { %14090 = shalt.err (!%p14087_p3)
}
  0x96   : > { %s14091_s21 = scalar_lea.vmem %s315_s1, 128  ;;  %p14099_p13 = scmp.lt.s32.totalorder %s315_s1, %s315_s1 }
  0x97   : > { %p14092_p10 = scmp.ne.s32.totalorder %s315_s1, %s14091_s21  ;;  %p14100_p0 = scmp.lt.s32.totalorder %s14091_s21, %s14091_s21 }
  0x99   : > { %p14094_p11 = pnand %p14092_p10, %p14364_p8  ;;  %p14101_p2 = por %p14100_p0, %p14099_p13 }
  0x9b   : > { %p14095_p12 = pneg %p14094_p11 }
  0x9d   : > { %p14102_p5 = pnand %p14101_p2, %p14095_p12 }
  0x9f   : > { %14105 = shalt.err (!%p14102_p5)
}
  0xa0   : > { %13740 = dma.hbm_to_vmem [thread:$0]  (!%p14348_p6), %s18321_s6, 128, %s315_s1, [#allocation12]  }
  0xa1   : > { %s10280_s23 = sadd.s32 4294967294, %s14246_s30   ;;  %s14491_s15 = sadd.s32 1, %s14246_s30  }
  0xa2   : > { %s35_s19 = ssub.s32 %s14246_s30, %s14491_s15  ;;  %s38_s25 = sadd.s32 1, %s14242_s29 }
  0xa3   : > { %p36_p8 = scmp.eq.s32.totalorder %s35_s19, 0  ;;  %p45_p7 = scmp.ne.s32.totalorder %s14242_s29, %s14238_s28 }
  0xa4   : > { %p46_p9 = scmp.eq.s32.totalorder %s14246_s30, 0  ;;  %p51_p4 = scmp.ne.s32.totalorder %s14238_s28, %s14234_s27 }
  0xa5   : > { %s14502_s26 = scalar_select %p36_p8, %s14242_s29, %s38_s25  }
  0xa6   : > { %p47_p1 = por %p46_p9, %p45_p7  ;;  %p18409_p3 = scmp.eq.s32.totalorder %s14334_s11, 0 }
  0xa7   : > { %p201_p6 = scmp.eq.s32.totalorder %s14334_s11, 1  ;;  %p207_p11 = scmp.eq.s32.totalorder %s10280_s23, 1 }
  0xa8   : > { %p14506_p10 = por %p18409_p3, %p51_p4  ;;  %p13758_p12 = scmp.lt.s32.totalorder %s14246_s30, 2 }
  0xa9   : > { %s325_s1 = sand.u32 1, %s14242_s29   ;;  %p14513_p13 = por %p201_p6, %p45_p7 }
  0xaa   : > { %p14517_p0 = por %p207_p11, %p51_p4  ;;  %s13689_s18 = smul.u32 288, %s325_s1 }
  0xab   : > { %s18411_s13 = scalar_select %p14513_p13, 1, 0 }
  0xac   : > { %s18412_s16 = scalar_select %p14517_p0, 1, 0 }
  0xad   : > { %s13690_s20 = smul.u32 4608, %s14246_s30  ;;  %p14522_p2 = pnand %p13758_p12, %p47_p1 }
  0xae   : > { %s329_s17 = scalar_lea.vmem [#allocation2], %s13689_s18  ;;  %s14533_s19 = scalar_lea.sflag [#allocation3], %s325_s1 }
  0xaf   : > { %s14529_s14 = scalar_lea.hbm %s18315_s0, %s13690_s20  ;;  %s336_s23 = sshll.u32 %s329_s17, 4  ;;  %s14531_s23 = int_to_ptr.vmem [resolvable:$true] %s336_s23 }
  0xb0   : > { %s14106_s25 = scalar_lea.hbm %s14529_s14, 4608  ;;  %p14108_p8 = pneg %p14522_p2 }
  0xb1   : > { %p14107_p5 = scmp.ne.s32.totalorder %s14529_s14, %s14106_s25  ;;  %s14111_s21 = scalar_lea.hbm %s18315_s0, 9216 }
  0xb2   : > { %p14112_p4 = scmp.lt.u32.totalorder %s14529_s14, %s18315_s0  ;;  %p14113_p1 = scmp.lt.u32.totalorder %s14111_s21, %s14106_s25 }
  0xb3   : > { %p14109_p7 = pnand %p14108_p8, %p14107_p5  ;;  %p14115_p6 = scmp.lt.u32.totalorder %s14106_s25, %s14529_s14 }
  0xb4   : > { %p14114_p3 = por %p14113_p1, %p14112_p4 }
  0xb5   : > { %p14110_p9 = pneg %p14109_p7 }
  0xb6   : > { %p14116_p11 = por %p14115_p6, %p14114_p3 }
  0xb8   : > { %p14117_p12 = pnand %p14116_p11, %p14110_p9 }
  0xba   : > { %14120 = shalt.err (!%p14117_p12)
}
  0xbb   : > { %s14121_s1 = scalar_lea.vmem %s14531_s23, 4608  ;;  %s14258_s18 = smov [#allocation2]  }
  0xbc   : > { %p14122_p5 = scmp.ne.s32.totalorder %s14531_s23, %s14121_s1  ;;  %s14126_s17 = sshll.u32 %s14258_s18, 4  ;;  %s14127_s17 = int_to_ptr.vmem [resolvable:$false] %s14126_s17 }
  0xbd   : > { %s14128_s10 = scalar_lea.vmem %s14127_s17, 9216  ;;  %p14129_p13 = scmp.lt.s32.totalorder %s14531_s23, %s14127_s17 }
  0xbe   : > { %p14124_p7 = pnand %p14122_p5, %p14108_p8  ;;  %p14130_p4 = scmp.lt.s32.totalorder %s14128_s10, %s14121_s1 }
  0xc0   : > { %p14125_p0 = pneg %p14124_p7  ;;  %p14131_p1 = por %p14130_p4, %p14129_p13 }
  0xc2   : > { %p14132_p3 = pnand %p14131_p1, %p14125_p0 }
  0xc4   : > { %14135 = shalt.err (!%p14132_p3)
}
  0xc5   : > { %s18414_s9 = smov 4   ;;  %s18415_s25 = smov 64  }
  0xc6   : > { %13744 = dma.hbm_to_vmem [thread:$0]  (!%p14522_p2), %s14529_s14, 4608, %s14531_s23, %s14533_s19, %s18415_s25, %s18415_s25, %s18414_s9  }
  0xc7   : > { %p18416_p8 = scmp.ne.s32.totalorder %s18402_s12, 0 }
  0xc9   : > { %348 = sbr.rel (%p18416_p8) target bundleno = 1742 (0x6ce), region = 48 }
  0xd0   : > { %s14567_s20 = sand.u32 1, %s14238_s28  }
  0xd1   : > { %s13691_s24 = smul.u32 288, %s14567_s20  ;;  %s351_s21 = scalar_lea.sflag [#allocation3], %s14567_s20 }
  0xd3   : > { %s14571_s1 = scalar_lea.vmem [#allocation2], %s13691_s24 }
  0xd4   : > { %14209 = dma.done.wait (%p14506_p10), %s351_s21, 4608  }
  0xd5   : > { %14211 = vsyncadd (%p14506_p10), %s351_s21, 4294962688  ;;  %p18417_p13 = scmp.eq.s32.totalorder %s14334_s11, 0 }
  0xd7   : > { %14213 = dma.done.wait (%p18417_p13), [#allocation6], 320   ;;  %p18418_p0 = pmov %p18417_p13 }
  0xd9   : > { %14215 = vsyncadd (%p18418_p0), [#allocation6], 4294966976  ;;  %p18419_p2 = pmov %p18418_p0 }
  0xda   : > { %p18420_p9 = pmov %p18418_p0 }
  0xdb   : > { %14217 = dma.done.wait (%p18419_p2), [#allocation9], 320  }
  0xdc   : > { %14219 = vsyncadd (%p18420_p9), [#allocation9], 4294966976  ;;  %p18421_p6 = pmov %p18418_p0 }
  0xdd   : > { %p18422_p11 = pmov %p18418_p0 }
  0xde   : > { %14221 = dma.done.wait (%p18421_p6), [#allocation12], 1152  }
  0xdf   : > { %14223 = vsyncadd (%p18422_p11), [#allocation12], 4294966144  ;;  %vm514_vm0 = vcmask 1041408   ;;  %vm515_vm1 = vcmask 1045508   ;;  %vm1187_vm2 = vcmask 1042432   ;;  %vm1188_vm3 = vcmask 1046532  }
  0xe0   : > { %v14589_v0 = vld [vmem:[#allocation7] sm:$0x3]  ;;  %v629_v1 = vld [vmem:[#allocation5] sm:$0x3]  ;;  %v10298_v2 = vld [vmem:[%s14571_s1 + $0x30] sm:$0xc] }
  0xe1   : > { %13672 = vmatprep.subr.msk.bf16.mxu1 %vm514_vm0, %v14589_v0  ;;  %13669 = vmatprep.subr.msk.bf16.mxu0 %vm514_vm0, %v629_v1  ;;  %v14597_v3 = vsel %vm514_vm0, %v14589_v0, 0  ;;  %v734_v4 = vsel %vm514_vm0, %v629_v1, 0  ;;  %v10299_v5 = vld [vmem:[%s14571_s1 + $0x34] sm:$0xf]  ;;  %v10300_v6 = vld [vmem:[%s14571_s1 + $0x38] sm:$0x3]  ;;  %vm14603_vm4 = vmor %vm514_vm0, %vm515_vm1 }
  0xe2   : > { %13060 = vmatpush3.bf16.msra.mxu1 %v14597_v3  ;;  %12292 = vmatpush3.bf16.msra.mxu0 %v734_v4  ;;  %v10346_v8 = vrot.slane %v10298_v2, 10  ;;  %v519_v9 = vrot.slane %v10299_v5, 6  ;;  %v522_v10 = vrot.slane %v10300_v6, 6  ;;  %v10433_v11 = vld [vmem:[%s14571_s1 + $0x30] sm:$0xe]  ;;  %vm14615_vm5 = vmor %vm1187_vm2, %vm1188_vm3  ;;  %vm683_vm6 = vcmask 31744  }
  0xe3   : > { %v14610_v12 = vld [vmem:[%s14571_s1 + $0x34] sm:$0xf]  ;;  %v10435_v13 = vld [vmem:[%s14571_s1 + $0x38] sm:$0x1]  ;;  %v10477_v15 = vrot.slane %v10433_v11, 9  ;;  %vm2065_vm7 = vcmask 1040384  }
  0xe4   : > { %v520_v16 = vsel %vm14603_vm4, %v10346_v8, %v519_v9  ;;  %v521_v17 = vrot.slane %v519_v9, 4  ;;  %v1206_v18 = vrot.slane %v14610_v12, 5  ;;  %v1209_v19 = vrot.slane %v10435_v13, 5  ;;  %v2181_v20 = vld [vmem:[#allocation7 + $0x4] sm:$0x3]  ;;  %s10297_s12 = sshll.u32 %s14567_s20, 7 }
  0xe5   : > { %13673 = vmatprep.subr.msk.bf16.mxu1 %vm514_vm0, %v2181_v20  ;;  %v10301_v21 = vld [vmem:[%s14571_s1 + $0x3c] sm:$0xc]  ;;  %v10302_v22 = vld [vmem:[%s14571_s1 + $0x40] sm:$0xf]  ;;  %v10303_v26 = vld [vmem:[%s14571_s1 + $0x44] sm:$0x3] }
  0xe6   : > { %v523_v23 = vsel %vm14603_vm4, %v521_v17, %v522_v10  ;;  %v1207_v24 = vsel %vm14615_vm5, %v10477_v15, %v1206_v18  ;;  %v1208_v25 = vrot.slane %v1206_v18, 4  ;;  %v10347_v27 = vrot.slane %v10301_v21, 10  ;;  %v10436_v28 = vld [vmem:[%s14571_s1 + $0x3c] sm:$0xe]  ;;  %v14634_v32 = vld [vmem:[%s14571_s1 + $0x40] sm:$0xf] }
  0xe7   : > { %v14631_v29 = vcombine.low %v520_v16, %v523_v23  ;;  %v526_v30 = vrot.slane %v10302_v22, 6  ;;  %v529_v31 = vrot.slane %v10303_v26, 6  ;;  %v10438_v33 = vld [vmem:[%s14571_s1 + $0x44] sm:$0x1]  ;;  %v10478_v35 = vrot.slane %v10436_v28, 9  ;;  %s15977_s3 = scalar_lea.vmem [#allocation14], %s10297_s12 }
  0xe8   : > { %v1210_v34 = vsel %vm14615_vm5, %v1208_v25, %v1209_v19  ;;  %v1213_v36 = vrot.slane %v14634_v32, 5  ;;  %v1216_v37 = vrot.slane %v10438_v33, 5  ;;  %v10304_v38 = vld [vmem:[%s14571_s1 + $0x48] sm:$0xc]  ;;  %v2279_v42 = vsel %vm514_vm0, %v2181_v20, 0  ;;  %s14262_s22 = smov 32  }
  0xe9   : > { %12293 = vmatprep.mubr.msk.bf16.mxu0 %vm683_vm6, %v14631_v29  ;;  %v10573_v39 = vcombine.low %v1207_v24, %v1210_v34  ;;  %v527_v40 = vsel %vm14603_vm4, %v10347_v27, %v526_v30  ;;  %v528_v41 = vrot.slane %v526_v30, 4  ;;  %v10305_v43 = vld [vmem:[%s14571_s1 + $0x4c] sm:$0xf]  ;;  %v10306_v44 = vld [vmem:[%s14571_s1 + $0x50] sm:$0x3]  ;;  %v10348_v47 = vrot.slane %v10304_v38, 10 }
  0xea   : > { %v1214_v45 = vsel %vm14615_vm5, %v10478_v35, %v1213_v36  ;;  %v1215_v46 = vrot.slane %v1213_v36, 4  ;;  %v533_v48 = vrot.slane %v10305_v43, 6  ;;  %v10439_v49 = vld [vmem:[%s14571_s1 + $0x48] sm:$0xe]  ;;  %v536_v51 = vrot.slane %v10306_v44, 6  ;;  %s14263_s14 = smov 64  }
  0xeb   : > { %12365 = vmatprep.mubr.msk.bf16.mxu1 %vm683_vm6, %v10573_v39  ;;  %v530_v50 = vsel %vm14603_vm4, %v528_v41, %v529_v31  ;;  %v14655_v52 = vld [vmem:[%s14571_s1 + $0x4c] sm:$0xf]  ;;  %v10441_v53 = vld [vmem:[%s14571_s1 + $0x50] sm:$0x1]  ;;  %v10479_v54 = vrot.slane %v10439_v49, 9  ;;  %vm2066_vm8 = vcmask 1044484  }
  0xec   : > { %v14658_v55 = vcombine.low %v527_v40, %v530_v50  ;;  %v1217_v56 = vsel %vm14615_vm5, %v1215_v46, %v1216_v37  ;;  %v534_v57 = vsel %vm14603_vm4, %v10348_v47, %v533_v48  ;;  %v535_v58 = vrot.slane %v533_v48, 4  ;;  %v10307_v59 = vld [vmem:[%s14571_s1 + $0x54] sm:$0xc]  ;;  %v10308_v60 = vld [vmem:[%s14571_s1 + $0x58] sm:$0xf]  ;;  %vm14925_vm9 = vmor %vm2065_vm7, %vm2066_vm8  ;;  %s414_s23 = scalar_lea.vmem [#allocation15], %s14567_s20 }
  0xed   : > { %v10574_v61 = vcombine.low %v1214_v45, %v1217_v56  ;;  %v1220_v62 = vrot.slane %v14655_v52, 5  ;;  %v1223_v63 = vrot.slane %v10441_v53, 5  ;;  %v10309_v1 = vld [vmem:[%s14571_s1 + $0x5c] sm:$0x3]  ;;  %v10349_v2 = vrot.slane %v10307_v59, 10  ;;  %s14264_s19 = smov 96  }
  0xee   : > { %12294 = vmatmul.mubr.msk.bf16.vlgmr.msra.gmra.mrb[0].mxu0 %vm683_vm6, %v14658_v55  ;;  %v537_v4 = vsel %vm14603_vm4, %v535_v58, %v536_v51  ;;  %v540_v5 = vrot.slane %v10308_v60, 6  ;;  %v543_v6 = vrot.slane %v10309_v1, 6  ;;  %v10442_v8 = vld [vmem:[%s14571_s1 + $0x54] sm:$0xe]  ;;  %v14674_v9 = vld [vmem:[%s14571_s1 + $0x58] sm:$0xf] }
  0xef   : > { %12366 = vmatmul.mubr.msk.bf16.vlgmr.msra.gmra.mrb[0].mxu1 %vm683_vm6, %v10574_v61  ;;  %v14677_v10 = vcombine.low %v534_v57, %v537_v4  ;;  %v1221_v11 = vsel %vm14615_vm5, %v10479_v54, %v1220_v62  ;;  %v1222_v13 = vrot.slane %v1220_v62, 4  ;;  %v10444_v15 = vld [vmem:[%s14571_s1 + $0x5c] sm:$0x1]  ;;  %v10480_v16 = vrot.slane %v10442_v8, 9  ;;  %v10310_v17 = vld [vmem:[%s14571_s1 + $0x60] sm:$0xc] }
  0xf0   : > { %12394 = vmatpush3.bf16.msra.mxu1 %v2279_v42  ;;  %v541_v18 = vsel %vm14603_vm4, %v10349_v2, %v540_v5  ;;  %v542_v19 = vrot.slane %v540_v5, 4  ;;  %v1227_v20 = vrot.slane %v14674_v9, 5  ;;  %v1230_v21 = vrot.slane %v10444_v15, 5  ;;  %v10311_v22 = vld [vmem:[%s14571_s1 + $0x64] sm:$0xf]  ;;  %s11755_s18 = sshll.u32 %s14334_s11, 4 }
  0xf1   : > { %12297 = vmatprep.mubr.msk.bf16.mxu0 %vm683_vm6, %v14677_v10  ;;  %v1224_v23 = vsel %vm14615_vm5, %v1222_v13, %v1223_v63  ;;  %v10312_v24 = vld [vmem:[%s14571_s1 + $0x68] sm:$0x3]  ;;  %v10350_v25 = vrot.slane %v10310_v17, 10  ;;  %v547_v26 = vrot.slane %v10311_v22, 6  ;;  %v10445_v27 = vld [vmem:[%s14571_s1 + $0x60] sm:$0xe]  ;;  %s18165_s9 = scalar_lea.hbm %s18323_s8, %s11755_s18 }
  0xf2   : > { %v10575_v28 = vcombine.low %v1221_v11, %v1224_v23  ;;  %v544_v30 = vsel %vm14603_vm4, %v542_v19, %v543_v6  ;;  %v1228_v31 = vsel %vm14615_vm5, %v10480_v16, %v1227_v20  ;;  %v1229_v33 = vrot.slane %v1227_v20, 4  ;;  %v14698_v34 = vld [vmem:[%s14571_s1 + $0x64] sm:$0xf]  ;;  %v10447_v35 = vld [vmem:[%s14571_s1 + $0x68] sm:$0x1]  ;;  %s10125_s25 = sshll.u32 %s414_s23, 4  ;;  %s18170_s25 = int_to_ptr.vmem [resolvable:$true] %s10125_s25 }
  0xf3   : > { %v14701_v36 = vcombine.low %v541_v18, %v544_v30  ;;  %v548_v37 = vsel %vm14603_vm4, %v10350_v25, %v547_v26  ;;  %v549_v38 = vrot.slane %v547_v26, 4  ;;  %v550_v39 = vrot.slane %v10312_v24, 6  ;;  %v10313_v40 = vld [vmem:[%s14571_s1 + $0x6c] sm:$0xc]  ;;  %v10314_v41 = vld [vmem:[%s14571_s1 + $0x70] sm:$0xf] }
  0xf4   : > { %12369 = vmatprep.mubr.msk.bf16.mxu1 %vm683_vm6, %v10575_v28  ;;  %v1231_v42 = vsel %vm14615_vm5, %v1229_v33, %v1230_v21  ;;  %v10481_v43 = vrot.slane %v10445_v27, 9  ;;  %v1234_v44 = vrot.slane %v14698_v34, 5  ;;  %v1237_v45 = vrot.slane %v10447_v35, 5  ;;  %v10315_v46 = vld [vmem:[%s14571_s1 + $0x74] sm:$0x3]  ;;  %s10097_s24 = scalar_lea.sflag [#allocation16], %s14567_s20 }
  0xf5   : > { %v10576_v47 = vcombine.low %v1228_v31, %v1231_v42  ;;  %v551_v48 = vsel %vm14603_vm4, %v549_v38, %v550_v39  ;;  %v10351_v49 = vrot.slane %v10313_v40, 10  ;;  %v554_v50 = vrot.slane %v10314_v41, 6  ;;  %v10448_v51 = vld [vmem:[%s14571_s1 + $0x6c] sm:$0xe]  ;;  %v14716_v53 = vld [vmem:[%s14571_s1 + $0x70] sm:$0xf] }
  0xf6   : > { %12298 = vmatmul.mubr.msk.bf16.gmra.mrb[4].mxu0 %vm683_vm6, %v14701_v36  ;;  %v14720_v54 = vcombine.low %v548_v37, %v551_v48  ;;  %v1235_v56 = vsel %vm14615_vm5, %v10481_v43, %v1234_v44  ;;  %v1236_v57 = vrot.slane %v1234_v44, 4  ;;  %v557_v58 = vrot.slane %v10315_v46, 6  ;;  %v10450_v59 = vld [vmem:[%s14571_s1 + $0x74] sm:$0x1]  ;;  %v10316_v60 = vld [vmem:[%s14571_s1 + $0x78] sm:$0xc] }
  0xf7   : > { %12370 = vmatmul.mubr.msk.bf16.gmra.mrb[4].mxu1 %vm683_vm6, %v10576_v47  ;;  %v555_v61 = vsel %vm14603_vm4, %v10351_v49, %v554_v50  ;;  %v556_v62 = vrot.slane %v554_v50, 4  ;;  %v10482_v63 = vrot.slane %v10448_v51, 9  ;;  %v1241_v1 = vrot.slane %v14716_v53, 5  ;;  %v10317_v2 = vld [vmem:[%s14571_s1 + $0x7c] sm:$0xf]  ;;  %s14136_s21 = scalar_lea.vmem %s18170_s25, 16 }
  0xf8   : > { %12301 = vmatprep.mubr.msk.bf16.mxu0 %vm683_vm6, %v14720_v54  ;;  %v1238_v4 = vsel %vm14615_vm5, %v1236_v57, %v1237_v45  ;;  %v1244_v5 = vrot.slane %v10450_v59, 5  ;;  %v10318_v6 = vld [vmem:[%s14571_s1 + $0x80] sm:$0x3]  ;;  %v10352_v8 = vrot.slane %v10316_v60, 10  ;;  %v561_v11 = vrot.slane %v10317_v2, 6  ;;  %p14137_p10 = scmp.ne.s32.totalorder %s18170_s25, %s14136_s21  ;;  %p18666_p12 = scmp.ne.s32.totalorder %s18411_s13, 0 }
  0xf9   : > { %v10577_v13 = vcombine.low %v1235_v56, %v1238_v4  ;;  %v558_v15 = vsel %vm14603_vm4, %v556_v62, %v557_v58  ;;  %v1242_v16 = vsel %vm14615_vm5, %v10482_v63, %v1241_v1  ;;  %v1243_v17 = vrot.slane %v1241_v1, 4  ;;  %v10451_v18 = vld [vmem:[%s14571_s1 + $0x78] sm:$0xe]  ;;  %v14742_v19 = vld [vmem:[%s14571_s1 + $0x7c] sm:$0xf] }
  0xfa   : > { %v14744_v20 = vcombine.low %v555_v61, %v558_v15  ;;  %v562_v21 = vsel %vm14603_vm4, %v10352_v8, %v561_v11  ;;  %v563_v22 = vrot.slane %v561_v11, 4  ;;  %v564_v23 = vrot.slane %v10318_v6, 6  ;;  %v10453_v24 = vld [vmem:[%s14571_s1 + $0x80] sm:$0x1]  ;;  %v10319_v25 = vld [vmem:[%s14571_s1 + $0x84] sm:$0xc]  ;;  %p14138_p5 = pnand %p14137_p10, %p18666_p12 }
  0xfb   : > { %12373 = vmatprep.mubr.msk.bf16.mxu1 %vm683_vm6, %v10577_v13  ;;  %v1245_v26 = vsel %vm14615_vm5, %v1243_v17, %v1244_v5  ;;  %v10483_v27 = vrot.slane %v10451_v18, 9  ;;  %v1248_v28 = vrot.slane %v14742_v19, 5  ;;  %v1251_v30 = vrot.slane %v10453_v24, 5  ;;  %v10320_v31 = vld [vmem:[%s14571_s1 + $0x88] sm:$0xf] }
  0xfc   : > { %v10578_v33 = vcombine.low %v1242_v16, %v1245_v26  ;;  %v565_v35 = vsel %vm14603_vm4, %v563_v22, %v564_v23  ;;  %v10321_v37 = vld [vmem:[%s14571_s1 + $0x8c] sm:$0x3]  ;;  %v10353_v38 = vrot.slane %v10319_v25, 10  ;;  %v568_v39 = vrot.slane %v10320_v31, 6  ;;  %v10454_v40 = vld [vmem:[%s14571_s1 + $0x84] sm:$0xe]  ;;  %p14139_p7 = pneg %p14138_p5 }
  0xfd   : > { %v14759_v41 = vcombine.low %v562_v21, %v565_v35  ;;  %v1249_v42 = vsel %vm14615_vm5, %v10483_v27, %v1248_v28  ;;  %v1250_v43 = vrot.slane %v1248_v28, 4  ;;  %v571_v44 = vrot.slane %v10321_v37, 6  ;;  %v14764_v45 = vld [vmem:[%s14571_s1 + $0x88] sm:$0xf]  ;;  %v10456_v46 = vld [vmem:[%s14571_s1 + $0x8c] sm:$0x1] }
  0xfe   : > { %12302 = vmatmul.mubr.msk.bf16.gmra.mrb[8].mxu0 %vm683_vm6, %v14744_v20  ;;  %v570_v47 = vrot.slane %v568_v39, 4  ;;  %v10484_v48 = vrot.slane %v10454_v40, 9  ;;  %v1255_v49 = vrot.slane %v14764_v45, 5  ;;  %v10322_v50 = vld [vmem:[%s14571_s1 + $0x90] sm:$0xc]  ;;  %v569_v56 = vsel %vm14603_vm4, %v10353_v38, %v568_v39 }
  0xff   : > { %12374 = vmatmul.mubr.msk.bf16.gmra.mrb[8].mxu1 %vm683_vm6, %v10578_v33  ;;  %12305 = vmatprep.mubr.msk.bf16.mxu0 %vm683_vm6, %v14759_v41  ;;  %v1252_v51 = vsel %vm14615_vm5, %v1250_v43, %v1251_v30  ;;  %v1258_v57 = vrot.slane %v10456_v46, 5  ;;  %v10323_v58 = vld [vmem:[%s14571_s1 + $0x94] sm:$0xf]  ;;  %v10324_v59 = vld [vmem:[%s14571_s1 + $0x98] sm:$0x3]  ;;  %v10354_v60 = vrot.slane %v10322_v50, 10 }
 0x100   : > { %v10579_v61 = vcombine.low %v1249_v42, %v1252_v51  ;;  %v572_v62 = vsel %vm14603_vm4, %v570_v47, %v571_v44  ;;  %v1256_v63 = vsel %vm14615_vm5, %v10484_v48, %v1255_v49  ;;  %v1257_v1 = vrot.slane %v1255_v49, 4  ;;  %v10457_v2 = vld [vmem:[%s14571_s1 + $0x90] sm:$0xe]  ;;  %v14786_v4 = vld [vmem:[%s14571_s1 + $0x94] sm:$0xf] }
 0x101   : > { %v575_v5 = vrot.slane %v10323_v58, 6  ;;  %v578_v6 = vrot.slane %v10324_v59, 6  ;;  %v10459_v8 = vld [vmem:[%s14571_s1 + $0x98] sm:$0x1]  ;;  %v10485_v11 = vrot.slane %v10457_v2, 9  ;;  %v14790_v13 = vcombine.low %v569_v56, %v572_v62 }
 0x102   : > { %12377 = vmatprep.mubr.msk.bf16.mxu1 %vm683_vm6, %v10579_v61  ;;  %v1259_v15 = vsel %vm14615_vm5, %v1257_v1, %v1258_v57  ;;  %v1262_v16 = vrot.slane %v14786_v4, 5  ;;  %v1265_v17 = vrot.slane %v10459_v8, 5  ;;  %v10325_v18 = vld [vmem:[%s14571_s1 + $0x9c] sm:$0xc]  ;;  %v10326_v21 = vld [vmem:[%s14571_s1 + $0xa0] sm:$0xf] }
 0x103   : > { %v10580_v22 = vcombine.low %v1256_v63, %v1259_v15  ;;  %v576_v23 = vsel %vm14603_vm4, %v10354_v60, %v575_v5  ;;  %v577_v24 = vrot.slane %v575_v5, 4  ;;  %v10327_v25 = vld [vmem:[%s14571_s1 + $0xa4] sm:$0x3]  ;;  %v10355_v26 = vrot.slane %v10325_v18, 10  ;;  %v10460_v27 = vld [vmem:[%s14571_s1 + $0x9c] sm:$0xe] }
 0x104   : > { %v1263_v28 = vsel %vm14615_vm5, %v10485_v11, %v1262_v16  ;;  %v1264_v30 = vrot.slane %v1262_v16, 4  ;;  %v582_v31 = vrot.slane %v10326_v21, 6  ;;  %v585_v33 = vrot.slane %v10327_v25, 6  ;;  %v14804_v35 = vld [vmem:[%s14571_s1 + $0xa0] sm:$0xf] }
 0x105   : > { %v579_v37 = vsel %vm14603_vm4, %v577_v24, %v578_v6  ;;  %v10462_v38 = vld [vmem:[%s14571_s1 + $0xa4] sm:$0x1]  ;;  %v10486_v39 = vrot.slane %v10460_v27, 9  ;;  %v1269_v40 = vrot.slane %v14804_v35, 5  ;;  %v10328_v42 = vld [vmem:[%s14571_s1 + $0xa8] sm:$0xc] }
 0x106   : > { %12306 = vmatmul.mubr.msk.bf16.gmra.mrb[12].mxu0 %vm683_vm6, %v14790_v13  ;;  %v14813_v43 = vcombine.low %v576_v23, %v579_v37  ;;  %v1266_v44 = vsel %vm14615_vm5, %v1264_v30, %v1265_v17  ;;  %v583_v46 = vsel %vm14603_vm4, %v10355_v26, %v582_v31  ;;  %v584_v47 = vrot.slane %v582_v31, 4  ;;  %v10329_v48 = vld [vmem:[%s14571_s1 + $0xac] sm:$0xf]  ;;  %v10330_v49 = vld [vmem:[%s14571_s1 + $0xb0] sm:$0x3] }
 0x107   : > { %12378 = vmatmul.mubr.msk.bf16.gmra.mrb[12].mxu1 %vm683_vm6, %v10580_v22  ;;  %v10581_v50 = vcombine.low %v1263_v28, %v1266_v44  ;;  %v1270_v51 = vsel %vm14615_vm5, %v10486_v39, %v1269_v40  ;;  %v1271_v56 = vrot.slane %v1269_v40, 4  ;;  %v1272_v57 = vrot.slane %v10462_v38, 5  ;;  %v10463_v58 = vld [vmem:[%s14571_s1 + $0xa8] sm:$0xe]  ;;  %v14826_v59 = vld [vmem:[%s14571_s1 + $0xac] sm:$0xf] }
 0x108   : > { %12309 = vmatprep.mubr.msk.bf16.mxu0 %vm683_vm6, %v14813_v43  ;;  %v586_v60 = vsel %vm14603_vm4, %v584_v47, %v585_v33  ;;  %v10356_v61 = vrot.slane %v10328_v42, 10  ;;  %v589_v62 = vrot.slane %v10329_v48, 6  ;;  %v592_v63 = vrot.slane %v10330_v49, 6  ;;  %v10465_v1 = vld [vmem:[%s14571_s1 + $0xb0] sm:$0x1] }
 0x109   : > { %12381 = vmatprep.mubr.msk.bf16.mxu1 %vm683_vm6, %v10581_v50  ;;  %v14834_v2 = vcombine.low %v583_v46, %v586_v60  ;;  %v1273_v5 = vsel %vm14615_vm5, %v1271_v56, %v1272_v57  ;;  %v10487_v6 = vrot.slane %v10463_v58, 9  ;;  %v1276_v8 = vrot.slane %v14826_v59, 5  ;;  %v10331_v11 = vld [vmem:[%s14571_s1 + $0xb4] sm:$0xc]  ;;  %v10332_v15 = vld [vmem:[%s14571_s1 + $0xb8] sm:$0xf] }
 0x10a   : > { %v10582_v16 = vcombine.low %v1270_v51, %v1273_v5  ;;  %v590_v17 = vsel %vm14603_vm4, %v10356_v61, %v589_v62  ;;  %v591_v18 = vrot.slane %v589_v62, 4  ;;  %v1279_v21 = vrot.slane %v10465_v1, 5  ;;  %v10333_v22 = vld [vmem:[%s14571_s1 + $0xbc] sm:$0x3]  ;;  %v10466_v23 = vld [vmem:[%s14571_s1 + $0xb4] sm:$0xe] }
 0x10b   : > { %v1277_v24 = vsel %vm14615_vm5, %v10487_v6, %v1276_v8  ;;  %v1278_v25 = vrot.slane %v1276_v8, 4  ;;  %v10357_v26 = vrot.slane %v10331_v11, 10  ;;  %v596_v27 = vrot.slane %v10332_v15, 6  ;;  %v14848_v28 = vld [vmem:[%s14571_s1 + $0xb8] sm:$0xf] }
 0x10c   : > { %v593_v30 = vsel %vm14603_vm4, %v591_v18, %v592_v63  ;;  %v599_v31 = vrot.slane %v10333_v22, 6  ;;  %v10468_v33 = vld [vmem:[%s14571_s1 + $0xbc] sm:$0x1]  ;;  %v10488_v37 = vrot.slane %v10466_v23, 9  ;;  %v1283_v38 = vrot.slane %v14848_v28, 5 }
 0x10d   : > { %v1383_v39 = vrot.slane %v14610_v12, 6  ;;  %v14855_v40 = vcombine.low %v590_v17, %v593_v30  ;;  %v1280_v42 = vsel %vm14615_vm5, %v1278_v25, %v1279_v21  ;;  %v598_v44 = vrot.slane %v596_v27, 4  ;;  %v10334_v46 = vld [vmem:[%s14571_s1 + $0xc0] sm:$0xc]  ;;  %v10335_v47 = vld [vmem:[%s14571_s1 + $0xc4] sm:$0xf] }
 0x10e   : > { %12310 = vmatmul.mubr.msk.bf16.gmra.mrb[16].mxu0 %vm683_vm6, %v14834_v2  ;;  %v10583_v48 = vcombine.low %v1277_v24, %v1280_v42  ;;  %v597_v49 = vsel %vm14603_vm4, %v10357_v26, %v596_v27  ;;  %v1285_v50 = vrot.slane %v1283_v38, 4  ;;  %v1286_v51 = vrot.slane %v10468_v33, 5  ;;  %v10336_v56 = vld [vmem:[%s14571_s1 + $0xc8] sm:$0x3]  ;;  %v10469_v57 = vld [vmem:[%s14571_s1 + $0xc0] sm:$0xe] }
 0x10f   : > { %12382 = vmatmul.mubr.msk.bf16.gmra.mrb[16].mxu1 %vm683_vm6, %v10582_v16  ;;  %12313 = vmatprep.mubr.msk.bf16.mxu0 %vm683_vm6, %v14855_v40  ;;  %v600_v58 = vsel %vm14603_vm4, %v598_v44, %v599_v31  ;;  %v10358_v60 = vrot.slane %v10334_v46, 10  ;;  %v603_v61 = vrot.slane %v10335_v47, 6  ;;  %v606_v62 = vrot.slane %v10336_v56, 6  ;;  %v14873_v63 = vld [vmem:[%s14571_s1 + $0xc4] sm:$0xf] }
 0x110   : > { %12385 = vmatprep.mubr.msk.bf16.mxu1 %vm683_vm6, %v10583_v48  ;;  %v1284_v1 = vsel %vm14615_vm5, %v10488_v37, %v1283_v38  ;;  %v1287_v5 = vsel %vm14615_vm5, %v1285_v50, %v1286_v51  ;;  %v10471_v6 = vld [vmem:[%s14571_s1 + $0xc8] sm:$0x1]  ;;  %v10489_v8 = vrot.slane %v10469_v57, 9  ;;  %v1290_v11 = vrot.slane %v14873_v63, 5  ;;  %v10337_v15 = vld [vmem:[%s14571_s1 + $0xcc] sm:$0xc] }
 0x111   : > { %v14883_v16 = vcombine.low %v597_v49, %v600_v58  ;;  %v604_v17 = vsel %vm14603_vm4, %v10358_v60, %v603_v61  ;;  %v605_v18 = vrot.slane %v603_v61, 4  ;;  %v1293_v21 = vrot.slane %v10471_v6, 5  ;;  %v10338_v22 = vld [vmem:[%s14571_s1 + $0xd0] sm:$0xf]  ;;  %v10339_v23 = vld [vmem:[%s14571_s1 + $0xd4] sm:$0x3] }
 0x112   : > { %v1291_v24 = vsel %vm14615_vm5, %v10489_v8, %v1290_v11  ;;  %v1292_v25 = vrot.slane %v1290_v11, 4  ;;  %v10359_v26 = vrot.slane %v10337_v15, 10  ;;  %v610_v27 = vrot.slane %v10338_v22, 6  ;;  %v10472_v30 = vld [vmem:[%s14571_s1 + $0xcc] sm:$0xe] }
 0x113   : > { %v10584_v31 = vcombine.low %v1284_v1, %v1287_v5  ;;  %v607_v33 = vsel %vm14603_vm4, %v605_v18, %v606_v62  ;;  %v613_v37 = vrot.slane %v10339_v23, 6  ;;  %v14895_v38 = vld [vmem:[%s14571_s1 + $0xd0] sm:$0xf]  ;;  %v10474_v42 = vld [vmem:[%s14571_s1 + $0xd4] sm:$0x1]  ;;  %v10490_v44 = vrot.slane %v10472_v30, 9 }
 0x114   : > { %v2084_v46 = vrot.slane %v14610_v12, 7  ;;  %v14899_v47 = vcombine.low %v604_v17, %v607_v33  ;;  %v1294_v48 = vsel %vm14615_vm5, %v1292_v25, %v1293_v21  ;;  %v612_v49 = vrot.slane %v610_v27, 4  ;;  %v10340_v50 = vld [vmem:[%s14571_s1 + $0xd8] sm:$0xc]  ;;  %v10341_v51 = vld [vmem:[%s14571_s1 + $0xdc] sm:$0xf] }
 0x115   : > { %v10585_v56 = vcombine.low %v1291_v24, %v1294_v48  ;;  %v1297_v57 = vrot.slane %v14895_v38, 5  ;;  %v1300_v58 = vrot.slane %v10474_v42, 5  ;;  %v10342_v60 = vld [vmem:[%s14571_s1 + $0xe0] sm:$0x3]  ;;  %v10360_v61 = vrot.slane %v10340_v50, 10 }
 0x116   : > { %18427 = vst [vmem:[#allocation23_spill] sm:$0xff] %v14899_v47  ;;  %12314 = vmatmul.mubr.msk.bf16.gmra.mrb[20].mxu0 %vm683_vm6, %v14883_v16  ;;  %v611_v62 = vsel %vm14603_vm4, %v10359_v26, %v610_v27  ;;  %v614_v1 = vsel %vm14603_vm4, %v612_v49, %v613_v37  ;;  %v617_v5 = vrot.slane %v10341_v51, 6  ;;  %v620_v6 = vrot.slane %v10342_v60, 6  ;;  %v14914_v8 = vld [vmem:[%s14571_s1 + $0x1c] sm:$0xf] }
 0x117   : > { %v10603_v11 = vld [vmem:[%s14571_s1 + $0x18] sm:$0x8]  ;;  %12386 = vmatmul.mubr.msk.bf16.gmra.mrb[20].mxu1 %vm683_vm6, %v10584_v31  ;;  %12317 = vmatprep.mubr.msk.bf16.mxu0 %vm683_vm6, %v14899_v47  ;;  %v1298_v15 = vsel %vm14615_vm5, %v10490_v44, %v1297_v57  ;;  %v1299_v17 = vrot.slane %v1297_v57, 4  ;;  %v10604_v18 = vld [vmem:[%s14571_s1 + $0x20] sm:$0x7]  ;;  %v18428_v21 = vmov 0  ;;  %v14935_v31 = vcombine.low %v611_v62, %v614_v1 }
 0x118   : > { %v18429_v21 = vsel %vm14925_vm9, 4294967295, %v18428_v21  ;;  %v10635_v22 = vrot.slane %v10603_v11, 11  ;;  %v2683_v23 = vld [vmem:[#allocation7 + $0x6] sm:$0x3]  ;;  %12389 = vmatprep.mubr.msk.bf16.mxu1 %vm683_vm6, %v10585_v56  ;;  %v618_v24 = vsel %vm14603_vm4, %v10360_v61, %v617_v5  ;;  %v619_v25 = vrot.slane %v617_v5, 4 }
 0x119   : > { %18430 = vst [vmem:[#allocation24_spill] sm:$0xff] %v18429_v21  ;;  %v2070_v26 = vrot.slane %v14914_v8, 7  ;;  %v2073_v27 = vrot.slane %v10604_v18, 7  ;;  %13674 = vmatprep.subr.msk.bf16.mxu1 %vm514_vm0, %v2683_v23  ;;  %v10343_v30 = vld [vmem:[%s14571_s1 + $0xe4] sm:$0xc]  ;;  %18431 = vst [vmem:[#allocation25_spill] sm:$0xff] %v14935_v31  ;;  %v1301_v33 = vsel %vm14615_vm5, %v1299_v17, %v1300_v58 }
 0x11a   : > { %v10344_v37 = vld [vmem:[%s14571_s1 + $0xe8] sm:$0xf]  ;;  %v10345_v42 = vld [vmem:[%s14571_s1 + $0xec] sm:$0x3]  ;;  %v10361_v44 = vrot.slane %v10343_v30, 10  ;;  %v14942_v48 = vsel %vm514_vm0, %v2683_v23, 0  ;;  %v10586_v49 = vcombine.low %v1298_v15, %v1301_v33  ;;  %v621_v50 = vsel %vm14603_vm4, %v619_v25, %v620_v6 }
 0x11b   : > { %v2071_v51 = vsel %vm14925_vm9, %v10635_v22, %v2070_v26  ;;  %v2072_v56 = vrot.slane %v2070_v26, 4  ;;  %v14949_v57 = vld [vmem:[%s14571_s1 + $0x28] sm:$0xf]  ;;  %v10605_v60 = vld [vmem:[%s14571_s1 + $0x24] sm:$0x8]  ;;  %v14952_v58 = vcombine.low %v618_v24, %v621_v50  ;;  %v624_v61 = vrot.slane %v10344_v37, 6 }
 0x11c   : > { %v627_v62 = vrot.slane %v10345_v42, 6  ;;  %v10606_v1 = vld [vmem:[%s14571_s1 + $0x2c] sm:$0x7]  ;;  %v10636_v5 = vrot.slane %v10605_v60, 11  ;;  %v2077_v6 = vrot.slane %v14949_v57, 7  ;;  %v1369_v42 = vrot.slane %v14914_v8, 6 }
 0x11d   : > { %18432 = vst [vmem:[#allocation26_spill] sm:$0xff] %v14952_v58  ;;  %v2074_v11 = vsel %vm14925_vm9, %v2072_v56, %v2073_v27  ;;  %v2080_v15 = vrot.slane %v10606_v1, 7  ;;  %v1480_v17 = vld [vmem:[#allocation7 + $0x2] sm:$0x3]  ;;  %v10491_v18 = vld [vmem:[%s14571_s1 + $0x18] sm:$0xc]  ;;  %v625_v23 = vsel %vm14603_vm4, %v10361_v44, %v624_v61 }
 0x11e   : > { %v10651_v22 = vcombine.low %v2071_v51, %v2074_v11  ;;  %v626_v24 = vrot.slane %v624_v61, 4  ;;  %13670 = vmatprep.subr.msk.bf16.mxu0 %vm514_vm0, %v1480_v17  ;;  %v1578_v25 = vsel %vm514_vm0, %v1480_v17, 0  ;;  %v10492_v26 = vld [vmem:[%s14571_s1 + $0x20] sm:$0x3]  ;;  %v10607_v30 = vld [vmem:[%s14571_s1 + $0x30] sm:$0x8]  ;;  %12318 = vmatmul.mubr.msk.bf16.gmra.mrb[24].mxu0 %vm683_vm6, %v14935_v31  ;;  %v2078_v27 = vsel %vm14925_vm9, %v10636_v5, %v2077_v6 }
 0x11f   : > { %v2079_v33 = vrot.slane %v2077_v6, 4  ;;  %v10523_v37 = vrot.slane %v10491_v18, 10  ;;  %v10608_v44 = vld [vmem:[%s14571_s1 + $0x38] sm:$0x7]  ;;  %12390 = vmatmul.mubr.msk.bf16.gmra.mrb[24].mxu1 %vm683_vm6, %v10586_v49  ;;  %12321 = vmatprep.mubr.msk.bf16.mxu0 %vm683_vm6, %v14952_v58  ;;  %v1372_v51 = vrot.slane %v10492_v26, 6  ;;  %v10637_v56 = vrot.slane %v10607_v30, 11 }
 0x120   : > { %v628_v50 = vsel %vm14603_vm4, %v626_v24, %v627_v62  ;;  %v2086_v60 = vrot.slane %v2084_v46, 4  ;;  %v10493_v61 = vld [vmem:[%s14571_s1 + $0x24] sm:$0xc]  ;;  %12395 = vmatprep.mubr.msk.bf16.mxu1 %vm683_vm6, %v10651_v22  ;;  %12326 = vmatpush3.bf16.msra.mxu0 %v1578_v25  ;;  %v1371_v5 = vrot.slane %v1369_v42, 4  ;;  %v10494_v11 = vld [vmem:[%s14571_s1 + $0x2c] sm:$0x3] }
 0x121   : > { %v14980_v1 = vcombine.low %v625_v23, %v628_v50  ;;  %v2081_v49 = vsel %vm14925_vm9, %v2079_v33, %v2080_v15  ;;  %v1370_v62 = vsel %vm14603_vm4, %v10523_v37, %v1369_v42  ;;  %v10609_v6 = vld [vmem:[%s14571_s1 + $0x3c] sm:$0x8]  ;;  %v2085_v18 = vsel %vm14925_vm9, %v10637_v56, %v2084_v46  ;;  %v10610_v24 = vld [vmem:[%s14571_s1 + $0x44] sm:$0x7]  ;;  %v10495_v26 = vld [vmem:[%s14571_s1 + $0x30] sm:$0xc]  ;;  %13671 = vmatprep.subr.msk.bf16.mxu0 %vm514_vm0, %v14589_v0 }
 0x122   : > { %v10652_v17 = vcombine.low %v2078_v27, %v2081_v49  ;;  %v2087_v22 = vrot.slane %v10608_v44, 7  ;;  %v10524_v23 = vrot.slane %v10493_v61, 10  ;;  %v1373_v15 = vsel %vm14603_vm4, %v1371_v5, %v1372_v51  ;;  %v10496_v33 = vld [vmem:[%s14571_s1 + $0x38] sm:$0x3]  ;;  %v10611_v50 = vld [vmem:[%s14571_s1 + $0x48] sm:$0x8] }
 0x123   : > { %18433 = vst [vmem:[#allocation27_spill] sm:$0xff] %v14980_v1  ;;  %v1376_v25 = vrot.slane %v14949_v57, 6  ;;  %v1379_v30 = vrot.slane %v10494_v11, 6  ;;  %v10638_v27 = vrot.slane %v10609_v6, 11  ;;  %v10539_v37 = vcombine.low %v1370_v62, %v1373_v15  ;;  %v10612_v49 = vld [vmem:[%s14571_s1 + $0x50] sm:$0x7] }
 0x124   : > { %v2088_v46 = vsel %vm14925_vm9, %v2086_v60, %v2087_v22  ;;  %v2091_v42 = vrot.slane %v14634_v32, 7  ;;  %v2094_v44 = vrot.slane %v10610_v24, 7  ;;  %v10525_v61 = vrot.slane %v10495_v26, 10  ;;  %v10497_v6 = vld [vmem:[%s14571_s1 + $0x3c] sm:$0xc] }
 0x125   : > { %v10653_v0 = vcombine.low %v2085_v18, %v2088_v46  ;;  %v1377_v51 = vsel %vm14603_vm4, %v10524_v23, %v1376_v25  ;;  %v1378_v56 = vrot.slane %v1376_v25, 4  ;;  %v1385_v60 = vrot.slane %v1383_v39, 4  ;;  %v10498_v24 = vld [vmem:[%s14571_s1 + $0x44] sm:$0x3]  ;;  %v10613_v26 = vld [vmem:[%s14571_s1 + $0x54] sm:$0x8] }
 0x126   : > { %v2092_v5 = vsel %vm14925_vm9, %v10638_v27, %v2091_v42  ;;  %v2093_v62 = vrot.slane %v2091_v42, 4  ;;  %v1386_v11 = vrot.slane %v10496_v33, 6  ;;  %12322 = vmatmul.mubr.msk.bf16.gmra.mrb[28].mxu0 %vm683_vm6, %v14980_v1  ;;  %v10639_v22 = vrot.slane %v10611_v50, 11  ;;  %v10614_v33 = vld [vmem:[%s14571_s1 + $0x5c] sm:$0x7] }
 0x127   : > { %v1380_v18 = vsel %vm14603_vm4, %v1378_v56, %v1379_v30  ;;  %v2098_v23 = vrot.slane %v14655_v52, 7  ;;  %12396 = vmatmul.mubr.msk.bf16.vlgmr.msra.gmra.mrb[28].mxu1 %vm683_vm6, %v10652_v17  ;;  %12327 = vmatprep.mubr.msk.bf16.mxu0 %vm683_vm6, %v10539_v37  ;;  %v1384_v25 = vsel %vm14603_vm4, %v10525_v61, %v1383_v39  ;;  %v2101_v27 = vrot.slane %v10612_v49, 7  ;;  %v10499_v42 = vld [vmem:[%s14571_s1 + $0x48] sm:$0xc]  ;;  %v10500_v61 = vld [vmem:[%s14571_s1 + $0x50] sm:$0x3] }
 0x128   : > { %v2095_v15 = vsel %vm14925_vm9, %v2093_v62, %v2094_v44  ;;  %v1387_v30 = vsel %vm14603_vm4, %v1385_v60, %v1386_v11  ;;  %12428 = vmatpush3.bf16.msra.mxu1 %v14942_v48  ;;  %12399 = vmatprep.mubr.msk.bf16.mxu1 %vm683_vm6, %v10653_v0  ;;  %v10540_v17 = vcombine.low %v1377_v51, %v1380_v18  ;;  %v10526_v44 = vrot.slane %v10497_v6, 10  ;;  %v10616_v18 = vld [vmem:[%s14571_s1 + $0x68] sm:$0x7]  ;;  %v11583_v7 = vld [vmem:[%s14571_s1 + $0x8c] sm:$0xf] }
 0x129   : > { %v10654_v37 = vcombine.low %v2092_v5, %v2095_v15  ;;  %v2099_v46 = vsel %vm14925_vm9, %v10639_v22, %v2098_v23  ;;  %v2100_v12 = vrot.slane %v2098_v23, 4  ;;  %v1390_v39 = vrot.slane %v14634_v32, 6  ;;  %v10615_v5 = vld [vmem:[%s14571_s1 + $0x60] sm:$0x8] }
 0x12a   : > { %v1393_v50 = vrot.slane %v10498_v24, 6  ;;  %v10640_v56 = vrot.slane %v10613_v26, 11  ;;  %v10541_v49 = vcombine.low %v1384_v25, %v1387_v30  ;;  %v2105_v0 = vrot.slane %v14674_v9, 7 }
 0x12b   : > { %v2102_v48 = vsel %vm14925_vm9, %v2100_v12, %v2101_v27  ;;  %v2108_v51 = vrot.slane %v10614_v33, 7  ;;  %v1392_v60 = vrot.slane %v1390_v39, 4  ;;  %v10527_v11 = vrot.slane %v10499_v42, 10  ;;  %v10501_v27 = vld [vmem:[%s14571_s1 + $0x54] sm:$0xc] }
 0x12c   : > { %v10655_v62 = vcombine.low %v2099_v46, %v2102_v48  ;;  %v1397_v6 = vrot.slane %v14655_v52, 6  ;;  %v1391_v32 = vsel %vm14603_vm4, %v10526_v44, %v1390_v39  ;;  %v2106_v22 = vsel %vm14925_vm9, %v10640_v56, %v2105_v0  ;;  %v10502_v46 = vld [vmem:[%s14571_s1 + $0x5c] sm:$0x3]  ;;  %v10617_v39 = vld [vmem:[%s14571_s1 + $0x6c] sm:$0x8] }
 0x12d   : > { %v2107_v23 = vrot.slane %v2105_v0, 4  ;;  %v1400_v24 = vrot.slane %v10500_v61, 6  ;;  %v1394_v26 = vsel %vm14603_vm4, %v1392_v60, %v1393_v50  ;;  %v10641_v25 = vrot.slane %v10615_v5, 11  ;;  %v10503_v50 = vld [vmem:[%s14571_s1 + $0x60] sm:$0xc] }
 0x12e   : > { %v1399_v15 = vrot.slane %v1397_v6, 4  ;;  %v2112_v30 = vrot.slane %v14698_v34, 7  ;;  %12328 = vmatmul.mubr.msk.bf16.vlgmr.msra.gmra.mrb[32].mxu0 %vm683_vm6, %v10540_v17  ;;  %v2115_v33 = vrot.slane %v10616_v18, 7  ;;  %v10542_v12 = vcombine.low %v1391_v32, %v1394_v26  ;;  %v10618_v48 = vld [vmem:[%s14571_s1 + $0x74] sm:$0x7] }
 0x12f   : > { %v2109_v52 = vsel %vm14925_vm9, %v2107_v23, %v2108_v51  ;;  %12400 = vmatmul.mubr.msk.bf16.gmra.mrb[0].mxu1 %vm683_vm6, %v10654_v37  ;;  %12331 = vmatprep.mubr.msk.bf16.mxu0 %vm683_vm6, %v10541_v49  ;;  %v1398_v42 = vsel %vm14603_vm4, %v10527_v11, %v1397_v6  ;;  %v10528_v61 = vrot.slane %v10501_v27, 10  ;;  %v1404_v37 = vrot.slane %v14674_v9, 6  ;;  %v10504_v49 = vld [vmem:[%s14571_s1 + $0x68] sm:$0x3]  ;;  %v10619_v60 = vld [vmem:[%s14571_s1 + $0x78] sm:$0x8] }
 0x130   : > { %v2114_v44 = vrot.slane %v2112_v30, 4  ;;  %12403 = vmatprep.mubr.msk.bf16.mxu1 %vm683_vm6, %v10655_v62  ;;  %v10656_v17 = vcombine.low %v2106_v22, %v2109_v52  ;;  %v1401_v56 = vsel %vm14603_vm4, %v1399_v15, %v1400_v24  ;;  %12360 = vmatpush3.bf16.msra.mxu0 %v14597_v3  ;;  %v2113_v0 = vsel %vm14925_vm9, %v10641_v25, %v2112_v30  ;;  %v10620_v32 = vld [vmem:[%s14571_s1 + $0x80] sm:$0x7]  ;;  %v10505_v27 = vld [vmem:[%s14571_s1 + $0x6c] sm:$0xc] }
 0x131   : > { %v1407_v5 = vrot.slane %v10502_v46, 6  ;;  %v2119_v62 = vrot.slane %v14716_v53, 7  ;;  %v1406_v11 = vrot.slane %v1404_v37, 4  ;;  %v10642_v6 = vrot.slane %v10617_v39, 11  ;;  %v10506_v46 = vld [vmem:[%s14571_s1 + $0x74] sm:$0x3] }
 0x132   : > { %v2116_v51 = vsel %vm14925_vm9, %v2114_v44, %v2115_v33  ;;  %v10529_v9 = vrot.slane %v10503_v50, 10  ;;  %v1411_v18 = vrot.slane %v14698_v34, 6  ;;  %v10543_v3 = vcombine.low %v1398_v42, %v1401_v56  ;;  %v10621_v34 = vld [vmem:[%s14571_s1 + $0x84] sm:$0x8]  ;;  %v10622_v56 = vld [vmem:[%s14571_s1 + $0x8c] sm:$0x7] }
 0x133   : > { %v2121_v22 = vrot.slane %v2119_v62, 4  ;;  %v2122_v23 = vrot.slane %v10618_v48, 7  ;;  %v1414_v24 = vrot.slane %v10504_v49, 6  ;;  %v10657_v26 = vcombine.low %v2113_v0, %v2116_v51  ;;  %v10507_v49 = vld [vmem:[%s14571_s1 + $0x78] sm:$0xc] }
 0x134   : > { %v1413_v15 = vrot.slane %v1411_v18, 4  ;;  %v10643_v25 = vrot.slane %v10619_v60, 11  ;;  %v2126_v30 = vrot.slane %v14742_v19, 7  ;;  %v1405_v52 = vsel %vm14603_vm4, %v10528_v61, %v1404_v37  ;;  %v10508_v0 = vld [vmem:[%s14571_s1 + $0x80] sm:$0x3] }
 0x135   : > { %v2129_v33 = vrot.slane %v10620_v32, 7  ;;  %v1408_v42 = vsel %vm14603_vm4, %v1406_v11, %v1407_v5  ;;  %v2120_v44 = vsel %vm14925_vm9, %v10642_v6, %v2119_v62  ;;  %v1412_v39 = vsel %vm14603_vm4, %v10529_v9, %v1411_v18 }
 0x136   : > { %12332 = vmatmul.mubr.msk.bf16.gmra.mrb[36].mxu0 %vm683_vm6, %v10542_v12  ;;  %v2128_v50 = vrot.slane %v2126_v30, 4  ;;  %v2123_v61 = vsel %vm14925_vm9, %v2121_v22, %v2122_v23  ;;  %v1415_v12 = vsel %vm14603_vm4, %v1413_v15, %v1414_v24  ;;  %v10530_v37 = vrot.slane %v10505_v27, 10  ;;  %v10624_v23 = vld [vmem:[%s14571_s1 + $0x98] sm:$0x7] }
 0x137   : > { %12404 = vmatmul.mubr.msk.bf16.gmra.mrb[4].mxu1 %vm683_vm6, %v10656_v17  ;;  %12335 = vmatprep.mubr.msk.bf16.mxu0 %vm683_vm6, %v10543_v3  ;;  %v1418_v48 = vrot.slane %v14716_v53, 6  ;;  %v2127_v17 = vsel %vm14925_vm9, %v10643_v25, %v2126_v30  ;;  %v1421_v51 = vrot.slane %v10506_v46, 6  ;;  %v10644_v5 = vrot.slane %v10621_v34, 11  ;;  %v10623_v53 = vld [vmem:[%s14571_s1 + $0x90] sm:$0x8] }
 0x138   : > { %12407 = vmatprep.mubr.msk.bf16.mxu1 %vm683_vm6, %v10657_v26  ;;  %v2133_v62 = vrot.slane %v14764_v45, 7  ;;  %v2130_v60 = vsel %vm14925_vm9, %v2128_v50, %v2129_v33  ;;  %v2136_v6 = vrot.slane %v10622_v56, 7  ;;  %v1425_v9 = vrot.slane %v14742_v19, 6  ;;  %v10510_v56 = vld [vmem:[%s14571_s1 + $0x8c] sm:$0x3] }
 0x139   : > { %v1420_v11 = vrot.slane %v1418_v48, 4  ;;  %v10544_v18 = vcombine.low %v1405_v52, %v1408_v42  ;;  %v10531_v3 = vrot.slane %v10507_v49, 10  ;;  %v1428_v22 = vrot.slane %v10508_v0, 6  ;;  %v10511_v0 = vld [vmem:[%s14571_s1 + $0x90] sm:$0xc] }
 0x13a   : > { %v2135_v32 = vrot.slane %v2133_v62, 4  ;;  %v10658_v24 = vcombine.low %v2120_v44, %v2123_v61  ;;  %v10545_v26 = vcombine.low %v1412_v39, %v1415_v12  ;;  %v1427_v15 = vrot.slane %v1425_v9, 4  ;;  %v10509_v44 = vld [vmem:[%s14571_s1 + $0x84] sm:$0xc]  ;;  %v10625_v12 = vld [vmem:[%s14571_s1 + $0x9c] sm:$0x8] }
 0x13b   : > { %v2140_v25 = vrot.slane %v14786_v4, 7  ;;  %v10659_v30 = vcombine.low %v2127_v17, %v2130_v60  ;;  %v1419_v27 = vsel %vm14603_vm4, %v10530_v37, %v1418_v48  ;;  %v1422_v19 = vsel %vm14603_vm4, %v1420_v11, %v1421_v51  ;;  %v10626_v48 = vld [vmem:[%s14571_s1 + $0xa4] sm:$0x7]  ;;  %v10627_v60 = vld [vmem:[%s14571_s1 + $0xa8] sm:$0x8] }
 0x13c   : > { %v10645_v52 = vrot.slane %v10623_v53, 11  ;;  %v2134_v33 = vsel %vm14925_vm9, %v10644_v5, %v2133_v62  ;;  %v2137_v46 = vsel %vm14925_vm9, %v2135_v32, %v2136_v6  ;;  %v2143_v42 = vrot.slane %v10624_v23, 7  ;;  %v10512_v62 = vld [vmem:[%s14571_s1 + $0x98] sm:$0x3] }
 0x13d   : > { %v2142_v34 = vrot.slane %v2140_v25, 4  ;;  %v1426_v39 = vsel %vm14603_vm4, %v10531_v3, %v1425_v9  ;;  %v1429_v50 = vsel %vm14603_vm4, %v1427_v15, %v1428_v22  ;;  %v1432_v61 = vrot.slane %v14764_v45, 6 }
 0x13e   : > { %12336 = vmatmul.mubr.msk.bf16.gmra.mrb[40].mxu0 %vm683_vm6, %v10544_v18  ;;  %v10546_v37 = vcombine.low %v1419_v27, %v1422_v19  ;;  %v2147_v49 = vrot.slane %v14804_v35, 7  ;;  %v10660_v17 = vcombine.low %v2134_v33, %v2137_v46  ;;  %v2141_v51 = vsel %vm14925_vm9, %v10645_v52, %v2140_v25  ;;  %v10628_v18 = vld [vmem:[%s14571_s1 + $0xb0] sm:$0x7]  ;;  %v15141_v25 = vld [vmem:[#allocation7 + $0x8] sm:$0x3] }
 0x13f   : > { %12408 = vmatmul.mubr.msk.bf16.gmra.mrb[8].mxu1 %vm683_vm6, %v10658_v24  ;;  %12339 = vmatprep.mubr.msk.bf16.mxu0 %vm683_vm6, %v10545_v26  ;;  %v10532_v5 = vrot.slane %v10509_v44, 10  ;;  %v1439_v45 = vrot.slane %v14786_v4, 6  ;;  %v10547_v11 = vcombine.low %v1426_v39, %v1429_v50  ;;  %v2144_v6 = vsel %vm14925_vm9, %v2142_v34, %v2143_v42  ;;  %v10513_v52 = vld [vmem:[%s14571_s1 + $0x9c] sm:$0xc]  ;;  %v10514_v46 = vld [vmem:[%s14571_s1 + $0xa4] sm:$0x3] }
 0x140   : > { %12411 = vmatprep.mubr.msk.bf16.mxu1 %vm683_vm6, %v10659_v30  ;;  %v1435_v9 = vrot.slane %v10510_v56, 6  ;;  %v10646_v53 = vrot.slane %v10625_v12, 11  ;;  %v1434_v32 = vrot.slane %v1432_v61, 4  ;;  %v2150_v3 = vrot.slane %v10626_v48, 7  ;;  %13675 = vmatprep.subr.msk.bf16.mxu1 %vm514_vm0, %v15141_v25  ;;  %v10629_v50 = vld [vmem:[%s14571_s1 + $0xb4] sm:$0x8] }
 0x141   : > { %v10533_v22 = vrot.slane %v10511_v0, 10  ;;  %v2154_v23 = vrot.slane %v14826_v59, 7  ;;  %v2149_v24 = vrot.slane %v2147_v49, 4  ;;  %v1441_v26 = vrot.slane %v1439_v45, 4  ;;  %v10630_v56 = vld [vmem:[%s14571_s1 + $0xbc] sm:$0x7] }
 0x142   : > { %v1442_v15 = vrot.slane %v10512_v62, 6  ;;  %v10647_v4 = vrot.slane %v10627_v60, 11  ;;  %v10661_v30 = vcombine.low %v2141_v51, %v2144_v6  ;;  %v2157_v19 = vrot.slane %v10628_v18, 7  ;;  %v10631_v6 = vld [vmem:[%s14571_s1 + $0xc0] sm:$0x8] }
 0x143   : > { %v2156_v27 = vrot.slane %v2154_v23, 4  ;;  %v1433_v33 = vsel %vm14603_vm4, %v10532_v5, %v1432_v61  ;;  %v1446_v34 = vrot.slane %v14804_v35, 6  ;;  %v1436_v42 = vsel %vm14603_vm4, %v1434_v32, %v1435_v9  ;;  %v10516_v5 = vld [vmem:[%s14571_s1 + $0xb0] sm:$0x3]  ;;  %v10632_v32 = vld [vmem:[%s14571_s1 + $0xc8] sm:$0x7] }
 0x144   : > { %v2148_v44 = vsel %vm14925_vm9, %v10646_v53, %v2147_v49  ;;  %v1440_v39 = vsel %vm14603_vm4, %v10533_v22, %v1439_v45  ;;  %v2161_v61 = vrot.slane %v14848_v28, 7  ;;  %v2151_v35 = vsel %vm14925_vm9, %v2149_v24, %v2150_v3  ;;  %v10515_v49 = vld [vmem:[%s14571_s1 + $0xa8] sm:$0xc] }
 0x145   : > { %v1443_v12 = vsel %vm14603_vm4, %v1441_v26, %v1442_v15  ;;  %v10534_v48 = vrot.slane %v10513_v52, 10  ;;  %v2158_v0 = vsel %vm14925_vm9, %v2156_v27, %v2157_v19  ;;  %v1449_v51 = vrot.slane %v10514_v46, 6  ;;  %v10518_v46 = vld [vmem:[%s14571_s1 + $0xbc] sm:$0x3] }
 0x146   : > { %12340 = vmatmul.mubr.msk.bf16.gmra.mrb[44].mxu0 %vm683_vm6, %v10546_v37  ;;  %v2155_v37 = vsel %vm14925_vm9, %v10647_v4, %v2154_v23  ;;  %v1453_v62 = vrot.slane %v14826_v59, 6  ;;  %v10648_v45 = vrot.slane %v10629_v50, 11  ;;  %v2163_v60 = vrot.slane %v2161_v61, 4  ;;  %v10684_v50 = vld [vmem:[%s14571_s1 + $0x34] sm:$0xf] }
 0x147   : > { %12412 = vmatmul.mubr.msk.bf16.gmra.mrb[12].mxu1 %vm683_vm6, %v10660_v17  ;;  %12343 = vmatprep.mubr.msk.bf16.mxu0 %vm683_vm6, %v10547_v11  ;;  %v1448_v17 = vrot.slane %v1446_v34, 4  ;;  %v2164_v11 = vrot.slane %v10630_v56, 7  ;;  %v2168_v9 = vrot.slane %v14873_v63, 7  ;;  %v10548_v53 = vcombine.low %v1433_v33, %v1436_v42 }
 0x148   : > { %12415 = vmatprep.mubr.msk.bf16.mxu1 %vm683_vm6, %v10661_v30  ;;  %v10662_v18 = vcombine.low %v2148_v44, %v2151_v35  ;;  %v10549_v3 = vcombine.low %v1440_v39, %v1443_v12  ;;  %v10663_v22 = vcombine.low %v2155_v37, %v2158_v0  ;;  %v1447_v23 = vsel %vm14603_vm4, %v10534_v48, %v1446_v34  ;;  %v10517_v30 = vld [vmem:[%s14571_s1 + $0xb4] sm:$0xc]  ;;  %v10633_v44 = vld [vmem:[%s14571_s1 + $0xcc] sm:$0x8] }
 0x149   : > { %v10535_v24 = vrot.slane %v10515_v49, 10  ;;  %v1450_v59 = vsel %vm14603_vm4, %v1448_v17, %v1449_v51  ;;  %v1455_v26 = vrot.slane %v1453_v62, 4  ;;  %v1456_v15 = vrot.slane %v10516_v5, 6  ;;  %v15187_v34 = vld [vmem:[#allocation8 + $0x2] sm:$0x3] }
 0x14a   : > { %v10649_v4 = vrot.slane %v10631_v6, 11  ;;  %v2162_v27 = vsel %vm14925_vm9, %v10648_v45, %v2161_v61  ;;  %v2165_v19 = vsel %vm14925_vm9, %v2163_v60, %v2164_v11  ;;  %v2170_v52 = vrot.slane %v2168_v9, 4  ;;  %13680 = vmatprep.subr.msk.bf16.mxu0 %vm514_vm0, %v15187_v34  ;;  %v10634_v35 = vld [vmem:[%s14571_s1 + $0xd4] sm:$0x7]  ;;  %v10520_v17 = vld [vmem:[%s14571_s1 + $0xc8] sm:$0x3] }
 0x14b   : > { %v2171_v33 = vrot.slane %v10632_v32, 7  ;;  %v1460_v42 = vrot.slane %v14848_v28, 6  ;;  %v2175_v39 = vrot.slane %v14895_v38, 7  ;;  %v10550_v56 = vcombine.low %v1447_v23, %v1450_v59  ;;  %v10519_v28 = vld [vmem:[%s14571_s1 + $0xc0] sm:$0xc] }
 0x14c   : > { %v1454_v61 = vsel %vm14603_vm4, %v10535_v24, %v1453_v62  ;;  %v1467_v12 = vrot.slane %v14873_v63, 6  ;;  %v10664_v37 = vcombine.low %v2162_v27, %v2165_v19  ;;  %v1457_v48 = vsel %vm14603_vm4, %v1455_v26, %v1456_v15  ;;  %v10683_v51 = vld [vmem:[%s14571_s1 + $0x30] sm:$0xe]  ;;  %v15213_v60 = vld [vmem:[%s14571_s1 + $0x40] sm:$0xf] }
 0x14d   : > { %v2169_v49 = vsel %vm14925_vm9, %v10649_v4, %v2168_v9  ;;  %v10536_v0 = vrot.slane %v10517_v30, 10  ;;  %v2172_v5 = vsel %vm14925_vm9, %v2170_v52, %v2171_v33  ;;  %v1463_v62 = vrot.slane %v10518_v46, 6  ;;  %v10685_v9 = vld [vmem:[%s14571_s1 + $0x38] sm:$0x1]  ;;  %v10521_v23 = vld [vmem:[%s14571_s1 + $0xcc] sm:$0xc] }
 0x14e   : > { %12344 = vmatmul.mubr.msk.bf16.gmra.mrb[48].mxu0 %vm683_vm6, %v10548_v53  ;;  %v10650_v63 = vrot.slane %v10633_v44, 11  ;;  %v2572_v45 = vrot.slane %v10684_v50, 5  ;;  %v1462_v11 = vrot.slane %v1460_v42, 4  ;;  %v2177_v6 = vrot.slane %v2175_v39, 4  ;;  %v10522_v15 = vld [vmem:[%s14571_s1 + $0xd4] sm:$0x3] }
 0x14f   : > { %12416 = vmatmul.mubr.msk.bf16.gmra.mrb[16].mxu1 %vm683_vm6, %v10662_v18  ;;  %12347 = vmatprep.mubr.msk.bf16.mxu0 %vm683_vm6, %v10549_v3  ;;  %v2178_v53 = vrot.slane %v10634_v35, 7  ;;  %v10537_v18 = vrot.slane %v10519_v28, 10  ;;  %v10551_v32 = vcombine.low %v1454_v61, %v1457_v48  ;;  %v1469_v3 = vrot.slane %v1467_v12, 4  ;;  %v10686_v4 = vld [vmem:[%s14571_s1 + $0x3c] sm:$0xe] }
 0x150   : > { %12419 = vmatprep.mubr.msk.bf16.mxu1 %vm683_vm6, %v10663_v22  ;;  %v1470_v22 = vrot.slane %v10520_v17, 6  ;;  %v1474_v24 = vrot.slane %v14895_v38, 6  ;;  %v10665_v59 = vcombine.low %v2169_v49, %v2172_v5  ;;  %v1461_v26 = vsel %vm14603_vm4, %v10536_v0, %v1460_v42  ;;  %v10688_v46 = vld [vmem:[%s14571_s1 + $0x44] sm:$0x1]  ;;  %v10427_v28 = vld [vmem:[%s14571_s1 + $0x18] sm:$0xe] }
 0x151   : > { %v2579_v30 = vrot.slane %v15213_v60, 5  ;;  %v2176_v27 = vsel %vm14925_vm9, %v10650_v63, %v2175_v39  ;;  %v10731_v19 = vrot.slane %v10683_v51, 9  ;;  %v2574_v52 = vrot.slane %v2572_v45, 4  ;;  %v15234_v39 = vld [vmem:[%s14571_s1 + $0x4c] sm:$0xf] }
 0x152   : > { %v2575_v33 = vrot.slane %v10685_v9, 5  ;;  %v1464_v38 = vsel %vm14603_vm4, %v1462_v11, %v1463_v62  ;;  %v2179_v42 = vsel %vm14925_vm9, %v2177_v6, %v2178_v53  ;;  %v1468_v44 = vsel %vm14603_vm4, %v10537_v18, %v1467_v12  ;;  %18434 = vst [vmem:[#allocation28_spill] sm:$0xff] %v15234_v39  ;;  %v10429_v17 = vld [vmem:[%s14571_s1 + $0x20] sm:$0x1]  ;;  %v10689_v5 = vld [vmem:[%s14571_s1 + $0x48] sm:$0xe] }
 0x153   : > { %v10538_v50 = vrot.slane %v10521_v23, 10  ;;  %v1476_v61 = vrot.slane %v1474_v24, 4  ;;  %v1477_v35 = vrot.slane %v10522_v15, 6  ;;  %v1192_v48 = vrot.slane %v14914_v8, 5  ;;  %v10691_v53 = vld [vmem:[%s14571_s1 + $0x50] sm:$0x1] }
 0x154   : > { %v10732_v12 = vrot.slane %v10686_v4, 9  ;;  %v2581_v49 = vrot.slane %v2579_v30, 4  ;;  %v2582_v0 = vrot.slane %v10688_v46, 5  ;;  %v2576_v51 = vsel %vm14615_vm5, %v2574_v52, %v2575_v33  ;;  %v15252_v18 = vld [vmem:[%s14571_s1 + $0x58] sm:$0xf] }
 0x155   : > { %v2586_v62 = vrot.slane %v15234_v39, 5  ;;  %v10552_v63 = vcombine.low %v1461_v26, %v1464_v38  ;;  %v10666_v8 = vcombine.low %v2176_v27, %v2179_v42  ;;  %v10475_v6 = vrot.slane %v10427_v28, 9  ;;  %18435 = vst [vmem:[#allocation29_spill] sm:$0xff] %v15252_v18  ;;  %v10432_v23 = vld [vmem:[%s14571_s1 + $0x2c] sm:$0x1] }
 0x156   : > { %12348 = vmatmul.mubr.msk.bf16.gmra.mrb[52].mxu0 %vm683_vm6, %v10550_v56  ;;  %v1471_v56 = vsel %vm14603_vm4, %v1469_v3, %v1470_v22  ;;  %v15256_v9 = vsel %vm14603_vm4, %v10538_v50, %v1474_v24  ;;  %v1195_v3 = vrot.slane %v10429_v17, 5  ;;  %v10430_v22 = vld [vmem:[%s14571_s1 + $0x24] sm:$0xe]  ;;  %v2580_v26 = vsel %vm14615_vm5, %v10732_v12, %v2579_v30  ;;  %v10692_v46 = vld [vmem:[%s14571_s1 + $0x54] sm:$0xe] }
 0x157   : > { %12420 = vmatmul.mubr.msk.bf16.gmra.mrb[20].mxu1 %vm683_vm6, %v10664_v37  ;;  %12351 = vmatprep.mubr.msk.bf16.mxu0 %vm683_vm6, %v10551_v32  ;;  %v2573_v37 = vsel %vm14615_vm5, %v10731_v19, %v2572_v45  ;;  %v10553_v11 = vcombine.low %v1468_v44, %v1471_v56  ;;  %v15260_v45 = vsel %vm14603_vm4, %v1476_v61, %v1477_v35  ;;  %v1194_v32 = vrot.slane %v1192_v48, 4  ;;  %v15269_v4 = vld [vmem:[%s14571_s1 + $0x64] sm:$0xf]  ;;  %v10694_v44 = vld [vmem:[%s14571_s1 + $0x5c] sm:$0x1] }
 0x158   : > { %12423 = vmatprep.mubr.msk.bf16.mxu1 %vm683_vm6, %v10665_v59  ;;  %v10747_v59 = vcombine.low %v2573_v37, %v2576_v51  ;;  %v2583_v15 = vsel %vm14615_vm5, %v2581_v49, %v2582_v0  ;;  %v10733_v24 = vrot.slane %v10689_v5, 9  ;;  %18436 = vst [vmem:[#allocation30_spill] sm:$0xff] %v15269_v4  ;;  %v15272_v27 = vld [vmem:[%s14571_s1 + $0x4] sm:$0xf]  ;;  %v2588_v19 = vrot.slane %v2586_v62, 4 }
 0x159   : > { %v2589_v52 = vrot.slane %v10691_v53, 5  ;;  %v1199_v33 = vrot.slane %v14949_v57, 5  ;;  %v2593_v38 = vrot.slane %v15252_v18, 5  ;;  %v10554_v30 = vcombine.low %v15256_v9, %v15260_v45  ;;  %v10695_v50 = vld [vmem:[%s14571_s1 + $0x60] sm:$0xe] }
 0x15a   : > { %v1193_v42 = vsel %vm14615_vm5, %v10475_v6, %v1192_v48  ;;  %v10697_v56 = vld [vmem:[%s14571_s1 + $0x68] sm:$0x1]  ;;  %v10748_v57 = vcombine.low %v2580_v26, %v2583_v15  ;;  %v1196_v61 = vsel %vm14615_vm5, %v1194_v32, %v1195_v3  ;;  %v2600_v35 = vrot.slane %v15269_v4, 5  ;;  %v5414_v28 = vld [vmem:[%s14571_s1] sm:$0xc] }
 0x15b   : > { %v5415_v12 = vld [vmem:[%s14571_s1 + $0x8] sm:$0x3]  ;;  %v5496_v49 = vrot.slane %v15272_v27, 6  ;;  %v2587_v48 = vsel %vm14615_vm5, %v10733_v24, %v2586_v62  ;;  %v10476_v0 = vrot.slane %v10430_v22, 9  ;;  %v1202_v17 = vrot.slane %v10432_v23, 5 }
 0x15c   : > { %v10734_v37 = vrot.slane %v10692_v46, 9  ;;  %v15297_v51 = vld [vmem:[%s14571_s1 + $0x70] sm:$0xf]  ;;  %v2590_v5 = vsel %vm14615_vm5, %v2588_v19, %v2589_v52  ;;  %v10571_v53 = vcombine.low %v1193_v42, %v1196_v61  ;;  %v10735_v9 = vrot.slane %v10695_v50, 9  ;;  %v10698_v32 = vld [vmem:[%s14571_s1 + $0x6c] sm:$0xe] }
 0x15d   : > { %18437 = vst [vmem:[#allocation31_spill] sm:$0xff] %v15297_v51  ;;  %v15302_v6 = vld [vmem:[%s14571_s1 + $0x10] sm:$0xf]  ;;  %v2603_v45 = vrot.slane %v10697_v56, 5  ;;  %v11164_v62 = vrot.slane %v5414_v28, 10  ;;  %v2602_v3 = vrot.slane %v2600_v35, 4  ;;  %v10749_v24 = vcombine.low %v2587_v48, %v2590_v5 }
 0x15e   : > { %12352 = vmatmul.mubr.msk.bf16.gmra.mrb[56].mxu0 %vm683_vm6, %v10552_v63  ;;  %v1201_v63 = vrot.slane %v1199_v33, 4  ;;  %v5498_v22 = vrot.slane %v5496_v49, 4  ;;  %v5499_v23 = vrot.slane %v5415_v12, 6  ;;  %v5416_v26 = vld [vmem:[%s14571_s1 + $0xc] sm:$0xc]  ;;  %v2979_v15 = vsel %vm514_vm0, %v15141_v25, 0 }
 0x15f   : > { %12424 = vmatmul.mubr.msk.bf16.gmra.mrb[24].mxu1 %vm683_vm6, %v10666_v8  ;;  %12355 = vmatprep.mubr.msk.bf16.mxu0 %vm683_vm6, %v10553_v11  ;;  %v2595_v8 = vrot.slane %v2593_v38, 4  ;;  %v2596_v11 = vrot.slane %v10694_v44, 5  ;;  %v10700_v19 = vld [vmem:[%s14571_s1 + $0x74] sm:$0x1]  ;;  %v5503_v52 = vrot.slane %v15302_v6, 6  ;;  %v1200_v46 = vsel %vm14615_vm5, %v10476_v0, %v1199_v33 }
 0x160   : > { %12429 = vmatprep.mubr.msk.bf16.mxu1 %vm683_vm6, %v10747_v59  ;;  %v2607_v59 = vrot.slane %v15297_v51, 5  ;;  %v1203_v42 = vsel %vm14615_vm5, %v1201_v63, %v1202_v17  ;;  %v2594_v44 = vsel %vm14615_vm5, %v10734_v37, %v2593_v38  ;;  %v5417_v56 = vld [vmem:[%s14571_s1 + $0x14] sm:$0x3]  ;;  %v15321_v25 = vld [vmem:[%s14571_s1 + $0x7c] sm:$0xf]  ;;  %v2601_v33 = vsel %vm14615_vm5, %v10735_v9, %v2600_v35 }
 0x161   : > { %v2597_v50 = vsel %vm14615_vm5, %v2595_v8, %v2596_v11  ;;  %18438 = vst [vmem:[#allocation32_spill] sm:$0xff] %v15321_v25  ;;  %v15324_v61 = vld [vmem:[%s14571_s1 + $0x1c] sm:$0xf]  ;;  %v5497_v28 = vsel %vm14603_vm4, %v11164_v62, %v5496_v49  ;;  %v10736_v38 = vrot.slane %v10698_v32, 9  ;;  %v11165_v12 = vrot.slane %v5416_v26, 10 }
 0x162   : > { %v2604_v48 = vsel %vm14615_vm5, %v2602_v3, %v2603_v45  ;;  %v2609_v0 = vrot.slane %v2607_v59, 4  ;;  %v2610_v17 = vrot.slane %v10700_v19, 5  ;;  %v10701_v35 = vld [vmem:[%s14571_s1 + $0x78] sm:$0xe]  ;;  %v10703_v37 = vld [vmem:[%s14571_s1 + $0x80] sm:$0x1]  ;;  %v10572_v11 = vcombine.low %v1200_v46, %v1203_v42 }
 0x163   : > { %v5505_v49 = vrot.slane %v5503_v52, 4  ;;  %v2614_v5 = vrot.slane %v15321_v25, 5  ;;  %v5418_v63 = vld [vmem:[%s14571_s1 + $0x18] sm:$0xc]  ;;  %v5510_v8 = vrot.slane %v15324_v61, 6  ;;  %v5705_v9 = vsel %vm514_vm0, %v15187_v34, 0 }
 0x164   : > { %v5419_v45 = vld [vmem:[%s14571_s1 + $0x20] sm:$0x3]  ;;  %v10751_v62 = vcombine.low %v2601_v33, %v2604_v48  ;;  %v15348_v3 = vsel %vm14615_vm5, %v10736_v38, %v2607_v59  ;;  %v15356_v26 = vld [vmem:[%s14571_s1 + $0x28] sm:$0xf]  ;;  %v15360_v34 = vsel %vm14615_vm5, %v2609_v0, %v2610_v17  ;;  %v11166_v19 = vrot.slane %v5418_v63, 10 }
 0x165   : > { %v10704_v46 = vld [vmem:[%s14571_s1 + $0x84] sm:$0xe]  ;;  %v15364_v59 = vld [vmem:[%s14571_s1 + $0x94] sm:$0xf]  ;;  %v2616_v42 = vrot.slane %v2614_v5, 4  ;;  %v10752_v48 = vcombine.low %v15348_v3, %v15360_v34  ;;  %vm1057_vm10 = vcmask 257024  }
 0x166   : > { %12356 = vmatmul.mubr.msk.bf16.gmra.mrb[60].mxu0 %vm683_vm6, %v10554_v30  ;;  %v5500_v30 = vsel %vm14603_vm4, %v5498_v22, %v5499_v23  ;;  %v5504_v22 = vsel %vm14603_vm4, %v11165_v12, %v5503_v52  ;;  %v15353_v23 = vld [vmem:[%s14571_s1 + $0x88] sm:$0xf]  ;;  %18440 = vst [vmem:[#allocation34_spill] sm:$0xff] %v15364_v59  ;;  %v10706_v33 = vld [vmem:[%s14571_s1 + $0x8c] sm:$0x1]  ;;  %v5517_v12 = vrot.slane %v15356_v26, 6 }
 0x167   : > { %12430 = vmatmul.mubr.msk.bf16.vlgmr.msra.gmra.mrb[28].mxu1 %vm683_vm6, %v10748_v57  ;;  %12361 = vmatprep.mubr.msk.bf16.mxu0 %vm683_vm6, %v10571_v53  ;;  %v5506_v57 = vrot.slane %v5417_v56, 6  ;;  %v10750_v53 = vcombine.low %v2594_v44, %v2597_v50  ;;  %v11180_v32 = vcombine.low %v5497_v28, %v5500_v30  ;;  %18439 = vst [vmem:[#allocation33_spill] sm:$0xff] %v15353_v23  ;;  %v5512_v44 = vrot.slane %v5510_v8, 4  ;;  %v15369_v56 = vld [vmem:[%s14571_s1 + $0x34] sm:$0xf] }
 0x168   : > { %12462 = vmatpush3.bf16.msra.mxu1 %v2979_v15  ;;  %12433 = vmatprep.mubr.msk.bf16.mxu1 %vm683_vm6, %v10749_v24  ;;  %v10737_v15 = vrot.slane %v10701_v35, 9  ;;  %v2617_v24 = vrot.slane %v10703_v37, 5  ;;  %v5513_v50 = vrot.slane %v5419_v45, 6  ;;  %v2621_v28 = vrot.slane %v15353_v23, 5  ;;  %v5420_v38 = vld [vmem:[%s14571_s1 + $0x24] sm:$0xc] }
 0x169   : > { %v5507_v52 = vsel %vm14603_vm4, %v5505_v49, %v5506_v57  ;;  %v5421_v30 = vld [vmem:[%s14571_s1 + $0x2c] sm:$0x3]  ;;  %v10707_v0 = vld [vmem:[%s14571_s1 + $0x90] sm:$0xe]  ;;  %v2628_v17 = vrot.slane %v15364_v59, 5  ;;  %v5511_v49 = vsel %vm14603_vm4, %v11166_v19, %v5510_v8  ;;  %v11167_v34 = vrot.slane %v5420_v38, 10 }
 0x16a   : > { %v11181_v35 = vcombine.low %v5504_v22, %v5507_v52  ;;  %v2615_v37 = vsel %vm14615_vm5, %v10737_v15, %v2614_v5  ;;  %v10709_v57 = vld [vmem:[%s14571_s1 + $0x98] sm:$0x1]  ;;  %v5422_v63 = vld [vmem:[%s14571_s1 + $0x30] sm:$0xc]  ;;  %v2618_v45 = vsel %vm14615_vm5, %v2616_v42, %v2617_v24  ;;  %v2624_v5 = vrot.slane %v10706_v33, 5 }
 0x16b   : > { %v5423_v3 = vld [vmem:[%s14571_s1 + $0x38] sm:$0x3]  ;;  %v15397_v8 = vld [vmem:[%s14571_s1 + $0xa0] sm:$0xf]  ;;  %v2623_v22 = vrot.slane %v2621_v28, 4  ;;  %v5519_v15 = vrot.slane %v5517_v12, 4  ;;  %v10753_v59 = vcombine.low %v2615_v37, %v2618_v45 }
 0x16c   : > { %18441 = vst [vmem:[#allocation35_spill] sm:$0xff] %v15397_v8  ;;  %v10739_v19 = vrot.slane %v10707_v0, 9  ;;  %v2631_v24 = vrot.slane %v10709_v57, 5  ;;  %v11168_v52 = vrot.slane %v5422_v63, 10  ;;  %v2635_v33 = vrot.slane %v15397_v8, 5 }
 0x16d   : > { %v10712_v23 = vld [vmem:[%s14571_s1 + $0xa4] sm:$0x1]  ;;  %v15403_v25 = vld [vmem:[%s14571_s1 + $0x40] sm:$0xf]  ;;  %v5518_v0 = vsel %vm14603_vm4, %v11167_v34, %v5517_v12  ;;  %v15414_v57 = vld [vmem:[%s14571_s1 + $0xac] sm:$0xf] }
 0x16e   : > { %12362 = vmatmul.mubr.msk.bf16.vlgmr.msra.gmra.mrb[32].mxu0 %vm683_vm6, %v10572_v11  ;;  %v5524_v11 = vrot.slane %v15369_v56, 6  ;;  %18442 = vst [vmem:[#allocation36_spill] sm:$0xff] %v15414_v57  ;;  %v15417_v37 = vld [vmem:[%s14571_s1 + $0x4c] sm:$0xf]  ;;  %v2642_v34 = vrot.slane %v15414_v57, 5  ;;  %vm14261_vm11 = vmmov 0  }
 0x16f   : > { %12434 = vmatmul.mubr.msk.bf16.gmra.mrb[0].mxu1 %vm683_vm6, %v10750_v53  ;;  %12632 = vmatpush3.bf16.msra.mxu0 %v5705_v9  ;;  %v5514_v53 = vsel %vm14603_vm4, %v5512_v44, %v5513_v50  ;;  %v10738_v9 = vrot.slane %v10704_v46, 9  ;;  %v5527_v50 = vrot.slane %v5423_v3, 6  ;;  %v10710_v46 = vld [vmem:[%s14571_s1 + $0x9c] sm:$0xe]  ;;  %v5531_v3 = vrot.slane %v15403_v25, 6 }
 0x170   : > { %12437 = vmatprep.mubr.msk.bf16.mxu1 %vm683_vm6, %v10751_v62  ;;  %12633 = vmatprep.mubr.msk.bf16.mxu0 %vm683_vm6, %v11180_v32  ;;  %v5520_v62 = vrot.slane %v5421_v30, 6  ;;  %v2630_v32 = vrot.slane %v2628_v17, 4  ;;  %v11182_v42 = vcombine.low %v5511_v49, %v5514_v53  ;;  %v5526_v44 = vrot.slane %v5524_v11, 4  ;;  %v5424_v53 = vld [vmem:[%s14571_s1 + $0x3c] sm:$0xc] }
 0x171   : > { %v2622_v38 = vsel %vm14615_vm5, %v10738_v9, %v2621_v28  ;;  %v2625_v30 = vsel %vm14615_vm5, %v2623_v22, %v2624_v5  ;;  %v2629_v28 = vsel %vm14615_vm5, %v10739_v19, %v2628_v17  ;;  %v5525_v12 = vsel %vm14603_vm4, %v11168_v52, %v5524_v11  ;;  %v5425_v17 = vld [vmem:[%s14571_s1 + $0x44] sm:$0x3]  ;;  %v10713_v11 = vld [vmem:[%s14571_s1 + $0xa8] sm:$0xe]  ;;  %v10715_v22 = vld [vmem:[%s14571_s1 + $0xb0] sm:$0x1] }
 0x172   : > { %v5521_v49 = vsel %vm14603_vm4, %v5519_v15, %v5520_v62  ;;  %v2632_v63 = vsel %vm14615_vm5, %v2630_v32, %v2631_v24  ;;  %v10740_v45 = vrot.slane %v10710_v46, 9  ;;  %v2637_v9 = vrot.slane %v2635_v33, 4  ;;  %v5426_v32 = vld [vmem:[%s14571_s1 + $0x48] sm:$0xc]  ;;  %v5427_v24 = vld [vmem:[%s14571_s1 + $0x50] sm:$0x3] }
 0x173   : > { %v2638_v5 = vrot.slane %v10712_v23, 5  ;;  %v10754_v15 = vcombine.low %v2622_v38, %v2625_v30  ;;  %v11183_v62 = vcombine.low %v5518_v0, %v5521_v49  ;;  %v10755_v19 = vcombine.low %v2629_v28, %v2632_v63  ;;  %v15455_v49 = vld [vmem:[%s14571_s1 + $0x64] sm:$0xf]  ;;  %v10721_v8 = vld [vmem:[%s14571_s1 + $0xc8] sm:$0x1] }
 0x174   : > { %v15442_v52 = vsel %vm14615_vm5, %v10740_v45, %v2635_v33  ;;  %v5533_v38 = vrot.slane %v5531_v3, 4  ;;  %v10741_v30 = vrot.slane %v10713_v11, 9  ;;  %v2645_v0 = vrot.slane %v10715_v22, 5  ;;  %v15457_v45 = vld [vmem:[#allocation7 + $0xa] sm:$0x3] }
 0x175   : > { %v15452_v46 = vsel %vm14615_vm5, %v2637_v9, %v2638_v5  ;;  %v2644_v28 = vrot.slane %v2642_v34, 4  ;;  %v11170_v33 = vrot.slane %v5426_v32, 10  ;;  %13676 = vmatprep.subr.msk.bf16.mxu1 %vm514_vm0, %v15457_v45  ;;  %v10718_v9 = vld [vmem:[%s14571_s1 + $0xbc] sm:$0x1]  ;;  %v5428_v32 = vld [vmem:[%s14571_s1 + $0x54] sm:$0xc] }
 0x176   : > { %12634 = vmatmul.mubr.msk.bf16.vlgmr.msra.gmra.mrb[64].mxu0 %vm683_vm6, %v11181_v35  ;;  %v5528_v35 = vsel %vm14603_vm4, %v5526_v44, %v5527_v50  ;;  %v15445_v44 = vld [vmem:[%s14571_s1 + $0xb8] sm:$0xf]  ;;  %v10756_v11 = vcombine.low %v15442_v52, %v15452_v46  ;;  %v5431_v46 = vld [vmem:[%s14571_s1 + $0x68] sm:$0x3]  ;;  %v11171_v51 = vrot.slane %v5428_v32, 10  ;;  %vm5348_vm12 = vcmask 519424  }
 0x177   : > { %12438 = vmatmul.mubr.msk.bf16.gmra.mrb[4].mxu1 %vm683_vm6, %v10752_v48  ;;  %12637 = vmatprep.mubr.msk.bf16.mxu0 %vm683_vm6, %v11182_v42  ;;  %v5538_v48 = vrot.slane %v15417_v37, 6  ;;  %v11184_v23 = vcombine.low %v5525_v12, %v5528_v35  ;;  %v11169_v42 = vrot.slane %v5424_v53, 10  ;;  %18443 = vst [vmem:[#allocation37_spill] sm:$0xff] %v15445_v44  ;;  %v15448_v50 = vld [vmem:[%s14571_s1 + $0x58] sm:$0xf]  ;;  %v5541_v12 = vrot.slane %v5427_v24, 6 }
 0x178   : > { %12441 = vmatprep.mubr.msk.bf16.mxu1 %vm683_vm6, %v10753_v59  ;;  %v5534_v59 = vrot.slane %v5425_v17, 6  ;;  %v10716_v53 = vld [vmem:[%s14571_s1 + $0xb4] sm:$0xe]  ;;  %v2649_v35 = vrot.slane %v15445_v44, 5  ;;  %v5545_v5 = vrot.slane %v15448_v50, 6  ;;  %v5552_v44 = vrot.slane %v15455_v49, 6 }
 0x179   : > { %v5540_v63 = vrot.slane %v5538_v48, 4  ;;  %v15467_v17 = vld [vmem:[%s14571_s1 + $0xc4] sm:$0xf]  ;;  %v5532_v22 = vsel %vm14603_vm4, %v11169_v42, %v5531_v3  ;;  %v5429_v24 = vld [vmem:[%s14571_s1 + $0x5c] sm:$0x3]  ;;  %v5539_v3 = vsel %vm14603_vm4, %v11170_v33, %v5538_v48  ;;  %v5555_v1 = vrot.slane %v5431_v46, 6 }
 0x17a   : > { %18444 = vst [vmem:[#allocation38_spill] sm:$0xff] %v15467_v17  ;;  %v10719_v42 = vld [vmem:[%s14571_s1 + $0xc0] sm:$0xe]  ;;  %v2651_v57 = vrot.slane %v2649_v35, 4  ;;  %v15495_v48 = vld [vmem:[%s14571_s1 + $0xd0] sm:$0xf] }
 0x17b   : > { %v5542_v52 = vsel %vm14603_vm4, %v5540_v63, %v5541_v12  ;;  %18445 = vst [vmem:[#allocation39_spill] sm:$0xff] %v15495_v48  ;;  %v5554_v12 = vrot.slane %v5552_v44, 4  ;;  %v15501_v18 = vld [vmem:[%s14571_s1 + $0xdc] sm:$0xf]  ;;  %vm8956_vm13 = vcmask 253952   ;;  %vm8976_vm14 = vcmask 261120  }
 0x17c   : > { %v11186_v33 = vcombine.low %v5539_v3, %v5542_v52  ;;  %18446 = vst [vmem:[#allocation40_spill] sm:$0xff] %v15501_v18  ;;  %v15508_v3 = vld [vmem:[%s14571_s1 + $0x7c] sm:$0xf]  ;;  %v10724_v52 = vld [vmem:[%s14571_s1 + $0xd4] sm:$0x1]  ;;  %v2670_v46 = vrot.slane %v15501_v18, 5 }
 0x17d   : > { %vm8816_vm15 = vcmask 781824  }
 0x17e   : > { %12638 = vmatmul.mubr.msk.bf16.gmra.mrb[68].mxu0 %vm683_vm6, %v11183_v62  ;;  %v5535_v62 = vsel %vm14603_vm4, %v5533_v38, %v5534_v59  ;;  %v5430_v59 = vld [vmem:[%s14571_s1 + $0x60] sm:$0xc]  ;;  %v10742_v38 = vrot.slane %v10716_v53, 9  ;;  %v15498_v53 = vld [vmem:[%s14571_s1 + $0x70] sm:$0xf] }
 0x17f   : > { %12442 = vmatmul.mubr.msk.bf16.gmra.mrb[8].mxu1 %vm683_vm6, %v10754_v15  ;;  %12641 = vmatprep.mubr.msk.bf16.mxu0 %vm683_vm6, %v11184_v23  ;;  %v2643_v15 = vsel %vm14615_vm5, %v10741_v30, %v2642_v34  ;;  %v2646_v23 = vsel %vm14615_vm5, %v2644_v28, %v2645_v0  ;;  %v2656_v34 = vrot.slane %v15467_v17, 5  ;;  %v11185_v30 = vcombine.low %v5532_v22, %v5535_v62  ;;  %v5413_v17 = vld [vmem:[#allocation8] sm:$0x3] }
 0x180   : > { %12445 = vmatprep.mubr.msk.bf16.mxu1 %vm683_vm6, %v10755_v19  ;;  %v2652_v19 = vrot.slane %v10718_v9, 5  ;;  %v5547_v0 = vrot.slane %v5545_v5, 4  ;;  %v5548_v28 = vrot.slane %v5429_v24, 6  ;;  %v11172_v63 = vrot.slane %v5430_v59, 10  ;;  %13681 = vmatprep.subr.msk.bf16.mxu0 %vm514_vm0, %v5413_v17 }
 0x181   : > { %v10757_v4 = vcombine.low %v2643_v15, %v2646_v23  ;;  %v10743_v9 = vrot.slane %v10719_v42, 9  ;;  %v2650_v22 = vsel %vm14615_vm5, %v10742_v38, %v2649_v35  ;;  %v2658_v32 = vrot.slane %v2656_v34, 4  ;;  %v10722_v23 = vld [vmem:[%s14571_s1 + $0xcc] sm:$0xe]  ;;  %v5433_v42 = vld [vmem:[%s14571_s1 + $0x74] sm:$0x3] }
 0x182   : > { %v2653_v62 = vsel %vm14615_vm5, %v2651_v57, %v2652_v19  ;;  %v2659_v24 = vrot.slane %v10721_v8, 5  ;;  %v5546_v15 = vsel %vm14603_vm4, %v11171_v51, %v5545_v5  ;;  %v5549_v35 = vsel %vm14603_vm4, %v5547_v0, %v5548_v28  ;;  %v5432_v5 = vld [vmem:[%s14571_s1 + $0x6c] sm:$0xc]  ;;  %v10725_v19 = vld [vmem:[%s14571_s1 + $0xd8] sm:$0xe] }
 0x183   : > { %v2663_v57 = vrot.slane %v15495_v48, 5  ;;  %v5553_v8 = vsel %vm14603_vm4, %v11172_v63, %v5552_v44  ;;  %v5556_v51 = vsel %vm14603_vm4, %v5554_v12, %v5555_v1  ;;  %v5559_v59 = vrot.slane %v15498_v53, 6  ;;  %v5434_v63 = vld [vmem:[%s14571_s1 + $0x78] sm:$0xc]  ;;  %v5435_v12 = vld [vmem:[%s14571_s1 + $0x80] sm:$0x3] }
 0x184   : > { %v10758_v38 = vcombine.low %v2650_v22, %v2653_v62  ;;  %v5566_v44 = vrot.slane %v15508_v3, 6  ;;  %v11187_v0 = vcombine.low %v5546_v15, %v5549_v35  ;;  %v2660_v1 = vsel %vm14615_vm5, %v2658_v32, %v2659_v24  ;;  %v15540_v24 = vld [vmem:[%s14571_s1 + $0x88] sm:$0xf] }
 0x185   : > { %v10744_v28 = vrot.slane %v10722_v23, 9  ;;  %v2665_v22 = vrot.slane %v2663_v57, 4  ;;  %v11173_v62 = vrot.slane %v5432_v5, 10  ;;  %v5562_v18 = vrot.slane %v5433_v42, 6  ;;  %v15543_v23 = vld [vmem:[%s14571_s1 + $0xe8] sm:$0xf] }
 0x186   : > { %12642 = vmatmul.mubr.msk.bf16.gmra.mrb[72].mxu0 %vm683_vm6, %v11185_v30  ;;  %v10727_v30 = vld [vmem:[%s14571_s1 + $0xe0] sm:$0x1]  ;;  %v2672_v48 = vrot.slane %v2670_v46, 4  ;;  %v11174_v15 = vrot.slane %v5434_v63, 10  ;;  %v5568_v35 = vrot.slane %v5566_v44, 4  ;;  %v5569_v32 = vrot.slane %v5435_v12, 6 }
 0x187   : > { %12446 = vmatmul.mubr.msk.bf16.gmra.mrb[12].mxu1 %vm683_vm6, %v10756_v11  ;;  %12645 = vmatprep.mubr.msk.bf16.mxu0 %vm683_vm6, %v11186_v33  ;;  %v2657_v11 = vsel %vm14615_vm5, %v10743_v9, %v2656_v34  ;;  %v2666_v33 = vrot.slane %v10724_v52, 5  ;;  %v5561_v34 = vrot.slane %v5559_v59, 4  ;;  %v10745_v9 = vrot.slane %v10725_v19, 9  ;;  %v15546_v52 = vld [vmem:[%s14571_s1 + $0x94] sm:$0xf] }
 0x188   : > { %12449 = vmatprep.mubr.msk.bf16.mxu1 %vm683_vm6, %v10757_v4  ;;  %v11188_v4 = vcombine.low %v5553_v8, %v5556_v51  ;;  %v2673_v21 = vrot.slane %v10727_v30, 5  ;;  %v10759_v39 = vcombine.low %v2657_v11, %v2660_v1  ;;  %v5981_v8 = vsel %vm514_vm0, %v5413_v17, 0  ;;  %v10728_v19 = vld [vmem:[%s14571_s1 + $0xe4] sm:$0xe]  ;;  %v10730_v30 = vld [vmem:[%s14571_s1 + $0xec] sm:$0x1] }
 0x189   : > { %v2664_v51 = vsel %vm14615_vm5, %v10744_v28, %v2663_v57  ;;  %v2667_v5 = vsel %vm14615_vm5, %v2665_v22, %v2666_v33  ;;  %v5560_v42 = vsel %vm14603_vm4, %v11173_v62, %v5559_v59  ;;  %v5563_v17 = vsel %vm14603_vm4, %v5561_v34, %v5562_v18  ;;  %v5436_v1 = vld [vmem:[%s14571_s1 + $0x84] sm:$0xc]  ;;  %v5437_v28 = vld [vmem:[%s14571_s1 + $0x8c] sm:$0x3]  ;;  %12666 = vmatpush3.bf16.msra.mxu0 %v5981_v8  ;;  %v5439_v33 = vld [vmem:[%s14571_s1 + $0x98] sm:$0x3] }
 0x18a   : > { %v2671_v11 = vsel %vm14615_vm5, %v10745_v9, %v2670_v46  ;;  %v2674_v57 = vsel %vm14615_vm5, %v2672_v48, %v2673_v21  ;;  %v5567_v59 = vsel %vm14603_vm4, %v11174_v15, %v5566_v44  ;;  %v2677_v18 = vrot.slane %v15543_v23, 5  ;;  %v5438_v48 = vld [vmem:[%s14571_s1 + $0x90] sm:$0xc]  ;;  %v15578_v9 = vld [vmem:[#allocation8 + $0x4] sm:$0x3] }
 0x18b   : > { %v5580_v46 = vrot.slane %v15546_v52, 6  ;;  %v10760_v21 = vcombine.low %v2664_v51, %v2667_v5  ;;  %v11189_v63 = vcombine.low %v5560_v42, %v5563_v17  ;;  %v10746_v12 = vrot.slane %v10728_v19, 9  ;;  %v15581_v51 = vld [vmem:[%s14571_s1 + $0xa0] sm:$0xf]  ;;  %13682 = vmatprep.subr.msk.bf16.mxu0 %vm514_vm0, %v15578_v9  ;;  %v15586_v5 = vld [vmem:[%s14571_s1 + $0xac] sm:$0xf] }
 0x18c   : > { %v11175_v22 = vrot.slane %v5436_v1, 10  ;;  %v5576_v34 = vrot.slane %v5437_v28, 6  ;;  %v2679_v15 = vrot.slane %v2677_v18, 4  ;;  %v5583_v8 = vrot.slane %v5439_v33, 6  ;;  %v5442_v1 = vld [vmem:[%s14571_s1 + $0xa8] sm:$0xc] }
 0x18d   : > { %v2678_v42 = vsel %vm14615_vm5, %v10746_v12, %v2677_v18  ;;  %v5587_v19 = vrot.slane %v15581_v51, 6  ;;  %v5441_v18 = vld [vmem:[%s14571_s1 + $0xa4] sm:$0x3]  ;;  %v5443_v28 = vld [vmem:[%s14571_s1 + $0xb0] sm:$0x3] }
 0x18e   : > { %12646 = vmatmul.mubr.msk.bf16.gmra.mrb[76].mxu0 %vm683_vm6, %v11187_v0  ;;  %v5573_v0 = vrot.slane %v15540_v24, 6  ;;  %v5590_v12 = vrot.slane %v5441_v18, 6 }
 0x18f   : > { %12450 = vmatmul.mubr.msk.bf16.gmra.mrb[16].mxu1 %vm683_vm6, %v10758_v38  ;;  %12649 = vmatprep.mubr.msk.bf16.mxu0 %vm683_vm6, %v11188_v4  ;;  %v5570_v38 = vsel %vm14603_vm4, %v5568_v35, %v5569_v32  ;;  %v2680_v4 = vrot.slane %v10730_v30, 5  ;;  %v11176_v35 = vrot.slane %v5438_v48, 10  ;;  %v5582_v32 = vrot.slane %v5580_v46, 4 }
 0x190   : > { %12453 = vmatprep.mubr.msk.bf16.mxu1 %vm683_vm6, %v10759_v39  ;;  %v10761_v39 = vcombine.low %v2671_v11, %v2674_v57  ;;  %v11190_v44 = vcombine.low %v5567_v59, %v5570_v38  ;;  %v5575_v62 = vrot.slane %v5573_v0, 4  ;;  %v5574_v17 = vsel %vm14603_vm4, %v11175_v22, %v5573_v0  ;;  %v5440_v57 = vld [vmem:[%s14571_s1 + $0x9c] sm:$0xc] }
 0x191   : > { %v2681_v30 = vsel %vm14615_vm5, %v2679_v15, %v2680_v4  ;;  %v5581_v59 = vsel %vm14603_vm4, %v11176_v35, %v5580_v46  ;;  %v5584_v38 = vsel %vm14603_vm4, %v5582_v32, %v5583_v8  ;;  %v5594_v0 = vrot.slane %v15586_v5, 6  ;;  %v15611_v46 = vld [vmem:[%s14571_s1 + $0xb8] sm:$0xf]  ;;  %v5444_v8 = vld [vmem:[%s14571_s1 + $0xb4] sm:$0xc] }
 0x192   : > { %v5577_v11 = vsel %vm14603_vm4, %v5575_v62, %v5576_v34  ;;  %v11177_v48 = vrot.slane %v5440_v57, 10  ;;  %v10762_v33 = vcombine.low %v2678_v42, %v2681_v30  ;;  %v11178_v4 = vrot.slane %v5442_v1, 10  ;;  %v5445_v42 = vld [vmem:[%s14571_s1 + $0xbc] sm:$0x3] }
 0x193   : > { %v5597_v22 = vrot.slane %v5443_v28, 6  ;;  %v5601_v15 = vrot.slane %v15611_v46, 6  ;;  %v11179_v57 = vrot.slane %v5444_v8, 10  ;;  %v5604_v30 = vrot.slane %v5445_v42, 6 }
 0x194   : > { %v5588_v62 = vsel %vm14603_vm4, %v11177_v48, %v5587_v19  ;;  %v5595_v35 = vsel %vm14603_vm4, %v11178_v4, %v5594_v0  ;;  %v5385_v48 = vld [vmem:[%s14571_s1 + $0x18] sm:$0xf]  ;;  %v5391_v4 = vld [vmem:[%s14571_s1 + $0x3c] sm:$0xf] }
 0x195   : > { %v5602_v18 = vsel %vm14603_vm4, %v11179_v57, %v5601_v15  ;;  %v10798_v57 = vld [vmem:[%s14571_s1 + $0x44] sm:$0x7] }
 0x196   : > { %12650 = vmatmul.mubr.msk.bf16.gmra.mrb[80].mxu0 %vm683_vm6, %v11189_v63  ;;  %v11192_v63 = vcombine.low %v5581_v59, %v5584_v38  ;;  %v3449_v59 = vsel %vm514_vm0, %v15457_v45, 0  ;;  %v15632_v38 = vld [vmem:[#allocation7 + $0xc] sm:$0x3]  ;;  %v5381_v45 = vld [vmem:[%s14571_s1] sm:$0xf] }
 0x197   : > { %12454 = vmatmul.mubr.msk.bf16.gmra.mrb[20].mxu1 %vm683_vm6, %v10760_v21  ;;  %12653 = vmatprep.mubr.msk.bf16.mxu0 %vm683_vm6, %v11190_v44  ;;  %v11191_v21 = vcombine.low %v5574_v17, %v5577_v11  ;;  %v5596_v44 = vrot.slane %v5594_v0, 4  ;;  %v11212_v28 = vcombine.low %v5381_v45, %v15272_v27  ;;  %v6259_v27 = vsel %vm514_vm0, %v15578_v9, 0 }
 0x198   : > { %12457 = vmatprep.mubr.msk.bf16.mxu1 %vm683_vm6, %v10761_v39  ;;  %v5589_v39 = vrot.slane %v5587_v19, 4  ;;  %v5603_v19 = vrot.slane %v5601_v15, 4  ;;  %v10795_v15 = vld [vmem:[%s14571_s1 + $0x30] sm:$0x8] }
 0x199   : > { %v5598_v32 = vsel %vm14603_vm4, %v5596_v44, %v5597_v22  ;;  %v5393_v44 = vld [vmem:[%s14571_s1 + $0x48] sm:$0xf]  ;;  %v11217_v22 = vcombine.low %v5391_v4, %v15403_v25  ;;  %v10827_v42 = vrot.slane %v10795_v15, 11  ;;  %v3952_v15 = vsel %vm514_vm0, %v15632_v38, 0 }
 0x19a   : > { %v5591_v34 = vsel %vm14603_vm4, %v5589_v39, %v5590_v12  ;;  %v11194_v11 = vcombine.low %v5595_v35, %v5598_v32  ;;  %v5605_v0 = vsel %vm14603_vm4, %v5603_v19, %v5604_v30  ;;  %v15660_v39 = vld [vmem:[#allocation8 + $0x6] sm:$0x3]  ;;  %v5387_v12 = vld [vmem:[%s14571_s1 + $0x24] sm:$0xf] }
 0x19b   : > { %v11193_v17 = vcombine.low %v5588_v62, %v5591_v34  ;;  %v11195_v1 = vcombine.low %v5602_v18, %v5605_v0  ;;  %v5397_v62 = vld [vmem:[%s14571_s1 + $0x60] sm:$0xf]  ;;  %v5399_v34 = vld [vmem:[%s14571_s1 + $0x6c] sm:$0xf]  ;;  %v5401_v35 = vld [vmem:[%s14571_s1 + $0x78] sm:$0xf] }
 0x19c   : > { %v10796_v32 = vld [vmem:[%s14571_s1 + $0x38] sm:$0x7]  ;;  %v10799_v18 = vld [vmem:[%s14571_s1 + $0x48] sm:$0x8] }
 0x19d   : > { %v3243_v30 = vrot.slane %v10796_v32, 7  ;;  %v18447_v0 = vld [vmem:[#allocation28_spill] sm:$0xff]  ;;  %v10804_v32 = vld [vmem:[%s14571_s1 + $0x68] sm:$0x7] }
 0x19e   : > { %12654 = vmatmul.mubr.msk.bf16.gmra.mrb[84].mxu0 %vm683_vm6, %v11191_v21  ;;  %v5383_v21 = vld [vmem:[%s14571_s1 + $0xc] sm:$0xf]  ;;  %v3254_v45 = vrot.slane %v18447_v0, 7 }
 0x19f   : > { %12458 = vmatmul.mubr.msk.bf16.gmra.mrb[24].mxu1 %vm683_vm6, %v10762_v33  ;;  %12657 = vmatprep.mubr.msk.bf16.mxu0 %vm683_vm6, %v11192_v63  ;;  %v11213_v33 = vcombine.low %v5383_v21, %v15302_v6  ;;  %v11214_v63 = vcombine.low %v5385_v48, %v15324_v61  ;;  %v5389_v6 = vld [vmem:[%s14571_s1 + $0x30] sm:$0xf]  ;;  %v11215_v61 = vcombine.low %v5387_v12, %v15356_v26  ;;  %v3250_v48 = vrot.slane %v10798_v57, 7 }
 0x1a0   : > { %12463 = vmatprep.mubr.msk.bf16.mxu1 %vm683_vm6, %v14631_v29  ;;  %v11216_v9 = vcombine.low %v5389_v6, %v15369_v56  ;;  %v11218_v26 = vcombine.low %v5393_v44, %v15417_v37  ;;  %v5395_v56 = vld [vmem:[%s14571_s1 + $0x54] sm:$0xf]  ;;  %v11220_v37 = vcombine.low %v5397_v62, %v15455_v49  ;;  %v11221_v49 = vcombine.low %v5399_v34, %v15498_v53  ;;  %v5403_v53 = vld [vmem:[%s14571_s1 + $0x84] sm:$0xf] }
 0x1a1   : > { %v11219_v25 = vcombine.low %v5395_v56, %v15448_v50  ;;  %v13919_v50 = vld [vmem:[%s14571_s1 + $0x34] sm:$0xf]  ;;  %v10829_v12 = vrot.slane %v10799_v18, 11  ;;  %v3256_v44 = vrot.slane %v3254_v45, 4  ;;  %v18449_v56 = vld [vmem:[#allocation29_spill] sm:$0xff] }
 0x1a2   : > { %v3240_v8 = vrot.slane %v13919_v50, 7  ;;  %v3261_v62 = vrot.slane %v18449_v56, 7  ;;  %v18451_v34 = vld [vmem:[#allocation27_spill] sm:$0xff] }
 0x1a3   : > { %v18452_v18 = vld [vmem:[#allocation31_spill] sm:$0xff] }
 0x1a4   : > { %v3242_v19 = vrot.slane %v3240_v8, 4  ;;  %v3263_v57 = vrot.slane %v3261_v62, 4 }
 0x1a6   : > { %12658 = vmatmul.mubr.msk.bf16.gmra.mrb[88].mxu0 %vm683_vm6, %v11193_v17  ;;  %v11222_v17 = vcombine.low %v5401_v35, %v15508_v3  ;;  %v5405_v3 = vld [vmem:[%s14571_s1 + $0x90] sm:$0xf]  ;;  %v10803_v35 = vld [vmem:[%s14571_s1 + $0x60] sm:$0x8] }
 0x1a7   : > { %12464 = vmatmul.mubr.msk.bf16.vlgmr.msra.gmra.mrb[28].mxu1 %vm683_vm6, %v14658_v55  ;;  %12661 = vmatprep.mubr.msk.bf16.mxu0 %vm683_vm6, %v11194_v11  ;;  %v10797_v11 = vld [vmem:[%s14571_s1 + $0x3c] sm:$0x8]  ;;  %v11224_v6 = vcombine.low %v5405_v3, %v15546_v52  ;;  %v3275_v3 = vrot.slane %v18452_v18, 7 }
 0x1a8   : > { %12496 = vmatpush3.bf16.msra.mxu1 %v3449_v59  ;;  %12467 = vmatprep.mubr.msk.bf16.mxu1 %vm683_vm6, %v14677_v10  ;;  %v3247_v59 = vrot.slane %v15213_v60, 7  ;;  %v3244_v60 = vsel %vm14925_vm9, %v3242_v19, %v3243_v30  ;;  %v10828_v21 = vrot.slane %v10797_v11, 11  ;;  %v10831_v30 = vrot.slane %v10803_v35, 11 }
 0x1a9   : > { %13677 = vmatprep.subr.msk.bf16.mxu1 %vm514_vm0, %v15632_v38  ;;  %v3255_v38 = vsel %vm14925_vm9, %v10829_v12, %v3254_v45  ;;  %v10807_v45 = vld [vmem:[%s14571_s1 + $0x78] sm:$0x8] }
 0x1aa   : > { %v3248_v50 = vsel %vm14925_vm9, %v10828_v21, %v3247_v59  ;;  %v5411_v21 = vld [vmem:[%s14571_s1 + $0xb4] sm:$0xf] }
 0x1ae   : > { %12662 = vmatmul.mubr.msk.bf16.gmra.mrb[92].mxu0 %vm683_vm6, %v11195_v1  ;;  %v13878_v1 = vld [vmem:[%s14571_s1 + $0xe8] sm:$0xff]  }
 0x1af   : > { %12468 = vmatmul.mubr.msk.bf16.gmra.mrb[0].mxu1 %vm683_vm6, %v14701_v36  ;;  %12667 = vmatprep.mubr.msk.bf16.mxu0 %vm683_vm6, %v11212_v28  ;;  %v3241_v28 = vsel %vm14925_vm9, %v10827_v42, %v3240_v8  ;;  %v5409_v42 = vld [vmem:[%s14571_s1 + $0xa8] sm:$0xf] }
 0x1b0   : > { %12471 = vmatprep.mubr.msk.bf16.mxu1 %vm683_vm6, %v14720_v54  ;;  %v10843_v4 = vcombine.low %v3241_v28, %v3244_v60  ;;  %v11226_v28 = vcombine.low %v5409_v42, %v15586_v5  ;;  %v10809_v42 = vld [vmem:[%s14571_s1 + $0x84] sm:$0x8] }
 0x1b6   : > { %12668 = vmatmul.mubr.msk.bf16.vlgmr.msra.gmra.mrb[64].mxu0 %vm683_vm6, %v11213_v33  ;;  %v10800_v33 = vld [vmem:[%s14571_s1 + $0x50] sm:$0x7] }
 0x1b7   : > { %12472 = vmatmul.mubr.msk.bf16.gmra.mrb[4].mxu1 %vm683_vm6, %v14744_v20  ;;  %12671 = vmatprep.mubr.msk.bf16.mxu0 %vm683_vm6, %v11214_v63  ;;  %v11223_v63 = vcombine.low %v5403_v53, %v15540_v24  ;;  %v3271_v53 = vrot.slane %v10804_v32, 7  ;;  %v13920_v32 = vld [vmem:[%s14571_s1 + $0x4] sm:$0xf] }
 0x1b8   : > { %12475 = vmatprep.mubr.msk.bf16.mxu1 %vm683_vm6, %v14759_v41  ;;  %12700 = vmatpush3.bf16.msra.mxu0 %v6259_v27  ;;  %v3249_v27 = vrot.slane %v3247_v59, 4 }
 0x1b9   : > { %13683 = vmatprep.subr.msk.bf16.mxu0 %vm514_vm0, %v15660_v39 }
 0x1ba   : > { %v3251_v8 = vsel %vm14925_vm9, %v3249_v27, %v3250_v48  ;;  %v10805_v48 = vld [vmem:[%s14571_s1 + $0x6c] sm:$0x8]  ;;  %v18453_v27 = vld [vmem:[#allocation32_spill] sm:$0xff] }
 0x1bb   : > { %v10844_v0 = vcombine.low %v3248_v50, %v3251_v8  ;;  %v3282_v12 = vrot.slane %v18453_v27, 7  ;;  %v10832_v56 = vrot.slane %v10805_v48, 11 }
 0x1bd   : > { %v3284_v8 = vrot.slane %v3282_v12, 4  ;;  %v3276_v18 = vsel %vm14925_vm9, %v10832_v56, %v3275_v3  ;;  %v18456_v56 = vld [vmem:[#allocation35_spill] sm:$0xff] }
 0x1be   : > { %12672 = vmatmul.mubr.msk.bf16.gmra.mrb[68].mxu0 %vm683_vm6, %v11215_v61  ;;  %v5407_v61 = vld [vmem:[%s14571_s1 + $0x9c] sm:$0xf] }
 0x1bf   : > { %12476 = vmatmul.mubr.msk.bf16.gmra.mrb[8].mxu1 %vm683_vm6, %v14790_v13  ;;  %12675 = vmatprep.mubr.msk.bf16.mxu0 %vm683_vm6, %v11216_v9  ;;  %v10801_v9 = vld [vmem:[%s14571_s1 + $0x54] sm:$0x8] }
 0x1c0   : > { %12479 = vmatprep.mubr.msk.bf16.mxu1 %vm683_vm6, %v14813_v43 }
 0x1c6   : > { %12676 = vmatmul.mubr.msk.bf16.gmra.mrb[72].mxu0 %vm683_vm6, %v11217_v22  ;;  %v3257_v22 = vrot.slane %v10800_v33, 7  ;;  %v10806_v33 = vld [vmem:[%s14571_s1 + $0x74] sm:$0x7] }
 0x1c7   : > { %12480 = vmatmul.mubr.msk.bf16.gmra.mrb[12].mxu1 %vm683_vm6, %v14834_v2  ;;  %12679 = vmatprep.mubr.msk.bf16.mxu0 %vm683_vm6, %v11218_v26  ;;  %v10802_v26 = vld [vmem:[%s14571_s1 + $0x5c] sm:$0x7] }
 0x1c8   : > { %12483 = vmatprep.mubr.msk.bf16.mxu1 %vm683_vm6, %v14855_v40  ;;  %v3258_v11 = vsel %vm14925_vm9, %v3256_v44, %v3257_v22  ;;  %v3264_v19 = vrot.slane %v10802_v26, 7  ;;  %v11227_v44 = vcombine.low %v5411_v21, %v15611_v46  ;;  %v10834_v21 = vrot.slane %v10809_v42, 11 }
 0x1c9   : > { %v10845_v60 = vcombine.low %v3255_v38, %v3258_v11  ;;  %v10811_v38 = vld [vmem:[%s14571_s1 + $0x90] sm:$0x8]  ;;  %v10812_v11 = vld [vmem:[%s14571_s1 + $0x98] sm:$0x7] }
 0x1ca   : > { %v3299_v27 = vrot.slane %v10812_v11, 7 }
 0x1ce   : > { %12680 = vmatmul.mubr.msk.bf16.gmra.mrb[76].mxu0 %vm683_vm6, %v11219_v25  ;;  %v18450_v25 = vld [vmem:[#allocation30_spill] sm:$0xff] }
 0x1cf   : > { %12484 = vmatmul.mubr.msk.bf16.gmra.mrb[16].mxu1 %vm683_vm6, %v14883_v16  ;;  %12683 = vmatprep.mubr.msk.bf16.mxu0 %vm683_vm6, %v11220_v37  ;;  %v3268_v37 = vrot.slane %v18450_v25, 7  ;;  %v3278_v25 = vrot.slane %v10806_v33, 7 }
 0x1d0   : > { %12487 = vmatprep.mubr.msk.bf16.mxu1 %vm683_vm6, %v14899_v47  ;;  %v16038_v47 = vld [vmem:[%s14571_s1 + $0x78] sm:$0xe] }
 0x1d1   : > { %v3270_v59 = vrot.slane %v3268_v37, 4  ;;  %v3269_v22 = vsel %vm14925_vm9, %v10831_v30, %v3268_v37  ;;  %v18455_v30 = vld [vmem:[#allocation34_spill] sm:$0xff] }
 0x1d3   : > { %v3272_v26 = vsel %vm14925_vm9, %v3270_v59, %v3271_v53  ;;  %v3296_v59 = vrot.slane %v18455_v30, 7  ;;  %v6145_v53 = vld [vmem:[%s14571_s1 + $0x14] sm:$0xf] }
 0x1d4   : > { %v10847_v37 = vcombine.low %v3269_v22, %v3272_v26  ;;  %v10813_v26 = vld [vmem:[%s14571_s1 + $0x9c] sm:$0x8] }
 0x1d5   : > { %v10836_v11 = vrot.slane %v10813_v26, 11 }
 0x1d6   : > { %12684 = vmatmul.mubr.msk.bf16.gmra.mrb[80].mxu0 %vm683_vm6, %v11221_v49  ;;  %v11225_v49 = vcombine.low %v5407_v61, %v15581_v51  ;;  %v3265_v61 = vsel %vm14925_vm9, %v3263_v57, %v3264_v19  ;;  %v18454_v57 = vld [vmem:[#allocation33_spill] sm:$0xff] }
 0x1d7   : > { %12488 = vmatmul.mubr.msk.bf16.gmra.mrb[20].mxu1 %vm683_vm6, %v14935_v31  ;;  %12687 = vmatprep.mubr.msk.bf16.mxu0 %vm683_vm6, %v11222_v17  ;;  %v10830_v17 = vrot.slane %v10801_v9, 11  ;;  %v6144_v9 = vld [vmem:[%s14571_s1 + $0x8] sm:$0xf]  ;;  %v3289_v19 = vrot.slane %v18454_v57, 7 }
 0x1d8   : > { %12491 = vmatprep.mubr.msk.bf16.mxu1 %vm683_vm6, %v14952_v58  ;;  %v11244_v50 = vcombine.low %v13920_v32, %v6144_v9  ;;  %v3298_v9 = vrot.slane %v3296_v59, 4  ;;  %v10816_v32 = vld [vmem:[%s14571_s1 + $0xb0] sm:$0x7] }
 0x1da   : > { %v3300_v30 = vsel %vm14925_vm9, %v3298_v9, %v3299_v27  ;;  %v10819_v27 = vld [vmem:[%s14571_s1 + $0xc0] sm:$0x8] }
 0x1de   : > { %12688 = vmatmul.mubr.msk.bf16.gmra.mrb[84].mxu0 %vm683_vm6, %v11223_v63  ;;  %v15756_v63 = vld [vmem:[#allocation7 + $0xe] sm:$0x3] }
 0x1df   : > { %12492 = vmatmul.mubr.msk.bf16.gmra.mrb[24].mxu1 %vm683_vm6, %v18451_v34  ;;  %12691 = vmatprep.mubr.msk.bf16.mxu0 %vm683_vm6, %v11224_v6  ;;  %v3262_v6 = vsel %vm14925_vm9, %v10830_v17, %v3261_v62  ;;  %v3277_v62 = vrot.slane %v3275_v3, 4  ;;  %v10810_v17 = vld [vmem:[%s14571_s1 + $0x8c] sm:$0x7] }
 0x1e0   : > { %12497 = vmatprep.mubr.msk.bf16.mxu1 %vm683_vm6, %v10843_v4  ;;  %v10808_v4 = vld [vmem:[%s14571_s1 + $0x80] sm:$0x7]  ;;  %v10846_v35 = vcombine.low %v3262_v6, %v3265_v61  ;;  %v3292_v33 = vrot.slane %v10810_v17, 7  ;;  %v13921_v6 = vld [vmem:[%s14571_s1 + $0x10] sm:$0xf]  ;;  %v3291_v61 = vrot.slane %v3289_v19, 4 }
 0x1e1   : > { %v11245_v3 = vcombine.low %v13921_v6, %v6145_v53  ;;  %v3313_v53 = vrot.slane %v10816_v32, 7 }
 0x1e2   : > { %v3293_v17 = vsel %vm14925_vm9, %v3291_v61, %v3292_v33  ;;  %v13924_v33 = vld [vmem:[%s14571_s1 + $0x34] sm:$0xf]  ;;  %v18459_v61 = vld [vmem:[#allocation38_spill] sm:$0xff] }
 0x1e3   : > { %v3324_v9 = vrot.slane %v18459_v61, 7 }
 0x1e6   : > { %12692 = vmatmul.mubr.msk.bf16.gmra.mrb[88].mxu0 %vm683_vm6, %v11225_v49  ;;  %v3285_v49 = vrot.slane %v10808_v4, 7 }
 0x1e7   : > { %12498 = vmatmul.mubr.msk.bf16.vlgmr.msra.gmra.mrb[28].mxu1 %vm683_vm6, %v10844_v0  ;;  %12695 = vmatprep.mubr.msk.bf16.mxu0 %vm683_vm6, %v11226_v28  ;;  %v3279_v0 = vsel %vm14925_vm9, %v3277_v62, %v3278_v25  ;;  %v3303_v62 = vrot.slane %v18456_v56, 7  ;;  %v10815_v25 = vld [vmem:[%s14571_s1 + $0xa8] sm:$0x8]  ;;  %v6150_v56 = vld [vmem:[%s14571_s1 + $0x50] sm:$0xf] }
 0x1e8   : > { %12530 = vmatpush3.bf16.msra.mxu1 %v3952_v15  ;;  %12501 = vmatprep.mubr.msk.bf16.mxu1 %vm683_vm6, %v10845_v60  ;;  %v10833_v15 = vrot.slane %v10807_v45, 11  ;;  %v6146_v60 = vld [vmem:[%s14571_s1 + $0x20] sm:$0xf]  ;;  %v3286_v48 = vsel %vm14925_vm9, %v3284_v8, %v3285_v49  ;;  %v10835_v45 = vrot.slane %v10811_v38, 11  ;;  %v10848_v4 = vcombine.low %v3276_v18, %v3279_v0  ;;  %v6147_v49 = vld [vmem:[%s14571_s1 + $0x2c] sm:$0xf] }
 0x1e9   : > { %13678 = vmatprep.subr.msk.bf16.mxu1 %vm514_vm0, %v15756_v63  ;;  %v3290_v8 = vsel %vm14925_vm9, %v10834_v21, %v3289_v19  ;;  %v6148_v38 = vld [vmem:[%s14571_s1 + $0x38] sm:$0xf]  ;;  %v10837_v19 = vrot.slane %v10815_v25, 11  ;;  %v18458_v18 = vld [vmem:[#allocation37_spill] sm:$0xff]  ;;  %v10817_v21 = vld [vmem:[%s14571_s1 + $0xb4] sm:$0x8]  ;;  %v3304_v26 = vsel %vm14925_vm9, %v10836_v11, %v3303_v62 }
 0x1ea   : > { %v3283_v28 = vsel %vm14925_vm9, %v10833_v15, %v3282_v12  ;;  %v10814_v12 = vld [vmem:[%s14571_s1 + $0xa4] sm:$0x7]  ;;  %v6617_v15 = vsel %vm514_vm0, %v15660_v39, 0  ;;  %v3297_v42 = vsel %vm14925_vm9, %v10835_v45, %v3296_v59  ;;  %v3305_v59 = vrot.slane %v3303_v62, 4  ;;  %v18460_v11 = vld [vmem:[#allocation39_spill] sm:$0xff] }
 0x1eb   : > { %v3306_v57 = vrot.slane %v10814_v12, 7  ;;  %v3317_v0 = vrot.slane %v18458_v18, 7  ;;  %v11248_v45 = vcombine.low %v13924_v33, %v6148_v38  ;;  %v10838_v25 = vrot.slane %v10817_v21, 11  ;;  %v10822_v38 = vld [vmem:[%s14571_s1 + $0xd4] sm:$0x7]  ;;  %v18461_v33 = vld [vmem:[#allocation40_spill] sm:$0xff] }
 0x1ec   : > { %v13926_v21 = vld [vmem:[%s14571_s1 + $0x4c] sm:$0xf] }
 0x1ed   : > { %v3307_v12 = vsel %vm14925_vm9, %v3305_v59, %v3306_v57  ;;  %v3319_v32 = vrot.slane %v3317_v0, 4  ;;  %v3331_v57 = vrot.slane %v18460_v11, 7  ;;  %v13925_v59 = vld [vmem:[%s14571_s1 + $0x40] sm:$0xf]  ;;  %v15867_v61 = vsel %vm14925_vm9, %v10838_v25, %v3317_v0 }
 0x1ee   : > { %12696 = vmatmul.mubr.msk.bf16.gmra.mrb[92].mxu0 %vm683_vm6, %v11227_v44  ;;  %v13922_v44 = vld [vmem:[%s14571_s1 + $0x1c] sm:$0xf] }
 0x1ef   : > { %12502 = vmatmul.mubr.msk.bf16.gmra.mrb[0].mxu1 %vm683_vm6, %v10846_v35  ;;  %12701 = vmatprep.mubr.msk.bf16.mxu0 %vm683_vm6, %v11244_v50  ;;  %v11246_v22 = vcombine.low %v13922_v44, %v6146_v60  ;;  %v10849_v35 = vcombine.low %v3283_v28, %v3286_v48  ;;  %v15806_v50 = vld [vmem:[#allocation8 + $0x8] sm:$0x3]  ;;  %v13923_v28 = vld [vmem:[%s14571_s1 + $0x28] sm:$0xf]  ;;  %v10850_v48 = vcombine.low %v3290_v8, %v3293_v17  ;;  %v10839_v8 = vrot.slane %v10819_v27, 11 }
 0x1f0   : > { %12505 = vmatprep.mubr.msk.bf16.mxu1 %vm683_vm6, %v10847_v37  ;;  %v18457_v37 = vld [vmem:[#allocation36_spill] sm:$0xff]  ;;  %v11247_v60 = vcombine.low %v13923_v28, %v6147_v49  ;;  %v10820_v44 = vld [vmem:[%s14571_s1 + $0xc8] sm:$0x7]  ;;  %v10821_v49 = vld [vmem:[%s14571_s1 + $0xcc] sm:$0x8]  ;;  %v3333_v0 = vrot.slane %v3331_v57, 4 }
 0x1f1   : > { %v3310_v39 = vrot.slane %v18457_v37, 7  ;;  %v3326_v37 = vrot.slane %v3324_v9, 4  ;;  %v3327_v17 = vrot.slane %v10820_v44, 7  ;;  %v15856_v28 = vld [vmem:[%s14571_s1 + $0x68] sm:$0xf]  ;;  %v15875_v44 = vsel %vm14925_vm9, %v10839_v8, %v3324_v9 }
 0x1f2   : > { %v13928_v9 = vld [vmem:[%s14571_s1 + $0x64] sm:$0xf] }
 0x1f3   : > { %v3312_v6 = vrot.slane %v3310_v39, 4 }
 0x1f6   : > { %12702 = vmatmul.mubr.msk.bf16.vlgmr.msra.gmra.mrb[64].mxu0 %vm683_vm6, %v11245_v3  ;;  %v10818_v3 = vld [vmem:[%s14571_s1 + $0xbc] sm:$0x7] }
 0x1f7   : > { %12506 = vmatmul.mubr.msk.bf16.gmra.mrb[4].mxu1 %vm683_vm6, %v10848_v4  ;;  %12705 = vmatprep.mubr.msk.bf16.mxu0 %vm683_vm6, %v11246_v22  ;;  %v10851_v4 = vcombine.low %v3297_v42, %v3300_v30  ;;  %v6149_v22 = vld [vmem:[%s14571_s1 + $0x44] sm:$0xf]  ;;  %v3320_v62 = vrot.slane %v10818_v3, 7  ;;  %v3314_v42 = vsel %vm14925_vm9, %v3312_v6, %v3313_v53  ;;  %v10823_v30 = vld [vmem:[%s14571_s1 + $0xd8] sm:$0x8]  ;;  %v3338_v53 = vrot.slane %v18461_v33, 7 }
 0x1f8   : > { %12509 = vmatprep.mubr.msk.bf16.mxu1 %vm683_vm6, %v10849_v35  ;;  %12734 = vmatpush3.bf16.msra.mxu0 %v6617_v15  ;;  %v15843_v15 = vld [vmem:[%s14571_s1 + $0x5c] sm:$0xf]  ;;  %v3311_v35 = vsel %vm14925_vm9, %v10837_v19, %v3310_v39  ;;  %v11249_v18 = vcombine.low %v13925_v59, %v6149_v22  ;;  %v10824_v39 = vld [vmem:[%s14571_s1 + $0xe0] sm:$0x7]  ;;  %v10825_v19 = vld [vmem:[%s14571_s1 + $0xe4] sm:$0x8] }
 0x1f9   : > { %13684 = vmatprep.subr.msk.bf16.mxu0 %vm514_vm0, %v15806_v50  ;;  %v10853_v6 = vcombine.low %v3311_v35, %v3314_v42  ;;  %v13927_v3 = vld [vmem:[%s14571_s1 + $0x58] sm:$0xf]  ;;  %v10840_v22 = vrot.slane %v10821_v49, 11  ;;  %v10841_v25 = vrot.slane %v10823_v30, 11  ;;  %v11252_v35 = vcombine.low %v13928_v9, %v15856_v28  ;;  %v12295_v49 = vpop.f32.mrb[0].mxu0 }
 0x1fa   : > { %v11251_v27 = vcombine.low %v13927_v3, %v15843_v15  ;;  %v15887_v15 = vld [vmem:[%s14571_s1 + $0x4c] sm:$0xf]  ;;  %v10842_v8 = vrot.slane %v10825_v19, 11  ;;  %v15893_v42 = vld [vmem:[#allocation13] ss:$0 sm:$0xff]  ;;  %v770_v59 = vpop.f32.mrb[1].mxu0 }
 0x1fb   : > { %v779_v30 = vadd.f32 %v12295_v49, %v15893_v42  ;;  %v15907_v28 = vsel %vm14925_vm9, %v10840_v22, %v3331_v57  ;;  %v3743_v19 = vrot.slane %v15887_v15, 5  ;;  %v15927_v57 = vld [vmem:[%s14571_s1 + $0x8c] sm:$0xf]  ;;  %v10877_v3 = vld [vmem:[%s14571_s1 + $0x50] sm:$0x1] }
 0x1fc   : > { %v13929_v9 = vld [vmem:[%s14571_s1 + $0x70] sm:$0xf] }
 0x1fe   : > { %12706 = vmatmul.mubr.msk.bf16.gmra.mrb[68].mxu0 %vm683_vm6, %v11247_v60  ;;  %v10852_v60 = vcombine.low %v3304_v26, %v3307_v12  ;;  %v10826_v26 = vld [vmem:[%s14571_s1 + $0xec] sm:$0x7]  ;;  %v15884_v12 = vsel %vm14925_vm9, %v3326_v37, %v3327_v17  ;;  %v15899_v17 = vld [vmem:[%s14571_s1 + $0x74] sm:$0xf] }
 0x1ff   : > { %12510 = vmatmul.mubr.msk.bf16.gmra.mrb[8].mxu1 %vm683_vm6, %v10850_v48  ;;  %12709 = vmatprep.mubr.msk.bf16.mxu0 %vm683_vm6, %v11248_v45  ;;  %v11250_v48 = vcombine.low %v13926_v21, %v6150_v56  ;;  %v3345_v45 = vrot.slane %v15543_v23, 7  ;;  %v15879_v23 = vld [vmem:[%s14571_s1 + $0x48] sm:$0xe]  ;;  %v3334_v56 = vrot.slane %v10822_v38, 7  ;;  %v3348_v11 = vrot.slane %v10826_v26, 7 }
 0x200   : > { %12513 = vmatprep.mubr.msk.bf16.mxu1 %vm683_vm6, %v10851_v4  ;;  %v15871_v4 = vsel %vm14925_vm9, %v3319_v32, %v3320_v62  ;;  %v3340_v32 = vrot.slane %v3338_v53, 4  ;;  %v3341_v62 = vrot.slane %v10824_v39, 7  ;;  %v15910_v39 = vld [vmem:[%s14571_s1 + $0x80] sm:$0xf]  ;;  %v15915_v21 = vld [vmem:[%s14571_s1 + $0x58] sm:$0xf] }
 0x201   : > { %v10854_v37 = vcombine.low %v15867_v61, %v15871_v4  ;;  %v3347_v38 = vrot.slane %v3345_v45, 4  ;;  %v15920_v33 = vsel %vm14925_vm9, %v3333_v0, %v3334_v56  ;;  %v10923_v61 = vrot.slane %v15879_v23, 9  ;;  %v15942_v26 = vld [vmem:[%s14571_s1 + $0x98] sm:$0xf]  ;;  %v10880_v23 = vld [vmem:[%s14571_s1 + $0x5c] sm:$0x1] }
 0x202   : > { %v15931_v4 = vmax.f32 %v779_v30, 0.0  ;;  %v15939_v22 = vsel %vm14925_vm9, %v10842_v8, %v3345_v45  ;;  %v3750_v56 = vrot.slane %v15915_v21, 5  ;;  %v3746_v8 = vrot.slane %v10877_v3, 5  ;;  %v13930_v30 = vld [vmem:[%s14571_s1 + $0x7c] sm:$0xf] }
 0x203   : > { %v10883_v3 = vld [vmem:[%s14571_s1 + $0x68] sm:$0x1] }
 0x204   : > { %18462 = vst [vmem:[#allocation28_spill] sm:$0xff] %v15931_v4  ;;  %v11760_v45 = vpack.c.bf16 %v15931_v4, %v15931_v4  ;;  %v16050_v4 = vld [vmem:[%s14571_s1 + $0x7c] sm:$0xf] }
 0x206   : > { %12710 = vmatmul.mubr.msk.bf16.gmra.mrb[72].mxu0 %vm683_vm6, %v11249_v18  ;;  %v10855_v18 = vcombine.low %v15875_v44, %v15884_v12  ;;  %v15935_v44 = vsel %vm14925_vm9, %v3340_v32, %v3341_v62  ;;  %v15948_v12 = vsel %vm14925_vm9, %v3347_v38, %v3348_v11  ;;  %v11253_v32 = vcombine.low %v13929_v9, %v15899_v17  ;;  %v15989_v9 = vld [vmem:[%s14571_s1 + $0x70] sm:$0xf] }
 0x207   : > { %12514 = vmatmul.mubr.msk.bf16.gmra.mrb[12].mxu1 %vm683_vm6, %v10852_v60  ;;  %12713 = vmatprep.mubr.msk.bf16.mxu0 %vm683_vm6, %v11250_v48  ;;  %v10878_v60 = vld [vmem:[%s14571_s1 + $0x54] sm:$0xe]  ;;  %v771_v48 = vadd.f32 %v15893_v42, %v770_v59  ;;  %v3745_v62 = vrot.slane %v3743_v19, 4  ;;  %v10856_v38 = vcombine.low %v15907_v28, %v15920_v33  ;;  %v11254_v59 = vcombine.low %v13930_v30, %v15910_v39  ;;  %v12296_v30 = vpop.f32.mrb[2].mxu0  ;;  %v16003_v28 = vld [vmem:[%s14571_s1 + $0xb0] sm:$0xf] }
 0x208   : > { %12517 = vmatprep.mubr.msk.bf16.mxu1 %vm683_vm6, %v10853_v6  ;;  %v15924_v6 = vsel %vm14925_vm9, %v10841_v25, %v3338_v53  ;;  %v10924_v0 = vrot.slane %v10878_v60, 9  ;;  %v15953_v25 = vld [vmem:[%s14571_s1 + $0x64] sm:$0xf]  ;;  %1060 = vst.msk [vmem:[%s15977_s3 + $0x8] sm:$0xf] %vm1057_vm10, %v11760_v45  ;;  %v3753_v39 = vrot.slane %v10880_v23, 5  ;;  %v782_v23 = vadd.f32 %v12296_v30, %v15893_v42 }
 0x209   : > { %v15944_v53 = vmax.f32 %v771_v48, 0.0  ;;  %v15971_v60 = vld [vmem:[%s14571_s1 + $0xa4] sm:$0xf]  ;;  %v10881_v48 = vld [vmem:[%s14571_s1 + $0x60] sm:$0xe]  ;;  %v3757_v33 = vrot.slane %v15953_v25, 5 }
 0x20a   : > { %v3752_v45 = vrot.slane %v3750_v56, 4  ;;  %v3764_v11 = vrot.slane %v15989_v9, 5  ;;  %v16015_v34 = vmax.f32 %v782_v23, 0.0 }
 0x20b   : > { %18463 = vst [vmem:[#allocation24_spill] sm:$0xff] %v15944_v53  ;;  %v11758_v49 = vpack.c.bf16 %v15944_v53, %v15944_v53 }
 0x20c   : > { %18464 = vst [vmem:[#allocation29_spill] sm:$0xff] %v16015_v34 }
 0x20d   : > { %1058 = vst.msk [vmem:[%s15977_s3] sm:$0xf] %vm1057_vm10, %v11758_v49  ;;  %v16008_v49 = vsel %vm14615_vm5, %v3745_v62, %v3746_v8  ;;  %v3759_v62 = vrot.slane %v3757_v33, 4  ;;  %v16032_v8 = vsel %vm14615_vm5, %v3752_v45, %v3753_v39  ;;  %v3766_v39 = vrot.slane %v3764_v11, 4 }
 0x20e   : > { %12714 = vmatmul.mubr.msk.bf16.gmra.mrb[76].mxu0 %vm683_vm6, %v11251_v27  ;;  %v773_v27 = vpop.f32.mrb[3].mxu0 }
 0x20f   : > { %12518 = vmatmul.mubr.msk.bf16.gmra.mrb[16].mxu1 %vm683_vm6, %v10854_v37  ;;  %12717 = vmatprep.mubr.msk.bf16.mxu0 %vm683_vm6, %v11252_v35  ;;  %v15996_v35 = vsel %vm14615_vm5, %v10923_v61, %v3743_v19  ;;  %v16000_v37 = vsel %vm14615_vm5, %v10924_v0, %v3750_v56  ;;  %v10925_v19 = vrot.slane %v10881_v48, 9  ;;  %v10884_v61 = vld [vmem:[%s14571_s1 + $0x6c] sm:$0xe]  ;;  %v774_v17 = vadd.f32 %v15893_v42, %v773_v27  ;;  %v12299_v0 = vpop.f32.mrb[4].mxu0 }
 0x210   : > { %12521 = vmatprep.mubr.msk.bf16.mxu1 %vm683_vm6, %v10855_v18  ;;  %v3760_v56 = vrot.slane %v10883_v3, 5  ;;  %v795_v30 = vadd.f32 %v12299_v0, %v15893_v42  ;;  %v786_v58 = vpop.f32.mrb[5].mxu0  ;;  %v10886_v18 = vld [vmem:[%s14571_s1 + $0x74] sm:$0x1]  ;;  %v10926_v3 = vrot.slane %v10884_v61, 9  ;;  %v11761_v0 = vpack.c.bf16 %v16015_v34, %v16015_v34 }
 0x211   : > { %v16021_v48 = vmax.f32 %v774_v17, 0.0  ;;  %v787_v27 = vadd.f32 %v15893_v42, %v786_v58  ;;  %v16035_v17 = vld [vmem:[%s14571_s1 + $0xbc] sm:$0xf]  ;;  %v3767_v45 = vrot.slane %v10886_v18, 5  ;;  %v16053_v34 = vld [vmem:[%s14571_s1 + $0x80] sm:$0x1]  ;;  %v16067_v18 = vsel %vm14615_vm5, %v10925_v19, %v3757_v33 }
 0x212   : > { %v16028_v31 = vmax.f32 %v795_v30, 0.0  ;;  %1061 = vst.msk [vmem:[%s15977_s3 + $0xc] sm:$0xf] %vm1057_vm10, %v11761_v0  ;;  %v16071_v58 = vsel %vm14615_vm5, %v3759_v62, %v3760_v56  ;;  %v12300_v0 = vpop.f32.mrb[6].mxu0  ;;  %v16085_v33 = vsel %vm14615_vm5, %v10926_v3, %v3764_v11  ;;  %v16090_v56 = vld [vmem:[%s14571_s1 + $0x84] sm:$0xe] }
 0x213   : > { %18465 = vst [vmem:[#allocation30_spill] sm:$0xff] %v16021_v48  ;;  %v11759_v61 = vpack.c.bf16 %v16021_v48, %v16021_v48  ;;  %v16044_v23 = vmax.f32 %v787_v27, 0.0  ;;  %v16093_v62 = vld [vmem:[%s14571_s1 + $0x88] sm:$0xf]  ;;  %v10928_v53 = vrot.slane %v16090_v56, 9 }
 0x214   : > { %18466 = vst [vmem:[#allocation31_spill] sm:$0xff] %v16028_v31  ;;  %v11764_v27 = vpack.c.bf16 %v16028_v31, %v16028_v31 }
 0x215   : > { %18467 = vst [vmem:[#allocation32_spill] sm:$0xff] %v16044_v23  ;;  %1059 = vst.msk [vmem:[%s15977_s3 + $0x4] sm:$0xf] %vm1057_vm10, %v11759_v61  ;;  %v10927_v61 = vrot.slane %v16038_v47, 9 }
 0x216   : > { %12718 = vmatmul.mubr.msk.bf16.gmra.mrb[80].mxu0 %vm683_vm6, %v11253_v32  ;;  %v16063_v32 = vsel %vm514_vm0, %v15756_v63, 0  ;;  %1064 = vst.msk [vmem:[%s15977_s3 + $0x18] sm:$0xf] %vm1057_vm10, %v11764_v27  ;;  %v16108_v27 = vsel %vm14615_vm5, %v3766_v39, %v3767_v45  ;;  %v3778_v63 = vrot.slane %v16093_v62, 5 }
 0x217   : > { %12522 = vmatmul.mubr.msk.bf16.gmra.mrb[20].mxu1 %vm683_vm6, %v10856_v38  ;;  %12721 = vmatprep.mubr.msk.bf16.mxu0 %vm683_vm6, %v11254_v59  ;;  %v11762_v38 = vpack.c.bf16 %v16044_v23, %v16044_v23  ;;  %v18468_v59 = vcombine.low %v15924_v6, %v15935_v44  ;;  %v798_v6 = vadd.f32 %v12300_v0, %v15893_v42  ;;  %v789_v44 = vpop.f32.mrb[7].mxu0 }
 0x218   : > { %v790_v11 = vadd.f32 %v15893_v42, %v789_v44  ;;  %v12303_v3 = vpop.f32.mrb[8].mxu0  ;;  %v18475_v23 = vcombine.low %v15939_v22, %v15948_v12 }
 0x219   : > { %12525 = vmatprep.mubr.msk.bf16.mxu1 %vm683_vm6, %v18468_v59  ;;  %v3771_v59 = vrot.slane %v16050_v4, 5  ;;  %1062 = vst.msk [vmem:[%s15977_s3 + $0x10] sm:$0xf] %vm1057_vm10, %v11762_v38  ;;  %v16110_v0 = vmax.f32 %v798_v6, 0.0  ;;  %v811_v47 = vadd.f32 %v12303_v3, %v15893_v42  ;;  %v802_v30 = vpop.f32.mrb[9].mxu0 }
 0x21a   : > { %v16115_v38 = vmax.f32 %v790_v11, 0.0  ;;  %v803_v44 = vadd.f32 %v15893_v42, %v802_v30  ;;  %v12304_v48 = vpop.f32.mrb[10].mxu0 }
 0x21b   : > { %18469 = vst [vmem:[#allocation33_spill] sm:$0xff] %v16110_v0  ;;  %v11765_v39 = vpack.c.bf16 %v16110_v0, %v16110_v0  ;;  %v16122_v45 = vmax.f32 %v811_v47, 0.0  ;;  %v814_v6 = vadd.f32 %v12304_v48, %v15893_v42  ;;  %v805_v3 = vpop.f32.mrb[11].mxu0  ;;  %v18473_v47 = vcombine.low %v15540_v24, %v15927_v57 }
 0x21c   : > { %18470 = vst [vmem:[#allocation34_spill] sm:$0xff] %v16115_v38  ;;  %v11763_v30 = vpack.c.bf16 %v16115_v38, %v16115_v38  ;;  %v16129_v11 = vmax.f32 %v803_v44, 0.0  ;;  %v806_v19 = vadd.f32 %v15893_v42, %v805_v3  ;;  %v12307_v31 = vpop.f32.mrb[12].mxu0  ;;  %v18476_v24 = vcombine.low %v15546_v52, %v15942_v26  ;;  %v13853_v38 = vld [vmem:[%s14571_s1 + $0x78] sm:$0xff]  }
 0x21d   : > { %18471 = vst [vmem:[#allocation35_spill] sm:$0xff] %v16122_v45  ;;  %1065 = vst.msk [vmem:[%s15977_s3 + $0x1c] sm:$0xf] %vm1057_vm10, %v11765_v39  ;;  %v11768_v56 = vpack.c.bf16 %v16122_v45, %v16122_v45  ;;  %v16142_v0 = vmax.f32 %v814_v6, 0.0  ;;  %v827_v44 = vadd.f32 %v12307_v31, %v15893_v42  ;;  %v818_v3 = vpop.f32.mrb[13].mxu0  ;;  %v16155_v57 = vsel %vm14615_vm5, %v10927_v61, %v3771_v59 }
 0x21e   : > { %18472 = vst [vmem:[#allocation36_spill] sm:$0xff] %v16129_v11  ;;  %12722 = vmatmul.mubr.msk.bf16.gmra.mrb[84].mxu0 %vm683_vm6, %v18473_v47  ;;  %v16158_v39 = vld [vmem:[%s14571_s1 + $0x8c] sm:$0x1]  ;;  %1063 = vst.msk [vmem:[%s15977_s3 + $0x14] sm:$0xf] %vm1057_vm10, %v11763_v30  ;;  %v11766_v31 = vpack.c.bf16 %v16129_v11, %v16129_v11  ;;  %v16164_v22 = vmax.f32 %v806_v19, 0.0  ;;  %v819_v12 = vadd.f32 %v15893_v42, %v818_v3 }
 0x21f   : > { %18474 = vst [vmem:[#allocation37_spill] sm:$0xff] %v16142_v0  ;;  %12526 = vmatmul.mubr.msk.bf16.gmra.mrb[24].mxu1 %vm683_vm6, %v18475_v23  ;;  %12725 = vmatprep.mubr.msk.bf16.mxu0 %vm683_vm6, %v18476_v24  ;;  %v12308_v52 = vpop.f32.mrb[14].mxu0  ;;  %v18478_v26 = vcombine.low %v15996_v35, %v16008_v49  ;;  %1068 = vst.msk [vmem:[%s15977_s3 + $0x28] sm:$0xf] %vm1057_vm10, %v11768_v56  ;;  %v11769_v61 = vpack.c.bf16 %v16142_v0, %v16142_v0  ;;  %v16177_v6 = vmax.f32 %v827_v44, 0.0 }
 0x220   : > { %18477 = vst [vmem:[#allocation38_spill] sm:$0xff] %v16164_v22  ;;  %v830_v19 = vadd.f32 %v12308_v52, %v15893_v42  ;;  %v821_v30 = vpop.f32.mrb[15].mxu0  ;;  %v3773_v47 = vrot.slane %v3771_v59, 4  ;;  %1066 = vst.msk [vmem:[%s15977_s3 + $0x20] sm:$0xf] %vm1057_vm10, %v11766_v31  ;;  %v11767_v49 = vpack.c.bf16 %v16164_v22, %v16164_v22  ;;  %v16186_v56 = vmax.f32 %v819_v12, 0.0 }
 0x221   : > { %12531 = vmatprep.mubr.msk.bf16.mxu1 %vm683_vm6, %v18478_v26  ;;  %18479 = vst [vmem:[#allocation39_spill] sm:$0xff] %v16177_v6  ;;  %v12311_v3 = vpop.f32.mrb[16].mxu0  ;;  %1069 = vst.msk [vmem:[%s15977_s3 + $0x2c] sm:$0xf] %vm1057_vm10, %v11769_v61  ;;  %v11772_v59 = vpack.c.bf16 %v16177_v6, %v16177_v6  ;;  %v822_v31 = vadd.f32 %v15893_v42, %v821_v30  ;;  %v16198_v26 = vsel %vm14615_vm5, %v10928_v53, %v3778_v63  ;;  %v16207_v35 = vld [vmem:[%s14571_s1 + $0x90] sm:$0xe] }
 0x222   : > { %18480 = vst [vmem:[#allocation40_spill] sm:$0xff] %v16186_v56  ;;  %v16193_v24 = vmax.f32 %v830_v19, 0.0  ;;  %v834_v52 = vpop.f32.mrb[17].mxu0  ;;  %1067 = vst.msk [vmem:[%s15977_s3 + $0x24] sm:$0xf] %vm1057_vm10, %v11767_v49  ;;  %v11770_v12 = vpack.c.bf16 %v16186_v56, %v16186_v56  ;;  %v843_v61 = vadd.f32 %v12311_v3, %v15893_v42  ;;  %v3780_v44 = vrot.slane %v3778_v63, 4 }
 0x223   : > { %v835_v23 = vadd.f32 %v15893_v42, %v834_v52  ;;  %v12312_v19 = vpop.f32.mrb[18].mxu0  ;;  %1072 = vst.msk [vmem:[%s15977_s3 + $0x38] sm:$0xf] %vm1057_vm10, %v11772_v59  ;;  %v16215_v49 = vmax.f32 %v822_v31, 0.0  ;;  %v16219_v52 = vld [vmem:[%s14571_s1 + $0x94] sm:$0xf]  ;;  %v18485_v31 = vcombine.low %v15581_v51, %v15971_v60  ;;  %v18487_v60 = vcombine.low %v16000_v37, %v16032_v8 }
 0x224   : > { %18481 = vst [vmem:[#allocation41_spill] sm:$0xff] %v16193_v24  ;;  %v11773_v30 = vpack.c.bf16 %v16193_v24, %v16193_v24  ;;  %v846_v48 = vadd.f32 %v12312_v19, %v15893_v42  ;;  %v837_v3 = vpop.f32.mrb[19].mxu0  ;;  %1070 = vst.msk [vmem:[%s15977_s3 + $0x30] sm:$0xf] %vm1057_vm10, %v11770_v12  ;;  %v16223_v45 = vmax.f32 %v843_v61, 0.0 }
 0x225   : > { %18482 = vst [vmem:[#allocation42_spill] sm:$0xff] %v16215_v49  ;;  %v16225_v59 = vmax.f32 %v835_v23, 0.0  ;;  %v838_v53 = vadd.f32 %v15893_v42, %v837_v3  ;;  %v12315_v6 = vpop.f32.mrb[20].mxu0  ;;  %v16233_v19 = vld [vmem:[%s14571_s1 + $0x98] sm:$0x1]  ;;  %v11771_v23 = vpack.c.bf16 %v16215_v49, %v16215_v49 }
 0x226   : > { %18483 = vst [vmem:[#allocation43_spill] sm:$0xff] %v16223_v45  ;;  %12726 = vmatmul.mubr.msk.bf16.gmra.mrb[88].mxu0 %vm683_vm6, %v18485_v31  ;;  %v16235_v63 = vld [vmem:[#allocation7 + $0x10] sm:$0x3]  ;;  %1073 = vst.msk [vmem:[%s15977_s3 + $0x3c] sm:$0xf] %vm1057_vm10, %v11773_v30  ;;  %v16243_v61 = vmax.f32 %v846_v48, 0.0  ;;  %v859_v3 = vadd.f32 %v12315_v6, %v15893_v42  ;;  %v18488_v30 = vcombine.low %v15586_v5, %v16003_v28 }
 0x227   : > { %18484 = vst [vmem:[#allocation44_spill] sm:$0xff] %v16225_v59  ;;  %v850_v51 = vpop.f32.mrb[21].mxu0  ;;  %12532 = vmatmul.mubr.msk.bf16.vlgmr.msra.gmra.mrb[28].mxu1 %vm683_vm6, %v18487_v60  ;;  %v10929_v31 = vrot.slane %v16207_v35, 9  ;;  %v16256_v12 = vld [vmem:[%s14571_s1 + $0x9c] sm:$0xe]  ;;  %v11776_v6 = vpack.c.bf16 %v16223_v45, %v16223_v45  ;;  %v11774_v37 = vpack.c.bf16 %v16225_v59, %v16225_v59  ;;  %v16265_v8 = vmax.f32 %v838_v53, 0.0 }
 0x228   : > { %18486 = vst [vmem:[#allocation45_spill] sm:$0xff] %v16243_v61  ;;  %12729 = vmatprep.mubr.msk.bf16.mxu0 %vm683_vm6, %v18488_v30  ;;  %v16259_v48 = vld [vmem:[%s14571_s1 + $0xa0] sm:$0xf]  ;;  %12564 = vmatpush3.bf16.msra.mxu1 %v16063_v32  ;;  %v18490_v5 = vcombine.low %v16067_v18, %v16071_v58  ;;  %v3785_v28 = vrot.slane %v16219_v52, 5  ;;  %1071 = vst.msk [vmem:[%s15977_s3 + $0x34] sm:$0xf] %vm1057_vm10, %v11771_v23  ;;  %v11777_v60 = vpack.c.bf16 %v16243_v61, %v16243_v61 }
 0x229   : > { %18489 = vst [vmem:[#allocation46_spill] sm:$0xff] %v16265_v8  ;;  %v16279_v53 = vmax.f32 %v859_v3, 0.0  ;;  %v12316_v32 = vpop.f32.mrb[22].mxu0  ;;  %v18492_v30 = vrot.slane %v16053_v34, 5  ;;  %13679 = vmatprep.subr.msk.bf16.mxu1 %vm514_vm0, %v16235_v63  ;;  %1076 = vst.msk [vmem:[%s15977_s3 + $0x48] sm:$0xf] %vm1057_vm10, %v11776_v6  ;;  %v11775_v23 = vpack.c.bf16 %v16265_v8, %v16265_v8  ;;  %v851_v3 = vadd.f32 %v15893_v42, %v850_v51 }
 0x22a   : > { %12535 = vmatprep.mubr.msk.bf16.mxu1 %vm683_vm6, %v18490_v5  ;;  %1074 = vst.msk [vmem:[%s15977_s3 + $0x40] sm:$0xf] %vm1057_vm10, %v11774_v37  ;;  %v853_v34 = vpop.f32.mrb[23].mxu0  ;;  %v3788_v5 = vrot.slane %v16233_v19, 5  ;;  %1077 = vst.msk [vmem:[%s15977_s3 + $0x4c] sm:$0xf] %vm1057_vm10, %v11777_v60  ;;  %v16319_v61 = vsel %vm14615_vm5, %v10929_v31, %v3785_v28 }
 0x22b   : > { %18491 = vst [vmem:[#allocation47_spill] sm:$0xff] %v16279_v53  ;;  %v3775_v58 = vsel %vm14615_vm5, %v3773_v47, %v18492_v30  ;;  %v11780_v6 = vpack.c.bf16 %v16279_v53, %v16279_v53  ;;  %v12319_v37 = vpop.f32.mrb[24].mxu0  ;;  %v13847_v35 = vld [vmem:[%s14571_s1 + $0x30] sm:$0xff]   ;;  %v18493_v18 = vrot.slane %v16158_v39, 5  ;;  %1075 = vst.msk [vmem:[%s15977_s3 + $0x44] sm:$0xf] %vm1057_vm10, %v11775_v23  ;;  %v862_v47 = vadd.f32 %v12316_v32, %v15893_v42 }
 0x22c   : > { %v16312_v19 = vmax.f32 %v851_v3, 0.0  ;;  %v854_v30 = vadd.f32 %v15893_v42, %v853_v34  ;;  %v866_v60 = vpop.f32.mrb[25].mxu0  ;;  %v10943_v45 = vcombine.low %v16155_v57, %v3775_v58  ;;  %v3787_v39 = vrot.slane %v3785_v28, 4  ;;  %v16322_v59 = vld [vmem:[%s14571_s1 + $0xac] sm:$0xf] }
 0x22d   : > { %v16308_v51 = vsel %vm14615_vm5, %v3780_v44, %v18493_v18  ;;  %1080 = vst.msk [vmem:[%s15977_s3 + $0x58] sm:$0xf] %vm1057_vm10, %v11780_v6  ;;  %v875_v44 = vadd.f32 %v12319_v37, %v15893_v42  ;;  %v12320_v18 = vpop.f32.mrb[26].mxu0  ;;  %v16329_v23 = vmax.f32 %v862_v47, 0.0  ;;  %v867_v31 = vadd.f32 %v15893_v42, %v866_v60  ;;  %v16499_v11 = vld [vmem:[%s14571_s1 + $0xd0] sm:$0xf] }
 0x22e   : > { %18494 = vst [vmem:[#allocation48_spill] sm:$0xff] %v16312_v19  ;;  %v11778_v32 = vpack.c.bf16 %v16312_v19, %v16312_v19  ;;  %v16331_v57 = vmax.f32 %v854_v30, 0.0  ;;  %v869_v58 = vpop.f32.mrb[27].mxu0  ;;  %v18497_v28 = vcombine.low %v15611_v46, %v16035_v17  ;;  %v10944_v3 = vcombine.low %v16198_v26, %v16308_v51  ;;  %v16350_v46 = vld [vmem:[%s14571_s1 + $0xa4] sm:$0x1] }
 0x22f   : > { %18495 = vst [vmem:[#allocation49_spill] sm:$0xff] %v16329_v23  ;;  %v16340_v34 = vmax.f32 %v875_v44, 0.0  ;;  %v878_v6 = vadd.f32 %v12320_v18, %v15893_v42  ;;  %v870_v47 = vadd.f32 %v15893_v42, %v869_v58  ;;  %v12323_v37 = vpop.f32.mrb[28].mxu0  ;;  %v18499_v30 = vcombine.low %v16085_v33, %v16108_v27  ;;  %v10899_v58 = vld [vmem:[%s14571_s1 + $0xa8] sm:$0xe] }
 0x230   : > { %18496 = vst [vmem:[#allocation50_spill] sm:$0xff] %v16331_v57  ;;  %12730 = vmatmul.mubr.msk.bf16.gmra.mrb[92].mxu0 %vm683_vm6, %v18497_v28  ;;  %1078 = vst.msk [vmem:[%s15977_s3 + $0x50] sm:$0xf] %vm1057_vm10, %v11778_v32  ;;  %v11781_v51 = vpack.c.bf16 %v16329_v23, %v16329_v23  ;;  %v16359_v33 = vmax.f32 %v867_v31, 0.0  ;;  %v882_v27 = vpop.f32.mrb[29].mxu0  ;;  %v11779_v60 = vpack.c.bf16 %v16331_v57, %v16331_v57  ;;  %v18503_v17 = vrot.slane %v16259_v48, 5 }
 0x231   : > { %18498 = vst [vmem:[#allocation51_spill] sm:$0xff] %v16340_v34  ;;  %12536 = vmatmul.mubr.msk.bf16.gmra.mrb[0].mxu1 %vm683_vm6, %v18499_v30  ;;  %12735 = vmatprep.mubr.msk.bf16.mxu0 %vm683_vm6, %v13847_v35  ;;  %v11784_v44 = vpack.c.bf16 %v16340_v34, %v16340_v34  ;;  %v16368_v18 = vmax.f32 %v878_v6, 0.0  ;;  %v12324_v32 = vpop.f32.mrb[30].mxu0  ;;  %v3789_v31 = vsel %vm14615_vm5, %v3787_v39, %v3788_v5  ;;  %v16378_v30 = vmax.f32 %v870_v47, 0.0  ;;  %v13848_v6 = vld [vmem:[%s14571_s1 + $0x3c] sm:$0xff]  }
 0x232   : > { %18500 = vst [vmem:[#allocation52_spill] sm:$0xff] %v16359_v33  ;;  %12539 = vmatprep.mubr.msk.bf16.mxu1 %vm683_vm6, %v10943_v45  ;;  %v10901_v45 = vld [vmem:[%s14571_s1 + $0xb0] sm:$0x1]  ;;  %1081 = vst.msk [vmem:[%s15977_s3 + $0x5c] sm:$0xf] %vm1057_vm10, %v11781_v51  ;;  %v11782_v28 = vpack.c.bf16 %v16359_v33, %v16359_v33  ;;  %v891_v26 = vadd.f32 %v12323_v37, %v15893_v42  ;;  %v885_v35 = vpop.f32.mrb[31].mxu0  ;;  %v10945_v34 = vcombine.low %v16319_v61, %v3789_v31 }
 0x233   : > { %18501 = vst [vmem:[#allocation53_spill] sm:$0xff] %v16368_v18  ;;  %18502 = vst [vmem:[#allocation54_spill] sm:$0xff] %v16378_v30  ;;  %v3794_v53 = vrot.slane %v18503_v17, 4  ;;  %v3795_v5 = vrot.slane %v16350_v46, 5  ;;  %v11785_v47 = vpack.c.bf16 %v16368_v18, %v16368_v18  ;;  %v16393_v37 = vpop.f32.mrb[36].mxu0  ;;  %v13849_v51 = vld [vmem:[%s14571_s1 + $0x48] sm:$0xff]   ;;  %v11783_v17 = vpack.c.bf16 %v16378_v30, %v16378_v30 }
 0x234   : > { %1079 = vst.msk [vmem:[%s15977_s3 + $0x54] sm:$0xf] %vm1057_vm10, %v11779_v60  ;;  %1084 = vst.msk [vmem:[%s15977_s3 + $0x68] sm:$0xf] %vm1057_vm10, %v11784_v44  ;;  %v16402_v60 = vmax.f32 %v891_v26, 0.0  ;;  %v883_v44 = vadd.f32 %v15893_v42, %v882_v27  ;;  %v16405_v39 = vpop.f32.mrb[37].mxu0 }
 0x235   : > { %1082 = vst.msk [vmem:[%s15977_s3 + $0x60] sm:$0xf] %vm1057_vm10, %v11782_v28  ;;  %v10931_v18 = vrot.slane %v10899_v58, 9  ;;  %v18505_v23 = vrot.slane %v16322_v59, 5  ;;  %v3802_v28 = vrot.slane %v10901_v45, 5  ;;  %v16412_v46 = vpop.f32.mrb[38].mxu0  ;;  %v886_v45 = vadd.f32 %v15893_v42, %v885_v35 }
 0x236   : > { %18504 = vst [vmem:[#allocation55_spill] sm:$0xff] %v16402_v60  ;;  %1085 = vst.msk [vmem:[%s15977_s3 + $0x6c] sm:$0xf] %vm1057_vm10, %v11785_v47  ;;  %v16415_v33 = vld [vmem:[%s14571_s1 + $0xb8] sm:$0xf]  ;;  %v6815_v26 = vsel %vm514_vm0, %v15806_v50, 0  ;;  %v11788_v61 = vpack.c.bf16 %v16402_v60, %v16402_v60 }
 0x237   : > { %v3801_v19 = vrot.slane %v18505_v23, 4  ;;  %1083 = vst.msk [vmem:[%s15977_s3 + $0x64] sm:$0xf] %vm1057_vm10, %v11783_v17  ;;  %v16423_v27 = vmax.f32 %v883_v44, 0.0  ;;  %v894_v23 = vadd.f32 %v12324_v32, %v15893_v42  ;;  %v16426_v31 = vpop.f32.mrb[39].mxu0  ;;  %v18507_v32 = vrot.slane %v16259_v48, 5 }
 0x238   : > { %12736 = vmatmul.mubr.msk.bf16.vlgmr.msra.gmra.mrb[64].mxu0 %vm683_vm6, %v13848_v6  ;;  %v16430_v58 = vld [vmem:[%s14571_s1 + $0xc4] sm:$0xf]  ;;  %v16433_v47 = vld [vmem:[#allocation8 + $0xa] sm:$0x3]  ;;  %v16435_v50 = vpop.f32.mrb[40].mxu0  ;;  %v18508_v17 = vrot.slane %v16256_v12, 9 }
 0x239   : > { %18506 = vst [vmem:[#allocation56_spill] sm:$0xff] %v16423_v27  ;;  %12540 = vmatmul.mubr.msk.bf16.gmra.mrb[4].mxu1 %vm683_vm6, %v10944_v3  ;;  %12739 = vmatprep.mubr.msk.bf16.mxu0 %vm683_vm6, %v13849_v51  ;;  %1088 = vst.msk [vmem:[%s15977_s3 + $0x78] sm:$0xf] %vm1057_vm10, %v11788_v61  ;;  %v11786_v42 = vpack.c.bf16 %v16423_v27, %v16423_v27  ;;  %v16449_v35 = vmax.f32 %v894_v23, 0.0  ;;  %v16451_v44 = vpop.f32.mrb[41].mxu0  ;;  %v3796_v3 = vsel %vm14615_vm5, %v3794_v53, %v3795_v5 }
 0x23a   : > { %v3793_v6 = vsel %vm14615_vm5, %v18508_v17, %v18507_v32  ;;  %12543 = vmatprep.mubr.msk.bf16.mxu1 %vm683_vm6, %v10945_v34  ;;  %v18510_v12 = vrot.slane %v16322_v59, 5  ;;  %v3806_v61 = vrot.slane %v16415_v33, 5  ;;  %12768 = vmatpush3.bf16.msra.mxu0 %v6815_v26  ;;  %v16461_v23 = vmax.f32 %v886_v45, 0.0  ;;  %v16463_v32 = vpop.f32.mrb[42].mxu0  ;;  %v10902_v17 = vld [vmem:[%s14571_s1 + $0xb4] sm:$0xe] }
 0x23b   : > { %18509 = vst [vmem:[#allocation57_spill] sm:$0xff] %v16449_v35  ;;  %v3803_v34 = vsel %vm14615_vm5, %v3801_v19, %v3802_v28  ;;  %v10904_v53 = vld [vmem:[%s14571_s1 + $0xbc] sm:$0x1]  ;;  %v3813_v5 = vrot.slane %v16430_v58, 5  ;;  %1086 = vst.msk [vmem:[%s15977_s3 + $0x70] sm:$0xf] %vm1057_vm10, %v11786_v42  ;;  %v11789_v26 = vpack.c.bf16 %v16449_v35, %v16449_v35  ;;  %13685 = vmatprep.subr.msk.bf16.mxu0 %vm514_vm0, %v16433_v47 }
 0x23c   : > { %v3800_v51 = vsel %vm14615_vm5, %v10931_v18, %v18510_v12  ;;  %18511 = vst [vmem:[#allocation58_spill] sm:$0xff] %v16461_v23  ;;  %v16478_v45 = vpop.f32.mrb[43].mxu0  ;;  %v13850_v19 = vld [vmem:[%s14571_s1 + $0x54] sm:$0xff]   ;;  %v10905_v28 = vld [vmem:[%s14571_s1 + $0xc0] sm:$0xe]  ;;  %v11787_v42 = vpack.c.bf16 %v16461_v23, %v16461_v23  ;;  %v10946_v60 = vcombine.low %v3793_v6, %v3796_v3  ;;  %v10932_v24 = vrot.slane %v10902_v17, 9 }
 0x23d   : > { %18512 = vst [vmem:[#allocation59_spill] sm:$0xff] %v16478_v45  ;;  %v10907_v12 = vld [vmem:[%s14571_s1 + $0xc8] sm:$0x1]  ;;  %v16487_v18 = vpop.f32.mrb[44].mxu0  ;;  %v13851_v35 = vld [vmem:[%s14571_s1 + $0x60] sm:$0xff]   ;;  %v10947_v8 = vcombine.low %v3800_v51, %v3803_v34  ;;  %v3808_v56 = vrot.slane %v3806_v61, 4 }
 0x23e   : > { %18513 = vst [vmem:[#allocation60_spill] sm:$0xff] %v16487_v18  ;;  %1089 = vst.msk [vmem:[%s15977_s3 + $0x7c] sm:$0xf] %vm1057_vm10, %v11789_v26  ;;  %v16492_v57 = vpop.f32.mrb[45].mxu0  ;;  %v3809_v49 = vrot.slane %v10904_v53, 5  ;;  %v10933_v27 = vrot.slane %v10905_v28, 9  ;;  %v3807_v17 = vsel %vm14615_vm5, %v10932_v24, %v3806_v61 }
 0x23f   : > { %18514 = vst [vmem:[#allocation61_spill] sm:$0xff] %v16492_v57  ;;  %1087 = vst.msk [vmem:[%s15977_s3 + $0x74] sm:$0xf] %vm1057_vm10, %v11787_v42  ;;  %v16496_v30 = vpop.f32.mrb[46].mxu0  ;;  %v3815_v0 = vrot.slane %v3813_v5, 4  ;;  %v3816_v23 = vrot.slane %v10907_v12, 5 }
 0x240   : > { %18515 = vst [vmem:[#allocation62_spill] sm:$0xff] %v16496_v30  ;;  %v16501_v6 = vpop.f32.mrb[47].mxu0  ;;  %12740 = vmatmul.mubr.msk.bf16.gmra.mrb[68].mxu0 %vm683_vm6, %v13850_v19  ;;  %v16505_v3 = vld [vmem:[%s14571_s1 + $0xdc] sm:$0xf]  ;;  %v3810_v53 = vsel %vm14615_vm5, %v3808_v56, %v3809_v49  ;;  %v3820_v26 = vrot.slane %v16499_v11, 5  ;;  %v13852_v24 = vld [vmem:[%s14571_s1 + $0x6c] sm:$0xff]  }
 0x241   : > { %18516 = vst [vmem:[#allocation63_spill] sm:$0xff] %v16501_v6  ;;  %v16507_v51 = vpop.f32.mrb[48].mxu0  ;;  %12544 = vmatmul.mubr.msk.bf16.gmra.mrb[8].mxu1 %vm683_vm6, %v10946_v60  ;;  %12743 = vmatprep.mubr.msk.bf16.mxu0 %vm683_vm6, %v13851_v35  ;;  %v3814_v60 = vsel %vm14615_vm5, %v10933_v27, %v3813_v5  ;;  %v3817_v35 = vsel %vm14615_vm5, %v3815_v0, %v3816_v23  ;;  %v10908_v28 = vld [vmem:[%s14571_s1 + $0xcc] sm:$0xe]  ;;  %v10910_v12 = vld [vmem:[%s14571_s1 + $0xd4] sm:$0x1] }
 0x242   : > { %18517 = vst [vmem:[#allocation64_spill] sm:$0xff] %v16507_v51  ;;  %v16511_v34 = vpop.f32.mrb[49].mxu0  ;;  %12547 = vmatprep.mubr.msk.bf16.mxu1 %vm683_vm6, %v10947_v8  ;;  %v3827_v8 = vrot.slane %v16505_v3, 5  ;;  %v10911_v61 = vld [vmem:[%s14571_s1 + $0xd8] sm:$0xe]  ;;  %v10948_v22 = vcombine.low %v3807_v17, %v3810_v53  ;;  %v10949_v27 = vcombine.low %v3814_v60, %v3817_v35  ;;  %v10934_v5 = vrot.slane %v10908_v28, 9 }
 0x243   : > { %18518 = vst [vmem:[#allocation65_spill] sm:$0xff] %v16511_v34  ;;  %v16519_v19 = vpop.f32.mrb[50].mxu0  ;;  %v10913_v56 = vld [vmem:[%s14571_s1 + $0xe0] sm:$0x1]  ;;  %v3822_v0 = vrot.slane %v3820_v26, 4  ;;  %v3823_v23 = vrot.slane %v10910_v12, 5 }
 0x244   : > { %18519 = vst [vmem:[#allocation66_spill] sm:$0xff] %v16519_v19  ;;  %v16528_v42 = vpop.f32.mrb[51].mxu0  ;;  %v10935_v51 = vrot.slane %v10911_v61, 9  ;;  %v3829_v6 = vrot.slane %v3827_v8, 4  ;;  %v16541_v30 = vld [vmem:[%s14571_s1 + $0xe8] sm:$0xf]  ;;  %v3821_v35 = vsel %vm14615_vm5, %v10934_v5, %v3820_v26 }
 0x245   : > { %18520 = vst [vmem:[#allocation67_spill] sm:$0xff] %v16528_v42  ;;  %v16533_v49 = vpop.f32.mrb[52].mxu0  ;;  %v3830_v42 = vrot.slane %v10913_v56, 5  ;;  %v16547_v17 = vld [vmem:[%s14571_s1 + $0xf4] sm:$0xf]  ;;  %v3824_v28 = vsel %vm14615_vm5, %v3822_v0, %v3823_v23  ;;  %v3834_v12 = vrot.slane %v16541_v30, 5 }
 0x246   : > { %18521 = vst [vmem:[#allocation68_spill] sm:$0xff] %v16533_v49  ;;  %v16536_v19 = vpop.f32.mrb[53].mxu0  ;;  %v10914_v61 = vld [vmem:[%s14571_s1 + $0xe4] sm:$0xe]  ;;  %v10916_v56 = vld [vmem:[%s14571_s1 + $0xec] sm:$0x1] }
 0x247   : > { %18522 = vst [vmem:[#allocation69_spill] sm:$0xff] %v16536_v19  ;;  %v16538_v34 = vpop.f32.mrb[54].mxu0  ;;  %v13854_v26 = vld [vmem:[%s14571_s1 + $0x84] sm:$0xff]   ;;  %v10917_v5 = vld [vmem:[%s14571_s1 + $0xf0] sm:$0xe] }
 0x248   : > { %18523 = vst [vmem:[#allocation70_spill] sm:$0xff] %v16538_v34  ;;  %v16543_v57 = vpop.f32.mrb[55].mxu0  ;;  %12744 = vmatmul.mubr.msk.bf16.gmra.mrb[72].mxu0 %vm683_vm6, %v13852_v24  ;;  %v10919_v0 = vld [vmem:[%s14571_s1 + $0xf8] sm:$0x1]  ;;  %v3836_v34 = vrot.slane %v3834_v12, 4  ;;  %v10937_v19 = vrot.slane %v10917_v5, 9 }
 0x249   : > { %18524 = vst [vmem:[#allocation71_spill] sm:$0xff] %v16543_v57  ;;  %v16549_v53 = vpop.f32.mrb[56].mxu0  ;;  %12548 = vmatmul.mubr.msk.bf16.gmra.mrb[12].mxu1 %vm683_vm6, %v10948_v22  ;;  %12747 = vmatprep.mubr.msk.bf16.mxu0 %vm683_vm6, %v13853_v38  ;;  %v3828_v22 = vsel %vm14615_vm5, %v10935_v51, %v3827_v8  ;;  %v3831_v38 = vsel %vm14615_vm5, %v3829_v6, %v3830_v42  ;;  %v10936_v8 = vrot.slane %v10914_v61, 9  ;;  %v3837_v6 = vrot.slane %v10916_v56, 5  ;;  %v16583_v18 = vld [vmem:[%s14571_s1 + $0x100] sm:$0xf] }
 0x24a   : > { %18525 = vst [vmem:[#allocation72_spill] sm:$0xff] %v16549_v53  ;;  %v16553_v60 = vpop.f32.mrb[57].mxu0  ;;  %12551 = vmatprep.mubr.msk.bf16.mxu1 %vm683_vm6, %v10949_v27  ;;  %v3841_v27 = vrot.slane %v16547_v17, 5  ;;  %v10950_v53 = vcombine.low %v3821_v35, %v3824_v28  ;;  %v10951_v51 = vcombine.low %v3828_v22, %v3831_v38  ;;  %v3848_v61 = vrot.slane %v16583_v18, 5  ;;  %v10922_v5 = vld [vmem:[%s14571_s1 + $0x104] sm:$0x1] }
 0x24b   : > { %18526 = vst [vmem:[#allocation73_spill] sm:$0xff] %v16553_v60  ;;  %v16561_v24 = vpop.f32.mrb[58].mxu0  ;;  %v3835_v22 = vsel %vm14615_vm5, %v10936_v8, %v3834_v12  ;;  %v3838_v38 = vsel %vm14615_vm5, %v3836_v34, %v3837_v6  ;;  %v13856_v12 = vld [vmem:[%s14571_s1 + $0x9c] sm:$0xff]   ;;  %v10971_v8 = vld [vmem:[%s14571_s1 + $0x48] sm:$0xc] }
 0x24c   : > { %18527 = vst [vmem:[#allocation74_spill] sm:$0xff] %v16561_v24  ;;  %v16570_v60 = vpop.f32.mrb[59].mxu0  ;;  %v13855_v24 = vld [vmem:[%s14571_s1 + $0x90] sm:$0xff]   ;;  %v3843_v49 = vrot.slane %v3841_v27, 4  ;;  %v10952_v34 = vcombine.low %v3835_v22, %v3838_v38  ;;  %v13857_v6 = vld [vmem:[%s14571_s1 + $0xa8] sm:$0xff]   ;;  %v4220_v38 = vrot.slane %v15915_v21, 6 }
 0x24d   : > { %18528 = vst [vmem:[#allocation75_spill] sm:$0xff] %v16570_v60  ;;  %v16575_v23 = vpop.f32.mrb[60].mxu0  ;;  %v3844_v60 = vrot.slane %v10919_v0, 5  ;;  %v4213_v0 = vrot.slane %v15887_v15, 6 }
 0x24e   : > { %18529 = vst [vmem:[#allocation76_spill] sm:$0xff] %v16575_v23  ;;  %v16578_v57 = vpop.f32.mrb[61].mxu0  ;;  %v3850_v23 = vrot.slane %v3848_v61, 4  ;;  %v4222_v21 = vrot.slane %v4220_v38, 4 }
 0x24f   : > { %18530 = vst [vmem:[#allocation77_spill] sm:$0xff] %v16578_v57  ;;  %v16580_v42 = vpop.f32.mrb[62].mxu0 }
 0x250   : > { %18531 = vst [vmem:[#allocation78_spill] sm:$0xff] %v16580_v42  ;;  %v16585_v45 = vpop.f32.mrb[63].mxu0  ;;  %12748 = vmatmul.mubr.msk.bf16.gmra.mrb[76].mxu0 %vm683_vm6, %v13854_v26  ;;  %v10920_v26 = vld [vmem:[%s14571_s1 + $0xfc] sm:$0xe] }
 0x251   : > { %18532 = vst [vmem:[#allocation79_spill] sm:$0xff] %v16585_v45  ;;  %v16588_v35 = vpop.f32.mrb[32].mxu0  ;;  %12552 = vmatmul.mubr.msk.bf16.gmra.mrb[16].mxu1 %vm683_vm6, %v10950_v53  ;;  %12751 = vmatprep.mubr.msk.bf16.mxu0 %vm683_vm6, %v13855_v24  ;;  %v3842_v53 = vsel %vm14615_vm5, %v10937_v19, %v3841_v27  ;;  %v3845_v24 = vsel %vm14615_vm5, %v3843_v49, %v3844_v60  ;;  %v10972_v45 = vld [vmem:[%s14571_s1 + $0x50] sm:$0x3]  ;;  %v10938_v57 = vrot.slane %v10920_v26, 9  ;;  %v3851_v19 = vrot.slane %v10922_v5, 5 }
 0x252   : > { %v16592_v28 = vpop.f32.mrb[33].mxu0  ;;  %12555 = vmatprep.mubr.msk.bf16.mxu1 %vm683_vm6, %v10951_v51  ;;  %v10953_v42 = vcombine.low %v3842_v53, %v3845_v24  ;;  %v11003_v27 = vrot.slane %v10971_v8, 10  ;;  %v4215_v49 = vrot.slane %v4213_v0, 4  ;;  %v4216_v60 = vrot.slane %v10972_v45, 6  ;;  %v10973_v24 = vld [vmem:[%s14571_s1 + $0x54] sm:$0xc] }
 0x253   : > { %v16600_v56 = vpop.f32.mrb[34].mxu0  ;;  %v3849_v15 = vsel %vm14615_vm5, %v10938_v57, %v3848_v61  ;;  %v3852_v22 = vsel %vm14615_vm5, %v3850_v23, %v3851_v19  ;;  %v10974_v26 = vld [vmem:[%s14571_s1 + $0x5c] sm:$0x3]  ;;  %v4227_v5 = vrot.slane %v15953_v25, 6  ;;  %v10976_v8 = vld [vmem:[%s14571_s1 + $0x68] sm:$0x3] }
 0x254   : > { %v16609_v51 = vpop.f32.mrb[35].mxu0  ;;  %v4214_v45 = vsel %vm14603_vm4, %v11003_v27, %v4213_v0  ;;  %v4217_v53 = vsel %vm14603_vm4, %v4215_v49, %v4216_v60  ;;  %v13859_v57 = vld [vmem:[%s14571_s1 + $0xc0] sm:$0xff]   ;;  %v11004_v14 = vrot.slane %v10973_v24, 10  ;;  %v4223_v23 = vrot.slane %v10974_v26, 6  ;;  %v13860_v24 = vld [vmem:[%s14571_s1 + $0xcc] sm:$0xff]  }
 0x255   : > { %v11019_v61 = vcombine.low %v4214_v45, %v4217_v53  ;;  %v4230_v19 = vrot.slane %v10976_v8, 6  ;;  %v4234_v49 = vrot.slane %v15989_v9, 6  ;;  %v10978_v45 = vld [vmem:[%s14571_s1 + $0x74] sm:$0x3]  ;;  %v4241_v53 = vrot.slane %v16050_v4, 6 }
 0x256   : > { %v4221_v25 = vsel %vm14603_vm4, %v11004_v14, %v4220_v38  ;;  %v4224_v27 = vsel %vm14603_vm4, %v4222_v21, %v4223_v23  ;;  %v10979_v26 = vld [vmem:[%s14571_s1 + $0x78] sm:$0xc]  ;;  %v4237_v9 = vrot.slane %v10978_v45, 6  ;;  %v4248_v23 = vrot.slane %v16093_v62, 6 }
 0x257   : > { %v13861_v38 = vld [vmem:[%s14571_s1 + $0xd8] sm:$0xff]   ;;  %v4243_v14 = vrot.slane %v4241_v53, 4 }
 0x258   : > { %12752 = vmatmul.mubr.msk.bf16.gmra.mrb[80].mxu0 %vm683_vm6, %v13856_v12  ;;  %v13858_v12 = vld [vmem:[%s14571_s1 + $0xb4] sm:$0xff]   ;;  %v4250_v62 = vrot.slane %v4248_v23, 4 }
 0x259   : > { %12556 = vmatmul.mubr.msk.bf16.gmra.mrb[20].mxu1 %vm683_vm6, %v10952_v34  ;;  %12755 = vmatprep.mubr.msk.bf16.mxu0 %vm683_vm6, %v13857_v6  ;;  %v10954_v34 = vcombine.low %v3849_v15, %v3852_v22  ;;  %v4229_v6 = vrot.slane %v4227_v5, 4  ;;  %v10977_v22 = vld [vmem:[%s14571_s1 + $0x6c] sm:$0xc] }
 0x25a   : > { %12559 = vmatprep.mubr.msk.bf16.mxu1 %vm683_vm6, %v10953_v42  ;;  %v10975_v42 = vld [vmem:[%s14571_s1 + $0x60] sm:$0xc] }
 0x25b   : > { %v11005_v0 = vrot.slane %v10975_v42, 10  ;;  %v4231_v15 = vsel %vm14603_vm4, %v4229_v6, %v4230_v19  ;;  %v11020_v42 = vcombine.low %v4221_v25, %v4224_v27  ;;  %v10981_v19 = vld [vmem:[%s14571_s1 + $0x84] sm:$0xc]  ;;  %v10982_v25 = vld [vmem:[%s14571_s1 + $0x8c] sm:$0x3]  ;;  %v4255_v27 = vrot.slane %v16219_v52, 6 }
 0x25d   : > { %v4228_v60 = vsel %vm14603_vm4, %v11005_v0, %v4227_v5  ;;  %v4892_v5 = vsel %vm514_vm0, %v16235_v63, 0 }
 0x25e   : > { %v11021_v8 = vcombine.low %v4228_v60, %v4231_v15  ;;  %v13862_v60 = vld [vmem:[%s14571_s1 + $0xe4] sm:$0xff]   ;;  %v10983_v15 = vld [vmem:[%s14571_s1 + $0x90] sm:$0xc] }
 0x260   : > { %12756 = vmatmul.mubr.msk.bf16.gmra.mrb[84].mxu0 %vm683_vm6, %v13858_v12  ;;  %v10980_v12 = vld [vmem:[%s14571_s1 + $0x80] sm:$0x3] }
 0x261   : > { %12560 = vmatmul.mubr.msk.bf16.gmra.mrb[24].mxu1 %vm683_vm6, %v10954_v34  ;;  %12759 = vmatprep.mubr.msk.bf16.mxu0 %vm683_vm6, %v13859_v57  ;;  %v11006_v34 = vrot.slane %v10977_v22, 10  ;;  %v4236_v57 = vrot.slane %v4234_v49, 4  ;;  %v4244_v21 = vrot.slane %v10980_v12, 6  ;;  %v4257_v12 = vrot.slane %v4255_v27, 4 }
 0x262   : > { %12565 = vmatprep.mubr.msk.bf16.mxu1 %vm683_vm6, %v11019_v61  ;;  %v11007_v61 = vrot.slane %v10979_v26, 10  ;;  %v4251_v26 = vrot.slane %v10982_v25, 6 }
 0x263   : > { %v4235_v4 = vsel %vm14603_vm4, %v11006_v34, %v4234_v49  ;;  %v4238_v63 = vsel %vm14603_vm4, %v4236_v57, %v4237_v9  ;;  %v4245_v6 = vsel %vm14603_vm4, %v4243_v14, %v4244_v21  ;;  %v10984_v49 = vld [vmem:[%s14571_s1 + $0x98] sm:$0x3]  ;;  %v4262_v34 = vrot.slane %v16259_v48, 6  ;;  %v10987_v21 = vld [vmem:[%s14571_s1 + $0xa8] sm:$0xc] }
 0x264   : > { %v4242_v0 = vsel %vm14603_vm4, %v11007_v61, %v4241_v53  ;;  %v11022_v22 = vcombine.low %v4235_v4, %v4238_v63  ;;  %v11009_v53 = vrot.slane %v10983_v15, 10  ;;  %v10986_v61 = vld [vmem:[%s14571_s1 + $0xa4] sm:$0x3]  ;;  %v4269_v14 = vrot.slane %v16322_v59, 6  ;;  %v10988_v4 = vld [vmem:[%s14571_s1 + $0xb0] sm:$0x3] }
 0x265   : > { %v11023_v45 = vcombine.low %v4242_v0, %v4245_v6  ;;  %v4264_v6 = vrot.slane %v4262_v34, 4  ;;  %v11011_v25 = vrot.slane %v10987_v21, 10  ;;  %v16700_v15 = vld [vmem:[#allocation8 + $0xc] sm:$0x3] }
 0x266   : > { %v4256_v57 = vsel %vm14603_vm4, %v11009_v53, %v4255_v27  ;;  %v4271_v48 = vrot.slane %v4269_v14, 4  ;;  %v7173_v27 = vsel %vm514_vm0, %v16433_v47, 0  ;;  %v4283_v53 = vrot.slane %v16430_v58, 6 }
 0x268   : > { %12760 = vmatmul.mubr.msk.bf16.gmra.mrb[88].mxu0 %vm683_vm6, %v13860_v24  ;;  %v11008_v24 = vrot.slane %v10981_v19, 10  ;;  %v4265_v19 = vrot.slane %v10986_v61, 6  ;;  %v4285_v61 = vrot.slane %v4283_v53, 4 }
 0x269   : > { %12566 = vmatmul.mubr.msk.bf16.vlgmr.msra.gmra.mrb[28].mxu1 %vm683_vm6, %v11020_v42  ;;  %12763 = vmatprep.mubr.msk.bf16.mxu0 %vm683_vm6, %v13861_v38  ;;  %v4258_v42 = vrot.slane %v10984_v49, 6 }
 0x26a   : > { %12598 = vmatpush3.bf16.msra.mxu1 %v4892_v5  ;;  %12569 = vmatprep.mubr.msk.bf16.mxu1 %vm683_vm6, %v11021_v8  ;;  %v4249_v38 = vsel %vm14603_vm4, %v11008_v24, %v4248_v23  ;;  %v4252_v8 = vsel %vm14603_vm4, %v4250_v62, %v4251_v26  ;;  %v10985_v5 = vld [vmem:[%s14571_s1 + $0x9c] sm:$0xc]  ;;  %v4266_v47 = vsel %vm14603_vm4, %v4264_v6, %v4265_v19  ;;  %v10989_v62 = vld [vmem:[%s14571_s1 + $0xb4] sm:$0xc]  ;;  %v10990_v26 = vld [vmem:[%s14571_s1 + $0xbc] sm:$0x3] }
 0x26b   : > { %12210 = vmatprep.subr.bf16.mxu1 %v14813_v43  ;;  %v4259_v9 = vsel %vm14603_vm4, %v4257_v12, %v4258_v42  ;;  %v11024_v63 = vcombine.low %v4249_v38, %v4252_v8  ;;  %v11010_v23 = vrot.slane %v10985_v5, 10  ;;  %v10991_v12 = vld [vmem:[%s14571_s1 + $0xc0] sm:$0xc]  ;;  %v10992_v42 = vld [vmem:[%s14571_s1 + $0xc8] sm:$0x3] }
 0x26c   : > { %v11025_v0 = vcombine.low %v4256_v57, %v4259_v9  ;;  %v4279_v9 = vrot.slane %v10990_v26, 6  ;;  %v11013_v5 = vrot.slane %v10991_v12, 10  ;;  %v10993_v6 = vld [vmem:[%s14571_s1 + $0xcc] sm:$0xc]  ;;  %v10994_v19 = vld [vmem:[%s14571_s1 + $0xd4] sm:$0x3] }
 0x26d   : > { %v4263_v49 = vsel %vm14603_vm4, %v11010_v23, %v4262_v34  ;;  %v11012_v34 = vrot.slane %v10989_v62, 10 }
 0x26e   : > { %v11026_v38 = vcombine.low %v4263_v49, %v4266_v47  ;;  %v11014_v47 = vrot.slane %v10993_v6, 10 }
 0x270   : > { %12764 = vmatmul.mubr.msk.bf16.gmra.mrb[92].mxu0 %vm683_vm6, %v13862_v60  ;;  %v4272_v60 = vrot.slane %v10988_v4, 6 }
 0x271   : > { %12570 = vmatmul.mubr.msk.bf16.gmra.mrb[0].mxu1 %vm683_vm6, %v11022_v22  ;;  %12769 = vmatprep.mubr.msk.bf16.mxu0 %vm683_vm6, %v14631_v29  ;;  %v4276_v22 = vrot.slane %v16415_v33, 6 }
 0x272   : > { %12573 = vmatprep.mubr.msk.bf16.mxu1 %vm683_vm6, %v11023_v45  ;;  %v4270_v45 = vsel %vm14603_vm4, %v11011_v25, %v4269_v14  ;;  %v4273_v24 = vsel %vm14603_vm4, %v4271_v48, %v4272_v60  ;;  %v4286_v14 = vrot.slane %v10992_v42, 6  ;;  %v4297_v25 = vrot.slane %v16505_v3, 6  ;;  %v10995_v48 = vld [vmem:[%s14571_s1 + $0xd8] sm:$0xc]  ;;  %v10996_v60 = vld [vmem:[%s14571_s1 + $0xe0] sm:$0x3] }
 0x273   : > { %v11027_v8 = vcombine.low %v4270_v45, %v4273_v24  ;;  %v4278_v57 = vrot.slane %v4276_v22, 4  ;;  %v4277_v21 = vsel %vm14603_vm4, %v11012_v34, %v4276_v22  ;;  %v4293_v45 = vrot.slane %v10994_v19, 6  ;;  %v10997_v34 = vld [vmem:[%s14571_s1 + $0xe4] sm:$0xc] }
 0x274   : > { %v4287_v23 = vsel %vm14603_vm4, %v4285_v61, %v4286_v14  ;;  %v11015_v24 = vrot.slane %v10995_v48, 10  ;;  %v4299_v62 = vrot.slane %v4297_v25, 4  ;;  %v4300_v26 = vrot.slane %v10996_v60, 6  ;;  %v11000_v61 = vld [vmem:[%s14571_s1 + $0xf8] sm:$0x3] }
 0x275   : > { %v4280_v4 = vsel %vm14603_vm4, %v4278_v57, %v4279_v9  ;;  %v4304_v42 = vrot.slane %v16541_v30, 6  ;;  %v10998_v57 = vld [vmem:[%s14571_s1 + $0xec] sm:$0x3]  ;;  %v4311_v9 = vrot.slane %v16547_v17, 6  ;;  %v4314_v19 = vrot.slane %v11000_v61, 6 }
 0x276   : > { %v4318_v60 = vrot.slane %v16583_v18, 6  ;;  %v13932_v61 = vld [vmem:[%s14571_s1 + $0x58] sm:$0xf] }
 0x277   : > { %v4313_v6 = vrot.slane %v4311_v9, 4 }
 0x278   : > { %12770 = vmatmul.mubr.msk.bf16.vlgmr.msra.gmra.mrb[64].mxu0 %vm683_vm6, %v14658_v55 }
 0x279   : > { %12574 = vmatmul.mubr.msk.bf16.gmra.mrb[4].mxu1 %vm683_vm6, %v11024_v63  ;;  %12773 = vmatprep.mubr.msk.bf16.mxu0 %vm683_vm6, %v14677_v10  ;;  %v4290_v63 = vrot.slane %v16499_v11, 6 }
 0x27a   : > { %12577 = vmatprep.mubr.msk.bf16.mxu1 %vm683_vm6, %v11025_v0  ;;  %12802 = vmatpush3.bf16.msra.mxu0 %v7173_v27  ;;  %v4284_v0 = vsel %vm14603_vm4, %v11013_v5, %v4283_v53  ;;  %v11028_v27 = vcombine.low %v4277_v21, %v4280_v4  ;;  %v10999_v5 = vld [vmem:[%s14571_s1 + $0xf0] sm:$0xc]  ;;  %v11016_v4 = vrot.slane %v10997_v34, 10 }
 0x27b   : > { %13686 = vmatprep.subr.msk.bf16.mxu0 %vm514_vm0, %v16700_v15  ;;  %v11029_v49 = vcombine.low %v4284_v0, %v4287_v23  ;;  %v4292_v22 = vrot.slane %v4290_v63, 4  ;;  %v4291_v53 = vsel %vm14603_vm4, %v11014_v47, %v4290_v63  ;;  %v4306_v63 = vrot.slane %v4304_v42, 4  ;;  %v11001_v47 = vld [vmem:[%s14571_s1 + $0xfc] sm:$0xc] }
 0x27c   : > { %v4307_v0 = vrot.slane %v10998_v57, 6  ;;  %v11017_v23 = vrot.slane %v10999_v5, 10 }
 0x27d   : > { %v4294_v12 = vsel %vm14603_vm4, %v4292_v22, %v4293_v45  ;;  %v11002_v22 = vld [vmem:[%s14571_s1 + $0x104] sm:$0x3]  ;;  %v13931_v45 = vld [vmem:[%s14571_s1 + $0x4c] sm:$0xf] }
 0x27e   : > { %v11030_v14 = vcombine.low %v4291_v53, %v4294_v12  ;;  %v4308_v48 = vsel %vm14603_vm4, %v4306_v63, %v4307_v0  ;;  %v11018_v12 = vrot.slane %v11001_v47, 10  ;;  %v11053_v63 = vld [vmem:[%s14571_s1 + $0x54] sm:$0x8]  ;;  %v11054_v0 = vld [vmem:[%s14571_s1 + $0x5c] sm:$0x7] }
 0x27f   : > { %v4693_v47 = vrot.slane %v11054_v0, 7 }
 0x280   : > { %12774 = vmatmul.mubr.msk.bf16.gmra.mrb[68].mxu0 %vm683_vm6, %v14701_v36 }
 0x281   : > { %12578 = vmatmul.mubr.msk.bf16.gmra.mrb[8].mxu1 %vm683_vm6, %v11026_v38  ;;  %12777 = vmatprep.mubr.msk.bf16.mxu0 %vm683_vm6, %v14720_v54  ;;  %v4298_v38 = vsel %vm14603_vm4, %v11015_v24, %v4297_v25  ;;  %v4305_v25 = vsel %vm14603_vm4, %v11016_v4, %v4304_v42  ;;  %v11051_v24 = vld [vmem:[%s14571_s1 + $0x48] sm:$0x8]  ;;  %v4320_v42 = vrot.slane %v4318_v60, 4 }
 0x282   : > { %12581 = vmatprep.mubr.msk.bf16.mxu1 %vm683_vm6, %v11027_v8  ;;  %v4301_v8 = vsel %vm14603_vm4, %v4299_v62, %v4300_v26  ;;  %v11052_v62 = vld [vmem:[%s14571_s1 + $0x50] sm:$0x7]  ;;  %v11032_v26 = vcombine.low %v4305_v25, %v4308_v48  ;;  %v11056_v25 = vld [vmem:[%s14571_s1 + $0x68] sm:$0x7] }
 0x283   : > { %v11031_v21 = vcombine.low %v4298_v38, %v4301_v8  ;;  %v4321_v38 = vrot.slane %v11002_v22, 6  ;;  %v11083_v8 = vrot.slane %v11051_v24, 11  ;;  %v4686_v57 = vrot.slane %v11052_v62, 7  ;;  %v18533_v24 = vld [vmem:[#allocation23_spill] sm:$0xff] }
 0x285   : > { %v4322_v5 = vsel %vm14603_vm4, %v4320_v42, %v4321_v38 }
 0x288   : > { %12778 = vmatmul.mubr.msk.bf16.gmra.mrb[72].mxu0 %vm683_vm6, %v14744_v20 }
 0x289   : > { %12582 = vmatmul.mubr.msk.bf16.gmra.mrb[12].mxu1 %vm683_vm6, %v11028_v27  ;;  %12781 = vmatprep.mubr.msk.bf16.mxu0 %vm683_vm6, %v14759_v41  ;;  %v4312_v27 = vsel %vm14603_vm4, %v11017_v23, %v4311_v9  ;;  %v4319_v9 = vsel %vm14603_vm4, %v11018_v12, %v4318_v60  ;;  %v13933_v23 = vld [vmem:[%s14571_s1 + $0x64] sm:$0xf] }
 0x28a   : > { %12585 = vmatprep.mubr.msk.bf16.mxu1 %vm683_vm6, %v11029_v49  ;;  %v4315_v49 = vsel %vm14603_vm4, %v4313_v6, %v4314_v19  ;;  %v4697_v6 = vrot.slane %v13933_v23, 7  ;;  %v11055_v19 = vld [vmem:[%s14571_s1 + $0x60] sm:$0x8]  ;;  %v11034_v48 = vcombine.low %v4319_v9, %v4322_v5  ;;  %v11059_v5 = vld [vmem:[%s14571_s1 + $0x78] sm:$0x8] }
 0x28b   : > { %v11033_v53 = vcombine.low %v4312_v27, %v4315_v49  ;;  %v11084_v27 = vrot.slane %v11053_v63, 11  ;;  %v11085_v22 = vrot.slane %v11055_v19, 11  ;;  %v11087_v23 = vrot.slane %v11059_v5, 11 }
 0x28d   : > { %v4698_v42 = vsel %vm14925_vm9, %v11085_v22, %v4697_v6 }
 0x290   : > { %12782 = vmatmul.mubr.msk.bf16.gmra.mrb[76].mxu0 %vm683_vm6, %v14790_v13 }
 0x291   : > { %12586 = vmatmul.mubr.msk.bf16.gmra.mrb[16].mxu1 %vm683_vm6, %v11030_v14  ;;  %12785 = vmatprep.mubr.msk.bf16.mxu0 %vm683_vm6, %v14813_v43  ;;  %v4683_v43 = vrot.slane %v13931_v45, 7  ;;  %v4690_v14 = vrot.slane %v13932_v61, 7  ;;  %v4699_v45 = vrot.slane %v4697_v6, 4  ;;  %v11060_v61 = vld [vmem:[%s14571_s1 + $0x80] sm:$0x7] }
 0x292   : > { %12589 = vmatprep.mubr.msk.bf16.mxu1 %vm683_vm6, %v11031_v21  ;;  %v4714_v6 = vrot.slane %v11060_v61, 7  ;;  %v18536_v61 = vld [vmem:[#allocation27_spill] sm:$0xff] }
 0x293   : > { %v4685_v34 = vrot.slane %v4683_v43, 4  ;;  %v4684_v21 = vsel %vm14925_vm9, %v11083_v8, %v4683_v43  ;;  %v4692_v49 = vrot.slane %v4690_v14, 4  ;;  %v4700_v43 = vrot.slane %v11056_v25, 7  ;;  %v11057_v8 = vld [vmem:[%s14571_s1 + $0x6c] sm:$0x8]  ;;  %v18534_v25 = vld [vmem:[#allocation25_spill] sm:$0xff] }
 0x294   : > { %v4691_v62 = vsel %vm14925_vm9, %v11084_v27, %v4690_v14 }
 0x295   : > { %v4687_v4 = vsel %vm14925_vm9, %v4685_v34, %v4686_v57  ;;  %v4701_v38 = vsel %vm14925_vm9, %v4699_v45, %v4700_v43  ;;  %v11058_v34 = vld [vmem:[%s14571_s1 + $0x74] sm:$0x7]  ;;  %v13935_v57 = vld [vmem:[%s14571_s1 + $0x7c] sm:$0xf]  ;;  %v11061_v43 = vld [vmem:[%s14571_s1 + $0x84] sm:$0x8] }
 0x296   : > { %v11099_v60 = vcombine.low %v4684_v21, %v4687_v4  ;;  %v4711_v9 = vrot.slane %v13935_v57, 7  ;;  %v11101_v14 = vcombine.low %v4698_v42, %v4701_v38  ;;  %v11086_v4 = vrot.slane %v11057_v8, 11  ;;  %v13863_v42 = vld [vmem:[%s14571_s1 + $0x34] sm:$0xff]  }
 0x297   : > { %v4707_v0 = vrot.slane %v11058_v34, 7  ;;  %v11088_v8 = vrot.slane %v11061_v43, 11 }
 0x298   : > { %12786 = vmatmul.mubr.msk.bf16.gmra.mrb[80].mxu0 %vm683_vm6, %v14834_v2  ;;  %v4713_v19 = vrot.slane %v4711_v9, 4  ;;  %v4712_v22 = vsel %vm14925_vm9, %v11087_v23, %v4711_v9  ;;  %v4739_v23 = vrot.slane %v16322_v59, 7  ;;  %v7532_v59 = vsel %vm514_vm0, %v16700_v15, 0 }
 0x299   : > { %12590 = vmatmul.mubr.msk.bf16.gmra.mrb[20].mxu1 %vm683_vm6, %v11032_v26  ;;  %12789 = vmatprep.mubr.msk.bf16.mxu0 %vm683_vm6, %v14855_v40  ;;  %v4694_v26 = vsel %vm14925_vm9, %v4692_v49, %v4693_v47  ;;  %v13936_v49 = vld [vmem:[%s14571_s1 + $0x88] sm:$0xf]  ;;  %v4746_v15 = vrot.slane %v16415_v33, 7 }
 0x29a   : > { %12593 = vmatprep.mubr.msk.bf16.mxu1 %vm683_vm6, %v11033_v53  ;;  %v13934_v53 = vld [vmem:[%s14571_s1 + $0x70] sm:$0xf]  ;;  %v11100_v21 = vcombine.low %v4691_v62, %v4694_v26  ;;  %v4718_v47 = vrot.slane %v13936_v49, 7  ;;  %v4715_v45 = vsel %vm14925_vm9, %v4713_v19, %v4714_v6  ;;  %v4725_v62 = vrot.slane %v16219_v52, 7  ;;  %v13937_v52 = vld [vmem:[%s14571_s1 + $0xa0] sm:$0xf] }
 0x29b   : > { %v4704_v12 = vrot.slane %v13934_v53, 7  ;;  %v11063_v26 = vld [vmem:[%s14571_s1 + $0x90] sm:$0x8]  ;;  %v11064_v53 = vld [vmem:[%s14571_s1 + $0x98] sm:$0x7]  ;;  %v11103_v38 = vcombine.low %v4712_v22, %v4715_v45  ;;  %v13864_v19 = vld [vmem:[%s14571_s1 + $0x40] sm:$0xff]  }
 0x29c   : > { %v11089_v57 = vrot.slane %v11063_v26, 11  ;;  %v4727_v9 = vrot.slane %v4725_v62, 4  ;;  %v4728_v5 = vrot.slane %v11064_v53, 7  ;;  %v11067_v6 = vld [vmem:[%s14571_s1 + $0xa8] sm:$0x8]  ;;  %v13865_v49 = vld [vmem:[%s14571_s1 + $0x4c] sm:$0xff]  }
 0x29d   : > { %v4706_v63 = vrot.slane %v4704_v12, 4  ;;  %v11091_v43 = vrot.slane %v11067_v6, 11  ;;  %v13867_v33 = vld [vmem:[%s14571_s1 + $0x64] sm:$0xff]   ;;  %v11076_v6 = vld [vmem:[%s14571_s1 + $0xe0] sm:$0x7] }
 0x29f   : > { %v4708_v27 = vsel %vm14925_vm9, %v4706_v63, %v4707_v0  ;;  %v11065_v63 = vld [vmem:[%s14571_s1 + $0x9c] sm:$0x8]  ;;  %v11066_v0 = vld [vmem:[%s14571_s1 + $0xa4] sm:$0x7]  ;;  %v4740_v26 = vsel %vm14925_vm9, %v11091_v43, %v4739_v23 }
 0x2a0   : > { %12790 = vmatmul.mubr.msk.bf16.gmra.mrb[84].mxu0 %vm683_vm6, %v14883_v16  ;;  %v4735_v45 = vrot.slane %v11066_v0, 7  ;;  %v4767_v0 = vrot.slane %v16505_v3, 7  ;;  %v4770_v3 = vrot.slane %v11076_v6, 7  ;;  %v13876_v6 = vld [vmem:[%s14571_s1 + $0xd0] sm:$0xff]  }
 0x2a1   : > { %12594 = vmatmul.mubr.msk.bf16.gmra.mrb[24].mxu1 %vm683_vm6, %v11034_v48  ;;  %12793 = vmatprep.mubr.msk.bf16.mxu0 %vm683_vm6, %v18533_v24  ;;  %v18535_v48 = vld [vmem:[#allocation26_spill] sm:$0xff] }
 0x2a2   : > { %12599 = vmatprep.mubr.msk.bf16.mxu1 %vm683_vm6, %v11099_v60  ;;  %v4705_v60 = vsel %vm14925_vm9, %v11086_v4, %v4704_v12  ;;  %v4729_v4 = vsel %vm14925_vm9, %v4727_v9, %v4728_v5  ;;  %v4748_v5 = vrot.slane %v4746_v15, 4 }
 0x2a3   : > { %v11102_v12 = vcombine.low %v4705_v60, %v4708_v27  ;;  %v11068_v60 = vld [vmem:[%s14571_s1 + $0xb0] sm:$0x7] }
 0x2a8   : > { %12794 = vmatmul.mubr.msk.bf16.gmra.mrb[88].mxu0 %vm683_vm6, %v18534_v25 }
 0x2a9   : > { %12600 = vmatmul.mubr.msk.bf16.vlgmr.msra.gmra.mrb[28].mxu1 %vm683_vm6, %v11100_v21  ;;  %12797 = vmatprep.mubr.msk.bf16.mxu0 %vm683_vm6, %v18535_v48  ;;  %v4732_v21 = vrot.slane %v13937_v52, 7 }
 0x2aa   : > { %12211 = vmatpush3.bf16.msra.mxu1 %v14631_v29  ;;  %12603 = vmatprep.mubr.msk.bf16.mxu1 %vm683_vm6, %v11101_v14  ;;  %v11062_v29 = vld [vmem:[%s14571_s1 + $0x8c] sm:$0x7]  ;;  %v4726_v14 = vsel %vm14925_vm9, %v11089_v57, %v4725_v62 }
 0x2ab   : > { %12212 = vmatprep.subr.bf16.mxu1 %v14834_v2  ;;  %v4720_v2 = vrot.slane %v4718_v47, 4  ;;  %v4721_v34 = vrot.slane %v11062_v29, 7  ;;  %v4734_v22 = vrot.slane %v4732_v21, 4  ;;  %v4741_v29 = vrot.slane %v4739_v23, 4  ;;  %v13868_v23 = vld [vmem:[%s14571_s1 + $0x70] sm:$0xff]  }
 0x2ae   : > { %12213 = vmatpush3.bf16.msra.mxu1 %v14658_v55  ;;  %v4719_v55 = vsel %vm14925_vm9, %v11088_v8, %v4718_v47  ;;  %v11090_v47 = vrot.slane %v11065_v63, 11  ;;  %v13866_v8 = vld [vmem:[%s14571_s1 + $0x58] sm:$0xff]   ;;  %v11074_v63 = vld [vmem:[%s14571_s1 + $0xd4] sm:$0x7] }
 0x2af   : > { %12214 = vmatprep.subr.bf16.mxu1 %v14855_v40  ;;  %v4722_v40 = vsel %vm14925_vm9, %v4720_v2, %v4721_v34  ;;  %v11071_v2 = vld [vmem:[%s14571_s1 + $0xc0] sm:$0x8]  ;;  %v11072_v34 = vld [vmem:[%s14571_s1 + $0xc8] sm:$0x7] }
 0x2b0   : > { %12798 = vmatmul.mubr.msk.bf16.gmra.mrb[92].mxu0 %vm683_vm6, %v18536_v61  ;;  %v11104_v27 = vcombine.low %v4719_v55, %v4722_v40  ;;  %v4733_v62 = vsel %vm14925_vm9, %v11090_v47, %v4732_v21  ;;  %v4760_v21 = vrot.slane %v16499_v11, 7 }
 0x2b1   : > { %12604 = vmatmul.mubr.msk.bf16.gmra.mrb[0].mxu1 %vm683_vm6, %v11102_v12  ;;  %12803 = vmatprep.mubr.msk.bf16.mxu0 %vm683_vm6, %v13863_v42  ;;  %v11069_v12 = vld [vmem:[%s14571_s1 + $0xb4] sm:$0x8]  ;;  %v11070_v42 = vld [vmem:[%s14571_s1 + $0xbc] sm:$0x7] }
 0x2b2   : > { %12607 = vmatprep.mubr.msk.bf16.mxu1 %vm683_vm6, %v11103_v38  ;;  %12215 = vmatpush3.bf16.msra.mxu1 %v14677_v10  ;;  %v11105_v10 = vcombine.low %v4726_v14, %v4729_v4  ;;  %v4753_v38 = vrot.slane %v16430_v58, 7  ;;  %v11092_v9 = vrot.slane %v11069_v12, 11  ;;  %v4749_v55 = vrot.slane %v11070_v42, 7  ;;  %v11073_v4 = vld [vmem:[%s14571_s1 + $0xcc] sm:$0x8]  ;;  %v13871_v12 = vld [vmem:[%s14571_s1 + $0x94] sm:$0xff]  }
 0x2b3   : > { %12216 = vmatprep.subr.bf16.mxu1 %v14883_v16  ;;  %v4742_v16 = vrot.slane %v11068_v60, 7  ;;  %v11093_v58 = vrot.slane %v11071_v2, 11 }
 0x2b4   : > { %v4755_v40 = vrot.slane %v4753_v38, 4  ;;  %v4750_v52 = vsel %vm14925_vm9, %v4748_v5, %v4749_v55  ;;  %v11081_v55 = vld [vmem:[%s14571_s1 + $0xfc] sm:$0x8] }
 0x2b5   : > { %v4743_v53 = vsel %vm14925_vm9, %v4741_v29, %v4742_v16  ;;  %v11077_v16 = vld [vmem:[%s14571_s1 + $0xe4] sm:$0x8] }
 0x2b6   : > { %12217 = vmatpush3.bf16.msra.mxu1 %v14701_v36  ;;  %v16877_v36 = vld [vmem:[#allocation8 + $0xe] sm:$0x3]  ;;  %v11107_v57 = vcombine.low %v4740_v26, %v4743_v53  ;;  %v11080_v26 = vld [vmem:[%s14571_s1 + $0xf8] sm:$0x7] }
 0x2b7   : > { %12218 = vmatprep.subr.bf16.mxu1 %v18533_v24  ;;  %v4736_v24 = vsel %vm14925_vm9, %v4734_v22, %v4735_v45  ;;  %v4769_v22 = vrot.slane %v4767_v0, 4  ;;  %v4774_v45 = vrot.slane %v16541_v30, 7 }
 0x2b8   : > { %12804 = vmatmul.mubr.msk.bf16.vlgmr.msra.gmra.mrb[64].mxu0 %vm683_vm6, %v13864_v19  ;;  %v11075_v19 = vld [vmem:[%s14571_s1 + $0xd8] sm:$0x8] }
 0x2b9   : > { %12608 = vmatmul.mubr.msk.bf16.gmra.mrb[4].mxu1 %vm683_vm6, %v11104_v27  ;;  %12807 = vmatprep.mubr.msk.bf16.mxu0 %vm683_vm6, %v13865_v49  ;;  %v13869_v27 = vld [vmem:[%s14571_s1 + $0x7c] sm:$0xff]   ;;  %v11094_v49 = vrot.slane %v11073_v4, 11  ;;  %v11095_v47 = vrot.slane %v11075_v19, 11  ;;  %v4771_v29 = vsel %vm14925_vm9, %v4769_v22, %v4770_v3  ;;  %v4776_v30 = vrot.slane %v4774_v45, 4  ;;  %v13883_v22 = vld [vmem:[%s14571_s1 + $0x90] sm:$0xff]   ;;  %v13885_v3 = vld [vmem:[%s14571_s1 + $0xa8] sm:$0xff]  }
 0x2ba   : > { %12611 = vmatprep.mubr.msk.bf16.mxu1 %vm683_vm6, %v11105_v10  ;;  %12219 = vmatpush3.bf16.msra.mxu1 %v14720_v54  ;;  %v11106_v54 = vcombine.low %v4733_v62, %v4736_v24  ;;  %v4763_v10 = vrot.slane %v11074_v63, 7  ;;  %v4781_v62 = vrot.slane %v16547_v17, 7  ;;  %v13870_v24 = vld [vmem:[%s14571_s1 + $0x88] sm:$0xff]   ;;  %v13874_v63 = vld [vmem:[%s14571_s1 + $0xb8] sm:$0xff]   ;;  %v14259_v19 = vmov 1065369472  }
 0x2bb   : > { %12220 = vmatprep.subr.bf16.mxu1 %v18534_v25  ;;  %12836 = vmatpush3.bf16.msra.mxu0 %v7532_v59  ;;  %v4756_v25 = vrot.slane %v11072_v34, 7  ;;  %v4768_v43 = vsel %vm14925_vm9, %v11095_v47, %v4767_v0  ;;  %v11078_v59 = vld [vmem:[%s14571_s1 + $0xec] sm:$0x7]  ;;  %v13882_v47 = vld [vmem:[%s14571_s1 + $0x84] sm:$0xff]  }
 0x2bc   : > { %13687 = vmatprep.subr.msk.bf16.mxu0 %vm514_vm0, %v16877_v36  ;;  %v11111_v42 = vcombine.low %v4768_v43, %v4771_v29  ;;  %v4783_v34 = vrot.slane %v4781_v62, 4  ;;  %v13889_v43 = vld [vmem:[%s14571_s1 + $0xd8] sm:$0xff]   ;;  %v13890_v29 = vld [vmem:[%s14571_s1 + $0xe4] sm:$0xff]  }
 0x2bd   : > { %v4757_v14 = vsel %vm14925_vm9, %v4755_v40, %v4756_v25  ;;  %v13872_v40 = vld [vmem:[%s14571_s1 + $0xa0] sm:$0xff]  }
 0x2be   : > { %12221 = vmatpush3.bf16.msra.mxu1 %v14744_v20  ;;  %v4747_v20 = vsel %vm14925_vm9, %v11092_v9, %v4746_v15  ;;  %v11079_v15 = vld [vmem:[%s14571_s1 + $0xf0] sm:$0x8] }
 0x2bf   : > { %12222 = vmatprep.subr.bf16.mxu1 %v18535_v48  ;;  %v4754_v48 = vsel %vm14925_vm9, %v11093_v58, %v4753_v38  ;;  %v11108_v60 = vcombine.low %v4747_v20, %v4750_v52  ;;  %v11096_v38 = vrot.slane %v11077_v16, 11  ;;  %v11097_v2 = vrot.slane %v11079_v15, 11  ;;  %v11082_v58 = vld [vmem:[%s14571_s1 + $0x104] sm:$0x7]  ;;  %v13873_v20 = vld [vmem:[%s14571_s1 + $0xac] sm:$0xff]  }
 0x2c0   : > { %12808 = vmatmul.mubr.msk.bf16.gmra.mrb[68].mxu0 %vm683_vm6, %v13866_v8  ;;  %v11109_v11 = vcombine.low %v4754_v48, %v4757_v14  ;;  %v4777_v8 = vrot.slane %v11078_v59, 7  ;;  %v4791_v14 = vrot.slane %v11082_v58, 7  ;;  %v13891_v16 = vld [vmem:[%s14571_s1 + $0xf0] sm:$0xff]   ;;  %v17012_v59 = vld [vmem:[%s14571_s1 + $0x64] sm:$0xf] }
 0x2c1   : > { %12612 = vmatmul.mubr.msk.bf16.gmra.mrb[8].mxu1 %vm683_vm6, %v11106_v54  ;;  %12811 = vmatprep.mubr.msk.bf16.mxu0 %vm683_vm6, %v13867_v33  ;;  %v4784_v54 = vrot.slane %v11080_v26, 7  ;;  %v4775_v17 = vsel %vm14925_vm9, %v11096_v38, %v4774_v45  ;;  %v4782_v9 = vsel %vm14925_vm9, %v11097_v2, %v4781_v62  ;;  %v13888_v45 = vld [vmem:[%s14571_s1 + $0xcc] sm:$0xff]   ;;  %v7825_v62 = vrot.slane %v17012_v59, 6  ;;  %v11486_v15 = vld [vmem:[%s14571_s1 + $0x68] sm:$0x3]  ;;  %v13892_v26 = vld [vmem:[%s14571_s1 + $0xfc] sm:$0xff]  }
 0x2c2   : > { %12615 = vmatprep.mubr.msk.bf16.mxu1 %vm683_vm6, %v11107_v57  ;;  %12223 = vmatpush3.bf16.msra.mxu1 %v14759_v41  ;;  %v4762_v41 = vrot.slane %v4760_v21, 4  ;;  %v4778_v33 = vsel %vm14925_vm9, %v4776_v30, %v4777_v8  ;;  %v4788_v57 = vrot.slane %v16583_v18, 7  ;;  %v7828_v38 = vrot.slane %v11486_v15, 6  ;;  %v17022_v30 = vld [vmem:[%s14571_s1 + $0x70] sm:$0xf] }
 0x2c3   : > { %12224 = vmatprep.subr.bf16.mxu1 %v18536_v61  ;;  %v4761_v61 = vsel %vm14925_vm9, %v11094_v49, %v4760_v21  ;;  %v4785_v5 = vsel %vm14925_vm9, %v4783_v34, %v4784_v54  ;;  %v11112_v25 = vcombine.low %v4775_v17, %v4778_v33  ;;  %v11098_v21 = vrot.slane %v11081_v55, 11  ;;  %v13881_v49 = vld [vmem:[%s14571_s1 + $0x78] sm:$0xff]   ;;  %v11487_v17 = vld [vmem:[%s14571_s1 + $0x6c] sm:$0xc]  ;;  %v11489_v33 = vld [vmem:[%s14571_s1 + $0x74] sm:$0x3] }
 0x2c4   : > { %v11113_v52 = vcombine.low %v4782_v9, %v4785_v5  ;;  %v4790_v48 = vrot.slane %v4788_v57, 4  ;;  %v17025_v8 = vld [vmem:[%s14571_s1 + $0x7c] sm:$0xf]  ;;  %v7832_v2 = vrot.slane %v17022_v30, 6  ;;  %v11490_v9 = vld [vmem:[%s14571_s1 + $0x78] sm:$0xc] }
 0x2c5   : > { %v4789_v18 = vsel %vm14925_vm9, %v11098_v21, %v4788_v57  ;;  %v7839_v57 = vrot.slane %v17025_v8, 6  ;;  %v11492_v5 = vld [vmem:[%s14571_s1 + $0x80] sm:$0x3]  ;;  %v13894_v55 = vld [vmem:[%s14571_s1 + $0x114] sm:$0xff]   ;;  %v11501_v15 = vld [vmem:[%s14571_s1 + $0xa4] sm:$0x3] }
 0x2c6   : > { %12225 = vmatpush3.bf16.msra.mxu1 %v14790_v13  ;;  %v4764_v13 = vsel %vm14925_vm9, %v4762_v41, %v4763_v10  ;;  %v4792_v4 = vsel %vm14925_vm9, %v4790_v48, %v4791_v14  ;;  %v8034_v41 = vsel %vm514_vm0, %v16877_v36, 0  ;;  %v16987_v10 = vld [vmem:[#allocation8 + $0x10] sm:$0x3]  ;;  %v13884_v36 = vld [vmem:[%s14571_s1 + $0x9c] sm:$0xff]   ;;  %v7842_v48 = vrot.slane %v11492_v5, 6 }
 0x2c7   : > { %v11110_v53 = vcombine.low %v4761_v61, %v4764_v13  ;;  %v11114_v0 = vcombine.low %v4789_v18, %v4792_v4  ;;  %v13886_v61 = vld [vmem:[%s14571_s1 + $0xb4] sm:$0xff]   ;;  %v13887_v13 = vld [vmem:[%s14571_s1 + $0xc0] sm:$0xff]   ;;  %v7841_v21 = vrot.slane %v7839_v57, 4  ;;  %v17041_v14 = vld [vmem:[%s14571_s1 + $0x88] sm:$0xf] }
 0x2c8   : > { %12812 = vmatmul.mubr.msk.bf16.gmra.mrb[72].mxu0 %vm683_vm6, %v13868_v23  ;;  %v13875_v23 = vld [vmem:[%s14571_s1 + $0xc4] sm:$0xff]   ;;  %v17044_v18 = vld [vmem:[%s14571_s1 + $0x94] sm:$0xf] }
 0x2c9   : > { %12616 = vmatmul.mubr.msk.bf16.gmra.mrb[12].mxu1 %vm683_vm6, %v11108_v60  ;;  %12815 = vmatprep.mubr.msk.bf16.mxu0 %vm683_vm6, %v13869_v27  ;;  %v13877_v60 = vld [vmem:[%s14571_s1 + $0xdc] sm:$0xff]  }
 0x2ca   : > { %12619 = vmatprep.mubr.msk.bf16.mxu1 %vm683_vm6, %v11109_v11  ;;  %v13879_v27 = vld [vmem:[%s14571_s1 + $0x60] sm:$0xff]   ;;  %v13880_v11 = vld [vmem:[%s14571_s1 + $0x6c] sm:$0xff]  }
 0x2d0   : > { %12816 = vmatmul.mubr.msk.bf16.gmra.mrb[76].mxu0 %vm683_vm6, %v13870_v24  ;;  %v11484_v24 = vld [vmem:[%s14571_s1 + $0x60] sm:$0xc] }
 0x2d1   : > { %12620 = vmatmul.mubr.msk.bf16.gmra.mrb[16].mxu1 %vm683_vm6, %v11110_v53  ;;  %12819 = vmatprep.mubr.msk.bf16.mxu0 %vm683_vm6, %v13871_v12  ;;  %v13893_v53 = vld [vmem:[%s14571_s1 + $0x108] sm:$0xff]   ;;  %v11532_v12 = vrot.slane %v11484_v24, 10  ;;  %v11499_v24 = vld [vmem:[%s14571_s1 + $0x9c] sm:$0xc] }
 0x2d2   : > { %12623 = vmatprep.mubr.msk.bf16.mxu1 %vm683_vm6, %v11111_v42  ;;  %v7827_v42 = vrot.slane %v7825_v62, 4 }
 0x2d3   : > { %v7826_v34 = vsel %vm14603_vm4, %v11532_v12, %v7825_v62  ;;  %v11502_v12 = vld [vmem:[%s14571_s1 + $0xa8] sm:$0xc] }
 0x2d4   : > { %v7829_v54 = vsel %vm14603_vm4, %v7827_v42, %v7828_v38  ;;  %v11504_v42 = vld [vmem:[%s14571_s1 + $0xb0] sm:$0x3] }
 0x2d5   : > { %v11548_v58 = vcombine.low %v7826_v34, %v7829_v54  ;;  %v11537_v34 = vrot.slane %v11499_v24, 10  ;;  %v7863_v54 = vrot.slane %v11501_v15, 6  ;;  %v11511_v15 = vld [vmem:[%s14571_s1 + $0xcc] sm:$0xc] }
 0x2d8   : > { %12820 = vmatmul.mubr.msk.bf16.gmra.mrb[80].mxu0 %vm683_vm6, %v13872_v40  ;;  %v11533_v40 = vrot.slane %v11487_v17, 10 }
 0x2d9   : > { %12624 = vmatmul.mubr.msk.bf16.gmra.mrb[20].mxu1 %vm683_vm6, %v11112_v25  ;;  %12823 = vmatprep.mubr.msk.bf16.mxu0 %vm683_vm6, %v13873_v20  ;;  %v7834_v25 = vrot.slane %v7832_v2, 4  ;;  %v7835_v20 = vrot.slane %v11489_v33, 6 }
 0x2da   : > { %12627 = vmatprep.mubr.msk.bf16.mxu1 %vm683_vm6, %v11113_v52  ;;  %v11534_v52 = vrot.slane %v11490_v9, 10  ;;  %v7833_v4 = vsel %vm14603_vm4, %v11533_v40, %v7832_v2  ;;  %v7870_v9 = vrot.slane %v11504_v42, 6  ;;  %v17090_v40 = vld [vmem:[%s14571_s1 + $0xc4] sm:$0xf] }
 0x2e0   : > { %12824 = vmatmul.mubr.msk.bf16.gmra.mrb[84].mxu0 %vm683_vm6, %v13874_v63  ;;  %v7836_v63 = vsel %vm14603_vm4, %v7834_v25, %v7835_v20  ;;  %v14260_v25 = vmov 0.0  }
 0x2e1   : > { %12628 = vmatmul.mubr.msk.bf16.gmra.mrb[24].mxu1 %vm683_vm6, %v11114_v0  ;;  %12827 = vmatprep.mubr.msk.bf16.mxu0 %vm683_vm6, %v13875_v23  ;;  %v7846_v0 = vrot.slane %v17041_v14, 6  ;;  %v7840_v23 = vsel %vm14603_vm4, %v11534_v52, %v7839_v57  ;;  %v11538_v57 = vrot.slane %v11502_v12, 10  ;;  %v11516_v12 = vld [vmem:[%s14571_s1 + $0xe0] sm:$0x3] }
 0x2e2   : > { %8897 = vmatprep.mubr.bf16.mxu1 %v14259_v19  ;;  %12937 = vmatprep.subr.bf16.mxu1 %v14260_v25 }
 0x2e8   : > { %12828 = vmatmul.mubr.msk.bf16.gmra.mrb[88].mxu0 %vm683_vm6, %v13876_v6  ;;  %v11493_v6 = vld [vmem:[%s14571_s1 + $0x84] sm:$0xc] }
 0x2e9   : > { %8898 = vmatmul.mubr.bf16.vlgmr.msra.gmra.mrb[32].mxu1 %v14259_v19  ;;  %12831 = vmatprep.mubr.msk.bf16.mxu0 %vm683_vm6, %v13877_v60  ;;  %v7843_v19 = vsel %vm14603_vm4, %v7841_v21, %v7842_v48  ;;  %v11495_v60 = vld [vmem:[%s14571_s1 + $0x8c] sm:$0x3] }
 0x2ea   : > { %12939 = vmatprep.mubr.msk.bf16.mxu1 %vm14261_vm11, %v14260_v25 }
 0x2f0   : > { %12832 = vmatmul.mubr.msk.bf16.gmra.mrb[92].mxu0 %vm683_vm6, %v13878_v1  ;;  %v7853_v1 = vrot.slane %v17044_v18, 6 }
 0x2f1   : > { %12837 = vmatprep.mubr.msk.bf16.mxu0 %vm683_vm6, %v13879_v27  ;;  %v11496_v27 = vld [vmem:[%s14571_s1 + $0x90] sm:$0xc] }
 0x2f8   : > { %12838 = vmatmul.mubr.msk.bf16.vlgmr.msra.gmra.mrb[64].mxu0 %vm683_vm6, %v13880_v11  ;;  %v11498_v11 = vld [vmem:[%s14571_s1 + $0x98] sm:$0x3] }
 0x2f9   : > { %12841 = vmatprep.mubr.msk.bf16.mxu0 %vm683_vm6, %v13881_v49  ;;  %12870 = vmatpush3.bf16.msra.mxu0 %v8034_v41  ;;  %v11549_v49 = vcombine.low %v7833_v4, %v7836_v63  ;;  %v11550_v41 = vcombine.low %v7840_v23, %v7843_v19  ;;  %v11507_v23 = vld [vmem:[%s14571_s1 + $0xbc] sm:$0x3]  ;;  %v7881_v19 = vrot.slane %v17090_v40, 6 }
 0x2fa   : > { %13688 = vmatprep.subr.msk.bf16.mxu0 %vm514_vm0, %v16987_v10 }
 0x300   : > { %12842 = vmatmul.mubr.msk.bf16.gmra.mrb[68].mxu0 %vm683_vm6, %v13882_v47  ;;  %v11535_v47 = vrot.slane %v11493_v6, 10  ;;  %v11508_v6 = vld [vmem:[%s14571_s1 + $0xc0] sm:$0xc] }
 0x301   : > { %12845 = vmatprep.mubr.msk.bf16.mxu0 %vm683_vm6, %v13883_v22  ;;  %v7848_v22 = vrot.slane %v7846_v0, 4 }
 0x308   : > { %12846 = vmatmul.mubr.msk.bf16.gmra.mrb[72].mxu0 %vm683_vm6, %v13884_v36  ;;  %v7849_v36 = vrot.slane %v11495_v60, 6  ;;  %v11510_v60 = vld [vmem:[%s14571_s1 + $0xc8] sm:$0x3] }
 0x309   : > { %12849 = vmatprep.mubr.msk.bf16.mxu0 %vm683_vm6, %v13885_v3  ;;  %v11536_v3 = vrot.slane %v11496_v27, 10 }
 0x30a   : > { %v7850_v62 = vsel %vm14603_vm4, %v7848_v22, %v7849_v36  ;;  %v7883_v22 = vrot.slane %v7881_v19, 4  ;;  %v7884_v36 = vrot.slane %v11510_v60, 6 }
 0x30c   : > { %v7885_v24 = vsel %vm14603_vm4, %v7883_v22, %v7884_v36  ;;  %v17158_v22 = vld [vmem:[%s14571_s1 + $0x100] sm:$0xf]  ;;  %v17161_v36 = vld [vmem:[%s14571_s1 + $0x10c] sm:$0xf] }
 0x310   : > { %12850 = vmatmul.mubr.msk.bf16.gmra.mrb[76].mxu0 %vm683_vm6, %v13886_v61  ;;  %v7855_v61 = vrot.slane %v7853_v1, 4 }
 0x311   : > { %12853 = vmatprep.mubr.msk.bf16.mxu0 %vm683_vm6, %v13887_v13  ;;  %v7856_v13 = vrot.slane %v11498_v11, 6 }
 0x318   : > { %12854 = vmatmul.mubr.msk.bf16.gmra.mrb[80].mxu0 %vm683_vm6, %v13888_v45  ;;  %v17063_v45 = vld [vmem:[%s14571_s1 + $0xa0] sm:$0xf] }
 0x319   : > { %12857 = vmatprep.mubr.msk.bf16.mxu0 %vm683_vm6, %v13889_v43  ;;  %v8360_v43 = vsel %vm514_vm0, %v16987_v10, 0  ;;  %v7854_v10 = vsel %vm14603_vm4, %v11536_v3, %v7853_v1  ;;  %v17114_v3 = vld [vmem:[%s14571_s1 + $0xd0] sm:$0xf] }
 0x320   : > { %12858 = vmatmul.mubr.msk.bf16.gmra.mrb[84].mxu0 %vm683_vm6, %v13890_v29  ;;  %v17068_v29 = vld [vmem:[%s14571_s1 + $0xac] sm:$0xf] }
 0x321   : > { %12861 = vmatprep.mubr.msk.bf16.mxu0 %vm683_vm6, %v13891_v16  ;;  %v7847_v16 = vsel %vm14603_vm4, %v11535_v47, %v7846_v0  ;;  %v7867_v38 = vrot.slane %v17068_v29, 6  ;;  %v11505_v0 = vld [vmem:[%s14571_s1 + $0xb4] sm:$0xc]  ;;  %v11540_v47 = vrot.slane %v11508_v6, 10 }
 0x322   : > { %v11551_v2 = vcombine.low %v7847_v16, %v7850_v62  ;;  %v11539_v11 = vrot.slane %v11505_v0, 10  ;;  %v7888_v16 = vrot.slane %v17114_v3, 6 }
 0x323   : > { %v7869_v5 = vrot.slane %v7867_v38, 4  ;;  %v7868_v4 = vsel %vm14603_vm4, %v11538_v57, %v7867_v38  ;;  %v7882_v62 = vsel %vm14603_vm4, %v11540_v47, %v7881_v19  ;;  %v7898_v57 = vrot.slane %v11516_v12, 6  ;;  %v11522_v19 = vld [vmem:[%s14571_s1 + $0xf8] sm:$0x3]  ;;  %v11528_v12 = vld [vmem:[%s14571_s1 + $0x110] sm:$0x3] }
 0x324   : > { %v11556_v38 = vcombine.low %v7882_v62, %v7885_v24  ;;  %v7912_v47 = vrot.slane %v11522_v19, 6 }
 0x325   : > { %v7871_v63 = vsel %vm14603_vm4, %v7869_v5, %v7870_v9  ;;  %v17136_v9 = vld [vmem:[%s14571_s1 + $0xe8] sm:$0xf]  ;;  %v17139_v5 = vld [vmem:[%s14571_s1 + $0xf4] sm:$0xf] }
 0x326   : > { %v11554_v27 = vcombine.low %v7868_v4, %v7871_v63  ;;  %v11517_v4 = vld [vmem:[%s14571_s1 + $0xe4] sm:$0xc]  ;;  %v11519_v63 = vld [vmem:[%s14571_s1 + $0xec] sm:$0x3]  ;;  %v7909_v0 = vrot.slane %v17139_v5, 6 }
 0x328   : > { %12862 = vmatmul.mubr.msk.bf16.gmra.mrb[88].mxu0 %vm683_vm6, %v13892_v26  ;;  %v7860_v26 = vrot.slane %v17063_v45, 6 }
 0x329   : > { %12865 = vmatprep.mubr.msk.bf16.mxu0 %vm683_vm6, %v13893_v53  ;;  %v7857_v53 = vsel %vm14603_vm4, %v7855_v61, %v7856_v13  ;;  %v17117_v61 = vld [vmem:[%s14571_s1 + $0xdc] sm:$0xf] }
 0x32a   : > { %v11552_v17 = vcombine.low %v7854_v10, %v7857_v53  ;;  %v7862_v33 = vrot.slane %v7860_v26, 4  ;;  %v7861_v52 = vsel %vm14603_vm4, %v11537_v34, %v7860_v26  ;;  %v11513_v26 = vld [vmem:[%s14571_s1 + $0xd4] sm:$0x3]  ;;  %v7895_v10 = vrot.slane %v17117_v61, 6  ;;  %v11514_v53 = vld [vmem:[%s14571_s1 + $0xd8] sm:$0xc] }
 0x32b   : > { %v7890_v34 = vrot.slane %v7888_v16, 4 }
 0x32c   : > { %v7864_v21 = vsel %vm14603_vm4, %v7862_v33, %v7863_v54  ;;  %v7891_v54 = vrot.slane %v11513_v26, 6  ;;  %v7897_v33 = vrot.slane %v7895_v10, 4  ;;  %v11525_v26 = vld [vmem:[%s14571_s1 + $0x104] sm:$0x3] }
 0x32d   : > { %v11553_v1 = vcombine.low %v7861_v52, %v7864_v21  ;;  %v7902_v52 = vrot.slane %v17136_v9, 6 }
 0x330   : > { %12866 = vmatmul.mubr.msk.bf16.gmra.mrb[92].mxu0 %vm683_vm6, %v13894_v55  ;;  %v17087_v55 = vld [vmem:[%s14571_s1 + $0xb8] sm:$0xf] }
 0x331   : > { %12871 = vmatprep.mubr.msk.bf16.mxu0 %vm683_vm6, %v11548_v58  ;;  %v8907_v58 = vld [vmem:[#allocation10] sm:$0x3]  ;;  %v7874_v48 = vrot.slane %v17087_v55, 6 }
 0x332   : > { %v8913_v20 = vsel %vm514_vm0, %v8907_v58, 0 }
 0x333   : > { %12938 = vmatpush3.bf16.msra.mxu1 %v8913_v20  ;;  %v7875_v13 = vsel %vm14603_vm4, %v11539_v11, %v7874_v48  ;;  %v7892_v20 = vsel %vm14603_vm4, %v7890_v34, %v7891_v54  ;;  %v7905_v11 = vrot.slane %v11519_v63, 6  ;;  %v7919_v54 = vrot.slane %v11525_v26, 6  ;;  %v11529_v63 = vld [vmem:[%s14571_s1 + $0x114] sm:$0xc]  ;;  %v17213_v26 = vld [vmem:[#allocation13 + $0x1] ss:$0 sm:$0xff] }
 0x334   : > { %12943 = vmatprep.subr.bf16.mxu1 %v14260_v25 }
 0x338   : > { %12872 = vmatmul.mubr.msk.bf16.vlgmr.msra.gmra.mrb[64].mxu0 %vm683_vm6, %v11549_v49  ;;  %v7876_v49 = vrot.slane %v7874_v48, 4  ;;  %v7899_v48 = vsel %vm14603_vm4, %v7897_v33, %v7898_v57  ;;  %v7926_v57 = vrot.slane %v11528_v12, 6 }
 0x339   : > { %12875 = vmatprep.mubr.msk.bf16.mxu0 %vm683_vm6, %v11550_v41  ;;  %12904 = vmatpush3.bf16.msra.mxu0 %v8360_v43  ;;  %v7877_v41 = vrot.slane %v11507_v23, 6  ;;  %v11520_v23 = vld [vmem:[%s14571_s1 + $0xf0] sm:$0xc] }
 0x33b   : > { %v7878_v43 = vsel %vm14603_vm4, %v7876_v49, %v7877_v41  ;;  %v11544_v49 = vrot.slane %v11520_v23, 10  ;;  %v7911_v41 = vrot.slane %v7909_v0, 4 }
 0x33c   : > { %v11555_v42 = vcombine.low %v7875_v13, %v7878_v43 }
 0x33d   : > { %v7910_v62 = vsel %vm14603_vm4, %v11544_v49, %v7909_v0  ;;  %v7913_v24 = vsel %vm14603_vm4, %v7911_v41, %v7912_v47  ;;  %v11531_v0 = vld [vmem:[%s14571_s1 + $0x11c] sm:$0x3]  ;;  %v11580_v49 = vld [vmem:[%s14571_s1 + $0x68] sm:$0xf] }
 0x33e   : > { %v11596_v47 = vcombine.low %v17012_v59, %v11580_v49  ;;  %v11599_v59 = vcombine.low %v17041_v14, %v11583_v7 }
 0x340   : > { %12876 = vmatmul.mubr.msk.bf16.gmra.mrb[68].mxu0 %vm683_vm6, %v11551_v2  ;;  %v11541_v2 = vrot.slane %v11511_v15, 10  ;;  %v11523_v15 = vld [vmem:[%s14571_s1 + $0xfc] sm:$0xc] }
 0x341   : > { %12879 = vmatprep.mubr.msk.bf16.mxu0 %vm683_vm6, %v11552_v17  ;;  %v11542_v17 = vrot.slane %v11514_v53, 10  ;;  %v11526_v53 = vld [vmem:[%s14571_s1 + $0x108] sm:$0xc] }
 0x342   : > { %v7889_v58 = vsel %vm14603_vm4, %v11541_v2, %v7888_v16  ;;  %v7916_v16 = vrot.slane %v17158_v22, 6  ;;  %v11545_v2 = vrot.slane %v11523_v15, 10 }
 0x343   : > { %v7896_v21 = vsel %vm14603_vm4, %v11542_v17, %v7895_v10  ;;  %v11557_v6 = vcombine.low %v7889_v58, %v7892_v20  ;;  %v7923_v10 = vrot.slane %v17161_v36, 6  ;;  %v11546_v17 = vrot.slane %v11526_v53, 10  ;;  %v17180_v58 = vld [vmem:[%s14571_s1 + $0x118] sm:$0xf] }
 0x344   : > { %v11558_v60 = vcombine.low %v7896_v21, %v7899_v48  ;;  %v7918_v34 = vrot.slane %v7916_v16, 4  ;;  %v7917_v20 = vsel %vm14603_vm4, %v11545_v2, %v7916_v16  ;;  %v7930_v21 = vrot.slane %v17180_v58, 6 }
 0x345   : > { %v7925_v33 = vrot.slane %v7923_v10, 4  ;;  %v7924_v48 = vsel %vm14603_vm4, %v11546_v17, %v7923_v10 }
 0x348   : > { %12880 = vmatmul.mubr.msk.bf16.gmra.mrb[72].mxu0 %vm683_vm6, %v11553_v1  ;;  %v11543_v1 = vrot.slane %v11517_v4, 10  ;;  %v7927_v4 = vsel %vm14603_vm4, %v7925_v33, %v7926_v57  ;;  %v11586_v33 = vld [vmem:[%s14571_s1 + $0xb0] sm:$0xf] }
 0x349   : > { %12883 = vmatprep.mubr.msk.bf16.mxu0 %vm683_vm6, %v11554_v27  ;;  %v7904_v27 = vrot.slane %v7902_v52, 4  ;;  %v11562_v19 = vcombine.low %v7924_v48, %v7927_v4 }
 0x34a   : > { %v7903_v13 = vsel %vm14603_vm4, %v11543_v1, %v7902_v52  ;;  %v7920_v52 = vsel %vm14603_vm4, %v7918_v34, %v7919_v54  ;;  %v7933_v1 = vrot.slane %v11531_v0, 6  ;;  %v11602_v0 = vcombine.low %v17068_v29, %v11586_v33 }
 0x34b   : > { %v7906_v43 = vsel %vm14603_vm4, %v7904_v27, %v7905_v11  ;;  %v11561_v23 = vcombine.low %v7917_v20, %v7920_v52 }
 0x350   : > { %12884 = vmatmul.mubr.msk.bf16.gmra.mrb[76].mxu0 %vm683_vm6, %v11555_v42  ;;  %v11559_v42 = vcombine.low %v7903_v13, %v7906_v43  ;;  %v11581_v13 = vld [vmem:[%s14571_s1 + $0x74] sm:$0xf]  ;;  %v11582_v43 = vld [vmem:[%s14571_s1 + $0x80] sm:$0xf] }
 0x351   : > { %12887 = vmatprep.mubr.msk.bf16.mxu0 %vm683_vm6, %v11556_v38  ;;  %v11560_v38 = vcombine.low %v7910_v62, %v7913_v24  ;;  %v11597_v16 = vcombine.low %v17022_v30, %v11581_v13  ;;  %v11598_v62 = vcombine.low %v17025_v8, %v11582_v43  ;;  %v11584_v24 = vld [vmem:[%s14571_s1 + $0x98] sm:$0xf] }
 0x352   : > { %v11600_v30 = vcombine.low %v17044_v18, %v11584_v24  ;;  %v11585_v18 = vld [vmem:[%s14571_s1 + $0xa4] sm:$0xf] }
 0x358   : > { %12888 = vmatmul.mubr.msk.bf16.gmra.mrb[80].mxu0 %vm683_vm6, %v11557_v6  ;;  %v11547_v6 = vrot.slane %v11529_v63, 10 }
 0x359   : > { %12891 = vmatprep.mubr.msk.bf16.mxu0 %vm683_vm6, %v11558_v60  ;;  %v7932_v60 = vrot.slane %v7930_v21, 4 }
 0x35a   : > { %v7931_v27 = vsel %vm14603_vm4, %v11547_v6, %v7930_v21  ;;  %v11601_v21 = vcombine.low %v17063_v45, %v11585_v18 }
 0x35b   : > { %v7934_v11 = vsel %vm14603_vm4, %v7932_v60, %v7933_v1 }
 0x35c   : > { %v11563_v41 = vcombine.low %v7931_v27, %v7934_v11 }
 0x360   : > { %12892 = vmatmul.mubr.msk.bf16.gmra.mrb[84].mxu0 %vm683_vm6, %v11559_v42 }
 0x361   : > { %12895 = vmatprep.mubr.msk.bf16.mxu0 %vm683_vm6, %v11560_v38 }
 0x368   : > { %12896 = vmatmul.mubr.msk.bf16.gmra.mrb[88].mxu0 %vm683_vm6, %v11561_v23 }
 0x369   : > { %12899 = vmatprep.mubr.msk.bf16.mxu0 %vm683_vm6, %v11562_v19 }
 0x370   : > { %12900 = vmatmul.mubr.msk.bf16.gmra.mrb[92].mxu0 %vm683_vm6, %v11563_v41 }
 0x371   : > { %12905 = vmatprep.mubr.msk.bf16.mxu0 %vm683_vm6, %v11596_v47  ;;  %v11588_v47 = vld [vmem:[%s14571_s1 + $0xc8] sm:$0xf] }
 0x378   : > { %12906 = vmatmul.mubr.msk.bf16.vlgmr.msra.gmra.mrb[64].mxu0 %vm683_vm6, %v11597_v16 }
 0x379   : > { %12909 = vmatprep.mubr.msk.bf16.mxu0 %vm683_vm6, %v11598_v62 }
 0x37c   : > { %v12601_v15 = vpop.f32.mrb[28].mxu1 }
 0x37d   : > { %v13061_v10 = vadd.f32 %v12601_v15, %v16588_v35  ;;  %v4928_v53 = vpop.f32.mrb[29].mxu1 }
 0x37e   : > { %v13062_v8 = vadd.f32 %v4928_v53, %v16592_v28  ;;  %v12602_v12 = vpop.f32.mrb[30].mxu1  ;;  %v11604_v53 = vcombine.low %v17090_v40, %v11588_v47  ;;  %v18537_v40 = vld [vmem:[#allocation59_spill] sm:$0xff] }
 0x37f   : > { %v5094_v42 = vadd.f32 %v13061_v10, %v17213_v26  ;;  %v13063_v38 = vadd.f32 %v12602_v12, %v16600_v56  ;;  %v4931_v2 = vpop.f32.mrb[31].mxu1 }
 0x380   : > { %v5092_v34 = vadd.f32 %v13062_v8, %v17213_v26  ;;  %v13064_v54 = vadd.f32 %v4931_v2, %v16609_v51  ;;  %12910 = vmatmul.mubr.msk.bf16.gmra.mrb[68].mxu0 %vm683_vm6, %v11599_v59 }
 0x381   : > { %v17224_v14 = vmax.f32 %v5094_v42, 0.0  ;;  %v5095_v35 = vadd.f32 %v13063_v38, %v17213_v26  ;;  %12913 = vmatprep.mubr.msk.bf16.mxu0 %vm683_vm6, %v11600_v30 }
 0x382   : > { %v17229_v28 = vmax.f32 %v5092_v34, 0.0  ;;  %v5093_v17 = vadd.f32 %v13064_v54, %v17213_v26 }
 0x383   : > { %v17233_v56 = vmax.f32 %v5095_v35, 0.0  ;;  %v11792_v57 = vpack.c.bf16 %v17224_v14, %v17224_v14 }
 0x384   : > { %v17237_v51 = vmax.f32 %v5093_v17, 0.0  ;;  %v12605_v20 = vpop.f32.mrb[0].mxu1  ;;  %v11790_v52 = vpack.c.bf16 %v17229_v28, %v17229_v28  ;;  %v11590_v17 = vld [vmem:[%s14571_s1 + $0xe0] sm:$0xf] }
 0x385   : > { %v13065_v4 = vadd.f32 %v12605_v20, %v16393_v37  ;;  %v4944_v63 = vpop.f32.mrb[1].mxu1  ;;  %5256 = vrot.lane.b32.xlu1 %v11792_v57, %s14262_s22  ;;  %v11793_v1 = vpack.c.bf16 %v17233_v56, %v17233_v56 }
 0x386   : > { %v13066_v19 = vadd.f32 %v4944_v63, %v16405_v39  ;;  %v12606_v6 = vpop.f32.mrb[2].mxu1  ;;  %5252 = vrot.lane.b32.xlu0 %v11790_v52, %s14262_s22  ;;  %v11791_v39 = vpack.c.bf16 %v17237_v51, %v17237_v51 }
 0x387   : > { %v5098_v45 = vadd.f32 %v13065_v4, %v17213_v26  ;;  %v13067_v37 = vadd.f32 %v12606_v6, %v16412_v46  ;;  %v4947_v60 = vpop.f32.mrb[3].mxu1  ;;  %v11587_v46 = vld [vmem:[%s14571_s1 + $0xbc] sm:$0xf] }
 0x388   : > { %v5096_v29 = vadd.f32 %v13066_v19, %v17213_v26  ;;  %v13068_v27 = vadd.f32 %v4947_v60, %v16426_v31  ;;  %12914 = vmatmul.mubr.msk.bf16.gmra.mrb[72].mxu0 %vm683_vm6, %v11601_v21  ;;  %v11603_v7 = vcombine.low %v17087_v55, %v11587_v46 }
 0x389   : > { %v17260_v11 = vmax.f32 %v5098_v45, 0.0  ;;  %v5099_v49 = vadd.f32 %v13067_v37, %v17213_v26  ;;  %5258 = vrot.lane.b32.xlu1 %v11793_v1, %s14262_s22  ;;  %12917 = vmatprep.mubr.msk.bf16.mxu0 %vm683_vm6, %v11602_v0  ;;  %v18538_v0 = vld [vmem:[#allocation60_spill] sm:$0xff]  ;;  %v11606_v37 = vcombine.low %v17117_v61, %v11590_v17  ;;  %v18539_v1 = vld [vmem:[#allocation61_spill] sm:$0xff]  ;;  %v18541_v61 = vld [vmem:[#allocation63_spill] sm:$0xff] }
 0x38a   : > { %v5097_v41 = vadd.f32 %v13068_v27, %v17213_v26  ;;  %5254 = vrot.lane.b32.xlu0 %v11791_v39, %s14262_s22  ;;  %v17273_v43 = vmax.f32 %v5096_v29, 0.0  ;;  %v18540_v39 = vld [vmem:[#allocation62_spill] sm:$0xff]  ;;  %v18543_v17 = vld [vmem:[#allocation65_spill] sm:$0xff] }
 0x38b   : > { %v17269_v31 = vmax.f32 %v5099_v49, 0.0  ;;  %v11796_v13 = vpack.c.bf16 %v17260_v11, %v17260_v11 }
 0x38c   : > { %v17275_v16 = vmax.f32 %v5097_v41, 0.0  ;;  %v12609_v62 = vpop.f32.mrb[4].mxu1 }
 0x38d   : > { %v13069_v15 = vadd.f32 %v12609_v62, %v16435_v50  ;;  %v4960_v59 = vpop.f32.mrb[5].mxu1  ;;  %v11797_v10 = vpack.c.bf16 %v17269_v31, %v17269_v31 }
 0x38e   : > { %v13070_v8 = vadd.f32 %v4960_v59, %v16451_v44  ;;  %v12610_v12 = vpop.f32.mrb[6].mxu1  ;;  %5264 = vrot.lane.b32.xlu0 %v11796_v13, %s14262_s22  ;;  %v11794_v44 = vpack.c.bf16 %v17273_v43, %v17273_v43  ;;  %v11795_v35 = vpack.c.bf16 %v17275_v16, %v17275_v16  ;;  %v11591_v59 = vld [vmem:[%s14571_s1 + $0xec] sm:$0xf] }
 0x38f   : > { %v5102_v55 = vadd.f32 %v13069_v15, %v17213_v26  ;;  %v13071_v50 = vadd.f32 %v12610_v12, %v16463_v32  ;;  %v4963_v42 = vpop.f32.mrb[7].mxu1  ;;  %5266 = vrot.lane.b32.xlu1 %v11797_v10, %s14262_s22  ;;  %v11589_v32 = vld [vmem:[%s14571_s1 + $0xd4] sm:$0xf] }
 0x390   : > { %v5100_v38 = vadd.f32 %v13070_v8, %v17213_v26  ;;  %v13072_v2 = vadd.f32 %v4963_v42, %v18537_v40  ;;  %12918 = vmatmul.mubr.msk.bf16.gmra.mrb[76].mxu0 %vm683_vm6, %v11603_v7  ;;  %v11605_v4 = vcombine.low %v17114_v3, %v11589_v32 }
 0x391   : > { %v17296_v34 = vmax.f32 %v5102_v55, 0.0  ;;  %v5103_v54 = vadd.f32 %v13071_v50, %v17213_v26  ;;  %12921 = vmatprep.mubr.msk.bf16.mxu0 %vm683_vm6, %v11604_v53  ;;  %v11592_v53 = vld [vmem:[%s14571_s1 + $0xf8] sm:$0xf] }
 0x392   : > { %v5101_v18 = vadd.f32 %v13072_v2, %v17213_v26  ;;  %5260 = vrot.lane.b32.xlu0 %v11794_v44, %s14262_s22  ;;  %v17311_v20 = vmax.f32 %v5100_v38, 0.0  ;;  %v11607_v38 = vcombine.low %v17136_v9, %v11591_v59  ;;  %v18542_v2 = vld [vmem:[#allocation64_spill] sm:$0xff]  ;;  %v11608_v32 = vcombine.low %v17139_v5, %v11592_v53  ;;  %v18545_v5 = vld [vmem:[#allocation67_spill] sm:$0xff] }
 0x393   : > { %v17306_v33 = vmax.f32 %v5103_v54, 0.0  ;;  %5262 = vrot.lane.b32.xlu1 %v11795_v35, %s14262_s22  ;;  %v11800_v57 = vpack.c.bf16 %v17296_v34, %v17296_v34  ;;  %v18546_v59 = vld [vmem:[#allocation68_spill] sm:$0xff] }
 0x394   : > { %v17313_v52 = vmax.f32 %v5101_v18, 0.0  ;;  %v12613_v21 = vpop.f32.mrb[8].mxu1  ;;  %v11798_v13 = vpack.c.bf16 %v17311_v20, %v17311_v20 }
 0x395   : > { %v13073_v19 = vadd.f32 %v12613_v21, %v18538_v0  ;;  %v4976_v6 = vpop.f32.mrb[9].mxu1  ;;  %v11801_v45 = vpack.c.bf16 %v17306_v33, %v17306_v33 }
 0x396   : > { %v13074_v29 = vadd.f32 %v4976_v6, %v18539_v1  ;;  %v12614_v27 = vpop.f32.mrb[10].mxu1  ;;  %5272 = vrot.lane.b32.xlu0 %v11800_v57, %s14262_s22  ;;  %v11799_v15 = vpack.c.bf16 %v17313_v52, %v17313_v52 }
 0x397   : > { %v5106_v3 = vadd.f32 %v13073_v19, %v17213_v26  ;;  %v13075_v49 = vadd.f32 %v12614_v27, %v18540_v39  ;;  %v4979_v46 = vpop.f32.mrb[11].mxu1  ;;  %5274 = vrot.lane.b32.xlu1 %v11801_v45, %s14262_s22 }
 0x398   : > { %v5104_v41 = vadd.f32 %v13074_v29, %v17213_v26  ;;  %v13076_v47 = vadd.f32 %v4979_v46, %v18541_v61  ;;  %12922 = vmatmul.mubr.msk.bf16.gmra.mrb[80].mxu0 %vm683_vm6, %v11605_v4  ;;  %v18544_v4 = vld [vmem:[#allocation66_spill] sm:$0xff] }
 0x399   : > { %v17334_v62 = vmax.f32 %v5106_v3, 0.0  ;;  %v5107_v7 = vadd.f32 %v13075_v49, %v17213_v26  ;;  %12925 = vmatprep.mubr.msk.bf16.mxu0 %vm683_vm6, %v11606_v37  ;;  %v11593_v3 = vld [vmem:[%s14571_s1 + $0x104] sm:$0xf]  ;;  %v11594_v49 = vld [vmem:[%s14571_s1 + $0x110] sm:$0xf] }
 0x39a   : > { %v5105_v10 = vadd.f32 %v13076_v47, %v17213_v26  ;;  %5268 = vrot.lane.b32.xlu0 %v11798_v13, %s14262_s22  ;;  %v17349_v55 = vmax.f32 %v5104_v41, 0.0 }
 0x39b   : > { %v17344_v8 = vmax.f32 %v5107_v7, 0.0  ;;  %5270 = vrot.lane.b32.xlu1 %v11799_v15, %s14262_s22  ;;  %v11804_v12 = vpack.c.bf16 %v17334_v62, %v17334_v62  ;;  %v11609_v7 = vcombine.low %v17158_v22, %v11593_v3 }
 0x39c   : > { %v17351_v50 = vmax.f32 %v5105_v10, 0.0  ;;  %v12617_v42 = vpop.f32.mrb[12].mxu1  ;;  %v11802_v37 = vpack.c.bf16 %v17349_v55, %v17349_v55 }
 0x39d   : > { %v13077_v44 = vadd.f32 %v12617_v42, %v18542_v2  ;;  %v4992_v54 = vpop.f32.mrb[13].mxu1  ;;  %v11805_v35 = vpack.c.bf16 %v17344_v8, %v17344_v8  ;;  %v11610_v42 = vcombine.low %v17161_v36, %v11594_v49  ;;  %v18547_v2 = vld [vmem:[#allocation69_spill] sm:$0xff] }
 0x39e   : > { %v13078_v57 = vadd.f32 %v4992_v54, %v18543_v17  ;;  %v12618_v21 = vpop.f32.mrb[14].mxu1  ;;  %5280 = vrot.lane.b32.xlu0 %v11804_v12, %s14262_s22  ;;  %v11803_v27 = vpack.c.bf16 %v17351_v50, %v17351_v50 }
 0x39f   : > { %v5110_v9 = vadd.f32 %v13077_v44, %v17213_v26  ;;  %v13079_v0 = vadd.f32 %v12618_v21, %v18544_v4  ;;  %v4995_v19 = vpop.f32.mrb[15].mxu1  ;;  %5282 = vrot.lane.b32.xlu1 %v11805_v35, %s14262_s22  ;;  %v18548_v35 = vld [vmem:[#allocation70_spill] sm:$0xff]  ;;  %v18549_v21 = vld [vmem:[#allocation71_spill] sm:$0xff] }
 0x3a0   : > { %v5108_v6 = vadd.f32 %v13078_v57, %v17213_v26  ;;  %v13080_v45 = vadd.f32 %v4995_v19, %v18545_v5  ;;  %12926 = vmatmul.mubr.msk.bf16.gmra.mrb[84].mxu0 %vm683_vm6, %v11607_v38 }
 0x3a1   : > { %v17372_v1 = vmax.f32 %v5110_v9, 0.0  ;;  %v5111_v29 = vadd.f32 %v13079_v0, %v17213_v26  ;;  %12929 = vmatprep.mubr.msk.bf16.mxu0 %vm683_vm6, %v11608_v32 }
 0x3a2   : > { %v5109_v39 = vadd.f32 %v13080_v45, %v17213_v26  ;;  %5276 = vrot.lane.b32.xlu0 %v11802_v37, %s14262_s22  ;;  %v17387_v61 = vmax.f32 %v5108_v6, 0.0  ;;  %v11595_v6 = vld [vmem:[%s14571_s1 + $0x11c] sm:$0xf]  ;;  %s14265_s1 = smov [#allocation15]  }
 0x3a3   : > { %v17382_v46 = vmax.f32 %v5111_v29, 0.0  ;;  %5278 = vrot.lane.b32.xlu1 %v11803_v27, %s14262_s22  ;;  %v11808_v41 = vpack.c.bf16 %v17372_v1, %v17372_v1  ;;  %s14140_s12 = sshll.u32 %s14265_s1, 4  ;;  %s14141_s12 = int_to_ptr.vmem [resolvable:$false] %s14140_s12 }
 0x3a4   : > { %v17389_v47 = vmax.f32 %v5109_v39, 0.0  ;;  %v12621_v13 = vpop.f32.mrb[16].mxu1  ;;  %v11806_v9 = vpack.c.bf16 %v17387_v61, %v17387_v61  ;;  %v11611_v39 = vcombine.low %v17180_v58, %v11595_v6  ;;  %v18552_v58 = vld [vmem:[#allocation74_spill] sm:$0xff]  ;;  %p14143_p4 = scmp.lt.s32.totalorder %s18170_s25, %s14141_s12 }
 0x3a5   : > { %v13081_v10 = vadd.f32 %v12621_v13, %v18546_v59  ;;  %v5008_v53 = vpop.f32.mrb[17].mxu1  ;;  %v11809_v12 = vpack.c.bf16 %v17382_v46, %v17382_v46 }
 0x3a6   : > { %v13082_v44 = vadd.f32 %v5008_v53, %v18547_v2  ;;  %v12622_v54 = vpop.f32.mrb[18].mxu1  ;;  %5288 = vrot.lane.b32.xlu0 %v11808_v41, %s14262_s22  ;;  %v11807_v19 = vpack.c.bf16 %v17389_v47, %v17389_v47  ;;  %v18550_v41 = vld [vmem:[#allocation72_spill] sm:$0xff]  ;;  %v18551_v53 = vld [vmem:[#allocation73_spill] sm:$0xff] }
 0x3a7   : > { %v5114_v22 = vadd.f32 %v13081_v10, %v17213_v26  ;;  %v13083_v32 = vadd.f32 %v12622_v54, %v18548_v35  ;;  %v5011_v17 = vpop.f32.mrb[19].mxu1  ;;  %5290 = vrot.lane.b32.xlu1 %v11809_v12, %s14262_s22  ;;  %v18553_v35 = vld [vmem:[#allocation75_spill] sm:$0xff] }
 0x3a8   : > { %v5112_v57 = vadd.f32 %v13082_v44, %v17213_v26  ;;  %v13084_v36 = vadd.f32 %v5011_v17, %v18549_v21  ;;  %12930 = vmatmul.mubr.msk.bf16.gmra.mrb[88].mxu0 %vm683_vm6, %v11609_v7 }
 0x3a9   : > { %v17410_v4 = vmax.f32 %v5114_v22, 0.0  ;;  %v5115_v0 = vadd.f32 %v13083_v32, %v17213_v26  ;;  %12933 = vmatprep.mubr.msk.bf16.mxu0 %vm683_vm6, %v11610_v42 }
 0x3aa   : > { %v5113_v5 = vadd.f32 %v13084_v36, %v17213_v26  ;;  %5284 = vrot.lane.b32.xlu0 %v11806_v9, %s14262_s22  ;;  %v17424_v29 = vmax.f32 %v5112_v57, 0.0 }
 0x3ab   : > { %v17419_v45 = vmax.f32 %v5115_v0, 0.0  ;;  %5286 = vrot.lane.b32.xlu1 %v11807_v19, %s14262_s22  ;;  %v11812_v37 = vpack.c.bf16 %v17410_v4, %v17410_v4 }
 0x3ac   : > { %v17426_v27 = vmax.f32 %v5113_v5, 0.0  ;;  %v12625_v3 = vpop.f32.mrb[20].mxu1  ;;  %v11810_v17 = vpack.c.bf16 %v17424_v29, %v17424_v29 }
 0x3ad   : > { %v13085_v13 = vadd.f32 %v12625_v3, %v18550_v41  ;;  %v5024_v7 = vpop.f32.mrb[21].mxu1  ;;  %v11813_v59 = vpack.c.bf16 %v17419_v45, %v17419_v45 }
 0x3ae   : > { %v13086_v12 = vadd.f32 %v5024_v7, %v18551_v53  ;;  %v12626_v42 = vpop.f32.mrb[22].mxu1  ;;  %5296 = vrot.lane.b32.xlu0 %v11812_v37, %s14262_s22  ;;  %v11811_v36 = vpack.c.bf16 %v17426_v27, %v17426_v27  ;;  %v18555_v53 = vld [vmem:[#allocation77_spill] sm:$0xff] }
 0x3af   : > { %v5118_v2 = vadd.f32 %v13085_v13, %v17213_v26  ;;  %v13087_v44 = vadd.f32 %v12626_v42, %v18552_v58  ;;  %v5027_v54 = vpop.f32.mrb[23].mxu1  ;;  %5298 = vrot.lane.b32.xlu1 %v11813_v59, %s14262_s22  ;;  %v18556_v58 = vld [vmem:[#allocation78_spill] sm:$0xff] }
 0x3b0   : > { %v5116_v22 = vadd.f32 %v13086_v12, %v17213_v26  ;;  %v13088_v32 = vadd.f32 %v5027_v54, %v18553_v35  ;;  %12934 = vmatmul.mubr.msk.bf16.gmra.mrb[92].mxu0 %vm683_vm6, %v11611_v39  ;;  %v18554_v39 = vld [vmem:[#allocation76_spill] sm:$0xff]  ;;  %v18557_v35 = vld [vmem:[#allocation79_spill] sm:$0xff] }
 0x3b1   : > { %v17446_v57 = vmax.f32 %v5118_v2, 0.0  ;;  %v5119_v21 = vadd.f32 %v13087_v44, %v17213_v26 }
 0x3b2   : > { %v5117_v9 = vadd.f32 %v13088_v32, %v17213_v26  ;;  %5292 = vrot.lane.b32.xlu0 %v11810_v17, %s14262_s22  ;;  %v17458_v6 = vmax.f32 %v5116_v22, 0.0 }
 0x3b3   : > { %v17453_v0 = vmax.f32 %v5119_v21, 0.0  ;;  %5294 = vrot.lane.b32.xlu1 %v11811_v36, %s14262_s22  ;;  %v11816_v19 = vpack.c.bf16 %v17446_v57, %v17446_v57 }
 0x3b4   : > { %v17460_v5 = vmax.f32 %v5117_v9, 0.0  ;;  %v12629_v37 = vpop.f32.mrb[24].mxu1  ;;  %v11814_v17 = vpack.c.bf16 %v17458_v6, %v17458_v6 }
 0x3b5   : > { %v13089_v41 = vadd.f32 %v12629_v37, %v18554_v39  ;;  %v5040_v13 = vpop.f32.mrb[25].mxu1  ;;  %v11817_v7 = vpack.c.bf16 %v17453_v0, %v17453_v0 }
 0x3b6   : > { %v13090_v12 = vadd.f32 %v5040_v13, %v18555_v53  ;;  %v12630_v42 = vpop.f32.mrb[26].mxu1  ;;  %5304 = vrot.lane.b32.xlu0 %v11816_v19, %s14262_s22  ;;  %v11815_v9 = vpack.c.bf16 %v17460_v5, %v17460_v5 }
 0x3b7   : > { %v5122_v2 = vadd.f32 %v13089_v41, %v17213_v26  ;;  %v13091_v44 = vadd.f32 %v12630_v42, %v18556_v58  ;;  %v5043_v54 = vpop.f32.mrb[27].mxu1  ;;  %5306 = vrot.lane.b32.xlu1 %v11817_v7, %s14262_s22 }
 0x3b8   : > { %v5120_v22 = vadd.f32 %v13090_v12, %v17213_v26  ;;  %v13092_v32 = vadd.f32 %v5043_v54, %v18557_v35 }
 0x3b9   : > { %v17478_v21 = vmax.f32 %v5122_v2, 0.0  ;;  %v5123_v36 = vadd.f32 %v13091_v44, %v17213_v26 }
 0x3ba   : > { %v5121_v19 = vadd.f32 %v13092_v32, %v17213_v26  ;;  %5300 = vrot.lane.b32.xlu0 %v11814_v17, %s14262_s22  ;;  %v17490_v41 = vmax.f32 %v5120_v22, 0.0 }
 0x3bb   : > { %v17485_v37 = vmax.f32 %v5123_v36, 0.0  ;;  %5302 = vrot.lane.b32.xlu1 %v11815_v9, %s14262_s22  ;;  %v11820_v39 = vpack.c.bf16 %v17478_v21, %v17478_v21 }
 0x3bc   : > { %v17492_v13 = vmax.f32 %v5121_v19, 0.0  ;;  %v12226_v7 = vpop.f32.mrb[32].mxu1  ;;  %v11818_v22 = vpack.c.bf16 %v17490_v41, %v17490_v41 }
 0x3bd   : > { %v12227_v12 = vpop.f32.mrb[33].mxu1  ;;  %v11821_v26 = vpack.c.bf16 %v17485_v37, %v17485_v37 }
 0x3be   : > { %v12228_v2 = vadd.f32 %v12227_v12, %v12226_v7  ;;  %v12229_v58 = vpop.f32.mrb[34].mxu1  ;;  %5312 = vrot.lane.b32.xlu0 %v11820_v39, %s14262_s22  ;;  %v11819_v35 = vpack.c.bf16 %v17492_v13, %v17492_v13 }
 0x3bf   : > { %v12230_v44 = vpop.f32.mrb[35].mxu1  ;;  %5314 = vrot.lane.b32.xlu1 %v11821_v26, %s14262_s22 }
 0x3c0   : > { %v8905_v54 = vmul.f32 0.00390625, %v12228_v2 }
 0x3c2   : > { %v8906_v32 = vpack.c.bf16 %v8905_v54, %v8905_v54  ;;  %5308 = vrot.lane.b32.xlu0 %v11818_v22, %s14262_s22 }
 0x3c3   : > { %5310 = vrot.lane.b32.xlu1 %v11819_v35, %s14262_s22  ;;  %v13911_v35 = vld [vmem:[#allocation11 + $0x30] sm:$0xff]   ;;  %s14142_s22 = scalar_lea.vmem %s14141_s12, 32 }
 0x3c4   : > { %12940 = vmatmul.mubr.msk.bf16.vlgmr.msra.gmra.mrb[36].mxu1 %vm683_vm6, %v8906_v32  ;;  %p14144_p1 = scmp.lt.s32.totalorder %s14142_s22, %s14136_s21 }
 0x3c5   : > { %12947 = vmatprep.mubr.msk.bf16.mxu1 %vm14261_vm11, %v14260_v25  ;;  %12944 = vmatpush3.bf16.msra.mxu1 %v13911_v35 }
 0x3c6   : > { %12945 = vmatprep.subr.bf16.mxu1 %v14260_v25  ;;  %p14145_p3 = por %p14144_p1, %p14143_p4 }
 0x3c8   : > { %p14146_p8 = pnand %p14145_p3, %p14139_p7 }
 0x3f7   : > { %v5257_v17 = vpop.permute.xlu1 %5256 }
 0x3f8   : > { %5351 = vst.msk [vmem:[%s15977_s3 + $0x8] sm:$0xf] %vm5348_vm12, %v5257_v17  ;;  %v5253_v36 = vpop.permute.xlu0 %5252 }
 0x3f9   : > { %5349 = vst.msk [vmem:[%s15977_s3] sm:$0xf] %vm5348_vm12, %v5253_v36 }
 0x3fb   : > { %v5259_v9 = vpop.permute.xlu1 %5258 }
 0x3fc   : > { %5352 = vst.msk [vmem:[%s15977_s3 + $0xc] sm:$0xf] %vm5348_vm12, %v5259_v9  ;;  %v5255_v19 = vpop.permute.xlu0 %5254 }
 0x3fd   : > { %5350 = vst.msk [vmem:[%s15977_s3 + $0x4] sm:$0xf] %vm5348_vm12, %v5255_v19 }
 0x400   : > { %v5265_v39 = vpop.permute.xlu0 %5264 }
 0x401   : > { %5355 = vst.msk [vmem:[%s15977_s3 + $0x18] sm:$0xf] %vm5348_vm12, %v5265_v39  ;;  %v5267_v7 = vpop.permute.xlu1 %5266  ;;  %v13912_v39 = vld [vmem:[#allocation11 + $0x38] sm:$0xff]  }
 0x402   : > { %5356 = vst.msk [vmem:[%s15977_s3 + $0x1c] sm:$0xf] %vm5348_vm12, %v5267_v7  ;;  %12946 = vmatpush3.bf16.msra.mxu1 %v13912_v39  ;;  %v17548_v7 = vld [vmem:[#allocation11] sm:$0xff]  }
 0x403   : > { %12951 = vmatprep.subr.bf16.mxu1 %v17548_v7  ;;  %v17579_v39 = vld [vmem:[#allocation13 + $0x2] ss:$0 sm:$0xff] }
 0x404   : > { %v5261_v12 = vpop.permute.xlu0 %5260 }
 0x405   : > { %5353 = vst.msk [vmem:[%s15977_s3 + $0x10] sm:$0xf] %vm5348_vm12, %v5261_v12  ;;  %v5263_v26 = vpop.permute.xlu1 %5262 }
 0x406   : > { %5354 = vst.msk [vmem:[%s15977_s3 + $0x14] sm:$0xf] %vm5348_vm12, %v5263_v26 }
 0x408   : > { %v5273_v2 = vpop.permute.xlu0 %5272 }
 0x409   : > { %5359 = vst.msk [vmem:[%s15977_s3 + $0x28] sm:$0xf] %vm5348_vm12, %v5273_v2  ;;  %v5275_v58 = vpop.permute.xlu1 %5274 }
 0x40a   : > { %5360 = vst.msk [vmem:[%s15977_s3 + $0x2c] sm:$0xf] %vm5348_vm12, %v5275_v58 }
 0x40c   : > { %v5269_v44 = vpop.permute.xlu0 %5268 }
 0x40d   : > { %5357 = vst.msk [vmem:[%s15977_s3 + $0x20] sm:$0xf] %vm5348_vm12, %v5269_v44  ;;  %v5271_v54 = vpop.permute.xlu1 %5270 }
 0x40e   : > { %5358 = vst.msk [vmem:[%s15977_s3 + $0x24] sm:$0xf] %vm5348_vm12, %v5271_v54 }
 0x410   : > { %v5281_v22 = vpop.permute.xlu0 %5280 }
 0x411   : > { %5363 = vst.msk [vmem:[%s15977_s3 + $0x38] sm:$0xf] %vm5348_vm12, %v5281_v22  ;;  %v5283_v32 = vpop.permute.xlu1 %5282 }
 0x412   : > { %5364 = vst.msk [vmem:[%s15977_s3 + $0x3c] sm:$0xf] %vm5348_vm12, %v5283_v32 }
 0x414   : > { %v5277_v17 = vpop.permute.xlu0 %5276 }
 0x415   : > { %5361 = vst.msk [vmem:[%s15977_s3 + $0x30] sm:$0xf] %vm5348_vm12, %v5277_v17  ;;  %v5279_v36 = vpop.permute.xlu1 %5278 }
 0x416   : > { %5362 = vst.msk [vmem:[%s15977_s3 + $0x34] sm:$0xf] %vm5348_vm12, %v5279_v36 }
 0x418   : > { %v5289_v9 = vpop.permute.xlu0 %5288 }
 0x419   : > { %5367 = vst.msk [vmem:[%s15977_s3 + $0x48] sm:$0xf] %vm5348_vm12, %v5289_v9  ;;  %v5291_v19 = vpop.permute.xlu1 %5290 }
 0x41a   : > { %5368 = vst.msk [vmem:[%s15977_s3 + $0x4c] sm:$0xf] %vm5348_vm12, %v5291_v19 }
 0x41c   : > { %v5285_v25 = vpop.permute.xlu0 %5284 }
 0x41d   : > { %5365 = vst.msk [vmem:[%s15977_s3 + $0x40] sm:$0xf] %vm5348_vm12, %v5285_v25  ;;  %v5287_v12 = vpop.permute.xlu1 %5286 }
 0x41e   : > { %5366 = vst.msk [vmem:[%s15977_s3 + $0x44] sm:$0xf] %vm5348_vm12, %v5287_v12 }
 0x420   : > { %v5297_v26 = vpop.permute.xlu0 %5296 }
 0x421   : > { %5371 = vst.msk [vmem:[%s15977_s3 + $0x58] sm:$0xf] %vm5348_vm12, %v5297_v26  ;;  %v5299_v2 = vpop.permute.xlu1 %5298 }
 0x422   : > { %5372 = vst.msk [vmem:[%s15977_s3 + $0x5c] sm:$0xf] %vm5348_vm12, %v5299_v2 }
 0x424   : > { %v5293_v58 = vpop.permute.xlu0 %5292 }
 0x425   : > { %5369 = vst.msk [vmem:[%s15977_s3 + $0x50] sm:$0xf] %vm5348_vm12, %v5293_v58  ;;  %v5295_v44 = vpop.permute.xlu1 %5294 }
 0x426   : > { %5370 = vst.msk [vmem:[%s15977_s3 + $0x54] sm:$0xf] %vm5348_vm12, %v5295_v44 }
 0x428   : > { %v5305_v54 = vpop.permute.xlu0 %5304 }
 0x429   : > { %5375 = vst.msk [vmem:[%s15977_s3 + $0x68] sm:$0xf] %vm5348_vm12, %v5305_v54  ;;  %v5307_v22 = vpop.permute.xlu1 %5306 }
 0x42a   : > { %5376 = vst.msk [vmem:[%s15977_s3 + $0x6c] sm:$0xf] %vm5348_vm12, %v5307_v22 }
 0x42c   : > { %v5301_v35 = vpop.permute.xlu0 %5300 }
 0x42d   : > { %5373 = vst.msk [vmem:[%s15977_s3 + $0x60] sm:$0xf] %vm5348_vm12, %v5301_v35  ;;  %v5303_v32 = vpop.permute.xlu1 %5302 }
 0x42e   : > { %5374 = vst.msk [vmem:[%s15977_s3 + $0x64] sm:$0xf] %vm5348_vm12, %v5303_v32 }
 0x430   : > { %v5313_v17 = vpop.permute.xlu0 %5312 }
 0x431   : > { %5379 = vst.msk [vmem:[%s15977_s3 + $0x78] sm:$0xf] %vm5348_vm12, %v5313_v17  ;;  %v5315_v36 = vpop.permute.xlu1 %5314 }
 0x432   : > { %5380 = vst.msk [vmem:[%s15977_s3 + $0x7c] sm:$0xf] %vm5348_vm12, %v5315_v36 }
 0x434   : > { %v5309_v9 = vpop.permute.xlu0 %5308 }
 0x435   : > { %5377 = vst.msk [vmem:[%s15977_s3 + $0x70] sm:$0xf] %vm5348_vm12, %v5309_v9  ;;  %v5311_v19 = vpop.permute.xlu1 %5310 }
 0x436   : > { %5378 = vst.msk [vmem:[%s15977_s3 + $0x74] sm:$0xf] %vm5348_vm12, %v5311_v19 }
 0x44b   : > { %v12907_v25 = vpop.f32.mrb[64].mxu0 }
 0x44c   : > { %v8562_v12 = vadd.f32 %v12907_v25, %v17579_v39  ;;  %v8396_v26 = vpop.f32.mrb[65].mxu0 }
 0x44d   : > { %v8560_v2 = vadd.f32 %v17579_v39, %v8396_v26  ;;  %v12908_v58 = vpop.f32.mrb[66].mxu0 }
 0x44e   : > { %v17583_v44 = vmax.f32 %v8562_v12, 0.0  ;;  %v8563_v54 = vadd.f32 %v12908_v58, %v17579_v39  ;;  %v8399_v22 = vpop.f32.mrb[67].mxu0 }
 0x44f   : > { %v8561_v35 = vadd.f32 %v17579_v39, %v8399_v22  ;;  %v17589_v17 = vmax.f32 %v8560_v2, 0.0 }
 0x450   : > { %v11824_v32 = vpack.c.bf16 %v17583_v44, %v17583_v44  ;;  %v17591_v36 = vmax.f32 %v8563_v54, 0.0 }
 0x451   : > { %v17593_v9 = vmax.f32 %v8561_v35, 0.0  ;;  %v11822_v2 = vpack.c.bf16 %v17589_v17, %v17589_v17 }
 0x452   : > { %v11825_v25 = vpack.c.bf16 %v17591_v36, %v17591_v36  ;;  %8724 = vrot.lane.b32.xlu0 %v11824_v32, %s14263_s14 }
 0x453   : > { %v12911_v26 = vpop.f32.mrb[68].mxu0  ;;  %v11823_v19 = vpack.c.bf16 %v17593_v9, %v17593_v9 }
 0x454   : > { %v8566_v58 = vadd.f32 %v12911_v26, %v17579_v39  ;;  %8726 = vrot.lane.b32.xlu1 %v11825_v25, %s14263_s14  ;;  %v8412_v54 = vpop.f32.mrb[69].mxu0 }
 0x455   : > { %v8564_v22 = vadd.f32 %v17579_v39, %v8412_v54  ;;  %v12912_v35 = vpop.f32.mrb[70].mxu0 }
 0x456   : > { %v17609_v53 = vmax.f32 %v8566_v58, 0.0  ;;  %v8567_v32 = vadd.f32 %v12912_v35, %v17579_v39  ;;  %v8415_v12 = vpop.f32.mrb[71].mxu0  ;;  %8720 = vrot.lane.b32.xlu0 %v11822_v2, %s14263_s14 }
 0x457   : > { %v8565_v42 = vadd.f32 %v17579_v39, %v8415_v12  ;;  %v17616_v25 = vmax.f32 %v8564_v22, 0.0 }
 0x458   : > { %v11828_v26 = vpack.c.bf16 %v17609_v53, %v17609_v53  ;;  %v17618_v3 = vmax.f32 %v8567_v32, 0.0  ;;  %8722 = vrot.lane.b32.xlu1 %v11823_v19, %s14263_s14 }
 0x459   : > { %v17621_v54 = vmax.f32 %v8565_v42, 0.0  ;;  %v11826_v22 = vpack.c.bf16 %v17616_v25, %v17616_v25 }
 0x45a   : > { %v11829_v35 = vpack.c.bf16 %v17618_v3, %v17618_v3  ;;  %8732 = vrot.lane.b32.xlu0 %v11828_v26, %s14263_s14 }
 0x45b   : > { %v12915_v2 = vpop.f32.mrb[72].mxu0  ;;  %v11827_v59 = vpack.c.bf16 %v17621_v54, %v17621_v54 }
 0x45c   : > { %v8570_v32 = vadd.f32 %v12915_v2, %v17579_v39  ;;  %8734 = vrot.lane.b32.xlu1 %v11829_v35, %s14263_s14  ;;  %v8428_v42 = vpop.f32.mrb[73].mxu0 }
 0x45d   : > { %v8568_v19 = vadd.f32 %v17579_v39, %v8428_v42  ;;  %v12916_v58 = vpop.f32.mrb[74].mxu0 }
 0x45e   : > { %v17637_v49 = vmax.f32 %v8570_v32, 0.0  ;;  %v8571_v26 = vadd.f32 %v12916_v58, %v17579_v39  ;;  %v8431_v12 = vpop.f32.mrb[75].mxu0  ;;  %8728 = vrot.lane.b32.xlu0 %v11826_v22, %s14263_s14 }
 0x45f   : > { %v8569_v10 = vadd.f32 %v17579_v39, %v8431_v12  ;;  %v17644_v35 = vmax.f32 %v8568_v19, 0.0 }
 0x460   : > { %v11832_v2 = vpack.c.bf16 %v17637_v49, %v17637_v49  ;;  %v17646_v15 = vmax.f32 %v8571_v26, 0.0  ;;  %8730 = vrot.lane.b32.xlu1 %v11827_v59, %s14263_s14 }
 0x461   : > { %v17649_v42 = vmax.f32 %v8569_v10, 0.0  ;;  %v11830_v19 = vpack.c.bf16 %v17644_v35, %v17644_v35 }
 0x462   : > { %v11833_v58 = vpack.c.bf16 %v17646_v15, %v17646_v15  ;;  %8740 = vrot.lane.b32.xlu0 %v11832_v2, %s14263_s14 }
 0x463   : > { %v12919_v22 = vpop.f32.mrb[76].mxu0  ;;  %v11831_v38 = vpack.c.bf16 %v17649_v42, %v17649_v42 }
 0x464   : > { %v8574_v26 = vadd.f32 %v12919_v22, %v17579_v39  ;;  %8742 = vrot.lane.b32.xlu1 %v11833_v58, %s14263_s14  ;;  %v8444_v10 = vpop.f32.mrb[77].mxu0 }
 0x465   : > { %v8572_v59 = vadd.f32 %v17579_v39, %v8444_v10  ;;  %v12920_v32 = vpop.f32.mrb[78].mxu0 }
 0x466   : > { %v17665_v40 = vmax.f32 %v8574_v26, 0.0  ;;  %v8575_v2 = vadd.f32 %v12920_v32, %v17579_v39  ;;  %v8447_v12 = vpop.f32.mrb[79].mxu0  ;;  %8736 = vrot.lane.b32.xlu0 %v11830_v19, %s14263_s14 }
 0x467   : > { %v8573_v18 = vadd.f32 %v17579_v39, %v8447_v12  ;;  %v17672_v58 = vmax.f32 %v8572_v59, 0.0 }
 0x468   : > { %v11836_v22 = vpack.c.bf16 %v17665_v40, %v17665_v40  ;;  %v17674_v63 = vmax.f32 %v8575_v2, 0.0  ;;  %8738 = vrot.lane.b32.xlu1 %v11831_v38, %s14263_s14 }
 0x469   : > { %v17677_v10 = vmax.f32 %v8573_v18, 0.0  ;;  %v11834_v59 = vpack.c.bf16 %v17672_v58, %v17672_v58 }
 0x46a   : > { %v11837_v32 = vpack.c.bf16 %v17674_v63, %v17674_v63  ;;  %8748 = vrot.lane.b32.xlu0 %v11836_v22, %s14263_s14 }
 0x46b   : > { %v12923_v19 = vpop.f32.mrb[80].mxu0  ;;  %v11835_v60 = vpack.c.bf16 %v17677_v10, %v17677_v10 }
 0x46c   : > { %v8578_v2 = vadd.f32 %v12923_v19, %v17579_v39  ;;  %8750 = vrot.lane.b32.xlu1 %v11837_v32, %s14263_s14  ;;  %v8460_v18 = vpop.f32.mrb[81].mxu0 }
 0x46d   : > { %v8576_v38 = vadd.f32 %v17579_v39, %v8460_v18  ;;  %v12924_v26 = vpop.f32.mrb[82].mxu0 }
 0x46e   : > { %v17693_v24 = vmax.f32 %v8578_v2, 0.0  ;;  %v8579_v22 = vadd.f32 %v12924_v26, %v17579_v39  ;;  %v8463_v12 = vpop.f32.mrb[83].mxu0  ;;  %8744 = vrot.lane.b32.xlu0 %v11834_v59, %s14263_s14 }
 0x46f   : > { %v8577_v30 = vadd.f32 %v17579_v39, %v8463_v12  ;;  %v17700_v32 = vmax.f32 %v8576_v38, 0.0 }
 0x470   : > { %18558 = vst [vmem:[#allocation23_spill] sm:$0xff] %v17693_v24  ;;  %v11840_v19 = vpack.c.bf16 %v17693_v24, %v17693_v24  ;;  %v17702_v48 = vmax.f32 %v8579_v22, 0.0  ;;  %8746 = vrot.lane.b32.xlu1 %v11835_v60, %s14263_s14 }
 0x471   : > { %18559 = vst [vmem:[#allocation25_spill] sm:$0xff] %v17700_v32  ;;  %v17705_v18 = vmax.f32 %v8577_v30, 0.0  ;;  %v11838_v38 = vpack.c.bf16 %v17700_v32, %v17700_v32 }
 0x472   : > { %18560 = vst [vmem:[#allocation26_spill] sm:$0xff] %v17702_v48  ;;  %v11841_v26 = vpack.c.bf16 %v17702_v48, %v17702_v48  ;;  %8756 = vrot.lane.b32.xlu0 %v11840_v19, %s14263_s14 }
 0x473   : > { %18561 = vst [vmem:[#allocation27_spill] sm:$0xff] %v17705_v18  ;;  %v12927_v59 = vpop.f32.mrb[84].mxu0  ;;  %v11839_v23 = vpack.c.bf16 %v17705_v18, %v17705_v18 }
 0x474   : > { %v8582_v22 = vadd.f32 %v12927_v59, %v17579_v39  ;;  %8758 = vrot.lane.b32.xlu1 %v11841_v26, %s14263_s14  ;;  %v8476_v30 = vpop.f32.mrb[85].mxu0 }
 0x475   : > { %v8580_v60 = vadd.f32 %v17579_v39, %v8476_v30  ;;  %v12928_v2 = vpop.f32.mrb[86].mxu0 }
 0x476   : > { %v17721_v24 = vmax.f32 %v8582_v22, 0.0  ;;  %v8583_v19 = vadd.f32 %v12928_v2, %v17579_v39  ;;  %v8479_v12 = vpop.f32.mrb[87].mxu0  ;;  %8752 = vrot.lane.b32.xlu0 %v11838_v38, %s14263_s14 }
 0x477   : > { %v8581_v48 = vadd.f32 %v17579_v39, %v8479_v12  ;;  %v17728_v26 = vmax.f32 %v8580_v60, 0.0 }
 0x478   : > { %18562 = vst [vmem:[#allocation59_spill] sm:$0xff] %v17721_v24  ;;  %v11844_v59 = vpack.c.bf16 %v17721_v24, %v17721_v24  ;;  %v17730_v32 = vmax.f32 %v8583_v19, 0.0  ;;  %8754 = vrot.lane.b32.xlu1 %v11839_v23, %s14263_s14 }
 0x479   : > { %18563 = vst [vmem:[#allocation60_spill] sm:$0xff] %v17728_v26  ;;  %v17733_v30 = vmax.f32 %v8581_v48, 0.0  ;;  %v11842_v60 = vpack.c.bf16 %v17728_v26, %v17728_v26 }
 0x47a   : > { %18564 = vst [vmem:[#allocation61_spill] sm:$0xff] %v17730_v32  ;;  %v11845_v2 = vpack.c.bf16 %v17730_v32, %v17730_v32  ;;  %8764 = vrot.lane.b32.xlu0 %v11844_v59, %s14263_s14 }
 0x47b   : > { %18565 = vst [vmem:[#allocation62_spill] sm:$0xff] %v17733_v30  ;;  %v12931_v38 = vpop.f32.mrb[88].mxu0  ;;  %v11843_v24 = vpack.c.bf16 %v17733_v30, %v17733_v30 }
 0x47c   : > { %v8586_v19 = vadd.f32 %v12931_v38, %v17579_v39  ;;  %8766 = vrot.lane.b32.xlu1 %v11845_v2, %s14263_s14  ;;  %v8492_v48 = vpop.f32.mrb[89].mxu0 }
 0x47d   : > { %v8584_v23 = vadd.f32 %v17579_v39, %v8492_v48  ;;  %v12932_v22 = vpop.f32.mrb[90].mxu0 }
 0x47e   : > { %v17749_v32 = vmax.f32 %v8586_v19, 0.0  ;;  %v8587_v59 = vadd.f32 %v12932_v22, %v17579_v39  ;;  %v8495_v12 = vpop.f32.mrb[91].mxu0  ;;  %8760 = vrot.lane.b32.xlu0 %v11842_v60, %s14263_s14 }
 0x47f   : > { %v8585_v26 = vadd.f32 %v17579_v39, %v8495_v12  ;;  %v17756_v2 = vmax.f32 %v8584_v23, 0.0 }
 0x480   : > { %18566 = vst [vmem:[#allocation63_spill] sm:$0xff] %v17749_v32  ;;  %v11848_v38 = vpack.c.bf16 %v17749_v32, %v17749_v32  ;;  %v17758_v18 = vmax.f32 %v8587_v59, 0.0  ;;  %8762 = vrot.lane.b32.xlu1 %v11843_v24, %s14263_s14 }
 0x481   : > { %18567 = vst [vmem:[#allocation64_spill] sm:$0xff] %v17756_v2  ;;  %v17761_v48 = vmax.f32 %v8585_v26, 0.0  ;;  %v11846_v23 = vpack.c.bf16 %v17756_v2, %v17756_v2 }
 0x482   : > { %18568 = vst [vmem:[#allocation65_spill] sm:$0xff] %v17758_v18  ;;  %v11849_v22 = vpack.c.bf16 %v17758_v18, %v17758_v18  ;;  %8772 = vrot.lane.b32.xlu0 %v11848_v38, %s14263_s14 }
 0x483   : > { %v12935_v60 = vpop.f32.mrb[92].mxu0  ;;  %v11847_v32 = vpack.c.bf16 %v17761_v48, %v17761_v48 }
 0x484   : > { %v8590_v59 = vadd.f32 %v12935_v60, %v17579_v39  ;;  %8774 = vrot.lane.b32.xlu1 %v11849_v22, %s14263_s14  ;;  %v8508_v24 = vpop.f32.mrb[93].mxu0 }
 0x485   : > { %v8588_v26 = vadd.f32 %v17579_v39, %v8508_v24  ;;  %v12936_v19 = vpop.f32.mrb[94].mxu0 }
 0x486   : > { %v17777_v18 = vmax.f32 %v8590_v59, 0.0  ;;  %v8591_v38 = vadd.f32 %v12936_v19, %v17579_v39  ;;  %v8511_v12 = vpop.f32.mrb[95].mxu0  ;;  %8768 = vrot.lane.b32.xlu0 %v11846_v23, %s14263_s14 }
 0x487   : > { %v8589_v2 = vadd.f32 %v17579_v39, %v8511_v12  ;;  %v17784_v22 = vmax.f32 %v8588_v26, 0.0 }
 0x488   : > { %18569 = vst [vmem:[#allocation66_spill] sm:$0xff] %v17777_v18  ;;  %v11852_v60 = vpack.c.bf16 %v17777_v18, %v17777_v18  ;;  %v17786_v30 = vmax.f32 %v8591_v38, 0.0  ;;  %8770 = vrot.lane.b32.xlu1 %v11847_v32, %s14263_s14 }
 0x489   : > { %18570 = vst [vmem:[#allocation67_spill] sm:$0xff] %v17784_v22  ;;  %v17789_v24 = vmax.f32 %v8589_v2, 0.0  ;;  %v11850_v12 = vpack.c.bf16 %v17784_v22, %v17784_v22  ;;  %v8908_v2 = vld [vmem:[#allocation13 + $0x3] sm:$0x1] }
 0x48a   : > { %18571 = vst [vmem:[#allocation68_spill] sm:$0xff] %v17786_v30  ;;  %v11853_v19 = vpack.c.bf16 %v17786_v30, %v17786_v30  ;;  %8780 = vrot.lane.b32.xlu0 %v11852_v60, %s14263_s14  ;;  %v13914_v30 = vld [vmem:[#allocation11 + $0x8] sm:$0xff]  }
 0x48b   : > { %v11851_v32 = vpack.c.bf16 %v17789_v24, %v17789_v24 }
 0x48c   : > { %8782 = vrot.lane.b32.xlu1 %v11853_v19, %s14263_s14  ;;  %v18572_v19 = vld [vmem:[#allocation30_spill] sm:$0xff] }
 0x48e   : > { %8776 = vrot.lane.b32.xlu0 %v11850_v12, %s14263_s14  ;;  %v18573_v12 = vld [vmem:[#allocation24_spill] sm:$0xff] }
 0x490   : > { %8778 = vrot.lane.b32.xlu1 %v11851_v32, %s14263_s14  ;;  %v18574_v32 = vpack.c.bf16 %v18572_v19, %v18573_v12  ;;  %v18582_v19 = vld [vmem:[#allocation31_spill] sm:$0xff] }
 0x497   : > { %v8949_v23 = vpop.f32.mrb[36].mxu1 }
 0x498   : > { %v8950_v26 = vadd.f32 %v8949_v23, %v8908_v2  ;;  %v12941_v38 = vpop.f32.mrb[37].mxu1  ;;  %v13915_v2 = vld [vmem:[#allocation11 + $0x10] sm:$0xff]   ;;  %v18575_v23 = vld [vmem:[#allocation29_spill] sm:$0xff] }
 0x499   : > { %v8952_v60 = vpop.f32.mrb[38].mxu1 }
 0x49a   : > { %v8955_v59 = vmax.f32 %v8950_v26, 0.0  ;;  %v12942_v39 = vpop.f32.mrb[39].mxu1  ;;  %v18576_v26 = vld [vmem:[#allocation28_spill] sm:$0xff]  ;;  %v13917_v60 = vld [vmem:[#allocation11 + $0x20] sm:$0xff]  }
 0x49b   : > { %v13916_v39 = vld [vmem:[#allocation11 + $0x18] sm:$0xff]   ;;  %v18577_v38 = vpack.c.bf16 %v18575_v23, %v18576_v26 }
 0x49c   : > { %v8958_v18 = vpack.c.bf16 %v8955_v59, %v8955_v59  ;;  %8957 = vst.msk [vmem:[%s414_s23] sm:$0x1] %vm8956_vm13, %v8955_v59  ;;  %v18579_v59 = vld [vmem:[#allocation32_spill] sm:$0xff] }
 0x49d   : > { %v18585_v23 = vld [vmem:[#allocation36_spill] sm:$0xff] }
 0x49e   : > { %12948 = vmatmul.mubr.msk.bf16.vlgmr.msra.gmra.mrb[40].mxu1 %vm8976_vm14, %v8958_v18  ;;  %v18578_v18 = vld [vmem:[#allocation34_spill] sm:$0xff] }
 0x49f   : > { %12952 = vmatpush3.bf16.msra.mxu1 %v17548_v7  ;;  %12955 = vmatprep.mubr.msk.bf16.mxu1 %vm8976_vm14, %v18574_v32  ;;  %v18580_v7 = vpack.c.bf16 %v18578_v18, %v18579_v59  ;;  %v18584_v32 = vld [vmem:[#allocation38_spill] sm:$0xff] }
 0x4a0   : > { %12953 = vmatprep.subr.bf16.mxu1 %v13914_v30  ;;  %v18586_v26 = vpack.c.bf16 %v18584_v32, %v18585_v23  ;;  %v18590_v59 = vld [vmem:[#allocation42_spill] sm:$0xff]  ;;  %v18597_v23 = vld [vmem:[#allocation44_spill] sm:$0xff] }
 0x4a1   : > { %v18596_v32 = vld [vmem:[#allocation46_spill] sm:$0xff] }
 0x4a2   : > { %v18598_v22 = vpack.c.bf16 %v18596_v32, %v18597_v23  ;;  %v18605_v32 = vld [vmem:[#allocation49_spill] sm:$0xff]  ;;  %v18606_v23 = vld [vmem:[#allocation47_spill] sm:$0xff] }
 0x4a3   : > { %12954 = vmatpush3.bf16.msra.mxu1 %v13914_v30  ;;  %v18581_v30 = vld [vmem:[#allocation33_spill] sm:$0xff] }
 0x4a4   : > { %12987 = vmatprep.subr.bf16.mxu1 %v13915_v2  ;;  %v18583_v12 = vpack.c.bf16 %v18581_v30, %v18582_v19  ;;  %v18593_v30 = vld [vmem:[#allocation41_spill] sm:$0xff]  ;;  %v18594_v19 = vld [vmem:[#allocation39_spill] sm:$0xff] }
 0x4a6   : > { %12956 = vmatmul.mubr.msk.bf16.vlgmr.msra.gmra.mrb[44].mxu1 %vm8976_vm14, %v18577_v38  ;;  %v18588_v38 = vld [vmem:[#allocation35_spill] sm:$0xff] }
 0x4a7   : > { %12988 = vmatpush3.bf16.msra.mxu1 %v13915_v2  ;;  %12959 = vmatprep.mubr.msk.bf16.mxu1 %vm8976_vm14, %v18580_v7  ;;  %v18587_v2 = vld [vmem:[#allocation37_spill] sm:$0xff] }
 0x4a8   : > { %12989 = vmatprep.subr.bf16.mxu1 %v13916_v39  ;;  %v18589_v18 = vpack.c.bf16 %v18587_v2, %v18588_v38  ;;  %v18599_v2 = vld [vmem:[#allocation45_spill] sm:$0xff]  ;;  %v18600_v38 = vld [vmem:[#allocation43_spill] sm:$0xff] }
 0x4ab   : > { %12990 = vmatpush3.bf16.msra.mxu1 %v13916_v39  ;;  %v18591_v39 = vld [vmem:[#allocation40_spill] sm:$0xff] }
 0x4ac   : > { %13023 = vmatprep.subr.bf16.mxu1 %v13917_v60  ;;  %v18592_v7 = vpack.c.bf16 %v18590_v59, %v18591_v39  ;;  %v18602_v39 = vld [vmem:[#allocation50_spill] sm:$0xff] }
 0x4ae   : > { %12960 = vmatmul.mubr.msk.bf16.gmra.mrb[48].mxu1 %vm8976_vm14, %v18583_v12  ;;  %v18595_v12 = vpack.c.bf16 %v18593_v30, %v18594_v19 }
 0x4af   : > { %12963 = vmatprep.mubr.msk.bf16.mxu1 %vm8976_vm14, %v18586_v26 }
 0x4b6   : > { %12964 = vmatmul.mubr.msk.bf16.gmra.mrb[52].mxu1 %vm8976_vm14, %v18589_v18  ;;  %v18601_v18 = vpack.c.bf16 %v18599_v2, %v18600_v38  ;;  %v18608_v38 = vld [vmem:[#allocation54_spill] sm:$0xff] }
 0x4b7   : > { %12967 = vmatprep.mubr.msk.bf16.mxu1 %vm8976_vm14, %v18592_v7  ;;  %v18603_v7 = vld [vmem:[#allocation48_spill] sm:$0xff] }
 0x4b8   : > { %v18604_v30 = vpack.c.bf16 %v18602_v39, %v18603_v7 }
 0x4be   : > { %12968 = vmatmul.mubr.msk.bf16.gmra.mrb[56].mxu1 %vm8976_vm14, %v18595_v12 }
 0x4bf   : > { %12971 = vmatprep.mubr.msk.bf16.mxu1 %vm8976_vm14, %v18598_v22 }
 0x4c4   : > { %v8725_v26 = vpop.permute.xlu0 %8724 }
 0x4c5   : > { %8819 = vst.msk [vmem:[%s15977_s3 + $0x8] sm:$0xf] %vm8816_vm15, %v8725_v26  ;;  %v18607_v26 = vpack.c.bf16 %v18605_v32, %v18606_v23  ;;  %v18614_v23 = vld [vmem:[#allocation58_spill] sm:$0xff] }
 0x4c6   : > { %12972 = vmatmul.mubr.msk.bf16.gmra.mrb[60].mxu1 %vm8976_vm14, %v18601_v18  ;;  %v8727_v59 = vpop.permute.xlu1 %8726  ;;  %v18609_v18 = vld [vmem:[#allocation52_spill] sm:$0xff] }
 0x4c7   : > { %8820 = vst.msk [vmem:[%s15977_s3 + $0xc] sm:$0xf] %vm8816_vm15, %v8727_v59  ;;  %12975 = vmatprep.mubr.msk.bf16.mxu1 %vm8976_vm14, %v18604_v30  ;;  %v18610_v59 = vpack.c.bf16 %v18608_v38, %v18609_v18 }
 0x4c8   : > { %v8721_v22 = vpop.permute.xlu0 %8720 }
 0x4c9   : > { %8817 = vst.msk [vmem:[%s15977_s3] sm:$0xf] %vm8816_vm15, %v8721_v22  ;;  %v18611_v22 = vld [vmem:[#allocation53_spill] sm:$0xff] }
 0x4ca   : > { %v8723_v19 = vpop.permute.xlu1 %8722 }
 0x4cb   : > { %8818 = vst.msk [vmem:[%s15977_s3 + $0x4] sm:$0xf] %vm8816_vm15, %v8723_v19  ;;  %v18612_v19 = vld [vmem:[#allocation51_spill] sm:$0xff] }
 0x4cc   : > { %v8733_v12 = vpop.permute.xlu0 %8732 }
 0x4cd   : > { %8823 = vst.msk [vmem:[%s15977_s3 + $0x18] sm:$0xf] %vm8816_vm15, %v8733_v12  ;;  %v18613_v12 = vpack.c.bf16 %v18611_v22, %v18612_v19  ;;  %v18620_v19 = vpack.c.bf16 %v17237_v51, %v17229_v28  ;;  %v18622_v51 = vpack.c.bf16 %v17275_v16, %v17273_v43  ;;  %v18624_v16 = vpack.c.bf16 %v17313_v52, %v17311_v20 }
 0x4ce   : > { %12976 = vmatmul.mubr.msk.bf16.gmra.mrb[64].mxu1 %vm8976_vm14, %v18607_v26  ;;  %v8735_v2 = vpop.permute.xlu1 %8734  ;;  %v18615_v26 = vld [vmem:[#allocation56_spill] sm:$0xff]  ;;  %v18626_v52 = vpack.c.bf16 %v17351_v50, %v17349_v55  ;;  %v18628_v55 = vpack.c.bf16 %v17389_v47, %v17387_v61  ;;  %v18632_v61 = vpack.c.bf16 %v17460_v5, %v17458_v6  ;;  %v18635_v47 = vpack.c.bf16 %v17485_v37, %v17478_v21  ;;  %v18645_v21 = vld [vmem:[#allocation25_spill] sm:$0xff] }
 0x4cf   : > { %8824 = vst.msk [vmem:[%s15977_s3 + $0x1c] sm:$0xf] %vm8816_vm15, %v8735_v2  ;;  %12979 = vmatprep.mubr.msk.bf16.mxu1 %vm8976_vm14, %v18610_v59  ;;  %v18616_v2 = vpack.c.bf16 %v18614_v23, %v18615_v26  ;;  %v13918_v26 = vld [vmem:[#allocation11 + $0x28] sm:$0xff]   ;;  %v18642_v6 = vpack.c.bf16 %v17677_v10, %v17672_v58  ;;  %v18643_v5 = vpack.c.bf16 %v17674_v63, %v17665_v40  ;;  %v18656_v40 = vld [vmem:[#allocation64_spill] sm:$0xff] }
 0x4d0   : > { %v8729_v39 = vpop.permute.xlu0 %8728  ;;  %v18663_v10 = vld [vmem:[#allocation68_spill] sm:$0xff] }
 0x4d1   : > { %8821 = vst.msk [vmem:[%s15977_s3 + $0x10] sm:$0xf] %vm8816_vm15, %v8729_v39  ;;  %v18617_v39 = vld [vmem:[#allocation57_spill] sm:$0xff] }
 0x4d2   : > { %v8731_v7 = vpop.permute.xlu1 %8730 }
 0x4d3   : > { %8822 = vst.msk [vmem:[%s15977_s3 + $0x14] sm:$0xf] %vm8816_vm15, %v8731_v7  ;;  %v18618_v7 = vld [vmem:[#allocation55_spill] sm:$0xff] }
 0x4d4   : > { %v8741_v30 = vpop.permute.xlu0 %8740 }
 0x4d5   : > { %8827 = vst.msk [vmem:[%s15977_s3 + $0x28] sm:$0xf] %vm8816_vm15, %v8741_v30  ;;  %v18619_v30 = vpack.c.bf16 %v18617_v39, %v18618_v7 }
 0x4d6   : > { %12980 = vmatmul.mubr.msk.bf16.gmra.mrb[68].mxu1 %vm8976_vm14, %v18613_v12  ;;  %v8743_v32 = vpop.permute.xlu1 %8742 }
 0x4d7   : > { %8828 = vst.msk [vmem:[%s15977_s3 + $0x2c] sm:$0xf] %vm8816_vm15, %v8743_v32  ;;  %12983 = vmatprep.mubr.msk.bf16.mxu1 %vm8976_vm14, %v18616_v2  ;;  %v18621_v2 = vpack.c.bf16 %v17233_v56, %v17224_v14 }
 0x4d8   : > { %v8737_v38 = vpop.permute.xlu0 %8736 }
 0x4d9   : > { %8825 = vst.msk [vmem:[%s15977_s3 + $0x20] sm:$0xf] %vm8816_vm15, %v8737_v38 }
 0x4da   : > { %v8739_v18 = vpop.permute.xlu1 %8738 }
 0x4db   : > { %8826 = vst.msk [vmem:[%s15977_s3 + $0x24] sm:$0xf] %vm8816_vm15, %v8739_v18 }
 0x4dc   : > { %v8749_v59 = vpop.permute.xlu0 %8748 }
 0x4dd   : > { %8831 = vst.msk [vmem:[%s15977_s3 + $0x38] sm:$0xf] %vm8816_vm15, %v8749_v59 }
 0x4de   : > { %12984 = vmatmul.mubr.msk.bf16.gmra.mrb[72].mxu1 %vm8976_vm14, %v18619_v30  ;;  %v8751_v22 = vpop.permute.xlu1 %8750 }
 0x4df   : > { %8832 = vst.msk [vmem:[%s15977_s3 + $0x3c] sm:$0xf] %vm8816_vm15, %v8751_v22  ;;  %12991 = vmatprep.mubr.msk.bf16.mxu1 %vm8976_vm14, %v18620_v19  ;;  %v18629_v19 = vpack.c.bf16 %v17382_v46, %v17372_v1  ;;  %v18633_v1 = vpack.c.bf16 %v17453_v0, %v17446_v57  ;;  %v18634_v46 = vpack.c.bf16 %v17492_v13, %v17490_v41  ;;  %v18647_v41 = vld [vmem:[#allocation26_spill] sm:$0xff]  ;;  %v18648_v13 = vld [vmem:[#allocation23_spill] sm:$0xff] }
 0x4e0   : > { %v8745_v12 = vpop.permute.xlu0 %8744  ;;  %v18640_v57 = vpack.c.bf16 %v17649_v42, %v17644_v35  ;;  %v18641_v0 = vpack.c.bf16 %v17646_v15, %v17637_v49  ;;  %v18649_v15 = vpack.c.bf16 %v18647_v41, %v18648_v13  ;;  %v18650_v49 = vld [vmem:[#allocation62_spill] sm:$0xff]  ;;  %v18661_v42 = vld [vmem:[#allocation67_spill] sm:$0xff] }
 0x4e1   : > { %8829 = vst.msk [vmem:[%s15977_s3 + $0x30] sm:$0xf] %vm8816_vm15, %v8745_v12  ;;  %v18662_v58 = vpack.c.bf16 %v17789_v24, %v18661_v42  ;;  %v18664_v12 = vld [vmem:[#allocation66_spill] sm:$0xff] }
 0x4e2   : > { %v8747_v32 = vpop.permute.xlu1 %8746 }
 0x4e3   : > { %8830 = vst.msk [vmem:[%s15977_s3 + $0x34] sm:$0xf] %vm8816_vm15, %v8747_v32  ;;  %v18665_v32 = vpack.c.bf16 %v18663_v10, %v18664_v12 }
 0x4e4   : > { %v8757_v23 = vpop.permute.xlu0 %8756 }
 0x4e5   : > { %8835 = vst.msk [vmem:[%s15977_s3 + $0x48] sm:$0xf] %vm8816_vm15, %v8757_v23 }
 0x4e6   : > { %12992 = vmatmul.mubr.msk.bf16.vlgmr.msra.gmra.mrb[44].mxu1 %vm8976_vm14, %v18621_v2  ;;  %v8759_v28 = vpop.permute.xlu1 %8758 }
 0x4e7   : > { %13024 = vmatpush3.bf16.msra.mxu1 %v13917_v60  ;;  %8836 = vst.msk [vmem:[%s15977_s3 + $0x4c] sm:$0xf] %vm8816_vm15, %v8759_v28  ;;  %12995 = vmatprep.mubr.msk.bf16.mxu1 %vm8976_vm14, %v18622_v51  ;;  %v18623_v60 = vpack.c.bf16 %v17269_v31, %v17260_v11  ;;  %v18625_v31 = vpack.c.bf16 %v17306_v33, %v17296_v34  ;;  %v9245_v28 = vlaneseq }
 0x4e8   : > { %v8753_v38 = vpop.permute.xlu0 %8752  ;;  %13025 = vmatprep.subr.bf16.mxu1 %v13918_v26  ;;  %v18627_v34 = vpack.c.bf16 %v17344_v8, %v17334_v62  ;;  %v18630_v62 = vpack.c.bf16 %v17426_v27, %v17424_v29  ;;  %v18631_v8 = vpack.c.bf16 %v17419_v45, %v17410_v4  ;;  %v18636_v4 = vpack.c.bf16 %v17593_v9, %v17589_v17  ;;  %v18653_v17 = vld [vmem:[#allocation61_spill] sm:$0xff] }
 0x4e9   : > { %8833 = vst.msk [vmem:[%s15977_s3 + $0x40] sm:$0xf] %vm8816_vm15, %v8753_v38  ;;  %v18637_v45 = vpack.c.bf16 %v17591_v36, %v17583_v44  ;;  %v18638_v29 = vpack.c.bf16 %v17621_v54, %v17616_v25  ;;  %v18639_v27 = vpack.c.bf16 %v17618_v3, %v17609_v53  ;;  %v18644_v3 = vld [vmem:[#allocation27_spill] sm:$0xff]  ;;  %v18651_v53 = vld [vmem:[#allocation60_spill] sm:$0xff]  ;;  %v18657_v9 = vpack.c.bf16 %v17761_v48, %v18656_v40  ;;  %v18658_v25 = vld [vmem:[#allocation65_spill] sm:$0xff] }
 0x4ea   : > { %v8755_v14 = vpop.permute.xlu1 %8754  ;;  %v18646_v37 = vpack.c.bf16 %v18644_v3, %v18645_v21  ;;  %v18652_v44 = vpack.c.bf16 %v18650_v49, %v18651_v53  ;;  %v18654_v36 = vld [vmem:[#allocation59_spill] sm:$0xff]  ;;  %v9246_v51 = vshrl.u32 %v9245_v28, 7 }
 0x4eb   : > { %8834 = vst.msk [vmem:[%s15977_s3 + $0x44] sm:$0xf] %vm8816_vm15, %v8755_v14  ;;  %13026 = vmatpush3.bf16.msra.mxu1 %v13918_v26  ;;  %v18655_v63 = vpack.c.bf16 %v18653_v17, %v18654_v36  ;;  %v18659_v54 = vld [vmem:[#allocation63_spill] sm:$0xff] }
 0x4ec   : > { %v8765_v56 = vpop.permute.xlu0 %8764  ;;  %v18660_v35 = vpack.c.bf16 %v18658_v25, %v18659_v54  ;;  %v9247_v38 = vsub.s32 0, %v9246_v51 }
 0x4ed   : > { %8839 = vst.msk [vmem:[%s15977_s3 + $0x58] sm:$0xf] %vm8816_vm15, %v8765_v56 }
 0x4ee   : > { %12996 = vmatmul.mubr.msk.bf16.gmra.mrb[48].mxu1 %vm8976_vm14, %v18623_v60  ;;  %v8767_v43 = vpop.permute.xlu1 %8766  ;;  %v18068_v60 = vld [vmem:[#allocation13 + $0x4] ss:$0 sm:$0xff] }
 0x4ef   : > { %8840 = vst.msk [vmem:[%s15977_s3 + $0x5c] sm:$0xf] %vm8816_vm15, %v8767_v43  ;;  %12999 = vmatprep.mubr.msk.bf16.mxu1 %vm8976_vm14, %v18624_v16 }
 0x4f0   : > { %v8761_v18 = vpop.permute.xlu0 %8760 }
 0x4f1   : > { %8837 = vst.msk [vmem:[%s15977_s3 + $0x50] sm:$0xf] %vm8816_vm15, %v8761_v18 }
 0x4f2   : > { %v8763_v59 = vpop.permute.xlu1 %8762 }
 0x4f3   : > { %8838 = vst.msk [vmem:[%s15977_s3 + $0x54] sm:$0xf] %vm8816_vm15, %v8763_v59 }
 0x4f4   : > { %v8773_v11 = vpop.permute.xlu0 %8772 }
 0x4f5   : > { %8843 = vst.msk [vmem:[%s15977_s3 + $0x68] sm:$0xf] %vm8816_vm15, %v8773_v11 }
 0x4f6   : > { %13000 = vmatmul.mubr.msk.bf16.gmra.mrb[52].mxu1 %vm8976_vm14, %v18625_v31  ;;  %v8775_v20 = vpop.permute.xlu1 %8774 }
 0x4f7   : > { %8844 = vst.msk [vmem:[%s15977_s3 + $0x6c] sm:$0xf] %vm8816_vm15, %v8775_v20  ;;  %13003 = vmatprep.mubr.msk.bf16.mxu1 %vm8976_vm14, %v18626_v52 }
 0x4f8   : > { %v8769_v39 = vpop.permute.xlu0 %8768 }
 0x4f9   : > { %8841 = vst.msk [vmem:[%s15977_s3 + $0x60] sm:$0xf] %vm8816_vm15, %v8769_v39 }
 0x4fa   : > { %v8771_v7 = vpop.permute.xlu1 %8770 }
 0x4fb   : > { %8842 = vst.msk [vmem:[%s15977_s3 + $0x64] sm:$0xf] %vm8816_vm15, %v8771_v7 }
 0x4fc   : > { %v8781_v30 = vpop.permute.xlu0 %8780 }
 0x4fd   : > { %8847 = vst.msk [vmem:[%s15977_s3 + $0x78] sm:$0xf] %vm8816_vm15, %v8781_v30 }
 0x4fe   : > { %13004 = vmatmul.mubr.msk.bf16.gmra.mrb[56].mxu1 %vm8976_vm14, %v18627_v34  ;;  %v8783_v33 = vpop.permute.xlu1 %8782 }
 0x4ff   : > { %8848 = vst.msk [vmem:[%s15977_s3 + $0x7c] sm:$0xf] %vm8816_vm15, %v8783_v33  ;;  %13007 = vmatprep.mubr.msk.bf16.mxu1 %vm8976_vm14, %v18628_v55 }
 0x500   : > { %v8777_v50 = vpop.permute.xlu0 %8776 }
 0x501   : > { %8845 = vst.msk [vmem:[%s15977_s3 + $0x70] sm:$0xf] %vm8816_vm15, %v8777_v50 }
 0x502   : > { %v8779_v22 = vpop.permute.xlu1 %8778 }
 0x503   : > { %8846 = vst.msk [vmem:[%s15977_s3 + $0x74] sm:$0xf] %vm8816_vm15, %v8779_v22 }
 0x506   : > { %13008 = vmatmul.mubr.msk.bf16.gmra.mrb[60].mxu1 %vm8976_vm14, %v18629_v19 }
 0x507   : > { %13011 = vmatprep.mubr.msk.bf16.mxu1 %vm8976_vm14, %v18630_v62 }
 0x50e   : > { %13012 = vmatmul.mubr.msk.bf16.gmra.mrb[64].mxu1 %vm8976_vm14, %v18631_v8 }
 0x50f   : > { %13015 = vmatprep.mubr.msk.bf16.mxu1 %vm8976_vm14, %v18632_v61 }
 0x516   : > { %13016 = vmatmul.mubr.msk.bf16.gmra.mrb[68].mxu1 %vm8976_vm14, %v18633_v1 }
 0x517   : > { %13019 = vmatprep.mubr.msk.bf16.mxu1 %vm8976_vm14, %v18634_v46 }
 0x51e   : > { %13020 = vmatmul.mubr.msk.bf16.gmra.mrb[72].mxu1 %vm8976_vm14, %v18635_v47 }
 0x51f   : > { %13027 = vmatprep.mubr.msk.bf16.mxu1 %vm8976_vm14, %v18636_v4 }
 0x526   : > { %13028 = vmatmul.mubr.msk.bf16.vlgmr.msra.gmra.mrb[44].mxu1 %vm8976_vm14, %v18637_v45 }
 0x527   : > { %13031 = vmatprep.mubr.msk.bf16.mxu1 %vm8976_vm14, %v18638_v29 }
 0x52e   : > { %13032 = vmatmul.mubr.msk.bf16.gmra.mrb[48].mxu1 %vm8976_vm14, %v18639_v27 }
 0x52f   : > { %13035 = vmatprep.mubr.msk.bf16.mxu1 %vm8976_vm14, %v18640_v57 }
 0x536   : > { %13036 = vmatmul.mubr.msk.bf16.gmra.mrb[52].mxu1 %vm8976_vm14, %v18641_v0 }
 0x537   : > { %13039 = vmatprep.mubr.msk.bf16.mxu1 %vm8976_vm14, %v18642_v6 }
 0x53e   : > { %13040 = vmatmul.mubr.msk.bf16.gmra.mrb[56].mxu1 %vm8976_vm14, %v18643_v5 }
 0x53f   : > { %13043 = vmatprep.mubr.msk.bf16.mxu1 %vm8976_vm14, %v18646_v37 }
 0x546   : > { %13044 = vmatmul.mubr.msk.bf16.gmra.mrb[60].mxu1 %vm8976_vm14, %v18649_v15 }
 0x547   : > { %13047 = vmatprep.mubr.msk.bf16.mxu1 %vm8976_vm14, %v18652_v44 }
 0x54e   : > { %13048 = vmatmul.mubr.msk.bf16.gmra.mrb[64].mxu1 %vm8976_vm14, %v18655_v63 }
 0x54f   : > { %13051 = vmatprep.mubr.msk.bf16.mxu1 %vm8976_vm14, %v18657_v9 }
 0x556   : > { %13052 = vmatmul.mubr.msk.bf16.gmra.mrb[68].mxu1 %vm8976_vm14, %v18660_v35 }
 0x557   : > { %13055 = vmatprep.mubr.msk.bf16.mxu1 %vm8976_vm14, %v18662_v58 }
 0x55e   : > { %13056 = vmatmul.mubr.msk.bf16.gmra.mrb[72].mxu1 %vm8976_vm14, %v18665_v32 }
 0x571   : > { %v9014_v23 = vpop.f32.mrb[40].mxu1 }
 0x572   : > { %v12949_v26 = vpop.f32.mrb[41].mxu1  ;;  %v18066_v14 = vrot.slane %v9014_v23, %v9247_v38 }
 0x573   : > { %v9017_v48 = vpop.f32.mrb[42].mxu1 }
 0x574   : > { %v12950_v2 = vpop.f32.mrb[43].mxu1 }
 0x5f9   : > { %v13029_v56 = vpop.f32.mrb[44].mxu1 }
 0x5fa   : > { %v13093_v24 = vadd.f32 %v13029_v56, %v18066_v14  ;;  %v9638_v43 = vpop.f32.mrb[45].mxu1 }
 0x5fb   : > { %v13094_v16 = vadd.f32 %v9638_v43, %v18066_v14  ;;  %v13030_v18 = vpop.f32.mrb[46].mxu1 }
 0x5fc   : > { %v9804_v59 = vadd.f32 %v13093_v24, %v18068_v60  ;;  %v13095_v11 = vadd.f32 %v13030_v18, %v18066_v14  ;;  %v9641_v31 = vpop.f32.mrb[47].mxu1 }
 0x5fd   : > { %v9802_v20 = vadd.f32 %v13094_v16, %v18068_v60  ;;  %v13096_v52 = vadd.f32 %v9641_v31, %v18066_v14 }
 0x5fe   : > { %v9836_v39 = vmax.f32 %v9804_v59, 0.0  ;;  %v9805_v7 = vadd.f32 %v13095_v11, %v18068_v60 }
 0x5ff   : > { %v9803_v30 = vadd.f32 %v13096_v52, %v18068_v60  ;;  %v9834_v33 = vmax.f32 %v9802_v20, 0.0 }
 0x600   : > { %v11856_v34 = vpack.c.bf16 %v9836_v39, %v9836_v39  ;;  %v9837_v55 = vmax.f32 %v9805_v7, 0.0 }
 0x601   : > { %v13033_v50 = vpop.f32.mrb[48].mxu1  ;;  %v9835_v19 = vmax.f32 %v9803_v30, 0.0  ;;  %v11854_v46 = vpack.c.bf16 %v9834_v33, %v9834_v33 }
 0x602   : > { %v11857_v22 = vpack.c.bf16 %v9837_v55, %v9837_v55  ;;  %v13097_v62 = vadd.f32 %v13033_v50, %v18066_v14  ;;  %9966 = vrot.lane.b32.xlu0 %v11856_v34, %s14264_s19  ;;  %v9654_v8 = vpop.f32.mrb[49].mxu1 }
 0x603   : > { %v13098_v61 = vadd.f32 %v9654_v8, %v18066_v14  ;;  %v13034_v1 = vpop.f32.mrb[50].mxu1  ;;  %v11855_v57 = vpack.c.bf16 %v9835_v19, %v9835_v19 }
 0x604   : > { %v9808_v47 = vadd.f32 %v13097_v62, %v18068_v60  ;;  %v13099_v4 = vadd.f32 %v13034_v1, %v18066_v14  ;;  %9968 = vrot.lane.b32.xlu1 %v11857_v22, %s14264_s19  ;;  %v9657_v45 = vpop.f32.mrb[51].mxu1 }
 0x605   : > { %v9806_v29 = vadd.f32 %v13098_v61, %v18068_v60  ;;  %v13100_v27 = vadd.f32 %v9657_v45, %v18066_v14 }
 0x606   : > { %v9840_v0 = vmax.f32 %v9808_v47, 0.0  ;;  %v9809_v6 = vadd.f32 %v13099_v4, %v18068_v60  ;;  %9962 = vrot.lane.b32.xlu0 %v11854_v46, %s14264_s19 }
 0x607   : > { %v9807_v5 = vadd.f32 %v13100_v27, %v18068_v60  ;;  %v9838_v21 = vmax.f32 %v9806_v29, 0.0 }
 0x608   : > { %v11860_v3 = vpack.c.bf16 %v9840_v0, %v9840_v0  ;;  %v9841_v37 = vmax.f32 %v9809_v6, 0.0  ;;  %9964 = vrot.lane.b32.xlu1 %v11855_v57, %s14264_s19 }
 0x609   : > { %v13037_v41 = vpop.f32.mrb[52].mxu1  ;;  %v9839_v15 = vmax.f32 %v9807_v5, 0.0  ;;  %v11858_v36 = vpack.c.bf16 %v9838_v21, %v9838_v21 }
 0x60a   : > { %v11861_v13 = vpack.c.bf16 %v9841_v37, %v9841_v37  ;;  %v13101_v49 = vadd.f32 %v13037_v41, %v18066_v14  ;;  %9974 = vrot.lane.b32.xlu0 %v11860_v3, %s14264_s19  ;;  %v9670_v53 = vpop.f32.mrb[53].mxu1 }
 0x60b   : > { %v13102_v44 = vadd.f32 %v9670_v53, %v18066_v14  ;;  %v13038_v17 = vpop.f32.mrb[54].mxu1  ;;  %v11859_v35 = vpack.c.bf16 %v9839_v15, %v9839_v15 }
 0x60c   : > { %v9812_v63 = vadd.f32 %v13101_v49, %v18068_v60  ;;  %v13103_v40 = vadd.f32 %v13038_v17, %v18066_v14  ;;  %9976 = vrot.lane.b32.xlu1 %v11861_v13, %s14264_s19  ;;  %v9673_v9 = vpop.f32.mrb[55].mxu1 }
 0x60d   : > { %v9810_v25 = vadd.f32 %v13102_v44, %v18068_v60  ;;  %v13104_v54 = vadd.f32 %v9673_v9, %v18066_v14 }
 0x60e   : > { %v9844_v42 = vmax.f32 %v9812_v63, 0.0  ;;  %v9813_v58 = vadd.f32 %v13103_v40, %v18068_v60  ;;  %9970 = vrot.lane.b32.xlu0 %v11858_v36, %s14264_s19 }
 0x60f   : > { %v9811_v10 = vadd.f32 %v13104_v54, %v18068_v60  ;;  %v9842_v32 = vmax.f32 %v9810_v25, 0.0 }
 0x610   : > { %v11864_v12 = vpack.c.bf16 %v9844_v42, %v9844_v42  ;;  %v9845_v23 = vmax.f32 %v9813_v58, 0.0  ;;  %9972 = vrot.lane.b32.xlu1 %v11859_v35, %s14264_s19 }
 0x611   : > { %v13041_v26 = vpop.f32.mrb[56].mxu1  ;;  %v9843_v2 = vmax.f32 %v9811_v10, 0.0  ;;  %v11862_v24 = vpack.c.bf16 %v9842_v32, %v9842_v32 }
 0x612   : > { %v11865_v48 = vpack.c.bf16 %v9845_v23, %v9845_v23  ;;  %v13105_v28 = vadd.f32 %v13041_v26, %v18066_v14  ;;  %9982 = vrot.lane.b32.xlu0 %v11864_v12, %s14264_s19  ;;  %v9686_v51 = vpop.f32.mrb[57].mxu1 }
 0x613   : > { %v13106_v38 = vadd.f32 %v9686_v51, %v18066_v14  ;;  %v13042_v56 = vpop.f32.mrb[58].mxu1  ;;  %v11863_v31 = vpack.c.bf16 %v9843_v2, %v9843_v2 }
 0x614   : > { %v9816_v43 = vadd.f32 %v13105_v28, %v18068_v60  ;;  %v13107_v16 = vadd.f32 %v13042_v56, %v18066_v14  ;;  %9984 = vrot.lane.b32.xlu1 %v11865_v48, %s14264_s19  ;;  %v9689_v18 = vpop.f32.mrb[59].mxu1 }
 0x615   : > { %v9814_v59 = vadd.f32 %v13106_v38, %v18068_v60  ;;  %v13108_v11 = vadd.f32 %v9689_v18, %v18066_v14 }
 0x616   : > { %v9848_v20 = vmax.f32 %v9816_v43, 0.0  ;;  %v9817_v52 = vadd.f32 %v13107_v16, %v18068_v60  ;;  %9978 = vrot.lane.b32.xlu0 %v11862_v24, %s14264_s19 }
 0x617   : > { %v9815_v39 = vadd.f32 %v13108_v11, %v18068_v60  ;;  %v9846_v30 = vmax.f32 %v9814_v59, 0.0 }
 0x618   : > { %v11868_v7 = vpack.c.bf16 %v9848_v20, %v9848_v20  ;;  %v9849_v34 = vmax.f32 %v9817_v52, 0.0  ;;  %9980 = vrot.lane.b32.xlu1 %v11863_v31, %s14264_s19 }
 0x619   : > { %v13045_v33 = vpop.f32.mrb[60].mxu1  ;;  %v9847_v50 = vmax.f32 %v9815_v39, 0.0  ;;  %v11866_v61 = vpack.c.bf16 %v9846_v30, %v9846_v30 }
 0x61a   : > { %v11869_v55 = vpack.c.bf16 %v9849_v34, %v9849_v34  ;;  %v13109_v22 = vadd.f32 %v13045_v33, %v18066_v14  ;;  %9990 = vrot.lane.b32.xlu0 %v11868_v7, %s14264_s19  ;;  %v9702_v19 = vpop.f32.mrb[61].mxu1 }
 0x61b   : > { %v13110_v62 = vadd.f32 %v9702_v19, %v18066_v14  ;;  %v13046_v8 = vpop.f32.mrb[62].mxu1  ;;  %v11867_v29 = vpack.c.bf16 %v9847_v50, %v9847_v50 }
 0x61c   : > { %v9820_v1 = vadd.f32 %v13109_v22, %v18068_v60  ;;  %v13111_v46 = vadd.f32 %v13046_v8, %v18066_v14  ;;  %9992 = vrot.lane.b32.xlu1 %v11869_v55, %s14264_s19  ;;  %v9705_v47 = vpop.f32.mrb[63].mxu1 }
 0x61d   : > { %v9818_v4 = vadd.f32 %v13110_v62, %v18068_v60  ;;  %v13112_v45 = vadd.f32 %v9705_v47, %v18066_v14 }
 0x61e   : > { %v9852_v27 = vmax.f32 %v9820_v1, 0.0  ;;  %v9821_v57 = vadd.f32 %v13111_v46, %v18068_v60  ;;  %9986 = vrot.lane.b32.xlu0 %v11866_v61, %s14264_s19 }
 0x61f   : > { %v9819_v0 = vadd.f32 %v13112_v45, %v18068_v60  ;;  %v9850_v5 = vmax.f32 %v9818_v4, 0.0 }
 0x620   : > { %v11872_v6 = vpack.c.bf16 %v9852_v27, %v9852_v27  ;;  %v9853_v3 = vmax.f32 %v9821_v57, 0.0  ;;  %9988 = vrot.lane.b32.xlu1 %v11867_v29, %s14264_s19 }
 0x621   : > { %v13049_v21 = vpop.f32.mrb[64].mxu1  ;;  %v9851_v41 = vmax.f32 %v9819_v0, 0.0  ;;  %v11870_v44 = vpack.c.bf16 %v9850_v5, %v9850_v5 }
 0x622   : > { %v11873_v37 = vpack.c.bf16 %v9853_v3, %v9853_v3  ;;  %v13113_v13 = vadd.f32 %v13049_v21, %v18066_v14  ;;  %9998 = vrot.lane.b32.xlu0 %v11872_v6, %s14264_s19  ;;  %v9718_v15 = vpop.f32.mrb[65].mxu1 }
 0x623   : > { %v13114_v49 = vadd.f32 %v9718_v15, %v18066_v14  ;;  %v13050_v53 = vpop.f32.mrb[66].mxu1  ;;  %v11871_v25 = vpack.c.bf16 %v9851_v41, %v9851_v41 }
 0x624   : > { %v9824_v17 = vadd.f32 %v13113_v13, %v18068_v60  ;;  %v13115_v36 = vadd.f32 %v13050_v53, %v18066_v14  ;;  %10000 = vrot.lane.b32.xlu1 %v11873_v37, %s14264_s19  ;;  %v9721_v63 = vpop.f32.mrb[67].mxu1 }
 0x625   : > { %v9822_v40 = vadd.f32 %v13114_v49, %v18068_v60  ;;  %v13116_v9 = vadd.f32 %v9721_v63, %v18066_v14 }
 0x626   : > { %v9856_v54 = vmax.f32 %v9824_v17, 0.0  ;;  %v9825_v35 = vadd.f32 %v13115_v36, %v18068_v60  ;;  %9994 = vrot.lane.b32.xlu0 %v11870_v44, %s14264_s19 }
 0x627   : > { %v9823_v42 = vadd.f32 %v13116_v9, %v18068_v60  ;;  %v9854_v10 = vmax.f32 %v9822_v40, 0.0 }
 0x628   : > { %v11876_v58 = vpack.c.bf16 %v9856_v54, %v9856_v54  ;;  %v9857_v12 = vmax.f32 %v9825_v35, 0.0  ;;  %9996 = vrot.lane.b32.xlu1 %v11871_v25, %s14264_s19 }
 0x629   : > { %v13053_v32 = vpop.f32.mrb[68].mxu1  ;;  %v9855_v26 = vmax.f32 %v9823_v42, 0.0  ;;  %v11874_v38 = vpack.c.bf16 %v9854_v10, %v9854_v10 }
 0x62a   : > { %v11877_v23 = vpack.c.bf16 %v9857_v12, %v9857_v12  ;;  %v13117_v48 = vadd.f32 %v13053_v32, %v18066_v14  ;;  %10006 = vrot.lane.b32.xlu0 %v11876_v58, %s14264_s19  ;;  %v9734_v2 = vpop.f32.mrb[69].mxu1 }
 0x62b   : > { %v13118_v28 = vadd.f32 %v9734_v2, %v18066_v14  ;;  %v13054_v51 = vpop.f32.mrb[70].mxu1  ;;  %v11875_v59 = vpack.c.bf16 %v9855_v26, %v9855_v26 }
 0x62c   : > { %v9828_v56 = vadd.f32 %v13117_v48, %v18068_v60  ;;  %v13119_v24 = vadd.f32 %v13054_v51, %v18066_v14  ;;  %10008 = vrot.lane.b32.xlu1 %v11877_v23, %s14264_s19  ;;  %v9737_v43 = vpop.f32.mrb[71].mxu1 }
 0x62d   : > { %v9826_v16 = vadd.f32 %v13118_v28, %v18068_v60  ;;  %v13120_v18 = vadd.f32 %v9737_v43, %v18066_v14 }
 0x62e   : > { %v9860_v11 = vmax.f32 %v9828_v56, 0.0  ;;  %v9829_v31 = vadd.f32 %v13119_v24, %v18068_v60  ;;  %10002 = vrot.lane.b32.xlu0 %v11874_v38, %s14264_s19 }
 0x62f   : > { %v9827_v20 = vadd.f32 %v13120_v18, %v18068_v60  ;;  %v9858_v39 = vmax.f32 %v9826_v16, 0.0 }
 0x630   : > { %v11880_v52 = vpack.c.bf16 %v9860_v11, %v9860_v11  ;;  %v9861_v7 = vmax.f32 %v9829_v31, 0.0  ;;  %10004 = vrot.lane.b32.xlu1 %v11875_v59, %s14264_s19 }
 0x631   : > { %v13057_v30 = vpop.f32.mrb[72].mxu1  ;;  %v9859_v33 = vmax.f32 %v9827_v20, 0.0  ;;  %v11878_v62 = vpack.c.bf16 %v9858_v39, %v9858_v39 }
 0x632   : > { %v11881_v34 = vpack.c.bf16 %v9861_v7, %v9861_v7  ;;  %v13121_v55 = vadd.f32 %v13057_v30, %v18066_v14  ;;  %10014 = vrot.lane.b32.xlu0 %v11880_v52, %s14264_s19  ;;  %v9750_v50 = vpop.f32.mrb[73].mxu1 }
 0x633   : > { %v13122_v22 = vadd.f32 %v9750_v50, %v18066_v14  ;;  %v13058_v19 = vpop.f32.mrb[74].mxu1  ;;  %v11879_v4 = vpack.c.bf16 %v9859_v33, %v9859_v33 }
 0x634   : > { %v13123_v8 = vadd.f32 %v13058_v19, %v18066_v14  ;;  %10016 = vrot.lane.b32.xlu1 %v11881_v34, %s14264_s19  ;;  %v9753_v61 = vpop.f32.mrb[75].mxu1  ;;  %v9832_v1 = vadd.f32 %v13121_v55, %v18068_v60 }
 0x635   : > { %v9830_v46 = vadd.f32 %v13122_v22, %v18068_v60  ;;  %v13124_v47 = vadd.f32 %v9753_v61, %v18066_v14 }
 0x636   : > { %10010 = vrot.lane.b32.xlu0 %v11878_v62, %s14264_s19  ;;  %v9833_v29 = vadd.f32 %v13123_v8, %v18068_v60  ;;  %v9864_v14 = vmax.f32 %v9832_v1, 0.0 }
 0x637   : > { %v9862_v45 = vmax.f32 %v9830_v46, 0.0  ;;  %v9831_v27 = vadd.f32 %v13124_v47, %v18068_v60 }
 0x638   : > { %10012 = vrot.lane.b32.xlu1 %v11879_v4, %s14264_s19 }
 0x639   : > { %v11882_v57 = vpack.c.bf16 %v9862_v45, %v9862_v45  ;;  %v9863_v0 = vmax.f32 %v9831_v27, 0.0 }
 0x63a   : > { %14149 = shalt.err (!%p14146_p8)
}
 0x63b   : > { %s14150_s23 = scalar_lea.hbm %s18165_s9, 16  ;;  %s14154_s10 = scalar_lea.hbm %s18323_s8, 32 }
 0x63c   : > { %p14151_p13 = scmp.ne.s32.totalorder %s18165_s9, %s14150_s23  ;;  %p14155_p9 = scmp.lt.u32.totalorder %s18165_s9, %s18323_s8 }
 0x63d   : > { %p14156_p6 = scmp.lt.u32.totalorder %s14154_s10, %s14150_s23  ;;  %p14158_p10 = scmp.lt.u32.totalorder %s14150_s23, %s18165_s9 }
 0x63e   : > { %p14152_p0 = pnand %p14151_p13, %p18666_p12 }
 0x63f   : > { %p14157_p11 = por %p14156_p6, %p14155_p9 }
 0x640   : > { %p14153_p2 = pneg %p14152_p0 }
 0x641   : > { %p14159_p5 = por %p14158_p10, %p14157_p11 }
 0x643   : > { %p14160_p7 = pnand %p14159_p5, %p14153_p2 }
 0x645   : > { %14163 = shalt.err (!%p14160_p7)
}
 0x646   : > { %13719 = dma.vmem_to_hbm [thread:$0]  (%p18666_p12), %s18170_s25, 16, %s18165_s9, %s10097_s24   ;;  %v9865_v60 = vmax.f32 %v9833_v29, 0.0  ;;  %v11883_v6 = vpack.c.bf16 %v9863_v0, %v9863_v0  ;;  %10018 = vrot.lane.b32.xlu0 %v11882_v57, %s14264_s19  ;;  %v11884_v5 = vpack.c.bf16 %v9864_v14, %v9864_v14  ;;  %vm10058_vm0 = vcmask 1044224  }
 0x647   : > { %s10109_s9 = sshll.u32 %s15977_s3, 4  ;;  %s14266_s23 = smov [#allocation14]   ;;  %s18267_s9 = int_to_ptr.vmem [resolvable:$true] %s10109_s9 }
 0x648   : > { %10020 = vrot.lane.b32.xlu1 %v11883_v6, %s14264_s19  ;;  %v11885_v3 = vpack.c.bf16 %v9865_v60, %v9865_v60  ;;  %s14164_s22 = scalar_lea.vmem %s18267_s9, 2048  ;;  %s14168_s18 = sshll.u32 %s14266_s23, 4  ;;  %s14169_s18 = int_to_ptr.vmem [resolvable:$false] %s14168_s18 }
 0x649   : > { %p14165_p4 = scmp.ne.s32.totalorder %s18267_s9, %s14164_s22  ;;  %s14170_s17 = scalar_lea.vmem %s14169_s18, 4096 }
 0x64a   : > { %10022 = vrot.lane.b32.xlu0 %v11884_v5, %s14264_s19  ;;  %p14171_p8 = scmp.lt.s32.totalorder %s18267_s9, %s14169_s18  ;;  %p14172_p13 = scmp.lt.s32.totalorder %s14170_s17, %s14164_s22 }
 0x64b   : > { %p14166_p1 = pnand %p14165_p4, %p18666_p12 }
 0x64c   : > { %10024 = vrot.lane.b32.xlu1 %v11885_v3, %s14264_s19  ;;  %s11886_s19 = sshll.u32 %s14334_s11, 11  ;;  %s10092_s11 = scalar_lea.sflag [#allocation4], %s14567_s20 }
 0x64d   : > { %s18263_s21 = scalar_lea.hbm %s18322_s7, %s11886_s19  ;;  %p14167_p3 = pneg %p14166_p1 }
 0x64e   : > { %p14173_p0 = por %p14172_p13, %p14171_p8 }
 0x650   : > { %p14174_p2 = pnand %p14173_p0, %p14167_p3 }
 0x674   : > { %v9967_v21 = vpop.permute.xlu0 %9966 }
 0x675   : > { %10061 = vst.msk [vmem:[%s15977_s3 + $0x8] sm:$0xf] %vm10058_vm0, %v9967_v21 }
 0x676   : > { %v9969_v37 = vpop.permute.xlu1 %9968 }
 0x677   : > { %10062 = vst.msk [vmem:[%s15977_s3 + $0xc] sm:$0xf] %vm10058_vm0, %v9969_v37 }
 0x678   : > { %v9963_v41 = vpop.permute.xlu0 %9962 }
 0x679   : > { %10059 = vst.msk [vmem:[%s15977_s3] sm:$0xf] %vm10058_vm0, %v9963_v41 }
 0x67a   : > { %v9965_v13 = vpop.permute.xlu1 %9964 }
 0x67b   : > { %10060 = vst.msk [vmem:[%s15977_s3 + $0x4] sm:$0xf] %vm10058_vm0, %v9965_v13 }
 0x67c   : > { %v9975_v15 = vpop.permute.xlu0 %9974 }
 0x67d   : > { %10065 = vst.msk [vmem:[%s15977_s3 + $0x18] sm:$0xf] %vm10058_vm0, %v9975_v15 }
 0x67e   : > { %v9977_v49 = vpop.permute.xlu1 %9976 }
 0x67f   : > { %10066 = vst.msk [vmem:[%s15977_s3 + $0x1c] sm:$0xf] %vm10058_vm0, %v9977_v49 }
 0x680   : > { %v9971_v53 = vpop.permute.xlu0 %9970 }
 0x681   : > { %10063 = vst.msk [vmem:[%s15977_s3 + $0x10] sm:$0xf] %vm10058_vm0, %v9971_v53 }
 0x682   : > { %v9973_v44 = vpop.permute.xlu1 %9972 }
 0x683   : > { %10064 = vst.msk [vmem:[%s15977_s3 + $0x14] sm:$0xf] %vm10058_vm0, %v9973_v44 }
 0x684   : > { %v9983_v17 = vpop.permute.xlu0 %9982 }
 0x685   : > { %10069 = vst.msk [vmem:[%s15977_s3 + $0x28] sm:$0xf] %vm10058_vm0, %v9983_v17 }
 0x686   : > { %v9985_v36 = vpop.permute.xlu1 %9984 }
 0x687   : > { %10070 = vst.msk [vmem:[%s15977_s3 + $0x2c] sm:$0xf] %vm10058_vm0, %v9985_v36 }
 0x688   : > { %v9979_v63 = vpop.permute.xlu0 %9978 }
 0x689   : > { %10067 = vst.msk [vmem:[%s15977_s3 + $0x20] sm:$0xf] %vm10058_vm0, %v9979_v63 }
 0x68a   : > { %v9981_v40 = vpop.permute.xlu1 %9980 }
 0x68b   : > { %10068 = vst.msk [vmem:[%s15977_s3 + $0x24] sm:$0xf] %vm10058_vm0, %v9981_v40 }
 0x68c   : > { %v9991_v9 = vpop.permute.xlu0 %9990 }
 0x68d   : > { %10073 = vst.msk [vmem:[%s15977_s3 + $0x38] sm:$0xf] %vm10058_vm0, %v9991_v9 }
 0x68e   : > { %v9993_v25 = vpop.permute.xlu1 %9992 }
 0x68f   : > { %10074 = vst.msk [vmem:[%s15977_s3 + $0x3c] sm:$0xf] %vm10058_vm0, %v9993_v25 }
 0x690   : > { %v9987_v54 = vpop.permute.xlu0 %9986 }
 0x691   : > { %10071 = vst.msk [vmem:[%s15977_s3 + $0x30] sm:$0xf] %vm10058_vm0, %v9987_v54 }
 0x692   : > { %v9989_v35 = vpop.permute.xlu1 %9988 }
 0x693   : > { %10072 = vst.msk [vmem:[%s15977_s3 + $0x34] sm:$0xf] %vm10058_vm0, %v9989_v35 }
 0x694   : > { %v9999_v42 = vpop.permute.xlu0 %9998 }
 0x695   : > { %10077 = vst.msk [vmem:[%s15977_s3 + $0x48] sm:$0xf] %vm10058_vm0, %v9999_v42 }
 0x696   : > { %v10001_v58 = vpop.permute.xlu1 %10000 }
 0x697   : > { %10078 = vst.msk [vmem:[%s15977_s3 + $0x4c] sm:$0xf] %vm10058_vm0, %v10001_v58 }
 0x698   : > { %v9995_v10 = vpop.permute.xlu0 %9994 }
 0x699   : > { %10075 = vst.msk [vmem:[%s15977_s3 + $0x40] sm:$0xf] %vm10058_vm0, %v9995_v10 }
 0x69a   : > { %v9997_v12 = vpop.permute.xlu1 %9996 }
 0x69b   : > { %10076 = vst.msk [vmem:[%s15977_s3 + $0x44] sm:$0xf] %vm10058_vm0, %v9997_v12 }
 0x69c   : > { %v10007_v32 = vpop.permute.xlu0 %10006 }
 0x69d   : > { %10081 = vst.msk [vmem:[%s15977_s3 + $0x58] sm:$0xf] %vm10058_vm0, %v10007_v32 }
 0x69e   : > { %v10009_v23 = vpop.permute.xlu1 %10008 }
 0x69f   : > { %10082 = vst.msk [vmem:[%s15977_s3 + $0x5c] sm:$0xf] %vm10058_vm0, %v10009_v23 }
 0x6a0   : > { %v10003_v26 = vpop.permute.xlu0 %10002 }
 0x6a1   : > { %10079 = vst.msk [vmem:[%s15977_s3 + $0x50] sm:$0xf] %vm10058_vm0, %v10003_v26 }
 0x6a2   : > { %v10005_v48 = vpop.permute.xlu1 %10004 }
 0x6a3   : > { %10080 = vst.msk [vmem:[%s15977_s3 + $0x54] sm:$0xf] %vm10058_vm0, %v10005_v48 }
 0x6a4   : > { %v10015_v2 = vpop.permute.xlu0 %10014 }
 0x6a5   : > { %10085 = vst.msk [vmem:[%s15977_s3 + $0x68] sm:$0xf] %vm10058_vm0, %v10015_v2 }
 0x6a6   : > { %v10017_v28 = vpop.permute.xlu1 %10016 }
 0x6a7   : > { %10086 = vst.msk [vmem:[%s15977_s3 + $0x6c] sm:$0xf] %vm10058_vm0, %v10017_v28 }
 0x6a8   : > { %v10011_v51 = vpop.permute.xlu0 %10010 }
 0x6a9   : > { %10083 = vst.msk [vmem:[%s15977_s3 + $0x60] sm:$0xf] %vm10058_vm0, %v10011_v51 }
 0x6aa   : > { %v10013_v38 = vpop.permute.xlu1 %10012 }
 0x6ab   : > { %10084 = vst.msk [vmem:[%s15977_s3 + $0x64] sm:$0xf] %vm10058_vm0, %v10013_v38 }
 0x6b8   : > { %v10019_v56 = vpop.permute.xlu0 %10018 }
 0x6b9   : > { %10087 = vst.msk [vmem:[%s15977_s3 + $0x70] sm:$0xf] %vm10058_vm0, %v10019_v56 }
 0x6ba   : > { %v10021_v24 = vpop.permute.xlu1 %10020 }
 0x6bb   : > { %10088 = vst.msk [vmem:[%s15977_s3 + $0x74] sm:$0xf] %vm10058_vm0, %v10021_v24 }
 0x6bc   : > { %v10023_v43 = vpop.permute.xlu0 %10022 }
 0x6bd   : > { %10089 = vst.msk [vmem:[%s15977_s3 + $0x78] sm:$0xf] %vm10058_vm0, %v10023_v43 }
 0x6be   : > { %v10025_v16 = vpop.permute.xlu1 %10024 }
 0x6bf   : > { %10090 = vst.msk [vmem:[%s15977_s3 + $0x7c] sm:$0xf] %vm10058_vm0, %v10025_v16 }
 0x6c0   : > { %14177 = shalt.err (!%p14174_p2)
}
 0x6c1   : > { %s14178_s3 = scalar_lea.hbm %s18263_s21, 2048  ;;  %s14182_s12 = scalar_lea.hbm %s18322_s7, 4096 }
 0x6c2   : > { %p14179_p9 = scmp.ne.s32.totalorder %s18263_s21, %s14178_s3  ;;  %p14183_p10 = scmp.lt.u32.totalorder %s18263_s21, %s18322_s7 }
 0x6c3   : > { %p14184_p5 = scmp.lt.u32.totalorder %s14182_s12, %s14178_s3  ;;  %p14186_p4 = scmp.lt.u32.totalorder %s14178_s3, %s18263_s21 }
 0x6c4   : > { %p14180_p6 = pnand %p14179_p9, %p18666_p12 }
 0x6c5   : > { %p14185_p7 = por %p14184_p5, %p14183_p10 }
 0x6c6   : > { %p14181_p11 = pneg %p14180_p6 }
 0x6c7   : > { %p14187_p1 = por %p14186_p4, %p14185_p7 }
 0x6c9   : > { %p14188_p3 = pnand %p14187_p1, %p14181_p11 }
 0x6cb   : > { %14191 = shalt.err (!%p14188_p3)
}
 0x6cc   : > { %s14267_s24 = smov 4  }
 0x6cd   : > { %13718 = dma.vmem_to_hbm [thread:$0]  (%p18666_p12), %s18267_s9, 2048, %s18263_s21, %s10092_s11, %s14263_s14, %s14263_s14, %s14267_s24  }
 0x6ce PF: > { %s10137_s22 = sand.u32 1, %s14234_s27   ;;  %p18667_p8 = scmp.ne.s32.totalorder %s18412_s16, 0 }
 0x6cf   : > { %p18668_p13 = scmp.ge.s32.totalorder %s14246_s30, 2  ;;  %s10138_s23 = scalar_lea.sflag [#allocation4], %s10137_s22 }
 0x6d1   : > { %p13746_p0 = pnand %p18668_p13, %p18667_p8 }
 0x6d3   : > { %14225 = dma.done.wait (!%p13746_p0), %s10138_s23, 2048  }
 0x6d4   : > { %14227 = vsyncadd (!%p13746_p0), %s10138_s23, 4294965248  ;;  %s10147_s18 = scalar_lea.sflag [#allocation16], %s10137_s22 }
 0x6d5   : > { %14229 = dma.done.wait (!%p13746_p0), %s10147_s18, 16  }
 0x6d6   : > { %14231 = vsyncadd (!%p13746_p0), %s10147_s18, 4294967280  ;;  %p28_p12 = scmp.ge.s32.totalorder %s14491_s15, 4   ;;  %s18669_s27 = smov %s14238_s28 }
 0x6d7   : > { %s18670_s28 = smov %s14242_s29  ;;  %s18671_s29 = smov %s14502_s26 }
 0x6d8   : > { %s18672_s30 = smov %s14491_s15  ;;  %30 = sbr.rel (!%p28_p12) target bundleno = 13 (0xd), region = 157 }
 0x6df   :  { %10151 = vsyncpa [#allocation3], 1 }
 0x6e0   :  { %10153 = vsyncpa [#allocation3 + $0x1], 1 }
 0x6e1   :  { %10154 = vsyncpa [#allocation6], 1 }
 0x6e2   :  { %10155 = vsyncpa [#allocation9], 1 }
 0x6e3   :  { %10156 = vsyncpa [#allocation12], 1 }
 0x6e4   :  { %10157 = vsyncpa [#allocation4], 1 }
 0x6e5   :  { %10159 = vsyncpa [#allocation4 + $0x1], 1 }
 0x6e6   :  { %10160 = vsyncpa [#allocation16], 1 }
 0x6e7   :  { %10162 = vsyncpa [#allocation16 + $0x1], 1 }

</bundles_post_ra>
